<compile_context>
chip_gen: v7x
topology: tpu7x:2x2x1
jax: 0.10.0
libtpu: 0.0.40
codegen_flags: <defaults>
</compile_context>

<pallas_src>
import functools

import jax
import jax.numpy as jnp
from jax import lax
from jax.experimental import pallas as pl
from jax.experimental.pallas import tpu as pltpu


# ---------------------------------------------------------------------------
# Kernel 1: fused 3x3 conv (pad=1, stride=1) + bias + ReLU + 2x2 max-pool.
# One grid step == one image.
# ---------------------------------------------------------------------------
def _conv_relu_pool_kernel(xe_ref, xo_ref, w_ref, b_ref, o_ref,
                           *, H, Wh, cin, cout):
    # xe_ref / xo_ref: [1, R, cin]   even / odd padded-input columns,
    #                                flattened as row = h_in * Wh + col_idx
    # w_ref:           [9, cin, cout]  tap-major (t = dy*3 + dx)
    # b_ref:           [1, cout]
    # o_ref:           [1, (H-1)*Wh, cout]
    M = H * Wh                       # conv output rows (flat h*Wh + pooled-col)
    xe = xe_ref[0]                   # [R, cin]
    xo = xo_ref[0]                   # [R, cin]

    # (source plane, extra column shift) for each kernel column dx, for
    # even-parity (b=0) and odd-parity (b=1) output columns.
    tap_src = (
        ((xe, 0), (xo, 0), (xe, 1)),     # output col = 2*pw
        ((xo, 0), (xe, 1), (xo, 1)),     # output col = 2*pw + 1
    )

    accs = []
    for parity in range(2):
        acc = jnp.zeros((M, cout), jnp.float32)
        for dy in range(3):
            for dx in range(3):
                src, s = tap_src[parity][dx]
                start = dy * Wh + s                      # static offset
                patch = src[start:start + M, :]          # [M, cin] contiguous
                w_t = w_ref[dy * 3 + dx]                 # [cin, cout]
                if cin == 1:
                    # Cin=1: VPU broadcast FMA instead of a degenerate matmul.
                    acc = acc + patch * w_t
                else:
                    acc = acc + jnp.dot(
                        patch, w_t, preferred_element_type=jnp.float32)
        accs.append(acc)

    # Horizontal (W) pooling: max over the two column-parity accumulators,
    # then bias + ReLU (commutes with the max since the bias is shared).
    z = jnp.maximum(jnp.maximum(accs[0], accs[1]) + b_ref[...], 0.0)  # [M, cout]
    # Vertical (H) pooling: row h vs row h+1 == flat row m vs m + Wh.
    pooled = jnp.maximum(z[:M - Wh, :], z[Wh:, :])       # [(H-1)*Wh, cout]
    o_ref[0] = pooled.astype(o_ref.dtype)


def conv3x3_relu_pool(x_nhwc, w_oihw, b):
    """relu(conv3x3_pad1(x) + b), 2x2/2 max-pooled.  NHWC in / NHWC out."""
    B, H, W, Cin = x_nhwc.shape
    Cout = w_oihw.shape[0]
    Hp, Wp = H + 2, W + 2
    Wh = Wp // 2                       # columns per parity plane
    M = H * Wh
    Mout = (H - 1) * Wh
    R = Hp * Wh + Wh                   # + slack rows so all tap slices are in-bounds

    # Host glue (cheap, XLA-fused): pad, split columns by parity, flatten 2D.
    xp = jnp.pad(x_nhwc.astype(jnp.float32), ((0, 0), (1, 1), (1, 1), (0, 0)))
    xe = xp[:, :, 0::2, :].reshape(B, Hp * Wh, Cin)
    xo = xp[:, :, 1::2, :].reshape(B, Hp * Wh, Cin)
    pad_rows = R - Hp * Wh
    xe = jnp.pad(xe, ((0, 0), (0, pad_rows), (0, 0)))
    xo = jnp.pad(xo, ((0, 0), (0, pad_rows), (0, 0)))

    # [Cout, Cin, 3, 3] -> [9, Cin, Cout], tap-major (dy, dx).
    w_taps = jnp.transpose(w_oihw, (2, 3, 1, 0)).reshape(9, Cin, Cout)
    w_taps = w_taps.astype(jnp.float32)
    b2d = b.reshape(1, Cout).astype(jnp.float32)

    kern = functools.partial(_conv_relu_pool_kernel,
                             H=H, Wh=Wh, cin=Cin, cout=Cout)
    out = pl.pallas_call(
        kern,
        out_shape=jax.ShapeDtypeStruct((B, Mout, Cout), jnp.float32),
        grid=(B,),
        in_specs=[
            pl.BlockSpec((1, R, Cin), lambda i: (i, 0, 0)),
            pl.BlockSpec((1, R, Cin), lambda i: (i, 0, 0)),
            pl.BlockSpec((9, Cin, Cout), lambda i: (0, 0, 0)),   # resident
            pl.BlockSpec((1, Cout), lambda i: (0, 0)),           # resident
        ],
        out_specs=pl.BlockSpec((1, Mout, Cout), lambda i: (i, 0, 0)),
        compiler_params=pltpu.CompilerParams(
            dimension_semantics=("parallel",)),
    )(xe, xo, w_taps, b2d)

    # Extract the valid pooled pixels: flat row = 2*ph*Wh + pw.
    out = out.reshape(B, H - 1, Wh, Cout)[:, 0::2, : W // 2, :]
    return out                                           # [B, H//2, W//2, Cout]


# ---------------------------------------------------------------------------
# Kernel 2: fused fc1 + ReLU + fc2 (hidden activation stays in VMEM).
# ---------------------------------------------------------------------------
def _fc_fused_kernel(x_ref, w1_ref, b1_ref, w2_ref, b2_ref, o_ref):
    h = jnp.dot(x_ref[...], w1_ref[...], preferred_element_type=jnp.float32)
    h = jnp.maximum(h + b1_ref[...], 0.0)
    o = jnp.dot(h, w2_ref[...], preferred_element_type=jnp.float32) + b2_ref[...]
    o_ref[...] = o.astype(o_ref.dtype)


def fc_relu_fc(x, w1, b1, w2, b2, n_out):
    """(relu(x @ w1 + b1)) @ w2 + b2 ; w2/b2 pre-padded to lane-dense N."""
    B, K = x.shape
    Hd = w1.shape[1]
    Np = w2.shape[1]
    TB = B if B <= 256 else 256        # keeps blocks comfortably inside VMEM
    out = pl.pallas_call(
        _fc_fused_kernel,
        out_shape=jax.ShapeDtypeStruct((B, Np), jnp.float32),
        grid=(pl.cdiv(B, TB),),
        in_specs=[
            pl.BlockSpec((TB, K), lambda i: (i, 0)),
            pl.BlockSpec((K, Hd), lambda i: (0, 0)),     # resident
            pl.BlockSpec((1, Hd), lambda i: (0, 0)),     # resident
            pl.BlockSpec((Hd, Np), lambda i: (0, 0)),    # resident
            pl.BlockSpec((1, Np), lambda i: (0, 0)),     # resident
        ],
        out_specs=pl.BlockSpec((TB, Np), lambda i: (i, 0)),
        compiler_params=pltpu.CompilerParams(
            dimension_semantics=("parallel",)),
    )(x, w1, b1, w2, b2)
    return out[:, :n_out]


# ---------------------------------------------------------------------------
# Full forward pass
# ---------------------------------------------------------------------------
def cnn_forward(params, x_nchw):
    B = x_nchw.shape[0]
    x = jnp.transpose(x_nchw, (0, 2, 3, 1)).astype(jnp.float32)  # NHWC [B,28,28,1]

    y1 = conv3x3_relu_pool(x, params["conv1_w"], params["conv1_b"])   # [B,14,14,32]
    y2 = conv3x3_relu_pool(y1, params["conv2_w"], params["conv2_b"])  # [B,7,7,64]

    # NHWC flatten (free); PyTorch's NCHW view(-1, 64*7*7) is folded into a
    # one-time permutation of fc1's weight columns instead of transposing y2.
    flat = y2.reshape(B, 7 * 7 * 64)
    w1p = jnp.transpose(params["fc1_w"].reshape(128, 64, 7, 7),
                        (0, 2, 3, 1)).reshape(128, 64 * 7 * 7).T      # [3136,128]
    w1p = w1p.astype(jnp.float32)
    b1 = params["fc1_b"].reshape(1, 128).astype(jnp.float32)

    # Pad fc2 output to a lane-dense N=128 (zero columns), slice back outside.
    w2p = jnp.pad(params["fc2_w"].T, ((0, 0), (0, 128 - 10))).astype(jnp.float32)
    b2p = jnp.pad(params["fc2_b"], (0, 128 - 10)).reshape(1, 128).astype(jnp.float32)

    return fc_relu_fc(flat, w1p, b1, w2p, b2p, n_out=10)              # [B, 10]


# ---------------------------------------------------------------------------
# Pure-JAX reference (for correctness checking only)
# ---------------------------------------------------------------------------
def cnn_forward_ref(params, x_nchw):
    def conv(x, w, b):
        y = lax.conv_general_dilated(
            x, w, window_strides=(1, 1), padding=((1, 1), (1, 1)),
            dimension_numbers=("NCHW", "OIHW", "NCHW"))
        return y + b.reshape(1, -1, 1, 1)

    def pool(x):
        return lax.reduce_window(x, -jnp.inf, lax.max,
                                 (1, 1, 2, 2), (1, 1, 2, 2), "VALID")

    x = jnp.maximum(conv(x_nchw, params["conv1_w"], params["conv1_b"]), 0.0)
    x = pool(x)
    x = jnp.maximum(conv(x, params["conv2_w"], params["conv2_b"]), 0.0)
    x = pool(x)
    x = x.reshape(x.shape[0], 64 * 7 * 7)
    x = jnp.maximum(x @ params["fc1_w"].T + params["fc1_b"], 0.0)
    return x @ params["fc2_w"].T + params["fc2_b"]


# ---------------------------------------------------------------------------
# Deterministic parameter init (PyTorch module shapes)
# ---------------------------------------------------------------------------
def init_params(key):
    ks = jax.random.split(key, 8)
    s = 0.05
    return {
        "conv1_w": s * jax.random.normal(ks[0], (32, 1, 3, 3), jnp.float32),
        "conv1_b": s * jax.random.normal(ks[1], (32,), jnp.float32),
        "conv2_w": s * jax.random.normal(ks[2], (64, 32, 3, 3), jnp.float32),
        "conv2_b": s * jax.random.normal(ks[3], (64,), jnp.float32),
        "fc1_w": s * jax.random.normal(ks[4], (128, 64 * 7 * 7), jnp.float32),
        "fc1_b": s * jax.random.normal(ks[5], (128,), jnp.float32),
        "fc2_w": s * jax.random.normal(ks[6], (10, 128), jnp.float32),
        "fc2_b": s * jax.random.normal(ks[7], (10,), jnp.float32),
    }


if __name__ == "__main__":
    key = jax.random.PRNGKey(0)
    pkey, xkey = jax.random.split(key)
    params = init_params(pkey)

    # Spatial size must be 28 (fc1 expects 64*7*7 features after two 2x2 pools).
    x = jax.random.normal(xkey, (2, 1, 28, 28), jnp.float32)

    out = jax.jit(cnn_forward)(params, x)
    out = jax.block_until_ready(out)
    assert out.shape == (2, 10), out.shape
    assert bool(jnp.all(jnp.isfinite(out)))

    ref = jax.block_until_ready(jax.jit(cnn_forward_ref)(params, x))
    assert bool(jnp.allclose(out, ref, rtol=2e-2, atol=2e-2)), (
        "Pallas output mismatch vs reference")

    print("KERNEL_OK")
</pallas_src>

<mosaic_0001>
module attributes {stable_mosaic.version = 11 : i64} {
  func.func @_conv_relu_pool_kernel(%arg0: i32, %arg1: memref<1x465x1xf32, #tpu.memory_space<vmem>>, %arg2: memref<1x465x1xf32, #tpu.memory_space<vmem>>, %arg3: memref<9x1x32xf32, #tpu.memory_space<vmem>>, %arg4: memref<1x32xf32, #tpu.memory_space<vmem>>, %arg5: memref<1x405x32xf32, #tpu.memory_space<vmem>>) attributes {dimension_semantics = [#tpu.dimension_semantics<parallel>], iteration_bounds = array<i64: 2>, scalar_prefetch = 0 : i64, scratch_operands = 0 : i64, tpu.core_type = #tpu.core_type<tc>, window_params = [{transform_indices = @transform_0, window_bounds = array<i64: 1, 465, 1>}, {transform_indices = @transform_1, window_bounds = array<i64: 1, 465, 1>}, {pipeline_mode = #tpu.pipeline_mode<synchronous>, transform_indices = @transform_2, window_bounds = array<i64: 9, 1, 32>}, {pipeline_mode = #tpu.pipeline_mode<synchronous>, transform_indices = @transform_3, window_bounds = array<i64: 1, 32>}, {transform_indices = @transform_4, window_bounds = array<i64: 1, 405, 32>}]} {
    %c0 = arith.constant 0 : index
    %c0_0 = arith.constant 0 : index
    %c0_1 = arith.constant 0 : index
    %0 = vector.load %arg1[%c0, %c0_0, %c0_1] : memref<1x465x1xf32, #tpu.memory_space<vmem>>, vector<1x465x1xf32>
    %1 = vector.shape_cast %0 : vector<1x465x1xf32> to vector<465x1xf32>
    %c0_2 = arith.constant 0 : index
    %c0_3 = arith.constant 0 : index
    %c0_4 = arith.constant 0 : index
    %2 = vector.load %arg2[%c0_2, %c0_3, %c0_4] : memref<1x465x1xf32, #tpu.memory_space<vmem>>, vector<1x465x1xf32>
    %3 = vector.shape_cast %2 : vector<1x465x1xf32> to vector<465x1xf32>
    %cst = arith.constant 0.000000e+00 : f32
    %4 = vector.broadcast %cst : f32 to vector<420x32xf32>
    %5 = vector.extract_strided_slice %1 {offsets = [0, 0], sizes = [420, 1], strides = [1, 1]} : vector<465x1xf32> to vector<420x1xf32>
    %c0_5 = arith.constant 0 : index
    %c0_6 = arith.constant 0 : index
    %c0_7 = arith.constant 0 : index
    %6 = vector.load %arg3[%c0_5, %c0_6, %c0_7] : memref<9x1x32xf32, #tpu.memory_space<vmem>>, vector<1x1x32xf32>
    %7 = vector.shape_cast %6 : vector<1x1x32xf32> to vector<1x32xf32>
    %8 = vector.broadcast %5 : vector<420x1xf32> to vector<420x32xf32>
    %9 = vector.broadcast %7 : vector<1x32xf32> to vector<420x32xf32>
    %10 = arith.mulf %8, %9 : vector<420x32xf32>
    %11 = arith.addf %4, %10 : vector<420x32xf32>
    %12 = vector.extract_strided_slice %3 {offsets = [0, 0], sizes = [420, 1], strides = [1, 1]} : vector<465x1xf32> to vector<420x1xf32>
    %c1 = arith.constant 1 : index
    %c0_8 = arith.constant 0 : index
    %c0_9 = arith.constant 0 : index
    %13 = vector.load %arg3[%c1, %c0_8, %c0_9] : memref<9x1x32xf32, #tpu.memory_space<vmem>>, vector<1x1x32xf32>
    %14 = vector.shape_cast %13 : vector<1x1x32xf32> to vector<1x32xf32>
    %15 = vector.broadcast %12 : vector<420x1xf32> to vector<420x32xf32>
    %16 = vector.broadcast %14 : vector<1x32xf32> to vector<420x32xf32>
    %17 = arith.mulf %15, %16 : vector<420x32xf32>
    %18 = arith.addf %11, %17 : vector<420x32xf32>
    %19 = vector.extract_strided_slice %1 {offsets = [1, 0], sizes = [420, 1], strides = [1, 1]} : vector<465x1xf32> to vector<420x1xf32>
    %c2 = arith.constant 2 : index
    %c0_10 = arith.constant 0 : index
    %c0_11 = arith.constant 0 : index
    %20 = vector.load %arg3[%c2, %c0_10, %c0_11] : memref<9x1x32xf32, #tpu.memory_space<vmem>>, vector<1x1x32xf32>
    %21 = vector.shape_cast %20 : vector<1x1x32xf32> to vector<1x32xf32>
    %22 = vector.broadcast %19 : vector<420x1xf32> to vector<420x32xf32>
    %23 = vector.broadcast %21 : vector<1x32xf32> to vector<420x32xf32>
    %24 = arith.mulf %22, %23 : vector<420x32xf32>
    %25 = arith.addf %18, %24 : vector<420x32xf32>
    %26 = vector.extract_strided_slice %1 {offsets = [15, 0], sizes = [420, 1], strides = [1, 1]} : vector<465x1xf32> to vector<420x1xf32>
    %c3 = arith.constant 3 : index
    %c0_12 = arith.constant 0 : index
    %c0_13 = arith.constant 0 : index
    %27 = vector.load %arg3[%c3, %c0_12, %c0_13] : memref<9x1x32xf32, #tpu.memory_space<vmem>>, vector<1x1x32xf32>
    %28 = vector.shape_cast %27 : vector<1x1x32xf32> to vector<1x32xf32>
    %29 = vector.broadcast %26 : vector<420x1xf32> to vector<420x32xf32>
    %30 = vector.broadcast %28 : vector<1x32xf32> to vector<420x32xf32>
    %31 = arith.mulf %29, %30 : vector<420x32xf32>
    %32 = arith.addf %25, %31 : vector<420x32xf32>
    %33 = vector.extract_strided_slice %3 {offsets = [15, 0], sizes = [420, 1], strides = [1, 1]} : vector<465x1xf32> to vector<420x1xf32>
    %c4 = arith.constant 4 : index
    %c0_14 = arith.constant 0 : index
    %c0_15 = arith.constant 0 : index
    %34 = vector.load %arg3[%c4, %c0_14, %c0_15] : memref<9x1x32xf32, #tpu.memory_space<vmem>>, vector<1x1x32xf32>
    %35 = vector.shape_cast %34 : vector<1x1x32xf32> to vector<1x32xf32>
    %36 = vector.broadcast %33 : vector<420x1xf32> to vector<420x32xf32>
    %37 = vector.broadcast %35 : vector<1x32xf32> to vector<420x32xf32>
    %38 = arith.mulf %36, %37 : vector<420x32xf32>
    %39 = arith.addf %32, %38 : vector<420x32xf32>
    %40 = vector.extract_strided_slice %1 {offsets = [16, 0], sizes = [420, 1], strides = [1, 1]} : vector<465x1xf32> to vector<420x1xf32>
    %c5 = arith.constant 5 : index
    %c0_16 = arith.constant 0 : index
    %c0_17 = arith.constant 0 : index
    %41 = vector.load %arg3[%c5, %c0_16, %c0_17] : memref<9x1x32xf32, #tpu.memory_space<vmem>>, vector<1x1x32xf32>
    %42 = vector.shape_cast %41 : vector<1x1x32xf32> to vector<1x32xf32>
    %43 = vector.broadcast %40 : vector<420x1xf32> to vector<420x32xf32>
    %44 = vector.broadcast %42 : vector<1x32xf32> to vector<420x32xf32>
    %45 = arith.mulf %43, %44 : vector<420x32xf32>
    %46 = arith.addf %39, %45 : vector<420x32xf32>
    %47 = vector.extract_strided_slice %1 {offsets = [30, 0], sizes = [420, 1], strides = [1, 1]} : vector<465x1xf32> to vector<420x1xf32>
    %c6 = arith.constant 6 : index
    %c0_18 = arith.constant 0 : index
    %c0_19 = arith.constant 0 : index
    %48 = vector.load %arg3[%c6, %c0_18, %c0_19] : memref<9x1x32xf32, #tpu.memory_space<vmem>>, vector<1x1x32xf32>
    %49 = vector.shape_cast %48 : vector<1x1x32xf32> to vector<1x32xf32>
    %50 = vector.broadcast %47 : vector<420x1xf32> to vector<420x32xf32>
    %51 = vector.broadcast %49 : vector<1x32xf32> to vector<420x32xf32>
    %52 = arith.mulf %50, %51 : vector<420x32xf32>
    %53 = arith.addf %46, %52 : vector<420x32xf32>
    %54 = vector.extract_strided_slice %3 {offsets = [30, 0], sizes = [420, 1], strides = [1, 1]} : vector<465x1xf32> to vector<420x1xf32>
    %c7 = arith.constant 7 : index
    %c0_20 = arith.constant 0 : index
    %c0_21 = arith.constant 0 : index
    %55 = vector.load %arg3[%c7, %c0_20, %c0_21] : memref<9x1x32xf32, #tpu.memory_space<vmem>>, vector<1x1x32xf32>
    %56 = vector.shape_cast %55 : vector<1x1x32xf32> to vector<1x32xf32>
    %57 = vector.broadcast %54 : vector<420x1xf32> to vector<420x32xf32>
    %58 = vector.broadcast %56 : vector<1x32xf32> to vector<420x32xf32>
    %59 = arith.mulf %57, %58 : vector<420x32xf32>
    %60 = arith.addf %53, %59 : vector<420x32xf32>
    %61 = vector.extract_strided_slice %1 {offsets = [31, 0], sizes = [420, 1], strides = [1, 1]} : vector<465x1xf32> to vector<420x1xf32>
    %c8 = arith.constant 8 : index
    %c0_22 = arith.constant 0 : index
    %c0_23 = arith.constant 0 : index
    %62 = vector.load %arg3[%c8, %c0_22, %c0_23] : memref<9x1x32xf32, #tpu.memory_space<vmem>>, vector<1x1x32xf32>
    %63 = vector.shape_cast %62 : vector<1x1x32xf32> to vector<1x32xf32>
    %64 = vector.broadcast %61 : vector<420x1xf32> to vector<420x32xf32>
    %65 = vector.broadcast %63 : vector<1x32xf32> to vector<420x32xf32>
    %66 = arith.mulf %64, %65 : vector<420x32xf32>
    %67 = arith.addf %60, %66 : vector<420x32xf32>
    %cst_24 = arith.constant 0.000000e+00 : f32
    %68 = vector.broadcast %cst_24 : f32 to vector<420x32xf32>
    %69 = vector.extract_strided_slice %3 {offsets = [0, 0], sizes = [420, 1], strides = [1, 1]} : vector<465x1xf32> to vector<420x1xf32>
    %c0_25 = arith.constant 0 : index
    %c0_26 = arith.constant 0 : index
    %c0_27 = arith.constant 0 : index
    %70 = vector.load %arg3[%c0_25, %c0_26, %c0_27] : memref<9x1x32xf32, #tpu.memory_space<vmem>>, vector<1x1x32xf32>
    %71 = vector.shape_cast %70 : vector<1x1x32xf32> to vector<1x32xf32>
    %72 = vector.broadcast %69 : vector<420x1xf32> to vector<420x32xf32>
    %73 = vector.broadcast %71 : vector<1x32xf32> to vector<420x32xf32>
    %74 = arith.mulf %72, %73 : vector<420x32xf32>
    %75 = arith.addf %68, %74 : vector<420x32xf32>
    %76 = vector.extract_strided_slice %1 {offsets = [1, 0], sizes = [420, 1], strides = [1, 1]} : vector<465x1xf32> to vector<420x1xf32>
    %c1_28 = arith.constant 1 : index
    %c0_29 = arith.constant 0 : index
    %c0_30 = arith.constant 0 : index
    %77 = vector.load %arg3[%c1_28, %c0_29, %c0_30] : memref<9x1x32xf32, #tpu.memory_space<vmem>>, vector<1x1x32xf32>
    %78 = vector.shape_cast %77 : vector<1x1x32xf32> to vector<1x32xf32>
    %79 = vector.broadcast %76 : vector<420x1xf32> to vector<420x32xf32>
    %80 = vector.broadcast %78 : vector<1x32xf32> to vector<420x32xf32>
    %81 = arith.mulf %79, %80 : vector<420x32xf32>
    %82 = arith.addf %75, %81 : vector<420x32xf32>
    %83 = vector.extract_strided_slice %3 {offsets = [1, 0], sizes = [420, 1], strides = [1, 1]} : vector<465x1xf32> to vector<420x1xf32>
    %c2_31 = arith.constant 2 : index
    %c0_32 = arith.constant 0 : index
    %c0_33 = arith.constant 0 : index
    %84 = vector.load %arg3[%c2_31, %c0_32, %c0_33] : memref<9x1x32xf32, #tpu.memory_space<vmem>>, vector<1x1x32xf32>
    %85 = vector.shape_cast %84 : vector<1x1x32xf32> to vector<1x32xf32>
    %86 = vector.broadcast %83 : vector<420x1xf32> to vector<420x32xf32>
    %87 = vector.broadcast %85 : vector<1x32xf32> to vector<420x32xf32>
    %88 = arith.mulf %86, %87 : vector<420x32xf32>
    %89 = arith.addf %82, %88 : vector<420x32xf32>
    %90 = vector.extract_strided_slice %3 {offsets = [15, 0], sizes = [420, 1], strides = [1, 1]} : vector<465x1xf32> to vector<420x1xf32>
    %c3_34 = arith.constant 3 : index
    %c0_35 = arith.constant 0 : index
    %c0_36 = arith.constant 0 : index
    %91 = vector.load %arg3[%c3_34, %c0_35, %c0_36] : memref<9x1x32xf32, #tpu.memory_space<vmem>>, vector<1x1x32xf32>
    %92 = vector.shape_cast %91 : vector<1x1x32xf32> to vector<1x32xf32>
    %93 = vector.broadcast %90 : vector<420x1xf32> to vector<420x32xf32>
    %94 = vector.broadcast %92 : vector<1x32xf32> to vector<420x32xf32>
    %95 = arith.mulf %93, %94 : vector<420x32xf32>
    %96 = arith.addf %89, %95 : vector<420x32xf32>
    %97 = vector.extract_strided_slice %1 {offsets = [16, 0], sizes = [420, 1], strides = [1, 1]} : vector<465x1xf32> to vector<420x1xf32>
    %c4_37 = arith.constant 4 : index
    %c0_38 = arith.constant 0 : index
    %c0_39 = arith.constant 0 : index
    %98 = vector.load %arg3[%c4_37, %c0_38, %c0_39] : memref<9x1x32xf32, #tpu.memory_space<vmem>>, vector<1x1x32xf32>
    %99 = vector.shape_cast %98 : vector<1x1x32xf32> to vector<1x32xf32>
    %100 = vector.broadcast %97 : vector<420x1xf32> to vector<420x32xf32>
    %101 = vector.broadcast %99 : vector<1x32xf32> to vector<420x32xf32>
    %102 = arith.mulf %100, %101 : vector<420x32xf32>
    %103 = arith.addf %96, %102 : vector<420x32xf32>
    %104 = vector.extract_strided_slice %3 {offsets = [16, 0], sizes = [420, 1], strides = [1, 1]} : vector<465x1xf32> to vector<420x1xf32>
    %c5_40 = arith.constant 5 : index
    %c0_41 = arith.constant 0 : index
    %c0_42 = arith.constant 0 : index
    %105 = vector.load %arg3[%c5_40, %c0_41, %c0_42] : memref<9x1x32xf32, #tpu.memory_space<vmem>>, vector<1x1x32xf32>
    %106 = vector.shape_cast %105 : vector<1x1x32xf32> to vector<1x32xf32>
    %107 = vector.broadcast %104 : vector<420x1xf32> to vector<420x32xf32>
    %108 = vector.broadcast %106 : vector<1x32xf32> to vector<420x32xf32>
    %109 = arith.mulf %107, %108 : vector<420x32xf32>
    %110 = arith.addf %103, %109 : vector<420x32xf32>
    %111 = vector.extract_strided_slice %3 {offsets = [30, 0], sizes = [420, 1], strides = [1, 1]} : vector<465x1xf32> to vector<420x1xf32>
    %c6_43 = arith.constant 6 : index
    %c0_44 = arith.constant 0 : index
    %c0_45 = arith.constant 0 : index
    %112 = vector.load %arg3[%c6_43, %c0_44, %c0_45] : memref<9x1x32xf32, #tpu.memory_space<vmem>>, vector<1x1x32xf32>
    %113 = vector.shape_cast %112 : vector<1x1x32xf32> to vector<1x32xf32>
    %114 = vector.broadcast %111 : vector<420x1xf32> to vector<420x32xf32>
    %115 = vector.broadcast %113 : vector<1x32xf32> to vector<420x32xf32>
    %116 = arith.mulf %114, %115 : vector<420x32xf32>
    %117 = arith.addf %110, %116 : vector<420x32xf32>
    %118 = vector.extract_strided_slice %1 {offsets = [31, 0], sizes = [420, 1], strides = [1, 1]} : vector<465x1xf32> to vector<420x1xf32>
    %c7_46 = arith.constant 7 : index
    %c0_47 = arith.constant 0 : index
    %c0_48 = arith.constant 0 : index
    %119 = vector.load %arg3[%c7_46, %c0_47, %c0_48] : memref<9x1x32xf32, #tpu.memory_space<vmem>>, vector<1x1x32xf32>
    %120 = vector.shape_cast %119 : vector<1x1x32xf32> to vector<1x32xf32>
    %121 = vector.broadcast %118 : vector<420x1xf32> to vector<420x32xf32>
    %122 = vector.broadcast %120 : vector<1x32xf32> to vector<420x32xf32>
    %123 = arith.mulf %121, %122 : vector<420x32xf32>
    %124 = arith.addf %117, %123 : vector<420x32xf32>
    %125 = vector.extract_strided_slice %3 {offsets = [31, 0], sizes = [420, 1], strides = [1, 1]} : vector<465x1xf32> to vector<420x1xf32>
    %c8_49 = arith.constant 8 : index
    %c0_50 = arith.constant 0 : index
    %c0_51 = arith.constant 0 : index
    %126 = vector.load %arg3[%c8_49, %c0_50, %c0_51] : memref<9x1x32xf32, #tpu.memory_space<vmem>>, vector<1x1x32xf32>
    %127 = vector.shape_cast %126 : vector<1x1x32xf32> to vector<1x32xf32>
    %128 = vector.broadcast %125 : vector<420x1xf32> to vector<420x32xf32>
    %129 = vector.broadcast %127 : vector<1x32xf32> to vector<420x32xf32>
    %130 = arith.mulf %128, %129 : vector<420x32xf32>
    %131 = arith.addf %124, %130 : vector<420x32xf32>
    %132 = arith.maximumf %67, %131 : vector<420x32xf32>
    %c0_52 = arith.constant 0 : index
    %c0_53 = arith.constant 0 : index
    %133 = vector.load %arg4[%c0_52, %c0_53] : memref<1x32xf32, #tpu.memory_space<vmem>>, vector<1x32xf32>
    %134 = vector.broadcast %133 : vector<1x32xf32> to vector<420x32xf32>
    %135 = arith.addf %132, %134 : vector<420x32xf32>
    %cst_54 = arith.constant 0.000000e+00 : f32
    %136 = vector.broadcast %cst_54 : f32 to vector<420x32xf32>
    %137 = arith.maximumf %135, %136 : vector<420x32xf32>
    %138 = vector.extract_strided_slice %137 {offsets = [0, 0], sizes = [405, 32], strides = [1, 1]} : vector<420x32xf32> to vector<405x32xf32>
    %139 = vector.extract_strided_slice %137 {offsets = [15, 0], sizes = [405, 32], strides = [1, 1]} : vector<420x32xf32> to vector<405x32xf32>
    %140 = arith.maximumf %138, %139 : vector<405x32xf32>
    %c0_55 = arith.constant 0 : index
    %c0_56 = arith.constant 0 : index
    %c0_57 = arith.constant 0 : index
    %141 = vector.load %arg5[%c0_55, %c0_56, %c0_57] : memref<1x405x32xf32, #tpu.memory_space<vmem>>, vector<1x405x32xf32>
    %142 = vector.shape_cast %141 : vector<1x405x32xf32> to vector<405x32xf32>
    %143 = vector.shape_cast %140 : vector<405x32xf32> to vector<1x405x32xf32>
    tpu.vector_store %arg5[%c0_55, %c0_56, %c0_57], %143 {strides = array<i32>} : memref<1x405x32xf32, #tpu.memory_space<vmem>>, vector<1x405x32xf32>,
    return
  }
  func.func @transform_0(%arg0: i32) -> (i32, i32, i32) {
    %c0_i32 = arith.constant 0 : i32
    %c0_i32_0 = arith.constant 0 : i32
    %c0_i32_1 = arith.constant 0 : i32
    return %arg0, %c0_i32, %c0_i32_0 : i32, i32, i32
  }
  func.func @transform_1(%arg0: i32) -> (i32, i32, i32) {
    %c0_i32 = arith.constant 0 : i32
    %c0_i32_0 = arith.constant 0 : i32
    %c0_i32_1 = arith.constant 0 : i32
    return %arg0, %c0_i32, %c0_i32_0 : i32, i32, i32
  }
  func.func @transform_2(%arg0: i32) -> (i32, i32, i32) {
    %c0_i32 = arith.constant 0 : i32
    %c0_i32_0 = arith.constant 0 : i32
    %c0_i32_1 = arith.constant 0 : i32
    %c0_i32_2 = arith.constant 0 : i32
    return %c0_i32, %c0_i32_0, %c0_i32_1 : i32, i32, i32
  }
  func.func @transform_3(%arg0: i32) -> (i32, i32) {
    %c0_i32 = arith.constant 0 : i32
    %c0_i32_0 = arith.constant 0 : i32
    %c0_i32_1 = arith.constant 0 : i32
    return %c0_i32, %c0_i32_0 : i32, i32
  }
  func.func @transform_4(%arg0: i32) -> (i32, i32, i32) {
    %c0_i32 = arith.constant 0 : i32
    %c0_i32_0 = arith.constant 0 : i32
    %c0_i32_1 = arith.constant 0 : i32
    return %arg0, %c0_i32, %c0_i32_0 : i32, i32, i32
  }
}

module attributes {stable_mosaic.version = 11 : i64} {
  func.func @_conv_relu_pool_kernel(%arg0: i32, %arg1: memref<1x136x32xf32, #tpu.memory_space<vmem>>, %arg2: memref<1x136x32xf32, #tpu.memory_space<vmem>>, %arg3: memref<9x32x64xf32, #tpu.memory_space<vmem>>, %arg4: memref<1x64xf32, #tpu.memory_space<vmem>>, %arg5: memref<1x104x64xf32, #tpu.memory_space<vmem>>) attributes {dimension_semantics = [#tpu.dimension_semantics<parallel>], iteration_bounds = array<i64: 2>, scalar_prefetch = 0 : i64, scratch_operands = 0 : i64, tpu.core_type = #tpu.core_type<tc>, window_params = [{transform_indices = @transform_0, window_bounds = array<i64: 1, 136, 32>}, {transform_indices = @transform_1, window_bounds = array<i64: 1, 136, 32>}, {pipeline_mode = #tpu.pipeline_mode<synchronous>, transform_indices = @transform_2, window_bounds = array<i64: 9, 32, 64>}, {pipeline_mode = #tpu.pipeline_mode<synchronous>, transform_indices = @transform_3, window_bounds = array<i64: 1, 64>}, {transform_indices = @transform_4, window_bounds = array<i64: 1, 104, 64>}]} {
    %c0 = arith.constant 0 : index
    %c0_0 = arith.constant 0 : index
    %c0_1 = arith.constant 0 : index
    %0 = vector.load %arg1[%c0, %c0_0, %c0_1] : memref<1x136x32xf32, #tpu.memory_space<vmem>>, vector<1x136x32xf32>
    %1 = vector.shape_cast %0 : vector<1x136x32xf32> to vector<136x32xf32>
    %c0_2 = arith.constant 0 : index
    %c0_3 = arith.constant 0 : index
    %c0_4 = arith.constant 0 : index
    %2 = vector.load %arg2[%c0_2, %c0_3, %c0_4] : memref<1x136x32xf32, #tpu.memory_space<vmem>>, vector<1x136x32xf32>
    %3 = vector.shape_cast %2 : vector<1x136x32xf32> to vector<136x32xf32>
    %cst = arith.constant 0.000000e+00 : f32
    %4 = vector.broadcast %cst : f32 to vector<112x64xf32>
    %5 = vector.extract_strided_slice %1 {offsets = [0, 0], sizes = [112, 32], strides = [1, 1]} : vector<136x32xf32> to vector<112x32xf32>
    %c0_5 = arith.constant 0 : index
    %c0_6 = arith.constant 0 : index
    %c0_7 = arith.constant 0 : index
    %6 = vector.load %arg3[%c0_5, %c0_6, %c0_7] : memref<9x32x64xf32, #tpu.memory_space<vmem>>, vector<1x32x64xf32>
    %7 = vector.shape_cast %6 : vector<1x32x64xf32> to vector<32x64xf32>
    %cst_8 = arith.constant dense<0.000000e+00> : vector<112x64xf32>
    %8 = tpu.matmul %5, %7, %cst_8 {dimension_numbers = #tpu.dot_dimension_numbers<[1], [0], [0], [1], [0, 0, 1, 1], [], []>} : vector<112x32xf32>, vector<32x64xf32>, vector<112x64xf32> -> vector<112x64xf32>
    %9 = arith.addf %4, %8 : vector<112x64xf32>
    %10 = vector.extract_strided_slice %3 {offsets = [0, 0], sizes = [112, 32], strides = [1, 1]} : vector<136x32xf32> to vector<112x32xf32>
    %c1 = arith.constant 1 : index
    %c0_9 = arith.constant 0 : index
    %c0_10 = arith.constant 0 : index
    %11 = vector.load %arg3[%c1, %c0_9, %c0_10] : memref<9x32x64xf32, #tpu.memory_space<vmem>>, vector<1x32x64xf32>
    %12 = vector.shape_cast %11 : vector<1x32x64xf32> to vector<32x64xf32>
    %cst_11 = arith.constant dense<0.000000e+00> : vector<112x64xf32>
    %13 = tpu.matmul %10, %12, %cst_11 {dimension_numbers = #tpu.dot_dimension_numbers<[1], [0], [0], [1], [0, 0, 1, 1], [], []>} : vector<112x32xf32>, vector<32x64xf32>, vector<112x64xf32> -> vector<112x64xf32>
    %14 = arith.addf %9, %13 : vector<112x64xf32>
    %15 = vector.extract_strided_slice %1 {offsets = [1, 0], sizes = [112, 32], strides = [1, 1]} : vector<136x32xf32> to vector<112x32xf32>
    %c2 = arith.constant 2 : index
    %c0_12 = arith.constant 0 : index
    %c0_13 = arith.constant 0 : index
    %16 = vector.load %arg3[%c2, %c0_12, %c0_13] : memref<9x32x64xf32, #tpu.memory_space<vmem>>, vector<1x32x64xf32>
    %17 = vector.shape_cast %16 : vector<1x32x64xf32> to vector<32x64xf32>
    %cst_14 = arith.constant dense<0.000000e+00> : vector<112x64xf32>
    %18 = tpu.matmul %15, %17, %cst_14 {dimension_numbers = #tpu.dot_dimension_numbers<[1], [0], [0], [1], [0, 0, 1, 1], [], []>} : vector<112x32xf32>, vector<32x64xf32>, vector<112x64xf32> -> vector<112x64xf32>
    %19 = arith.addf %14, %18 : vector<112x64xf32>
    %20 = vector.extract_strided_slice %1 {offsets = [8, 0], sizes = [112, 32], strides = [1, 1]} : vector<136x32xf32> to vector<112x32xf32>
    %c3 = arith.constant 3 : index
    %c0_15 = arith.constant 0 : index
    %c0_16 = arith.constant 0 : index
    %21 = vector.load %arg3[%c3, %c0_15, %c0_16] : memref<9x32x64xf32, #tpu.memory_space<vmem>>, vector<1x32x64xf32>
    %22 = vector.shape_cast %21 : vector<1x32x64xf32> to vector<32x64xf32>
    %cst_17 = arith.constant dense<0.000000e+00> : vector<112x64xf32>
    %23 = tpu.matmul %20, %22, %cst_17 {dimension_numbers = #tpu.dot_dimension_numbers<[1], [0], [0], [1], [0, 0, 1, 1], [], []>} : vector<112x32xf32>, vector<32x64xf32>, vector<112x64xf32> -> vector<112x64xf32>
    %24 = arith.addf %19, %23 : vector<112x64xf32>
    %25 = vector.extract_strided_slice %3 {offsets = [8, 0], sizes = [112, 32], strides = [1, 1]} : vector<136x32xf32> to vector<112x32xf32>
    %c4 = arith.constant 4 : index
    %c0_18 = arith.constant 0 : index
    %c0_19 = arith.constant 0 : index
    %26 = vector.load %arg3[%c4, %c0_18, %c0_19] : memref<9x32x64xf32, #tpu.memory_space<vmem>>, vector<1x32x64xf32>
    %27 = vector.shape_cast %26 : vector<1x32x64xf32> to vector<32x64xf32>
    %cst_20 = arith.constant dense<0.000000e+00> : vector<112x64xf32>
    %28 = tpu.matmul %25, %27, %cst_20 {dimension_numbers = #tpu.dot_dimension_numbers<[1], [0], [0], [1], [0, 0, 1, 1], [], []>} : vector<112x32xf32>, vector<32x64xf32>, vector<112x64xf32> -> vector<112x64xf32>
    %29 = arith.addf %24, %28 : vector<112x64xf32>
    %30 = vector.extract_strided_slice %1 {offsets = [9, 0], sizes = [112, 32], strides = [1, 1]} : vector<136x32xf32> to vector<112x32xf32>
    %c5 = arith.constant 5 : index
    %c0_21 = arith.constant 0 : index
    %c0_22 = arith.constant 0 : index
    %31 = vector.load %arg3[%c5, %c0_21, %c0_22] : memref<9x32x64xf32, #tpu.memory_space<vmem>>, vector<1x32x64xf32>
    %32 = vector.shape_cast %31 : vector<1x32x64xf32> to vector<32x64xf32>
    %cst_23 = arith.constant dense<0.000000e+00> : vector<112x64xf32>
    %33 = tpu.matmul %30, %32, %cst_23 {dimension_numbers = #tpu.dot_dimension_numbers<[1], [0], [0], [1], [0, 0, 1, 1], [], []>} : vector<112x32xf32>, vector<32x64xf32>, vector<112x64xf32> -> vector<112x64xf32>
    %34 = arith.addf %29, %33 : vector<112x64xf32>
    %35 = vector.extract_strided_slice %1 {offsets = [16, 0], sizes = [112, 32], strides = [1, 1]} : vector<136x32xf32> to vector<112x32xf32>
    %c6 = arith.constant 6 : index
    %c0_24 = arith.constant 0 : index
    %c0_25 = arith.constant 0 : index
    %36 = vector.load %arg3[%c6, %c0_24, %c0_25] : memref<9x32x64xf32, #tpu.memory_space<vmem>>, vector<1x32x64xf32>
    %37 = vector.shape_cast %36 : vector<1x32x64xf32> to vector<32x64xf32>
    %cst_26 = arith.constant dense<0.000000e+00> : vector<112x64xf32>
    %38 = tpu.matmul %35, %37, %cst_26 {dimension_numbers = #tpu.dot_dimension_numbers<[1], [0], [0], [1], [0, 0, 1, 1], [], []>} : vector<112x32xf32>, vector<32x64xf32>, vector<112x64xf32> -> vector<112x64xf32>
    %39 = arith.addf %34, %38 : vector<112x64xf32>
    %40 = vector.extract_strided_slice %3 {offsets = [16, 0], sizes = [112, 32], strides = [1, 1]} : vector<136x32xf32> to vector<112x32xf32>
    %c7 = arith.constant 7 : index
    %c0_27 = arith.constant 0 : index
    %c0_28 = arith.constant 0 : index
    %41 = vector.load %arg3[%c7, %c0_27, %c0_28] : memref<9x32x64xf32, #tpu.memory_space<vmem>>, vector<1x32x64xf32>
    %42 = vector.shape_cast %41 : vector<1x32x64xf32> to vector<32x64xf32>
    %cst_29 = arith.constant dense<0.000000e+00> : vector<112x64xf32>
    %43 = tpu.matmul %40, %42, %cst_29 {dimension_numbers = #tpu.dot_dimension_numbers<[1], [0], [0], [1], [0, 0, 1, 1], [], []>} : vector<112x32xf32>, vector<32x64xf32>, vector<112x64xf32> -> vector<112x64xf32>
    %44 = arith.addf %39, %43 : vector<112x64xf32>
    %45 = vector.extract_strided_slice %1 {offsets = [17, 0], sizes = [112, 32], strides = [1, 1]} : vector<136x32xf32> to vector<112x32xf32>
    %c8 = arith.constant 8 : index
    %c0_30 = arith.constant 0 : index
    %c0_31 = arith.constant 0 : index
    %46 = vector.load %arg3[%c8, %c0_30, %c0_31] : memref<9x32x64xf32, #tpu.memory_space<vmem>>, vector<1x32x64xf32>
    %47 = vector.shape_cast %46 : vector<1x32x64xf32> to vector<32x64xf32>
    %cst_32 = arith.constant dense<0.000000e+00> : vector<112x64xf32>
    %48 = tpu.matmul %45, %47, %cst_32 {dimension_numbers = #tpu.dot_dimension_numbers<[1], [0], [0], [1], [0, 0, 1, 1], [], []>} : vector<112x32xf32>, vector<32x64xf32>, vector<112x64xf32> -> vector<112x64xf32>
    %49 = arith.addf %44, %48 : vector<112x64xf32>
    %cst_33 = arith.constant 0.000000e+00 : f32
    %50 = vector.broadcast %cst_33 : f32 to vector<112x64xf32>
    %51 = vector.extract_strided_slice %3 {offsets = [0, 0], sizes = [112, 32], strides = [1, 1]} : vector<136x32xf32> to vector<112x32xf32>
    %c0_34 = arith.constant 0 : index
    %c0_35 = arith.constant 0 : index
    %c0_36 = arith.constant 0 : index
    %52 = vector.load %arg3[%c0_34, %c0_35, %c0_36] : memref<9x32x64xf32, #tpu.memory_space<vmem>>, vector<1x32x64xf32>
    %53 = vector.shape_cast %52 : vector<1x32x64xf32> to vector<32x64xf32>
    %cst_37 = arith.constant dense<0.000000e+00> : vector<112x64xf32>
    %54 = tpu.matmul %51, %53, %cst_37 {dimension_numbers = #tpu.dot_dimension_numbers<[1], [0], [0], [1], [0, 0, 1, 1], [], []>} : vector<112x32xf32>, vector<32x64xf32>, vector<112x64xf32> -> vector<112x64xf32>
    %55 = arith.addf %50, %54 : vector<112x64xf32>
    %56 = vector.extract_strided_slice %1 {offsets = [1, 0], sizes = [112, 32], strides = [1, 1]} : vector<136x32xf32> to vector<112x32xf32>
    %c1_38 = arith.constant 1 : index
    %c0_39 = arith.constant 0 : index
    %c0_40 = arith.constant 0 : index
    %57 = vector.load %arg3[%c1_38, %c0_39, %c0_40] : memref<9x32x64xf32, #tpu.memory_space<vmem>>, vector<1x32x64xf32>
    %58 = vector.shape_cast %57 : vector<1x32x64xf32> to vector<32x64xf32>
    %cst_41 = arith.constant dense<0.000000e+00> : vector<112x64xf32>
    %59 = tpu.matmul %56, %58, %cst_41 {dimension_numbers = #tpu.dot_dimension_numbers<[1], [0], [0], [1], [0, 0, 1, 1], [], []>} : vector<112x32xf32>, vector<32x64xf32>, vector<112x64xf32> -> vector<112x64xf32>
    %60 = arith.addf %55, %59 : vector<112x64xf32>
    %61 = vector.extract_strided_slice %3 {offsets = [1, 0], sizes = [112, 32], strides = [1, 1]} : vector<136x32xf32> to vector<112x32xf32>
    %c2_42 = arith.constant 2 : index
    %c0_43 = arith.constant 0 : index
    %c0_44 = arith.constant 0 : index
    %62 = vector.load %arg3[%c2_42, %c0_43, %c0_44] : memref<9x32x64xf32, #tpu.memory_space<vmem>>, vector<1x32x64xf32>
    %63 = vector.shape_cast %62 : vector<1x32x64xf32> to vector<32x64xf32>
    %cst_45 = arith.constant dense<0.000000e+00> : vector<112x64xf32>
    %64 = tpu.matmul %61, %63, %cst_45 {dimension_numbers = #tpu.dot_dimension_numbers<[1], [0], [0], [1], [0, 0, 1, 1], [], []>} : vector<112x32xf32>, vector<32x64xf32>, vector<112x64xf32> -> vector<112x64xf32>
    %65 = arith.addf %60, %64 : vector<112x64xf32>
    %66 = vector.extract_strided_slice %3 {offsets = [8, 0], sizes = [112, 32], strides = [1, 1]} : vector<136x32xf32> to vector<112x32xf32>
    %c3_46 = arith.constant 3 : index
    %c0_47 = arith.constant 0 : index
    %c0_48 = arith.constant 0 : index
    %67 = vector.load %arg3[%c3_46, %c0_47, %c0_48] : memref<9x32x64xf32, #tpu.memory_space<vmem>>, vector<1x32x64xf32>
    %68 = vector.shape_cast %67 : vector<1x32x64xf32> to vector<32x64xf32>
    %cst_49 = arith.constant dense<0.000000e+00> : vector<112x64xf32>
    %69 = tpu.matmul %66, %68, %cst_49 {dimension_numbers = #tpu.dot_dimension_numbers<[1], [0], [0], [1], [0, 0, 1, 1], [], []>} : vector<112x32xf32>, vector<32x64xf32>, vector<112x64xf32> -> vector<112x64xf32>
    %70 = arith.addf %65, %69 : vector<112x64xf32>
    %71 = vector.extract_strided_slice %1 {offsets = [9, 0], sizes = [112, 32], strides = [1, 1]} : vector<136x32xf32> to vector<112x32xf32>
    %c4_50 = arith.constant 4 : index
    %c0_51 = arith.constant 0 : index
    %c0_52 = arith.constant 0 : index
    %72 = vector.load %arg3[%c4_50, %c0_51, %c0_52] : memref<9x32x64xf32, #tpu.memory_space<vmem>>, vector<1x32x64xf32>
    %73 = vector.shape_cast %72 : vector<1x32x64xf32> to vector<32x64xf32>
    %cst_53 = arith.constant dense<0.000000e+00> : vector<112x64xf32>
    %74 = tpu.matmul %71, %73, %cst_53 {dimension_numbers = #tpu.dot_dimension_numbers<[1], [0], [0], [1], [0, 0, 1, 1], [], []>} : vector<112x32xf32>, vector<32x64xf32>, vector<112x64xf32> -> vector<112x64xf32>
    %75 = arith.addf %70, %74 : vector<112x64xf32>
    %76 = vector.extract_strided_slice %3 {offsets = [9, 0], sizes = [112, 32], strides = [1, 1]} : vector<136x32xf32> to vector<112x32xf32>
    %c5_54 = arith.constant 5 : index
    %c0_55 = arith.constant 0 : index
    %c0_56 = arith.constant 0 : index
    %77 = vector.load %arg3[%c5_54, %c0_55, %c0_56] : memref<9x32x64xf32, #tpu.memory_space<vmem>>, vector<1x32x64xf32>
    %78 = vector.shape_cast %77 : vector<1x32x64xf32> to vector<32x64xf32>
    %cst_57 = arith.constant dense<0.000000e+00> : vector<112x64xf32>
    %79 = tpu.matmul %76, %78, %cst_57 {dimension_numbers = #tpu.dot_dimension_numbers<[1], [0], [0], [1], [0, 0, 1, 1], [], []>} : vector<112x32xf32>, vector<32x64xf32>, vector<112x64xf32> -> vector<112x64xf32>
    %80 = arith.addf %75, %79 : vector<112x64xf32>
    %81 = vector.extract_strided_slice %3 {offsets = [16, 0], sizes = [112, 32], strides = [1, 1]} : vector<136x32xf32> to vector<112x32xf32>
    %c6_58 = arith.constant 6 : index
    %c0_59 = arith.constant 0 : index
    %c0_60 = arith.constant 0 : index
    %82 = vector.load %arg3[%c6_58, %c0_59, %c0_60] : memref<9x32x64xf32, #tpu.memory_space<vmem>>, vector<1x32x64xf32>
    %83 = vector.shape_cast %82 : vector<1x32x64xf32> to vector<32x64xf32>
    %cst_61 = arith.constant dense<0.000000e+00> : vector<112x64xf32>
    %84 = tpu.matmul %81, %83, %cst_61 {dimension_numbers = #tpu.dot_dimension_numbers<[1], [0], [0], [1], [0, 0, 1, 1], [], []>} : vector<112x32xf32>, vector<32x64xf32>, vector<112x64xf32> -> vector<112x64xf32>
    %85 = arith.addf %80, %84 : vector<112x64xf32>
    %86 = vector.extract_strided_slice %1 {offsets = [17, 0], sizes = [112, 32], strides = [1, 1]} : vector<136x32xf32> to vector<112x32xf32>
    %c7_62 = arith.constant 7 : index
    %c0_63 = arith.constant 0 : index
    %c0_64 = arith.constant 0 : index
    %87 = vector.load %arg3[%c7_62, %c0_63, %c0_64] : memref<9x32x64xf32, #tpu.memory_space<vmem>>, vector<1x32x64xf32>
    %88 = vector.shape_cast %87 : vector<1x32x64xf32> to vector<32x64xf32>
    %cst_65 = arith.constant dense<0.000000e+00> : vector<112x64xf32>
    %89 = tpu.matmul %86, %88, %cst_65 {dimension_numbers = #tpu.dot_dimension_numbers<[1], [0], [0], [1], [0, 0, 1, 1], [], []>} : vector<112x32xf32>, vector<32x64xf32>, vector<112x64xf32> -> vector<112x64xf32>
    %90 = arith.addf %85, %89 : vector<112x64xf32>
    %91 = vector.extract_strided_slice %3 {offsets = [17, 0], sizes = [112, 32], strides = [1, 1]} : vector<136x32xf32> to vector<112x32xf32>
    %c8_66 = arith.constant 8 : index
    %c0_67 = arith.constant 0 : index
    %c0_68 = arith.constant 0 : index
    %92 = vector.load %arg3[%c8_66, %c0_67, %c0_68] : memref<9x32x64xf32, #tpu.memory_space<vmem>>, vector<1x32x64xf32>
    %93 = vector.shape_cast %92 : vector<1x32x64xf32> to vector<32x64xf32>
    %cst_69 = arith.constant dense<0.000000e+00> : vector<112x64xf32>
    %94 = tpu.matmul %91, %93, %cst_69 {dimension_numbers = #tpu.dot_dimension_numbers<[1], [0], [0], [1], [0, 0, 1, 1], [], []>} : vector<112x32xf32>, vector<32x64xf32>, vector<112x64xf32> -> vector<112x64xf32>
    %95 = arith.addf %90, %94 : vector<112x64xf32>
    %96 = arith.maximumf %49, %95 : vector<112x64xf32>
    %c0_70 = arith.constant 0 : index
    %c0_71 = arith.constant 0 : index
    %97 = vector.load %arg4[%c0_70, %c0_71] : memref<1x64xf32, #tpu.memory_space<vmem>>, vector<1x64xf32>
    %98 = vector.broadcast %97 : vector<1x64xf32> to vector<112x64xf32>
    %99 = arith.addf %96, %98 : vector<112x64xf32>
    %cst_72 = arith.constant 0.000000e+00 : f32
    %100 = vector.broadcast %cst_72 : f32 to vector<112x64xf32>
    %101 = arith.maximumf %99, %100 : vector<112x64xf32>
    %102 = vector.extract_strided_slice %101 {offsets = [0, 0], sizes = [104, 64], strides = [1, 1]} : vector<112x64xf32> to vector<104x64xf32>
    %103 = vector.extract_strided_slice %101 {offsets = [8, 0], sizes = [104, 64], strides = [1, 1]} : vector<112x64xf32> to vector<104x64xf32>
    %104 = arith.maximumf %102, %103 : vector<104x64xf32>
    %c0_73 = arith.constant 0 : index
    %c0_74 = arith.constant 0 : index
    %c0_75 = arith.constant 0 : index
    %105 = vector.load %arg5[%c0_73, %c0_74, %c0_75] : memref<1x104x64xf32, #tpu.memory_space<vmem>>, vector<1x104x64xf32>
    %106 = vector.shape_cast %105 : vector<1x104x64xf32> to vector<104x64xf32>
    %107 = vector.shape_cast %104 : vector<104x64xf32> to vector<1x104x64xf32>
    tpu.vector_store %arg5[%c0_73, %c0_74, %c0_75], %107 {strides = array<i32>} : memref<1x104x64xf32, #tpu.memory_space<vmem>>, vector<1x104x64xf32>,
    return
  }
  func.func @transform_0(%arg0: i32) -> (i32, i32, i32) {
    %c0_i32 = arith.constant 0 : i32
    %c0_i32_0 = arith.constant 0 : i32
    %c0_i32_1 = arith.constant 0 : i32
    return %arg0, %c0_i32, %c0_i32_0 : i32, i32, i32
  }
  func.func @transform_1(%arg0: i32) -> (i32, i32, i32) {
    %c0_i32 = arith.constant 0 : i32
    %c0_i32_0 = arith.constant 0 : i32
    %c0_i32_1 = arith.constant 0 : i32
    return %arg0, %c0_i32, %c0_i32_0 : i32, i32, i32
  }
  func.func @transform_2(%arg0: i32) -> (i32, i32, i32) {
    %c0_i32 = arith.constant 0 : i32
    %c0_i32_0 = arith.constant 0 : i32
    %c0_i32_1 = arith.constant 0 : i32
    %c0_i32_2 = arith.constant 0 : i32
    return %c0_i32, %c0_i32_0, %c0_i32_1 : i32, i32, i32
  }
  func.func @transform_3(%arg0: i32) -> (i32, i32) {
    %c0_i32 = arith.constant 0 : i32
    %c0_i32_0 = arith.constant 0 : i32
    %c0_i32_1 = arith.constant 0 : i32
    return %c0_i32, %c0_i32_0 : i32, i32
  }
  func.func @transform_4(%arg0: i32) -> (i32, i32, i32) {
    %c0_i32 = arith.constant 0 : i32
    %c0_i32_0 = arith.constant 0 : i32
    %c0_i32_1 = arith.constant 0 : i32
    return %arg0, %c0_i32, %c0_i32_0 : i32, i32, i32
  }
}

module attributes {stable_mosaic.version = 11 : i64} {
  func.func @_fc_fused_kernel(%arg0: i32, %arg1: memref<2x3136xf32, #tpu.memory_space<vmem>>, %arg2: memref<3136x128xf32, #tpu.memory_space<vmem>>, %arg3: memref<1x128xf32, #tpu.memory_space<vmem>>, %arg4: memref<128x128xf32, #tpu.memory_space<vmem>>, %arg5: memref<1x128xf32, #tpu.memory_space<vmem>>, %arg6: memref<2x128xf32, #tpu.memory_space<vmem>>) attributes {dimension_semantics = [#tpu.dimension_semantics<parallel>], iteration_bounds = array<i64: 1>, scalar_prefetch = 0 : i64, scratch_operands = 0 : i64, tpu.core_type = #tpu.core_type<tc>, window_params = [{transform_indices = @transform_0, window_bounds = array<i64: 2, 3136>}, {pipeline_mode = #tpu.pipeline_mode<synchronous>, transform_indices = @transform_1, window_bounds = array<i64: 3136, 128>}, {pipeline_mode = #tpu.pipeline_mode<synchronous>, transform_indices = @transform_2, window_bounds = array<i64: 1, 128>}, {pipeline_mode = #tpu.pipeline_mode<synchronous>, transform_indices = @transform_3, window_bounds = array<i64: 128, 128>}, {pipeline_mode = #tpu.pipeline_mode<synchronous>, transform_indices = @transform_4, window_bounds = array<i64: 1, 128>}, {transform_indices = @transform_5, window_bounds = array<i64: 2, 128>}]} {
    %c0 = arith.constant 0 : index
    %c0_0 = arith.constant 0 : index
    %0 = vector.load %arg1[%c0, %c0_0] : memref<2x3136xf32, #tpu.memory_space<vmem>>, vector<2x3136xf32>
    %c0_1 = arith.constant 0 : index
    %c0_2 = arith.constant 0 : index
    %1 = vector.load %arg2[%c0_1, %c0_2] : memref<3136x128xf32, #tpu.memory_space<vmem>>, vector<3136x128xf32>
    %cst = arith.constant dense<0.000000e+00> : vector<2x128xf32>
    %2 = tpu.matmul %0, %1, %cst {dimension_numbers = #tpu.dot_dimension_numbers<[1], [0], [0], [1], [0, 0, 1, 1], [], []>} : vector<2x3136xf32>, vector<3136x128xf32>, vector<2x128xf32> -> vector<2x128xf32>
    %c0_3 = arith.constant 0 : index
    %c0_4 = arith.constant 0 : index
    %3 = vector.load %arg3[%c0_3, %c0_4] : memref<1x128xf32, #tpu.memory_space<vmem>>, vector<1x128xf32>
    %4 = vector.broadcast %3 : vector<1x128xf32> to vector<2x128xf32>
    %5 = arith.addf %2, %4 : vector<2x128xf32>
    %cst_5 = arith.constant 0.000000e+00 : f32
    %6 = vector.broadcast %cst_5 : f32 to vector<2x128xf32>
    %7 = arith.maximumf %5, %6 : vector<2x128xf32>
    %c0_6 = arith.constant 0 : index
    %c0_7 = arith.constant 0 : index
    %8 = vector.load %arg4[%c0_6, %c0_7] : memref<128x128xf32, #tpu.memory_space<vmem>>, vector<128x128xf32>
    %cst_8 = arith.constant dense<0.000000e+00> : vector<2x128xf32>
    %9 = tpu.matmul %7, %8, %cst_8 {dimension_numbers = #tpu.dot_dimension_numbers<[1], [0], [0], [1], [0, 0, 1, 1], [], []>} : vector<2x128xf32>, vector<128x128xf32>, vector<2x128xf32> -> vector<2x128xf32>
    %c0_9 = arith.constant 0 : index
    %c0_10 = arith.constant 0 : index
    %10 = vector.load %arg5[%c0_9, %c0_10] : memref<1x128xf32, #tpu.memory_space<vmem>>, vector<1x128xf32>
    %11 = vector.broadcast %10 : vector<1x128xf32> to vector<2x128xf32>
    %12 = arith.addf %9, %11 : vector<2x128xf32>
    %c0_11 = arith.constant 0 : index
    %c0_12 = arith.constant 0 : index
    %13 = vector.load %arg6[%c0_11, %c0_12] : memref<2x128xf32, #tpu.memory_space<vmem>>, vector<2x128xf32>
    tpu.vector_store %arg6[%c0_11, %c0_12], %12 {strides = array<i32>} : memref<2x128xf32, #tpu.memory_space<vmem>>, vector<2x128xf32>,
    return
  }
  func.func @transform_0(%arg0: i32) -> (i32, i32) {
    %c0_i32 = arith.constant 0 : i32
    %c0_i32_0 = arith.constant 0 : i32
    return %arg0, %c0_i32 : i32, i32
  }
  func.func @transform_1(%arg0: i32) -> (i32, i32) {
    %c0_i32 = arith.constant 0 : i32
    %c0_i32_0 = arith.constant 0 : i32
    %c0_i32_1 = arith.constant 0 : i32
    return %c0_i32, %c0_i32_0 : i32, i32
  }
  func.func @transform_2(%arg0: i32) -> (i32, i32) {
    %c0_i32 = arith.constant 0 : i32
    %c0_i32_0 = arith.constant 0 : i32
    %c0_i32_1 = arith.constant 0 : i32
    return %c0_i32, %c0_i32_0 : i32, i32
  }
  func.func @transform_3(%arg0: i32) -> (i32, i32) {
    %c0_i32 = arith.constant 0 : i32
    %c0_i32_0 = arith.constant 0 : i32
    %c0_i32_1 = arith.constant 0 : i32
    return %c0_i32, %c0_i32_0 : i32, i32
  }
  func.func @transform_4(%arg0: i32) -> (i32, i32) {
    %c0_i32 = arith.constant 0 : i32
    %c0_i32_0 = arith.constant 0 : i32
    %c0_i32_1 = arith.constant 0 : i32
    return %c0_i32, %c0_i32_0 : i32, i32
  }
  func.func @transform_5(%arg0: i32) -> (i32, i32) {
    %c0_i32 = arith.constant 0 : i32
    %c0_i32_0 = arith.constant 0 : i32
    return %arg0, %c0_i32 : i32, i32
  }
}

</mosaic_0001>

<bundles_post_ra>
// kernel: cnn_forward.4
= control target key start
LH: loop header
LB: loop body
LE: loop exit
PB: predicated region body
PF: predicated region fallthrough
CT: control target
= control target key end

     0   :  { %s4847_s15 = smov 0   ;;  %s5778_s0 = inlined_call_operand.vmem [shape: f32[2,136,32], index: 0, kind: input, shape index: {}]   ;;  %s5779_s1 = inlined_call_operand.vmem [shape: f32[2,136,32], index: 1, kind: input, shape index: {}]   ;;  %s5780_s2 = inlined_call_operand.vmem [shape: f32[9,32,64], index: 2, kind: input, shape index: {}]   ;;  %s5781_s3 = inlined_call_operand.vmem [shape: f32[1,64], index: 3, kind: input, shape index: {}]   ;;  %s5782_s4 = inlined_call_operand.vmem [shape: f32[2,104,64], index: 4, kind: output, shape index: {}]  }
   0x1 LB: > { %s3295_s16 = sadd.s32 4294967295, %s4820_s15   ;;  %p3299_p0 = scmp.ge.s32.totalorder %s4820_s15, 1  ;;  %s4820_s15 = sphi %s4847_s15, %s14_s15  }
   0x2   : > { %p172_p1 = scmp.lt.s32.totalorder %s4820_s15, 3 }
   0x4   : > { %p173_p2 = pnand %p3299_p0, %p172_p1 }
   0x5   : > { %v3303_v0 = vld [vmem:[%s5780_s2 + $0x20] sm:$0xff] (!%p173_p2)  ;;  %v3304_v1 = vld [vmem:[%s5780_s2 + $0x28] sm:$0xff] (!%p173_p2)  ;;  %v3305_v2 = vld [vmem:[%s5780_s2 + $0x30] sm:$0xff] (!%p173_p2)  ;;  %p203_p3 = scmp.lt.s32.totalorder (!%p173_p2), %s3295_s16, 1  ;;  %vm261_vm0 = vcmask (!%p173_p2), 261120   ;;  %vm622_vm1 = vcmask (!%p173_p2), 1046528  }
   0x6   : > { %176 = sbr.rel (%p173_p2) target bundleno = 493 (0x1ed), region = 36  ;;  %v4436_v3 = vpack.c.bf16 (!%p173_p2), %v3304_v1, %v3303_v0  ;;  %v3306_v4 = vld [vmem:[%s5780_s2 + $0x38] sm:$0xff] (!%p173_p2)  ;;  %v252_v6 = vld [vmem:[%s5780_s2] sm:$0xff] (!%p173_p2)  ;;  %v253_v7 = vld [vmem:[%s5780_s2 + $0x8] sm:$0xff] (!%p173_p2)  ;;  %vm3214_vm2 = vcmask (!%p173_p2), 523264  }
   0x7   : > { %v4440_v5 = vpack.c.bf16 (!%p173_p2), %v3306_v4, %v3305_v2  ;;  %v4444_v8 = vpack.c.bf16 (!%p173_p2), %v253_v7, %v252_v6  ;;  %v254_v9 = vld [vmem:[%s5780_s2 + $0x10] sm:$0xff] (!%p173_p2)  ;;  %v255_v12 = vld [vmem:[%s5780_s2 + $0x18] sm:$0xff] (!%p173_p2)  ;;  %v3335_v30 = vld [vmem:[%s5780_s2 + $0x40] sm:$0xff] (!%p173_p2) }
   0x8   : > { %4437 = vmatprep.subr.bf16.mxu0 (!%p173_p2), %v4436_v3  ;;  %4509 = vmatprep.subr.bf16.mxu1 (!%p173_p2), %v4436_v3  ;;  %v4448_v29 = vpack.c.bf16 (!%p173_p2), %v255_v12, %v254_v9  ;;  %v3336_v34 = vld [vmem:[%s5780_s2 + $0x48] sm:$0xff] (!%p173_p2)  ;;  %v3337_v9 = vld [vmem:[%s5780_s2 + $0x50] sm:$0xff] (!%p173_p2)  ;;  %v3338_v12 = vld [vmem:[%s5780_s2 + $0x58] sm:$0xff] (!%p173_p2) }
   0x9   : > { %4439 = vmatpush3.bf16.msra.mxu0 (!%p173_p2), %v4436_v3  ;;  %4511 = vmatpush3.bf16.msra.mxu1 (!%p173_p2), %v4436_v3  ;;  %v4977_v41 = vpack.c.bf16 (!%p173_p2), %v3336_v34, %v3335_v30 }
   0xa   : > { %4441 = vmatprep.subr.bf16.mxu0 (!%p173_p2), %v4440_v5  ;;  %4513 = vmatprep.subr.bf16.mxu1 (!%p173_p2), %v4440_v5 }
   0xd   : > { %s5784_s16 = smov (!%p203_p3, %s3295_s16), 1  ;;  %4443 = vmatpush3.bf16.msra.mxu0 %v4440_v5  ;;  %4515 = vmatpush3.bf16.msra.mxu1 %v4440_v5 }
   0xe   : > { %s4804_s29 = smul.u32 136, %s5784_s16  ;;  %4445 = vmatprep.subr.bf16.mxu0 %v4444_v8  ;;  %4517 = vmatprep.subr.bf16.mxu1 %v4444_v8 }
   0xf   : > { %s4805_s28 = smul.u32 104, %s5784_s16 }
  0x10   : > { %s4879_s6 = scalar_lea.vmem %s5778_s0, %s4804_s29  ;;  %s4884_s9 = scalar_lea.vmem %s5779_s1, %s4804_s29 }
  0x11   : > { %v4890_v10 = vld [vmem:[%s4884_s9] sm:$0xff]  ;;  %v4899_v13 = vld [vmem:[%s4884_s9 + $0x8] sm:$0xff]  ;;  %v4906_v16 = vld [vmem:[%s4879_s6 + $0x10] sm:$0xff]  ;;  %s5735_s5 = scalar_lea.vmem %s5782_s4, %s4805_s28 }
  0x12   : > { %v4893_v11 = vld [vmem:[%s4879_s6] sm:$0xff]  ;;  %v4902_v14 = vld [vmem:[%s4879_s6 + $0x8] sm:$0xff]  ;;  %3922 = vmatprep.mubr.msk.f32.mxu0 %vm261_vm0, %v4890_v10  ;;  %v626_v18 = vrot.slane %v4906_v16, 1  ;;  %v4913_v19 = vld [vmem:[%s4879_s6 + $0x18] sm:$0xff] }
  0x13   : > { %v623_v15 = vrot.slane %v4893_v11, 1  ;;  %v624_v17 = vrot.slane %v4902_v14, 1  ;;  %v4916_v20 = vld [vmem:[%s4879_s6 + $0x20] sm:$0xff]  ;;  %v4919_v21 = vld [vmem:[%s4884_s9 + $0x10] sm:$0xff]  ;;  %v628_v22 = vrot.slane %v4913_v19, 1  ;;  %v4924_v24 = vld [vmem:[%s4879_s6 + $0x28] sm:$0xff]  ;;  %3923 = vmatmul.mubr.msk.f32.vlgmr.msra.gmra.mrb[0].mxu0 %vm261_vm0, %v4899_v13 }
  0x14   : > { %v630_v23 = vrot.slane %v4916_v20, 1  ;;  %v632_v27 = vrot.slane %v4924_v24, 1  ;;  %v4936_v28 = vld [vmem:[%s4879_s6 + $0x30] sm:$0xff]  ;;  %4447 = vmatpush3.bf16.msra.mxu0 %v4444_v8  ;;  %v4944_v31 = vld [vmem:[%s4884_s9 + $0x18] sm:$0xff]  ;;  %3925 = vmatprep.mubr.msk.f32.mxu0 %vm261_vm0, %v4919_v21  ;;  %v4960_v35 = vld [vmem:[%s4884_s9 + $0x20] sm:$0xff] }
  0x15   : > { %v4929_v25 = vsel %vm622_vm1, %v623_v15, %v624_v17  ;;  %v4932_v26 = vsel %vm622_vm1, %v624_v17, %v626_v18  ;;  %v4947_v32 = vsel %vm622_vm1, %v626_v18, %v628_v22  ;;  %v4950_v33 = vld [vmem:[%s4879_s6 + $0x38] sm:$0xff]  ;;  %v634_v37 = vrot.slane %v4936_v28, 1  ;;  %v4975_v40 = vld [vmem:[%s4879_s6 + $0x40] sm:$0xff]  ;;  %4449 = vmatprep.subr.bf16.mxu0 %v4448_v29  ;;  %v4982_v42 = vld [vmem:[%s4884_s9 + $0x28] sm:$0xff] }
  0x16   : > { %4183 = vmatprep.mubr.msk.f32.mxu1 %vm261_vm0, %v4929_v25  ;;  %v4965_v36 = vsel %vm622_vm1, %v628_v22, %v630_v23  ;;  %v4971_v38 = vsel %vm622_vm1, %v630_v23, %v632_v27  ;;  %v636_v39 = vrot.slane %v4950_v33, 1  ;;  %v4985_v43 = vld [vmem:[%s4879_s6 + $0x48] sm:$0xff]  ;;  %v4990_v44 = vld [vmem:[%s4884_s9 + $0x30] sm:$0xff]  ;;  %v638_v46 = vrot.slane %v4975_v40, 1  ;;  %v5011_v50 = vld [vmem:[%s4884_s9 + $0x38] sm:$0xff] }
  0x17   : > { %4184 = vmatmul.mubr.msk.f32.vlgmr.msra.gmra.mrb[0].mxu1 %vm261_vm0, %v4932_v26  ;;  %3926 = vmatmul.mubr.msk.f32.gmra.mrb[2].mxu0 %vm261_vm0, %v4944_v31  ;;  %v4995_v45 = vsel %vm622_vm1, %v632_v27, %v634_v37  ;;  %v640_v48 = vrot.slane %v4985_v43, 1  ;;  %v5005_v49 = vld [vmem:[%s4879_s6 + $0x50] sm:$0xff]  ;;  %v5014_v51 = vld [vmem:[%s4879_s6 + $0x58] sm:$0xff]  ;;  %v5020_v52 = vld [vmem:[%s4884_s9 + $0x40] sm:$0xff]  ;;  %v4456_v15 = vpack.c.bf16 %v3338_v12, %v3337_v9  ;;  %v2043_v22 = vrot.slane %v4890_v10, 1 }
  0x18   : > { %4519 = vmatpush3.bf16.msra.mxu1 %v4444_v8  ;;  %4186 = vmatprep.mubr.msk.f32.mxu1 %vm261_vm0, %v4947_v32  ;;  %v5001_v47 = vsel %vm622_vm1, %v634_v37, %v636_v39  ;;  %v5025_v53 = vsel %vm622_vm1, %v636_v39, %v638_v46  ;;  %v642_v54 = vrot.slane %v5005_v49, 1  ;;  %v644_v56 = vrot.slane %v5014_v51, 1  ;;  %v5035_v57 = vld [vmem:[%s4879_s6 + $0x60] sm:$0xff]  ;;  %v5040_v58 = vld [vmem:[%s4884_s9 + $0x48] sm:$0xff]  ;;  %v5048_v60 = vld [vmem:[%s4884_s9 + $0x50] sm:$0xff] }
  0x19   : > { %3928 = vmatprep.mubr.msk.f32.mxu0 %vm261_vm0, %v4960_v35  ;;  %4521 = vmatprep.subr.bf16.mxu1 %v4448_v29  ;;  %v5031_v55 = vsel %vm622_vm1, %v638_v46, %v640_v48  ;;  %v5043_v59 = vld [vmem:[%s4879_s6 + $0x68] sm:$0xff]  ;;  %v646_v62 = vrot.slane %v5035_v57, 1  ;;  %v5063_v1 = vld [vmem:[%s4879_s6 + $0x70] sm:$0xff]  ;;  %v5068_v2 = vld [vmem:[%s4884_s9 + $0x58] sm:$0xff]  ;;  %v2044_v23 = vrot.slane %v4899_v13, 1  ;;  %v2046_v27 = vrot.slane %v4919_v21, 1 }
  0x1a   : > { %4451 = vmatpush3.bf16.msra.mxu0 %v4448_v29  ;;  %v5053_v61 = vsel %vm622_vm1, %v640_v48, %v642_v54  ;;  %v5059_v63 = vsel %vm622_vm1, %v642_v54, %v644_v56  ;;  %v648_v0 = vrot.slane %v5043_v59, 1  ;;  %v5073_v3 = vld [vmem:[%s4884_s9 + $0x60] sm:$0xff]  ;;  %v650_v5 = vrot.slane %v5063_v1, 1  ;;  %v5089_v7 = vld [vmem:[%s4884_s9 + $0x68] sm:$0xff] }
  0x1b   : > { %4187 = vmatmul.mubr.msk.f32.gmra.mrb[2].mxu1 %vm261_vm0, %v4965_v36  ;;  %3929 = vmatmul.mubr.msk.f32.gmra.mrb[4].mxu0 %vm261_vm0, %v4982_v42  ;;  %v5078_v4 = vsel %vm622_vm1, %v644_v56, %v646_v62  ;;  %v3353_v17 = vld [vmem:[%s5780_s2 + $0x60] sm:$0xff]  ;;  %v3354_v18 = vld [vmem:[%s5780_s2 + $0x68] sm:$0xff]  ;;  %v2045_v30 = vsel %vm622_vm1, %v2043_v22, %v2044_v23  ;;  %v2048_v34 = vrot.slane %v4944_v31, 1  ;;  %v5189_v39 = vsel %vm622_vm1, %v2044_v23, %v2046_v27 }
  0x1c   : > { %4189 = vmatprep.mubr.msk.f32.mxu1 %vm261_vm0, %v4971_v38  ;;  %4523 = vmatpush3.bf16.msra.mxu1 %v4448_v29  ;;  %v5084_v6 = vsel %vm622_vm1, %v646_v62, %v648_v0  ;;  %v5098_v8 = vsel %vm622_vm1, %v648_v0, %v650_v5  ;;  %v3356_v29 = vld [vmem:[%s5780_s2 + $0x78] sm:$0xff]  ;;  %v3371_v46 = vld [vmem:[%s5780_s2 + $0x80] sm:$0xff]  ;;  %v3372_v48 = vld [vmem:[%s5780_s2 + $0x88] sm:$0xff]  ;;  %v2052_v54 = vrot.slane %v4982_v42, 1  ;;  %v2054_v0 = vrot.slane %v4990_v44, 1 }
  0x1d   : > { %4453 = vmatprep.subr.bf16.mxu0 %v4977_v41  ;;  %3931 = vmatprep.mubr.msk.f32.mxu0 %vm261_vm0, %v4990_v44  ;;  %v5208_v56 = vpack.c.bf16 %v3372_v48, %v3371_v46  ;;  %v2056_v12 = vrot.slane %v5011_v50, 1  ;;  %v2062_v23 = vrot.slane %v5048_v60, 1 }
  0x1e   : > { %4525 = vmatprep.subr.bf16.mxu1 %v4977_v41 }
  0x1f   : > { %4190 = vmatmul.mubr.msk.f32.gmra.mrb[4].mxu1 %vm261_vm0, %v4995_v45  ;;  %3932 = vmatmul.mubr.msk.f32.gmra.mrb[6].mxu0 %vm261_vm0, %v5011_v50 }
  0x20   : > { %4192 = vmatprep.mubr.msk.f32.mxu1 %vm261_vm0, %v5001_v47  ;;  %3934 = vmatprep.mubr.msk.f32.mxu0 %vm261_vm0, %v5020_v52 }
  0x23   : > { %4193 = vmatmul.mubr.msk.f32.gmra.mrb[6].mxu1 %vm261_vm0, %v5025_v53  ;;  %3935 = vmatmul.mubr.msk.f32.gmra.mrb[8].mxu0 %vm261_vm0, %v5040_v58 }
  0x24   : > { %4195 = vmatprep.mubr.msk.f32.mxu1 %vm261_vm0, %v5031_v55  ;;  %3937 = vmatprep.mubr.msk.f32.mxu0 %vm261_vm0, %v5048_v60 }
  0x27   : > { %4196 = vmatmul.mubr.msk.f32.gmra.mrb[8].mxu1 %vm261_vm0, %v5053_v61  ;;  %3938 = vmatmul.mubr.msk.f32.gmra.mrb[10].mxu0 %vm261_vm0, %v5068_v2 }
  0x28   : > { %4198 = vmatprep.mubr.msk.f32.mxu1 %vm261_vm0, %v5059_v63  ;;  %3940 = vmatprep.mubr.msk.f32.mxu0 %vm261_vm0, %v5073_v3 }
  0x2b   : > { %4199 = vmatmul.mubr.msk.f32.gmra.mrb[10].mxu1 %vm261_vm0, %v5078_v4  ;;  %3941 = vmatmul.mubr.msk.f32.gmra.mrb[12].mxu0 %vm261_vm0, %v5089_v7 }
  0x2c   : > { %4201 = vmatprep.mubr.msk.f32.mxu1 %vm261_vm0, %v5084_v6  ;;  %3951 = vmatprep.mubr.msk.f32.mxu0 %vm261_vm0, %v4893_v11  ;;  %v4460_v11 = vpack.c.bf16 %v3354_v18, %v3353_v17  ;;  %v2058_v17 = vrot.slane %v5020_v52, 1  ;;  %v5236_v18 = vsel %vm622_vm1, %v2054_v0, %v2056_v12 }
  0x2e   : > { %v5247_v22 = vsel %vm622_vm1, %v2056_v12, %v2058_v17  ;;  %v3373_v12 = vld [vmem:[%s5780_s2 + $0x90] sm:$0xff] }
  0x2f   : > { %4202 = vmatmul.mubr.msk.f32.gmra.mrb[12].mxu1 %vm261_vm0, %v5098_v8  ;;  %3952 = vmatmul.mubr.msk.f32.vlgmr.msra.gmra.mrb[0].mxu0 %vm261_vm0, %v4902_v14 }
  0x30   : > { %4212 = vmatprep.mubr.msk.f32.mxu1 %vm261_vm0, %v4890_v10  ;;  %4455 = vmatpush3.bf16.msra.mxu0 %v4977_v41  ;;  %v3355_v10 = vld [vmem:[%s5780_s2 + $0x70] sm:$0xff] }
  0x31   : > { %3954 = vmatprep.mubr.msk.f32.mxu0 %vm261_vm0, %v4906_v16  ;;  %4457 = vmatprep.subr.bf16.mxu0 %v4456_v15  ;;  %v4464_v37 = vpack.c.bf16 %v3356_v29, %v3355_v10  ;;  %v2064_v10 = vrot.slane %v5068_v2, 1 }
  0x33   : > { %4213 = vmatmul.mubr.msk.f32.vlgmr.msra.gmra.mrb[0].mxu1 %vm261_vm0, %v4899_v13  ;;  %3955 = vmatmul.mubr.msk.f32.gmra.mrb[2].mxu0 %vm261_vm0, %v4913_v19 }
  0x34   : > { %4527 = vmatpush3.bf16.msra.mxu1 %v4977_v41  ;;  %4215 = vmatprep.mubr.msk.f32.mxu1 %vm261_vm0, %v4919_v21  ;;  %v2050_v41 = vrot.slane %v4960_v35, 1 }
  0x35   : > { %4529 = vmatprep.subr.bf16.mxu1 %v4456_v15  ;;  %3957 = vmatprep.mubr.msk.f32.mxu0 %vm261_vm0, %v4916_v20 }
  0x36   : > { %4459 = vmatpush3.bf16.msra.mxu0 %v4456_v15  ;;  %v5213_v62 = vsel %vm622_vm1, %v2048_v34, %v2050_v41  ;;  %v5219_v9 = vsel %vm622_vm1, %v2050_v41, %v2052_v54  ;;  %v5273_v41 = vld [vmem:[%s4884_s9 + $0x70] sm:$0xff] }
  0x37   : > { %4216 = vmatmul.mubr.msk.f32.gmra.mrb[2].mxu1 %vm261_vm0, %v4944_v31  ;;  %4461 = vmatprep.subr.bf16.mxu0 %v4460_v11  ;;  %v2070_v48 = vrot.slane %v5273_v41, 1 }
  0x38   : > { %4218 = vmatprep.mubr.msk.f32.mxu1 %vm261_vm0, %v4960_v35  ;;  %4531 = vmatpush3.bf16.msra.mxu1 %v4456_v15  ;;  %v5230_v15 = vsel %vm622_vm1, %v2052_v54, %v2054_v0 }
  0x39   : > { %3958 = vmatmul.mubr.msk.f32.gmra.mrb[4].mxu0 %vm261_vm0, %v4924_v24  ;;  %4533 = vmatprep.subr.bf16.mxu1 %v4460_v11 }
  0x3a   : > { %3960 = vmatprep.mubr.msk.f32.mxu0 %vm261_vm0, %v4936_v28 }
  0x3b   : > { %4219 = vmatmul.mubr.msk.f32.gmra.mrb[4].mxu1 %vm261_vm0, %v4982_v42 }
  0x3c   : > { %4221 = vmatprep.mubr.msk.f32.mxu1 %vm261_vm0, %v4990_v44 }
  0x3d   : > { %3961 = vmatmul.mubr.msk.f32.gmra.mrb[6].mxu0 %vm261_vm0, %v4950_v33 }
  0x3e   : > { %3963 = vmatprep.mubr.msk.f32.mxu0 %vm261_vm0, %v4975_v40 }
  0x3f   : > { %4222 = vmatmul.mubr.msk.f32.gmra.mrb[6].mxu1 %vm261_vm0, %v5011_v50 }
  0x40   : > { %4224 = vmatprep.mubr.msk.f32.mxu1 %vm261_vm0, %v5020_v52 }
  0x41   : > { %3964 = vmatmul.mubr.msk.f32.gmra.mrb[8].mxu0 %vm261_vm0, %v4985_v43 }
  0x42   : > { %3966 = vmatprep.mubr.msk.f32.mxu0 %vm261_vm0, %v5005_v49 }
  0x43   : > { %4225 = vmatmul.mubr.msk.f32.gmra.mrb[8].mxu1 %vm261_vm0, %v5040_v58 }
  0x44   : > { %4227 = vmatprep.mubr.msk.f32.mxu1 %vm261_vm0, %v5048_v60 }
  0x45   : > { %3967 = vmatmul.mubr.msk.f32.gmra.mrb[10].mxu0 %vm261_vm0, %v5014_v51 }
  0x46   : > { %3969 = vmatprep.mubr.msk.f32.mxu0 %vm261_vm0, %v5035_v57 }
  0x47   : > { %4228 = vmatmul.mubr.msk.f32.gmra.mrb[10].mxu1 %vm261_vm0, %v5068_v2 }
  0x48   : > { %4230 = vmatprep.mubr.msk.f32.mxu1 %vm261_vm0, %v5073_v3 }
  0x49   : > { %3970 = vmatmul.mubr.msk.f32.gmra.mrb[12].mxu0 %vm261_vm0, %v5043_v59 }
  0x4a   : > { %3980 = vmatprep.mubr.msk.f32.mxu0 %vm261_vm0, %v4929_v25  ;;  %v5201_v25 = vsel %vm622_vm1, %v2046_v27, %v2048_v34  ;;  %v5269_v34 = vsel %vm622_vm1, %v2062_v23, %v2064_v10 }
  0x4b   : > { %4231 = vmatmul.mubr.msk.f32.gmra.mrb[12].mxu1 %vm261_vm0, %v5089_v7 }
  0x4c   : > { %4241 = vmatprep.mubr.msk.f32.mxu1 %vm261_vm0, %v2045_v30  ;;  %v2066_v30 = vrot.slane %v5073_v3, 1 }
  0x4d   : > { %3981 = vmatmul.mubr.msk.f32.vlgmr.msra.gmra.mrb[0].mxu0 %vm261_vm0, %v4932_v26 }
  0x4e   : > { %4463 = vmatpush3.bf16.msra.mxu0 %v4460_v11  ;;  %3983 = vmatprep.mubr.msk.f32.mxu0 %vm261_vm0, %v4947_v32  ;;  %v5282_v46 = vsel %vm622_vm1, %v2064_v10, %v2066_v30  ;;  %v3390_v10 = vld [vmem:[%s5780_s2 + $0xa8] sm:$0xff] }
  0x4f   : > { %4242 = vmatmul.mubr.msk.f32.vlgmr.msra.gmra.mrb[0].mxu1 %vm261_vm0, %v5189_v39  ;;  %4465 = vmatprep.subr.bf16.mxu0 %v4464_v37 }
  0x50   : > { %4535 = vmatpush3.bf16.msra.mxu1 %v4460_v11  ;;  %4244 = vmatprep.mubr.msk.f32.mxu1 %vm261_vm0, %v5201_v25  ;;  %v2060_v11 = vrot.slane %v5040_v58, 1 }
  0x51   : > { %3984 = vmatmul.mubr.msk.f32.gmra.mrb[2].mxu0 %vm261_vm0, %v4965_v36  ;;  %4537 = vmatprep.subr.bf16.mxu1 %v4464_v37 }
  0x52   : > { %3986 = vmatprep.mubr.msk.f32.mxu0 %vm261_vm0, %v4971_v38  ;;  %4467 = vmatpush3.bf16.msra.mxu0 %v4464_v37  ;;  %v5253_v27 = vsel %vm622_vm1, %v2058_v17, %v2060_v11  ;;  %v5263_v29 = vsel %vm622_vm1, %v2060_v11, %v2062_v23  ;;  %v3374_v17 = vld [vmem:[%s5780_s2 + $0x98] sm:$0xff]  ;;  %v3389_v23 = vld [vmem:[%s5780_s2 + $0xa0] sm:$0xff] }
  0x53   : > { %4245 = vmatmul.mubr.msk.f32.gmra.mrb[2].mxu1 %vm261_vm0, %v5213_v62  ;;  %4469 = vmatprep.subr.bf16.mxu0 %v5208_v56  ;;  %v4472_v11 = vpack.c.bf16 %v3374_v17, %v3373_v12  ;;  %v3407_v12 = vld [vmem:[%s5780_s2 + $0xc0] sm:$0xff]  ;;  %v3408_v17 = vld [vmem:[%s5780_s2 + $0xc8] sm:$0xff] }
  0x54   : > { %4247 = vmatprep.mubr.msk.f32.mxu1 %vm261_vm0, %v5219_v9  ;;  %4539 = vmatpush3.bf16.msra.mxu1 %v4464_v37  ;;  %v2068_v37 = vrot.slane %v5089_v7, 1 }
  0x55   : > { %3987 = vmatmul.mubr.msk.f32.gmra.mrb[4].mxu0 %vm261_vm0, %v4995_v45  ;;  %4541 = vmatprep.subr.bf16.mxu1 %v5208_v56 }
  0x56   : > { %3989 = vmatprep.mubr.msk.f32.mxu0 %vm261_vm0, %v5001_v47  ;;  %v5288_v54 = vsel %vm622_vm1, %v2066_v30, %v2068_v37  ;;  %v5299_v0 = vsel %vm622_vm1, %v2068_v37, %v2070_v48  ;;  %v3392_v30 = vld [vmem:[%s5780_s2 + $0xb8] sm:$0xff] }
  0x57   : > { %4248 = vmatmul.mubr.msk.f32.gmra.mrb[4].mxu1 %vm261_vm0, %v5230_v15 }
  0x58   : > { %4250 = vmatprep.mubr.msk.f32.mxu1 %vm261_vm0, %v5236_v18 }
  0x59   : > { %3990 = vmatmul.mubr.msk.f32.gmra.mrb[6].mxu0 %vm261_vm0, %v5025_v53 }
  0x5a   : > { %3992 = vmatprep.mubr.msk.f32.mxu0 %vm261_vm0, %v5031_v55 }
  0x5b   : > { %4251 = vmatmul.mubr.msk.f32.gmra.mrb[6].mxu1 %vm261_vm0, %v5247_v22 }
  0x5c   : > { %4253 = vmatprep.mubr.msk.f32.mxu1 %vm261_vm0, %v5253_v27 }
  0x5d   : > { %3993 = vmatmul.mubr.msk.f32.gmra.mrb[8].mxu0 %vm261_vm0, %v5053_v61 }
  0x5e   : > { %3995 = vmatprep.mubr.msk.f32.mxu0 %vm261_vm0, %v5059_v63 }
  0x5f   : > { %4254 = vmatmul.mubr.msk.f32.gmra.mrb[8].mxu1 %vm261_vm0, %v5263_v29 }
  0x60   : > { %4256 = vmatprep.mubr.msk.f32.mxu1 %vm261_vm0, %v5269_v34 }
  0x61   : > { %3996 = vmatmul.mubr.msk.f32.gmra.mrb[10].mxu0 %vm261_vm0, %v5078_v4 }
  0x62   : > { %3998 = vmatprep.mubr.msk.f32.mxu0 %vm261_vm0, %v5084_v6 }
  0x63   : > { %4257 = vmatmul.mubr.msk.f32.gmra.mrb[10].mxu1 %vm261_vm0, %v5282_v46 }
  0x64   : > { %4259 = vmatprep.mubr.msk.f32.mxu1 %vm261_vm0, %v5288_v54 }
  0x65   : > { %3999 = vmatmul.mubr.msk.f32.gmra.mrb[12].mxu0 %vm261_vm0, %v5098_v8 }
  0x66   : > { %4009 = vmatprep.mubr.msk.f32.mxu0 %vm261_vm0, %v4902_v14  ;;  %v4476_v14 = vpack.c.bf16 %v3390_v10, %v3389_v23 }
  0x67   : > { %4260 = vmatmul.mubr.msk.f32.gmra.mrb[12].mxu1 %vm261_vm0, %v5299_v0 }
  0x68   : > { %4270 = vmatprep.mubr.msk.f32.mxu1 %vm261_vm0, %v4899_v13 }
  0x69   : > { %4010 = vmatmul.mubr.msk.f32.vlgmr.msra.gmra.mrb[0].mxu0 %vm261_vm0, %v4906_v16 }
  0x6a   : > { %4471 = vmatpush3.bf16.msra.mxu0 %v5208_v56  ;;  %4012 = vmatprep.mubr.msk.f32.mxu0 %vm261_vm0, %v4913_v19 }
  0x6b   : > { %4271 = vmatmul.mubr.msk.f32.vlgmr.msra.gmra.mrb[0].mxu1 %vm261_vm0, %v4919_v21  ;;  %4473 = vmatprep.subr.bf16.mxu0 %v4472_v11 }
  0x6c   : > { %4543 = vmatpush3.bf16.msra.mxu1 %v5208_v56  ;;  %4273 = vmatprep.mubr.msk.f32.mxu1 %vm261_vm0, %v4944_v31  ;;  %v3391_v56 = vld [vmem:[%s5780_s2 + $0xb0] sm:$0xff] }
  0x6d   : > { %4013 = vmatmul.mubr.msk.f32.gmra.mrb[2].mxu0 %vm261_vm0, %v4916_v20  ;;  %4545 = vmatprep.subr.bf16.mxu1 %v4472_v11  ;;  %v4480_v37 = vpack.c.bf16 %v3392_v30, %v3391_v56  ;;  %v3410_v56 = vld [vmem:[%s5780_s2 + $0xd8] sm:$0xff] }
  0x6e   : > { %4015 = vmatprep.mubr.msk.f32.mxu0 %vm261_vm0, %v4924_v24  ;;  %4475 = vmatpush3.bf16.msra.mxu0 %v4472_v11 }
  0x6f   : > { %4274 = vmatmul.mubr.msk.f32.gmra.mrb[2].mxu1 %vm261_vm0, %v4960_v35  ;;  %4477 = vmatprep.subr.bf16.mxu0 %v4476_v14 }
  0x70   : > { %4276 = vmatprep.mubr.msk.f32.mxu1 %vm261_vm0, %v4982_v42  ;;  %4547 = vmatpush3.bf16.msra.mxu1 %v4472_v11  ;;  %v5426_v11 = vld [vmem:[%s4879_s6 + $0x78] sm:$0xff] }
  0x71   : > { %4016 = vmatmul.mubr.msk.f32.gmra.mrb[4].mxu0 %vm261_vm0, %v4936_v28  ;;  %4549 = vmatprep.subr.bf16.mxu1 %v4476_v14  ;;  %v1148_v23 = vrot.slane %v5426_v11, 1 }
  0x72   : > { %4018 = vmatprep.mubr.msk.f32.mxu0 %vm261_vm0, %v4950_v33 }
  0x73   : > { %4277 = vmatmul.mubr.msk.f32.gmra.mrb[4].mxu1 %vm261_vm0, %v4990_v44  ;;  %v5448_v10 = vsel %vm622_vm1, %v650_v5, %v1148_v23  ;;  %v3425_v5 = vld [vmem:[%s5780_s2 + $0xe0] sm:$0xff] }
  0x74   : > { %4279 = vmatprep.mubr.msk.f32.mxu1 %vm261_vm0, %v5011_v50 }
  0x75   : > { %4019 = vmatmul.mubr.msk.f32.gmra.mrb[6].mxu0 %vm261_vm0, %v4975_v40 }
  0x76   : > { %4021 = vmatprep.mubr.msk.f32.mxu0 %vm261_vm0, %v4985_v43 }
  0x77   : > { %4280 = vmatmul.mubr.msk.f32.gmra.mrb[6].mxu1 %vm261_vm0, %v5020_v52 }
  0x78   : > { %4282 = vmatprep.mubr.msk.f32.mxu1 %vm261_vm0, %v5040_v58 }
  0x79   : > { %4022 = vmatmul.mubr.msk.f32.gmra.mrb[8].mxu0 %vm261_vm0, %v5005_v49 }
  0x7a   : > { %4024 = vmatprep.mubr.msk.f32.mxu0 %vm261_vm0, %v5014_v51 }
  0x7b   : > { %4283 = vmatmul.mubr.msk.f32.gmra.mrb[8].mxu1 %vm261_vm0, %v5048_v60 }
  0x7c   : > { %4285 = vmatprep.mubr.msk.f32.mxu1 %vm261_vm0, %v5068_v2 }
  0x7d   : > { %4025 = vmatmul.mubr.msk.f32.gmra.mrb[10].mxu0 %vm261_vm0, %v5035_v57 }
  0x7e   : > { %4027 = vmatprep.mubr.msk.f32.mxu0 %vm261_vm0, %v5043_v59 }
  0x7f   : > { %4286 = vmatmul.mubr.msk.f32.gmra.mrb[10].mxu1 %vm261_vm0, %v5073_v3 }
  0x80   : > { %4288 = vmatprep.mubr.msk.f32.mxu1 %vm261_vm0, %v5089_v7 }
  0x81   : > { %4028 = vmatmul.mubr.msk.f32.gmra.mrb[12].mxu0 %vm261_vm0, %v5063_v1 }
  0x82   : > { %4038 = vmatprep.mubr.msk.f32.mxu0 %vm261_vm0, %v4899_v13  ;;  %v4484_v13 = vpack.c.bf16 %v3408_v17, %v3407_v12 }
  0x83   : > { %4289 = vmatmul.mubr.msk.f32.gmra.mrb[12].mxu1 %vm261_vm0, %v5273_v41 }
  0x84   : > { %4299 = vmatprep.mubr.msk.f32.mxu1 %vm261_vm0, %v4932_v26 }
  0x85   : > { %4039 = vmatmul.mubr.msk.f32.vlgmr.msra.gmra.mrb[0].mxu0 %vm261_vm0, %v4919_v21 }
  0x86   : > { %4479 = vmatpush3.bf16.msra.mxu0 %v4476_v14  ;;  %4041 = vmatprep.mubr.msk.f32.mxu0 %vm261_vm0, %v4944_v31 }
  0x87   : > { %4300 = vmatmul.mubr.msk.f32.vlgmr.msra.gmra.mrb[0].mxu1 %vm261_vm0, %v4947_v32  ;;  %4481 = vmatprep.subr.bf16.mxu0 %v4480_v37 }
  0x88   : > { %4551 = vmatpush3.bf16.msra.mxu1 %v4476_v14  ;;  %4302 = vmatprep.mubr.msk.f32.mxu1 %vm261_vm0, %v4965_v36  ;;  %v3409_v14 = vld [vmem:[%s5780_s2 + $0xd0] sm:$0xff] }
  0x89   : > { %4042 = vmatmul.mubr.msk.f32.gmra.mrb[2].mxu0 %vm261_vm0, %v4960_v35  ;;  %4553 = vmatprep.subr.bf16.mxu1 %v4480_v37  ;;  %v4488_v30 = vpack.c.bf16 %v3410_v56, %v3409_v14  ;;  %v3428_v14 = vld [vmem:[%s5780_s2 + $0xf8] sm:$0xff] }
  0x8a   : > { %4044 = vmatprep.mubr.msk.f32.mxu0 %vm261_vm0, %v4982_v42  ;;  %4483 = vmatpush3.bf16.msra.mxu0 %v4480_v37 }
  0x8b   : > { %4303 = vmatmul.mubr.msk.f32.gmra.mrb[2].mxu1 %vm261_vm0, %v4971_v38  ;;  %4485 = vmatprep.subr.bf16.mxu0 %v4484_v13 }
  0x8c   : > { %4305 = vmatprep.mubr.msk.f32.mxu1 %vm261_vm0, %v4995_v45  ;;  %4555 = vmatpush3.bf16.msra.mxu1 %v4480_v37  ;;  %v3426_v37 = vld [vmem:[%s5780_s2 + $0xe8] sm:$0xff] }
  0x8d   : > { %4045 = vmatmul.mubr.msk.f32.gmra.mrb[4].mxu0 %vm261_vm0, %v4990_v44  ;;  %4557 = vmatprep.subr.bf16.mxu1 %v4484_v13 }
  0x8e   : > { %4047 = vmatprep.mubr.msk.f32.mxu0 %vm261_vm0, %v5011_v50 }
  0x8f   : > { %4306 = vmatmul.mubr.msk.f32.gmra.mrb[4].mxu1 %vm261_vm0, %v5001_v47 }
  0x90   : > { %4308 = vmatprep.mubr.msk.f32.mxu1 %vm261_vm0, %v5025_v53 }
  0x91   : > { %4048 = vmatmul.mubr.msk.f32.gmra.mrb[6].mxu0 %vm261_vm0, %v5020_v52 }
  0x92   : > { %4050 = vmatprep.mubr.msk.f32.mxu0 %vm261_vm0, %v5040_v58 }
  0x93   : > { %4309 = vmatmul.mubr.msk.f32.gmra.mrb[6].mxu1 %vm261_vm0, %v5031_v55 }
  0x94   : > { %4311 = vmatprep.mubr.msk.f32.mxu1 %vm261_vm0, %v5053_v61 }
  0x95   : > { %4051 = vmatmul.mubr.msk.f32.gmra.mrb[8].mxu0 %vm261_vm0, %v5048_v60 }
  0x96   : > { %4053 = vmatprep.mubr.msk.f32.mxu0 %vm261_vm0, %v5068_v2 }
  0x97   : > { %4312 = vmatmul.mubr.msk.f32.gmra.mrb[8].mxu1 %vm261_vm0, %v5059_v63 }
  0x98   : > { %4314 = vmatprep.mubr.msk.f32.mxu1 %vm261_vm0, %v5078_v4 }
  0x99   : > { %4054 = vmatmul.mubr.msk.f32.gmra.mrb[10].mxu0 %vm261_vm0, %v5073_v3 }
  0x9a   : > { %4056 = vmatprep.mubr.msk.f32.mxu0 %vm261_vm0, %v5089_v7 }
  0x9b   : > { %4315 = vmatmul.mubr.msk.f32.gmra.mrb[10].mxu1 %vm261_vm0, %v5084_v6 }
  0x9c   : > { %4317 = vmatprep.mubr.msk.f32.mxu1 %vm261_vm0, %v5098_v8 }
  0x9d   : > { %4057 = vmatmul.mubr.msk.f32.gmra.mrb[12].mxu0 %vm261_vm0, %v5273_v41 }
  0x9e   : > { %4067 = vmatprep.mubr.msk.f32.mxu0 %vm261_vm0, %v4932_v26  ;;  %v4492_v26 = vpack.c.bf16 %v3426_v37, %v3425_v5 }
  0x9f   : > { %4318 = vmatmul.mubr.msk.f32.gmra.mrb[12].mxu1 %vm261_vm0, %v5448_v10 }
  0xa0   : > { %4328 = vmatprep.mubr.msk.f32.mxu1 %vm261_vm0, %v5189_v39  ;;  %v5505_v39 = vld [vmem:[%s4884_s9 + $0x78] sm:$0xff] }
  0xa1   : > { %4068 = vmatmul.mubr.msk.f32.vlgmr.msra.gmra.mrb[0].mxu0 %vm261_vm0, %v4947_v32  ;;  %v2547_v12 = vrot.slane %v5505_v39, 1 }
  0xa2   : > { %4487 = vmatpush3.bf16.msra.mxu0 %v4484_v13  ;;  %4070 = vmatprep.mubr.msk.f32.mxu0 %vm261_vm0, %v4965_v36 }
  0xa3   : > { %4329 = vmatmul.mubr.msk.f32.vlgmr.msra.gmra.mrb[0].mxu1 %vm261_vm0, %v5201_v25  ;;  %4489 = vmatprep.subr.bf16.mxu0 %v4488_v30  ;;  %v5527_v17 = vsel %vm622_vm1, %v2070_v48, %v2547_v12  ;;  %v3443_v48 = vld [vmem:[%s5780_s2 + $0x100] sm:$0xff] }
  0xa4   : > { %4559 = vmatpush3.bf16.msra.mxu1 %v4484_v13  ;;  %4331 = vmatprep.mubr.msk.f32.mxu1 %vm261_vm0, %v5213_v62  ;;  %v3427_v13 = vld [vmem:[%s5780_s2 + $0xf0] sm:$0xff] }
  0xa5   : > { %4071 = vmatmul.mubr.msk.f32.gmra.mrb[2].mxu0 %vm261_vm0, %v4971_v38  ;;  %4561 = vmatprep.subr.bf16.mxu1 %v4488_v30  ;;  %v4496_v56 = vpack.c.bf16 %v3428_v14, %v3427_v13 }
  0xa6   : > { %4073 = vmatprep.mubr.msk.f32.mxu0 %vm261_vm0, %v4995_v45  ;;  %4491 = vmatpush3.bf16.msra.mxu0 %v4488_v30 }
  0xa7   : > { %4332 = vmatmul.mubr.msk.f32.gmra.mrb[2].mxu1 %vm261_vm0, %v5219_v9  ;;  %4493 = vmatprep.subr.bf16.mxu0 %v4492_v26 }
  0xa8   : > { %4334 = vmatprep.mubr.msk.f32.mxu1 %vm261_vm0, %v5230_v15  ;;  %4563 = vmatpush3.bf16.msra.mxu1 %v4488_v30  ;;  %v3444_v30 = vld [vmem:[%s5780_s2 + $0x108] sm:$0xff] }
  0xa9   : > { %4074 = vmatmul.mubr.msk.f32.gmra.mrb[4].mxu0 %vm261_vm0, %v5001_v47  ;;  %4565 = vmatprep.subr.bf16.mxu1 %v4492_v26 }
  0xaa   : > { %4076 = vmatprep.mubr.msk.f32.mxu0 %vm261_vm0, %v5025_v53 }
  0xab   : > { %4335 = vmatmul.mubr.msk.f32.gmra.mrb[4].mxu1 %vm261_vm0, %v5236_v18 }
  0xac   : > { %4337 = vmatprep.mubr.msk.f32.mxu1 %vm261_vm0, %v5247_v22 }
  0xad   : > { %4077 = vmatmul.mubr.msk.f32.gmra.mrb[6].mxu0 %vm261_vm0, %v5031_v55 }
  0xae   : > { %4079 = vmatprep.mubr.msk.f32.mxu0 %vm261_vm0, %v5053_v61 }
  0xaf   : > { %4338 = vmatmul.mubr.msk.f32.gmra.mrb[6].mxu1 %vm261_vm0, %v5253_v27 }
  0xb0   : > { %4340 = vmatprep.mubr.msk.f32.mxu1 %vm261_vm0, %v5263_v29 }
  0xb1   : > { %4080 = vmatmul.mubr.msk.f32.gmra.mrb[8].mxu0 %vm261_vm0, %v5059_v63 }
  0xb2   : > { %4082 = vmatprep.mubr.msk.f32.mxu0 %vm261_vm0, %v5078_v4 }
  0xb3   : > { %4341 = vmatmul.mubr.msk.f32.gmra.mrb[8].mxu1 %vm261_vm0, %v5269_v34 }
  0xb4   : > { %4343 = vmatprep.mubr.msk.f32.mxu1 %vm261_vm0, %v5282_v46 }
  0xb5   : > { %4083 = vmatmul.mubr.msk.f32.gmra.mrb[10].mxu0 %vm261_vm0, %v5084_v6 }
  0xb6   : > { %4085 = vmatprep.mubr.msk.f32.mxu0 %vm261_vm0, %v5098_v8 }
  0xb7   : > { %4344 = vmatmul.mubr.msk.f32.gmra.mrb[10].mxu1 %vm261_vm0, %v5288_v54 }
  0xb8   : > { %4346 = vmatprep.mubr.msk.f32.mxu1 %vm261_vm0, %v5299_v0 }
  0xb9   : > { %4086 = vmatmul.mubr.msk.f32.gmra.mrb[12].mxu0 %vm261_vm0, %v5448_v10 }
  0xba   : > { %4096 = vmatprep.mubr.msk.f32.mxu0 %vm261_vm0, %v4906_v16  ;;  %v4500_v16 = vpack.c.bf16 %v3444_v30, %v3443_v48 }
  0xbb   : > { %4347 = vmatmul.mubr.msk.f32.gmra.mrb[12].mxu1 %vm261_vm0, %v5527_v17 }
  0xbc   : > { %4357 = vmatprep.mubr.msk.f32.mxu1 %vm261_vm0, %v4919_v21 }
  0xbd   : > { %4097 = vmatmul.mubr.msk.f32.vlgmr.msra.gmra.mrb[0].mxu0 %vm261_vm0, %v4913_v19  ;;  %v3445_v19 = vld [vmem:[%s5780_s2 + $0x110] sm:$0xff] }
  0xbe   : > { %4495 = vmatpush3.bf16.msra.mxu0 %v4492_v26  ;;  %4099 = vmatprep.mubr.msk.f32.mxu0 %vm261_vm0, %v4916_v20  ;;  %v3446_v20 = vld [vmem:[%s5780_s2 + $0x118] sm:$0xff] }
  0xbf   : > { %4358 = vmatmul.mubr.msk.f32.vlgmr.msra.gmra.mrb[0].mxu1 %vm261_vm0, %v4944_v31  ;;  %4497 = vmatprep.subr.bf16.mxu0 %v4496_v56 }
  0xc0   : > { %4567 = vmatpush3.bf16.msra.mxu1 %v4492_v26  ;;  %4360 = vmatprep.mubr.msk.f32.mxu1 %vm261_vm0, %v4960_v35 }
  0xc1   : > { %4100 = vmatmul.mubr.msk.f32.gmra.mrb[2].mxu0 %vm261_vm0, %v4924_v24  ;;  %4569 = vmatprep.subr.bf16.mxu1 %v4496_v56  ;;  %v4504_v24 = vpack.c.bf16 %v3446_v20, %v3445_v19 }
  0xc2   : > { %4102 = vmatprep.mubr.msk.f32.mxu0 %vm261_vm0, %v4936_v28  ;;  %4499 = vmatpush3.bf16.msra.mxu0 %v4496_v56 }
  0xc3   : > { %4361 = vmatmul.mubr.msk.f32.gmra.mrb[2].mxu1 %vm261_vm0, %v4982_v42  ;;  %4501 = vmatprep.subr.bf16.mxu0 %v4500_v16 }
  0xc4   : > { %4363 = vmatprep.mubr.msk.f32.mxu1 %vm261_vm0, %v4990_v44  ;;  %4571 = vmatpush3.bf16.msra.mxu1 %v4496_v56 }
  0xc5   : > { %4103 = vmatmul.mubr.msk.f32.gmra.mrb[4].mxu0 %vm261_vm0, %v4950_v33  ;;  %4573 = vmatprep.subr.bf16.mxu1 %v4500_v16 }
  0xc6   : > { %4105 = vmatprep.mubr.msk.f32.mxu0 %vm261_vm0, %v4975_v40 }
  0xc7   : > { %4364 = vmatmul.mubr.msk.f32.gmra.mrb[4].mxu1 %vm261_vm0, %v5011_v50 }
  0xc8   : > { %4366 = vmatprep.mubr.msk.f32.mxu1 %vm261_vm0, %v5020_v52 }
  0xc9   : > { %4106 = vmatmul.mubr.msk.f32.gmra.mrb[6].mxu0 %vm261_vm0, %v4985_v43 }
  0xca   : > { %4108 = vmatprep.mubr.msk.f32.mxu0 %vm261_vm0, %v5005_v49 }
  0xcb   : > { %4367 = vmatmul.mubr.msk.f32.gmra.mrb[6].mxu1 %vm261_vm0, %v5040_v58 }
  0xcc   : > { %4369 = vmatprep.mubr.msk.f32.mxu1 %vm261_vm0, %v5048_v60 }
  0xcd   : > { %4109 = vmatmul.mubr.msk.f32.gmra.mrb[8].mxu0 %vm261_vm0, %v5014_v51 }
  0xce   : > { %4111 = vmatprep.mubr.msk.f32.mxu0 %vm261_vm0, %v5035_v57 }
  0xcf   : > { %4370 = vmatmul.mubr.msk.f32.gmra.mrb[8].mxu1 %vm261_vm0, %v5068_v2 }
  0xd0   : > { %4372 = vmatprep.mubr.msk.f32.mxu1 %vm261_vm0, %v5073_v3 }
  0xd1   : > { %4112 = vmatmul.mubr.msk.f32.gmra.mrb[10].mxu0 %vm261_vm0, %v5043_v59 }
  0xd2   : > { %4114 = vmatprep.mubr.msk.f32.mxu0 %vm261_vm0, %v5063_v1 }
  0xd3   : > { %4373 = vmatmul.mubr.msk.f32.gmra.mrb[10].mxu1 %vm261_vm0, %v5089_v7 }
  0xd4   : > { %4375 = vmatprep.mubr.msk.f32.mxu1 %vm261_vm0, %v5273_v41 }
  0xd5   : > { %4115 = vmatmul.mubr.msk.f32.gmra.mrb[12].mxu0 %vm261_vm0, %v5426_v11 }
  0xd6   : > { %4125 = vmatprep.mubr.msk.f32.mxu0 %vm261_vm0, %v4919_v21  ;;  %v234_v21 = vld [vmem:[%s4879_s6 + $0x80] sm:$0xff] }
  0xd7   : > { %4376 = vmatmul.mubr.msk.f32.gmra.mrb[12].mxu1 %vm261_vm0, %v5505_v39  ;;  %v1620_v28 = vrot.slane %v234_v21, 1 }
  0xd8   : > { %4386 = vmatprep.mubr.msk.f32.mxu1 %vm261_vm0, %v4947_v32 }
  0xd9   : > { %4126 = vmatmul.mubr.msk.f32.vlgmr.msra.gmra.mrb[0].mxu0 %vm261_vm0, %v4944_v31  ;;  %v1621_v31 = vsel %vm622_vm1, %v1148_v23, %v1620_v28 }
  0xda   : > { %4503 = vmatpush3.bf16.msra.mxu0 %v4500_v16  ;;  %4128 = vmatprep.mubr.msk.f32.mxu0 %vm261_vm0, %v4960_v35 }
  0xdb   : > { %4387 = vmatmul.mubr.msk.f32.vlgmr.msra.gmra.mrb[0].mxu1 %vm261_vm0, %v4965_v36  ;;  %4505 = vmatprep.subr.bf16.mxu0 %v4504_v24 }
  0xdc   : > { %4575 = vmatpush3.bf16.msra.mxu1 %v4500_v16  ;;  %4389 = vmatprep.mubr.msk.f32.mxu1 %vm261_vm0, %v4971_v38 }
  0xdd   : > { %4129 = vmatmul.mubr.msk.f32.gmra.mrb[2].mxu0 %vm261_vm0, %v4982_v42  ;;  %4577 = vmatprep.subr.bf16.mxu1 %v4504_v24  ;;  %v5727_v42 = vld [vmem:[%s5781_s3] ss:$0 sm:$0xff] }
  0xde   : > { %4131 = vmatprep.mubr.msk.f32.mxu0 %vm261_vm0, %v4990_v44  ;;  %4507 = vmatpush3.bf16.msra.mxu0 %v4504_v24 }
  0xdf   : > { %4390 = vmatmul.mubr.msk.f32.gmra.mrb[2].mxu1 %vm261_vm0, %v4995_v45 }
  0xe0   : > { %4392 = vmatprep.mubr.msk.f32.mxu1 %vm261_vm0, %v5001_v47  ;;  %4579 = vmatpush3.bf16.msra.mxu1 %v4504_v24 }
  0xe1   : > { %4132 = vmatmul.mubr.msk.f32.gmra.mrb[4].mxu0 %vm261_vm0, %v5011_v50 }
  0xe2   : > { %4134 = vmatprep.mubr.msk.f32.mxu0 %vm261_vm0, %v5020_v52 }
  0xe3   : > { %4393 = vmatmul.mubr.msk.f32.gmra.mrb[4].mxu1 %vm261_vm0, %v5025_v53 }
  0xe4   : > { %4395 = vmatprep.mubr.msk.f32.mxu1 %vm261_vm0, %v5031_v55 }
  0xe5   : > { %4135 = vmatmul.mubr.msk.f32.gmra.mrb[6].mxu0 %vm261_vm0, %v5040_v58 }
  0xe6   : > { %4137 = vmatprep.mubr.msk.f32.mxu0 %vm261_vm0, %v5048_v60 }
  0xe7   : > { %4396 = vmatmul.mubr.msk.f32.gmra.mrb[6].mxu1 %vm261_vm0, %v5053_v61 }
  0xe8   : > { %4398 = vmatprep.mubr.msk.f32.mxu1 %vm261_vm0, %v5059_v63 }
  0xe9   : > { %4138 = vmatmul.mubr.msk.f32.gmra.mrb[8].mxu0 %vm261_vm0, %v5068_v2 }
  0xea   : > { %4140 = vmatprep.mubr.msk.f32.mxu0 %vm261_vm0, %v5073_v3 }
  0xeb   : > { %4399 = vmatmul.mubr.msk.f32.gmra.mrb[8].mxu1 %vm261_vm0, %v5078_v4 }
  0xec   : > { %4401 = vmatprep.mubr.msk.f32.mxu1 %vm261_vm0, %v5084_v6 }
  0xed   : > { %4141 = vmatmul.mubr.msk.f32.gmra.mrb[10].mxu0 %vm261_vm0, %v5089_v7 }
  0xee   : > { %4143 = vmatprep.mubr.msk.f32.mxu0 %vm261_vm0, %v5273_v41 }
  0xef   : > { %4402 = vmatmul.mubr.msk.f32.gmra.mrb[10].mxu1 %vm261_vm0, %v5098_v8 }
  0xf0   : > { %4404 = vmatprep.mubr.msk.f32.mxu1 %vm261_vm0, %v5448_v10 }
  0xf1   : > { %4144 = vmatmul.mubr.msk.f32.gmra.mrb[12].mxu0 %vm261_vm0, %v5505_v39 }
  0xf2   : > { %4154 = vmatprep.mubr.msk.f32.mxu0 %vm261_vm0, %v4947_v32  ;;  %v251_v32 = vld [vmem:[%s4884_s9 + $0x80] sm:$0xff] }
  0xf3   : > { %4405 = vmatmul.mubr.msk.f32.gmra.mrb[12].mxu1 %vm261_vm0, %v1621_v31  ;;  %v2999_v33 = vrot.slane %v251_v32, 1 }
  0xf4   : > { %4415 = vmatprep.mubr.msk.f32.mxu1 %vm261_vm0, %v5201_v25 }
  0xf5   : > { %4155 = vmatmul.mubr.msk.f32.vlgmr.msra.gmra.mrb[0].mxu0 %vm261_vm0, %v4965_v36  ;;  %v3000_v35 = vsel %vm622_vm1, %v2547_v12, %v2999_v33 }
  0xf6   : > { %4157 = vmatprep.mubr.msk.f32.mxu0 %vm261_vm0, %v4971_v38 }
  0xf7   : > { %4416 = vmatmul.mubr.msk.f32.vlgmr.msra.gmra.mrb[0].mxu1 %vm261_vm0, %v5213_v62 }
  0xf8   : > { %4418 = vmatprep.mubr.msk.f32.mxu1 %vm261_vm0, %v5219_v9 }
  0xf9   : > { %4158 = vmatmul.mubr.msk.f32.gmra.mrb[2].mxu0 %vm261_vm0, %v4995_v45 }
  0xfa   : > { %4160 = vmatprep.mubr.msk.f32.mxu0 %vm261_vm0, %v5001_v47 }
  0xfb   : > { %4419 = vmatmul.mubr.msk.f32.gmra.mrb[2].mxu1 %vm261_vm0, %v5230_v15 }
  0xfc   : > { %4421 = vmatprep.mubr.msk.f32.mxu1 %vm261_vm0, %v5236_v18 }
  0xfd   : > { %4161 = vmatmul.mubr.msk.f32.gmra.mrb[4].mxu0 %vm261_vm0, %v5025_v53 }
  0xfe   : > { %4163 = vmatprep.mubr.msk.f32.mxu0 %vm261_vm0, %v5031_v55 }
  0xff   : > { %4422 = vmatmul.mubr.msk.f32.gmra.mrb[4].mxu1 %vm261_vm0, %v5247_v22 }
 0x100   : > { %4424 = vmatprep.mubr.msk.f32.mxu1 %vm261_vm0, %v5253_v27 }
 0x101   : > { %4164 = vmatmul.mubr.msk.f32.gmra.mrb[6].mxu0 %vm261_vm0, %v5053_v61 }
 0x102   : > { %4166 = vmatprep.mubr.msk.f32.mxu0 %vm261_vm0, %v5059_v63 }
 0x103   : > { %4425 = vmatmul.mubr.msk.f32.gmra.mrb[6].mxu1 %vm261_vm0, %v5263_v29 }
 0x104   : > { %4427 = vmatprep.mubr.msk.f32.mxu1 %vm261_vm0, %v5269_v34 }
 0x105   : > { %4167 = vmatmul.mubr.msk.f32.gmra.mrb[8].mxu0 %vm261_vm0, %v5078_v4 }
 0x106   : > { %4169 = vmatprep.mubr.msk.f32.mxu0 %vm261_vm0, %v5084_v6 }
 0x107   : > { %4428 = vmatmul.mubr.msk.f32.gmra.mrb[8].mxu1 %vm261_vm0, %v5282_v46 }
 0x108   : > { %4430 = vmatprep.mubr.msk.f32.mxu1 %vm261_vm0, %v5288_v54 }
 0x109   : > { %4170 = vmatmul.mubr.msk.f32.gmra.mrb[10].mxu0 %vm261_vm0, %v5098_v8 }
 0x10a   : > { %4172 = vmatprep.mubr.msk.f32.mxu0 %vm261_vm0, %v5448_v10 }
 0x10b   : > { %4431 = vmatmul.mubr.msk.f32.gmra.mrb[10].mxu1 %vm261_vm0, %v5299_v0 }
 0x10c   : > { %4433 = vmatprep.mubr.msk.f32.mxu1 %vm261_vm0, %v5527_v17 }
 0x10d   : > { %4173 = vmatmul.mubr.msk.f32.gmra.mrb[12].mxu0 %vm261_vm0, %v1621_v31 }
 0x10f   : > { %4434 = vmatmul.mubr.msk.f32.gmra.mrb[12].mxu1 %vm261_vm0, %v3000_v35 }
 0x1c8   : > { %v4156_v36 = vpop.f32.mrb[0].mxu0 }
 0x1c9   : > { %v1690_v38 = vpop.f32.mrb[1].mxu0 }
 0x1ca   : > { %v4417_v40 = vpop.f32.mrb[0].mxu1 }
 0x1cb   : > { %v3153_v43 = vmax.f32 %v4156_v36, %v4417_v40  ;;  %v3069_v44 = vpop.f32.mrb[1].mxu1 }
 0x1cc   : > { %v3152_v45 = vmax.f32 %v1690_v38, %v3069_v44  ;;  %v4159_v47 = vpop.f32.mrb[2].mxu0 }
 0x1cd   : > { %v3174_v49 = vadd.f32 %v5727_v42, %v3153_v43  ;;  %v1700_v50 = vpop.f32.mrb[3].mxu0 }
 0x1ce   : > { %v3173_v51 = vadd.f32 %v5727_v42, %v3152_v45  ;;  %v4420_v52 = vpop.f32.mrb[2].mxu1 }
 0x1cf   : > { %v3188_v53 = vmax.f32 %v3174_v49, 0.0  ;;  %v3155_v55 = vmax.f32 %v4159_v47, %v4420_v52  ;;  %v3079_v57 = vpop.f32.mrb[3].mxu1 }
 0x1d0   : > { %v3187_v58 = vmax.f32 %v3173_v51, 0.0  ;;  %v3154_v59 = vmax.f32 %v1700_v50, %v3079_v57  ;;  %v4162_v60 = vpop.f32.mrb[4].mxu0 }
 0x1d1   : > { %v3176_v61 = vadd.f32 %v5727_v42, %v3155_v55  ;;  %v1710_v63 = vpop.f32.mrb[5].mxu0 }
 0x1d2   : > { %v3201_v1 = vmax.f32 %v3187_v58, %v3188_v53  ;;  %v3175_v2 = vadd.f32 %v5727_v42, %v3154_v59  ;;  %v4423_v3 = vpop.f32.mrb[4].mxu1 }
 0x1d3   : > { %v3190_v4 = vmax.f32 %v3176_v61, 0.0  ;;  %v3157_v6 = vmax.f32 %v4162_v60, %v4423_v3  ;;  %v3089_v7 = vpop.f32.mrb[5].mxu1 }
 0x1d4   : > { %3215 = vst.msk [vmem:[%s5735_s5] sm:$0xff] %vm3214_vm2, %v3201_v1  ;;  %v3189_v8 = vmax.f32 %v3175_v2, 0.0  ;;  %v3156_v25 = vmax.f32 %v1710_v63, %v3089_v7  ;;  %v4165_v62 = vpop.f32.mrb[6].mxu0 }
 0x1d5   : > { %v3178_v9 = vadd.f32 %v5727_v42, %v3157_v6  ;;  %v1720_v15 = vpop.f32.mrb[7].mxu0 }
 0x1d6   : > { %v3202_v18 = vmax.f32 %v3188_v53, %v3189_v8  ;;  %v3203_v22 = vmax.f32 %v3189_v8, %v3190_v4  ;;  %v3177_v27 = vadd.f32 %v5727_v42, %v3156_v25  ;;  %v4426_v29 = vpop.f32.mrb[6].mxu1 }
 0x1d7   : > { %v3192_v34 = vmax.f32 %v3178_v9, 0.0  ;;  %v3159_v41 = vmax.f32 %v4165_v62, %v4426_v29  ;;  %v3099_v46 = vpop.f32.mrb[7].mxu1 }
 0x1d8   : > { %3216 = vst.msk [vmem:[%s5735_s5 + $0x8] sm:$0xff] %vm3214_vm2, %v3202_v18  ;;  %3217 = vst.msk [vmem:[%s5735_s5 + $0x10] sm:$0xff] %vm3214_vm2, %v3203_v22  ;;  %v3191_v54 = vmax.f32 %v3177_v27, 0.0  ;;  %v3158_v0 = vmax.f32 %v1720_v15, %v3099_v46  ;;  %v4168_v11 = vpop.f32.mrb[8].mxu0 }
 0x1d9   : > { %v3180_v23 = vadd.f32 %v5727_v42, %v3159_v41  ;;  %v1730_v10 = vpop.f32.mrb[9].mxu0 }
 0x1da   : > { %v3204_v5 = vmax.f32 %v3190_v4, %v3191_v54  ;;  %v3205_v37 = vmax.f32 %v3191_v54, %v3192_v34  ;;  %v3179_v26 = vadd.f32 %v5727_v42, %v3158_v0  ;;  %v4429_v39 = vpop.f32.mrb[8].mxu1 }
 0x1db   : > { %v3194_v12 = vmax.f32 %v3180_v23, 0.0  ;;  %v3161_v17 = vmax.f32 %v4168_v11, %v4429_v39  ;;  %v3109_v13 = vpop.f32.mrb[9].mxu1 }
 0x1dc   : > { %3218 = vst.msk [vmem:[%s5735_s5 + $0x18] sm:$0xff] %vm3214_vm2, %v3204_v5  ;;  %3219 = vst.msk [vmem:[%s5735_s5 + $0x20] sm:$0xff] %vm3214_vm2, %v3205_v37  ;;  %v3193_v14 = vmax.f32 %v3179_v26, 0.0  ;;  %v3160_v56 = vmax.f32 %v1730_v10, %v3109_v13  ;;  %v4171_v48 = vpop.f32.mrb[10].mxu0 }
 0x1dd   : > { %v3182_v30 = vadd.f32 %v5727_v42, %v3161_v17  ;;  %v1740_v16 = vpop.f32.mrb[11].mxu0 }
 0x1de   : > { %v3206_v19 = vmax.f32 %v3192_v34, %v3193_v14  ;;  %v3207_v20 = vmax.f32 %v3193_v14, %v3194_v12  ;;  %v3181_v24 = vadd.f32 %v5727_v42, %v3160_v56  ;;  %v4432_v21 = vpop.f32.mrb[10].mxu1 }
 0x1df   : > { %v3196_v28 = vmax.f32 %v3182_v30, 0.0  ;;  %v3163_v31 = vmax.f32 %v4171_v48, %v4432_v21  ;;  %v3119_v32 = vpop.f32.mrb[11].mxu1 }
 0x1e0   : > { %3220 = vst.msk [vmem:[%s5735_s5 + $0x28] sm:$0xff] %vm3214_vm2, %v3206_v19  ;;  %3221 = vst.msk [vmem:[%s5735_s5 + $0x30] sm:$0xff] %vm3214_vm2, %v3207_v20  ;;  %v3195_v33 = vmax.f32 %v3181_v24, 0.0  ;;  %v3162_v35 = vmax.f32 %v1740_v16, %v3119_v32  ;;  %v4174_v36 = vpop.f32.mrb[12].mxu0 }
 0x1e1   : > { %v3184_v38 = vadd.f32 %v5727_v42, %v3163_v31  ;;  %v1750_v40 = vpop.f32.mrb[13].mxu0 }
 0x1e2   : > { %v3208_v43 = vmax.f32 %v3194_v12, %v3195_v33  ;;  %v3209_v44 = vmax.f32 %v3195_v33, %v3196_v28  ;;  %v3183_v45 = vadd.f32 %v5727_v42, %v3162_v35  ;;  %v4435_v47 = vpop.f32.mrb[12].mxu1 }
 0x1e3   : > { %v3198_v49 = vmax.f32 %v3184_v38, 0.0  ;;  %v3165_v50 = vmax.f32 %v4174_v36, %v4435_v47  ;;  %v3129_v51 = vpop.f32.mrb[13].mxu1 }
 0x1e4   : > { %3222 = vst.msk [vmem:[%s5735_s5 + $0x38] sm:$0xff] %vm3214_vm2, %v3208_v43  ;;  %3223 = vst.msk [vmem:[%s5735_s5 + $0x40] sm:$0xff] %vm3214_vm2, %v3209_v44  ;;  %v3197_v52 = vmax.f32 %v3183_v45, 0.0  ;;  %v3164_v53 = vmax.f32 %v1750_v40, %v3129_v51 }
 0x1e5   : > { %v3186_v55 = vadd.f32 %v5727_v42, %v3165_v50 }
 0x1e6   : > { %v3210_v57 = vmax.f32 %v3196_v28, %v3197_v52  ;;  %v3211_v58 = vmax.f32 %v3197_v52, %v3198_v49  ;;  %v3185_v59 = vadd.f32 %v5727_v42, %v3164_v53 }
 0x1e7   : > { %v3200_v60 = vmax.f32 %v3186_v55, 0.0 }
 0x1e8   : > { %3224 = vst.msk [vmem:[%s5735_s5 + $0x48] sm:$0xff] %vm3214_vm2, %v3210_v57  ;;  %3225 = vst.msk [vmem:[%s5735_s5 + $0x50] sm:$0xff] %vm3214_vm2, %v3211_v58  ;;  %v3199_v61 = vmax.f32 %v3185_v59, 0.0 }
 0x1ea   : > { %v3212_v63 = vmax.f32 %v3198_v49, %v3199_v61  ;;  %v3213_v1 = vmax.f32 %v3199_v61, %v3200_v60 }
 0x1ec   : > { %3226 = vst.msk [vmem:[%s5735_s5 + $0x58] sm:$0xff] %vm3214_vm2, %v3212_v63  ;;  %3227 = vst.msk [vmem:[%s5735_s5 + $0x60] sm:$0xff] %vm3214_vm2, %v3213_v1 }
 0x1ed PF: > { %s14_s15 = sadd.s32 1, %s4820_s15  }
 0x1ee   : > { %p11_p4 = scmp.ge.s32.totalorder %s14_s15, 4  }
 0x1f0   :  { %13 = sbr.rel (!%p11_p4) target bundleno = 1 (0x1), region = 77 }

// kernel: cnn_forward.5
= control target key start
LH: loop header
LB: loop body
LE: loop exit
PB: predicated region body
PF: predicated region fallthrough
CT: control target
= control target key end

     0   :  { %v2548_v43 = vmov 1983009808   ;;  %v438_v45 = vlaneseq  ;;  %s3922_s0 = inlined_call_operand.vmem [shape: f32[2,3136], index: 0, kind: input, shape index: {}]   ;;  %s3923_s1 = inlined_call_operand.vmem [shape: f32[3136,128], index: 1, kind: input, shape index: {}]   ;;  %s3924_s2 = inlined_call_operand.vmem [shape: f32[1,128], index: 2, kind: input, shape index: {}]   ;;  %s3925_s3 = inlined_call_operand.vmem [shape: f32[128,128], index: 3, kind: input, shape index: {}]   ;;  %s3926_s4 = inlined_call_operand.vmem [shape: f32[1,128], index: 4, kind: input, shape index: {}]   ;;  %s3927_s5 = inlined_call_operand.hbm [shape: f32[2,128], index: 5, kind: output, shape index: {}]  }
   0x1   :  { %v44_v0 = vld [vmem:[%s3923_s1 + $0x80] sm:$0xff]  ;;  %v45_v1 = vld [vmem:[%s3923_s1 + $0x88] sm:$0xff]  ;;  %v46_v11 = vld [vmem:[%s3923_s1 + $0x90] sm:$0xff]  ;;  %v436_v44 = vunpack.c.l.s4 %v2548_v43 }
   0x2   :  { %v28_v2 = vld [vmem:[%s3923_s1] sm:$0xff]  ;;  %v2093_v3 = vpack.c.bf16 %v45_v1, %v44_v0  ;;  %v29_v4 = vld [vmem:[%s3923_s1 + $0x8] sm:$0xff]  ;;  %v47_v13 = vld [vmem:[%s3923_s1 + $0x98] sm:$0xff]  ;;  %v439_v60 = vshrl.u32 %v438_v45, 7 }
   0x3   :  { %v76_v5 = vld [vmem:[%s3923_s1 + $0x180] sm:$0xff]  ;;  %v77_v6 = vld [vmem:[%s3923_s1 + $0x188] sm:$0xff]  ;;  %v2095_v7 = vpack.c.bf16 %v29_v4, %v28_v2  ;;  %v30_v14 = vld [vmem:[%s3923_s1 + $0x10] sm:$0xff]  ;;  %v2097_v16 = vpack.c.bf16 %v47_v13, %v46_v11  ;;  %v437_v59 = vunpack.c.0.s8 %v436_v44 }
   0x4   :  { %v2125_v8 = vpack.c.bf16 %v77_v6, %v76_v5  ;;  %v60_v9 = vld [vmem:[%s3923_s1 + $0x100] sm:$0xff]  ;;  %v61_v10 = vld [vmem:[%s3923_s1 + $0x108] sm:$0xff]  ;;  %2094 = vmatprep.subr.bf16.mxu0 %v2093_v3  ;;  %v31_v15 = vld [vmem:[%s3923_s1 + $0x18] sm:$0xff] }
   0x5   :  { %v2127_v12 = vpack.c.bf16 %v61_v10, %v60_v9  ;;  %2096 = vmatpush3.bf16.msra.mxu0 %v2095_v7  ;;  %v2099_v17 = vpack.c.bf16 %v31_v15, %v30_v14  ;;  %v78_v18 = vld [vmem:[%s3923_s1 + $0x190] sm:$0xff]  ;;  %v79_v19 = vld [vmem:[%s3923_s1 + $0x198] sm:$0xff]  ;;  %v48_v23 = vld [vmem:[%s3923_s1 + $0xa0] sm:$0xff]  ;;  %v2727_v10 = vsub.s32 %v437_v59, %v439_v60 }
   0x6   :  { %2126 = vmatprep.subr.bf16.mxu1 %v2125_v8  ;;  %v62_v20 = vld [vmem:[%s3923_s1 + $0x110] sm:$0xff]  ;;  %v2129_v21 = vpack.c.bf16 %v79_v19, %v78_v18  ;;  %v63_v22 = vld [vmem:[%s3923_s1 + $0x118] sm:$0xff]  ;;  %v49_v24 = vld [vmem:[%s3923_s1 + $0xa8] sm:$0xff]  ;;  %2098 = vmatprep.subr.bf16.mxu0 %v2097_v16 }
   0x7   :  { %2128 = vmatpush3.bf16.msra.mxu1 %v2127_v12  ;;  %v2131_v25 = vpack.c.bf16 %v63_v22, %v62_v20  ;;  %v2101_v26 = vpack.c.bf16 %v49_v24, %v48_v23  ;;  %v32_v27 = vld [vmem:[%s3923_s1 + $0x20] sm:$0xff]  ;;  %v33_v28 = vld [vmem:[%s3923_s1 + $0x28] sm:$0xff]  ;;  %v50_v35 = vld [vmem:[%s3923_s1 + $0xb0] sm:$0xff] }
   0x8   :  { %v80_v29 = vld [vmem:[%s3923_s1 + $0x1a0] sm:$0xff]  ;;  %2130 = vmatprep.subr.bf16.mxu1 %v2129_v21  ;;  %v81_v30 = vld [vmem:[%s3923_s1 + $0x1a8] sm:$0xff]  ;;  %v2103_v33 = vpack.c.bf16 %v33_v28, %v32_v27  ;;  %v51_v36 = vld [vmem:[%s3923_s1 + $0xb8] sm:$0xff] }
   0x9   :  { %v64_v31 = vld [vmem:[%s3923_s1 + $0x120] sm:$0xff]  ;;  %v65_v32 = vld [vmem:[%s3923_s1 + $0x128] sm:$0xff]  ;;  %2100 = vmatpush3.bf16.msra.mxu0 %v2099_v17  ;;  %v2133_v34 = vpack.c.bf16 %v81_v30, %v80_v29  ;;  %v34_v37 = vld [vmem:[%s3923_s1 + $0x30] sm:$0xff]  ;;  %v2105_v39 = vpack.c.bf16 %v51_v36, %v50_v35 }
   0xa   :  { %2102 = vmatprep.subr.bf16.mxu0 %v2101_v26  ;;  %v2135_v38 = vpack.c.bf16 %v65_v32, %v64_v31  ;;  %v35_v40 = vld [vmem:[%s3923_s1 + $0x38] sm:$0xff]  ;;  %v82_v41 = vld [vmem:[%s3923_s1 + $0x1b0] sm:$0xff]  ;;  %v52_v49 = vld [vmem:[%s3923_s1 + $0xc0] sm:$0xff] }
   0xb   :  { %2132 = vmatpush3.bf16.msra.mxu1 %v2131_v25  ;;  %v83_v42 = vld [vmem:[%s3923_s1 + $0x1b8] sm:$0xff]  ;;  %v66_v47 = vld [vmem:[%s3923_s1 + $0x130] sm:$0xff]  ;;  %v53_v50 = vld [vmem:[%s3923_s1 + $0xc8] sm:$0xff]  ;;  %v2107_v51 = vpack.c.bf16 %v35_v40, %v34_v37 }
   0xc   :  { %2134 = vmatprep.subr.bf16.mxu1 %v2133_v34  ;;  %v2137_v46 = vpack.c.bf16 %v83_v42, %v82_v41  ;;  %v67_v48 = vld [vmem:[%s3923_s1 + $0x138] sm:$0xff]  ;;  %v84_v52 = vld [vmem:[%s3923_s1 + $0x1c0] sm:$0xff]  ;;  %v85_v53 = vld [vmem:[%s3923_s1 + $0x1c8] sm:$0xff]  ;;  %v2109_v55 = vpack.c.bf16 %v53_v50, %v52_v49 }
   0xd   :  { %2104 = vmatpush3.bf16.msra.mxu0 %v2103_v33  ;;  %v2139_v54 = vpack.c.bf16 %v67_v48, %v66_v47  ;;  %v36_v56 = vld [vmem:[%s3923_s1 + $0x40] sm:$0xff]  ;;  %v37_v57 = vld [vmem:[%s3923_s1 + $0x48] sm:$0xff]  ;;  %v2141_v61 = vpack.c.bf16 %v85_v53, %v84_v52  ;;  %v54_v63 = vld [vmem:[%s3923_s1 + $0xd0] sm:$0xff] }
   0xe   :  { %2106 = vmatprep.subr.bf16.mxu0 %v2105_v39  ;;  %v68_v58 = vld [vmem:[%s3923_s1 + $0x140] sm:$0xff]  ;;  %v69_v62 = vld [vmem:[%s3923_s1 + $0x148] sm:$0xff]  ;;  %v55_v0 = vld [vmem:[%s3923_s1 + $0xd8] sm:$0xff]  ;;  %v2111_v3 = vpack.c.bf16 %v37_v57, %v36_v56 }
   0xf   :  { %2136 = vmatpush3.bf16.msra.mxu1 %v2135_v38  ;;  %v86_v1 = vld [vmem:[%s3923_s1 + $0x1d0] sm:$0xff]  ;;  %v87_v2 = vld [vmem:[%s3923_s1 + $0x1d8] sm:$0xff]  ;;  %v2143_v5 = vpack.c.bf16 %v69_v62, %v68_v58  ;;  %v2113_v6 = vpack.c.bf16 %v55_v0, %v54_v63  ;;  %v56_v12 = vld [vmem:[%s3923_s1 + $0xe0] sm:$0xff] }
  0x10   :  { %2138 = vmatprep.subr.bf16.mxu1 %v2137_v46  ;;  %v38_v4 = vld [vmem:[%s3923_s1 + $0x50] sm:$0xff]  ;;  %v39_v7 = vld [vmem:[%s3923_s1 + $0x58] sm:$0xff]  ;;  %v2145_v11 = vpack.c.bf16 %v87_v2, %v86_v1  ;;  %v57_v13 = vld [vmem:[%s3923_s1 + $0xe8] sm:$0xff] }
  0x11   :  { %2108 = vmatpush3.bf16.msra.mxu0 %v2107_v51  ;;  %v70_v8 = vld [vmem:[%s3923_s1 + $0x150] sm:$0xff]  ;;  %v71_v9 = vld [vmem:[%s3923_s1 + $0x158] sm:$0xff]  ;;  %v88_v14 = vld [vmem:[%s3923_s1 + $0x1e0] sm:$0xff]  ;;  %v2115_v16 = vpack.c.bf16 %v39_v7, %v38_v4  ;;  %v2117_v19 = vpack.c.bf16 %v57_v13, %v56_v12 }
  0x12   :  { %2110 = vmatprep.subr.bf16.mxu0 %v2109_v55  ;;  %v89_v15 = vld [vmem:[%s3923_s1 + $0x1e8] sm:$0xff]  ;;  %v2147_v17 = vpack.c.bf16 %v71_v9, %v70_v8  ;;  %v21_v18 = vld [vmem:[%s3922_s0] sm:$0xff]  ;;  %v58_v27 = vld [vmem:[%s3923_s1 + $0xf0] sm:$0xff] }
  0x13   :  { %2140 = vmatpush3.bf16.msra.mxu1 %v2139_v54  ;;  %v40_v20 = vld [vmem:[%s3923_s1 + $0x60] sm:$0xff]  ;;  %v41_v21 = vld [vmem:[%s3923_s1 + $0x68] sm:$0xff]  ;;  %v441_v23 = vrot.slane %v21_v18, %v2727_v10  ;;  %v434_v24 = vcombine.high %v21_v18, %v21_v18  ;;  %v2149_v25 = vpack.c.bf16 %v89_v15, %v88_v14  ;;  %v59_v28 = vld [vmem:[%s3923_s1 + $0xf8] sm:$0xff] }
  0x14   :  { %2142 = vmatprep.subr.bf16.mxu1 %v2141_v61  ;;  %v72_v22 = vld [vmem:[%s3923_s1 + $0x160] sm:$0xff]  ;;  %v73_v26 = vld [vmem:[%s3923_s1 + $0x168] sm:$0xff]  ;;  %v90_v29 = vld [vmem:[%s3923_s1 + $0x1f0] sm:$0xff]  ;;  %v2119_v33 = vpack.c.bf16 %v41_v21, %v40_v20  ;;  %v2121_v35 = vpack.c.bf16 %v59_v28, %v58_v27 }
  0x15   :  { %2112 = vmatpush3.bf16.msra.mxu0 %v2111_v3  ;;  %v91_v30 = vld [vmem:[%s3923_s1 + $0x1f8] sm:$0xff]  ;;  %v449_v31 = vcombine.high %v441_v23, %v441_v23  ;;  %v448_v32 = vrot.slane %v434_v24, %v2727_v10  ;;  %v2151_v34 = vpack.c.bf16 %v73_v26, %v72_v22  ;;  %v42_v36 = vld [vmem:[%s3923_s1 + $0x70] sm:$0xff]  ;;  %v108_v42 = vld [vmem:[%s3923_s1 + $0x280] sm:$0xff] }
  0x16   :  { %2114 = vmatprep.subr.bf16.mxu0 %v2113_v6  ;;  %v43_v37 = vld [vmem:[%s3923_s1 + $0x78] sm:$0xff]  ;;  %v74_v38 = vld [vmem:[%s3923_s1 + $0x170] sm:$0xff]  ;;  %v2153_v40 = vpack.c.bf16 %v91_v30, %v90_v29  ;;  %v109_v43 = vld [vmem:[%s3923_s1 + $0x288] sm:$0xff] }
  0x17   :  { %2144 = vmatpush3.bf16.msra.mxu1 %v2143_v5  ;;  %v450_v39 = vcombine.high %v448_v32, %v448_v32  ;;  %634 = vmatprep.mubr.f32.mxu0 %v449_v31  ;;  %v75_v41 = vld [vmem:[%s3923_s1 + $0x178] sm:$0xff]  ;;  %v140_v44 = vld [vmem:[%s3923_s1 + $0x380] sm:$0xff]  ;;  %v141_v45 = vld [vmem:[%s3923_s1 + $0x388] sm:$0xff]  ;;  %v2123_v46 = vpack.c.bf16 %v43_v37, %v42_v36  ;;  %v2157_v48 = vpack.c.bf16 %v109_v43, %v108_v42 }
  0x18   :  { %2146 = vmatprep.subr.bf16.mxu1 %v2145_v11  ;;  %v2155_v47 = vpack.c.bf16 %v75_v41, %v74_v38  ;;  %v92_v49 = vld [vmem:[%s3923_s1 + $0x200] sm:$0xff]  ;;  %v93_v50 = vld [vmem:[%s3923_s1 + $0x208] sm:$0xff]  ;;  %v2189_v52 = vpack.c.bf16 %v141_v45, %v140_v44  ;;  %v110_v54 = vld [vmem:[%s3923_s1 + $0x290] sm:$0xff] }
  0x19   :  { %2116 = vmatpush3.bf16.msra.mxu0 %v2115_v16  ;;  %704 = vmatprep.mubr.f32.mxu1 %v450_v39  ;;  %v124_v51 = vld [vmem:[%s3923_s1 + $0x300] sm:$0xff]  ;;  %v125_v53 = vld [vmem:[%s3923_s1 + $0x308] sm:$0xff]  ;;  %v111_v55 = vld [vmem:[%s3923_s1 + $0x298] sm:$0xff]  ;;  %v2159_v58 = vpack.c.bf16 %v93_v50, %v92_v49 }
  0x1a   :  { %2118 = vmatprep.subr.bf16.mxu0 %v2117_v19  ;;  %v142_v56 = vld [vmem:[%s3923_s1 + $0x390] sm:$0xff]  ;;  %v143_v57 = vld [vmem:[%s3923_s1 + $0x398] sm:$0xff]  ;;  %v2191_v59 = vpack.c.bf16 %v125_v53, %v124_v51  ;;  %v2161_v60 = vpack.c.bf16 %v111_v55, %v110_v54  ;;  %v112_v2 = vld [vmem:[%s3923_s1 + $0x2a0] sm:$0xff] }
  0x1b   :  { %2148 = vmatpush3.bf16.msra.mxu1 %v2147_v17  ;;  %v94_v61 = vld [vmem:[%s3923_s1 + $0x210] sm:$0xff]  ;;  %v95_v62 = vld [vmem:[%s3923_s1 + $0x218] sm:$0xff]  ;;  %v2193_v0 = vpack.c.bf16 %v143_v57, %v142_v56  ;;  %v113_v3 = vld [vmem:[%s3923_s1 + $0x2a8] sm:$0xff] }
  0x1c   :  { %2150 = vmatprep.subr.bf16.mxu1 %v2149_v25  ;;  %v126_v63 = vld [vmem:[%s3923_s1 + $0x310] sm:$0xff]  ;;  %v127_v1 = vld [vmem:[%s3923_s1 + $0x318] sm:$0xff]  ;;  %v144_v4 = vld [vmem:[%s3923_s1 + $0x3a0] sm:$0xff]  ;;  %v2163_v6 = vpack.c.bf16 %v95_v62, %v94_v61  ;;  %v2165_v8 = vpack.c.bf16 %v113_v3, %v112_v2 }
  0x1d   :  { %2120 = vmatpush3.bf16.msra.mxu0 %v2119_v33  ;;  %v145_v5 = vld [vmem:[%s3923_s1 + $0x3a8] sm:$0xff]  ;;  %v2195_v7 = vpack.c.bf16 %v127_v1, %v126_v63  ;;  %v96_v9 = vld [vmem:[%s3923_s1 + $0x220] sm:$0xff]  ;;  %v114_v15 = vld [vmem:[%s3923_s1 + $0x2b0] sm:$0xff] }
  0x1e   :  { %2122 = vmatprep.subr.bf16.mxu0 %v2121_v35  ;;  %v97_v11 = vld [vmem:[%s3923_s1 + $0x228] sm:$0xff]  ;;  %v128_v12 = vld [vmem:[%s3923_s1 + $0x320] sm:$0xff]  ;;  %v2197_v13 = vpack.c.bf16 %v145_v5, %v144_v4  ;;  %v115_v16 = vld [vmem:[%s3923_s1 + $0x2b8] sm:$0xff] }
  0x1f   :  { %2152 = vmatpush3.bf16.msra.mxu1 %v2151_v34  ;;  %v129_v14 = vld [vmem:[%s3923_s1 + $0x328] sm:$0xff]  ;;  %v146_v17 = vld [vmem:[%s3923_s1 + $0x3b0] sm:$0xff]  ;;  %v147_v18 = vld [vmem:[%s3923_s1 + $0x3b8] sm:$0xff]  ;;  %v2167_v19 = vpack.c.bf16 %v97_v11, %v96_v9  ;;  %v2169_v22 = vpack.c.bf16 %v115_v16, %v114_v15 }
  0x20   :  { %2154 = vmatprep.subr.bf16.mxu1 %v2153_v40  ;;  %v98_v20 = vld [vmem:[%s3923_s1 + $0x230] sm:$0xff]  ;;  %v2199_v21 = vpack.c.bf16 %v129_v14, %v128_v12  ;;  %v131_v25 = vld [vmem:[%s3923_s1 + $0x338] sm:$0xff]  ;;  %v2201_v26 = vpack.c.bf16 %v147_v18, %v146_v17  ;;  %v116_v27 = vld [vmem:[%s3923_s1 + $0x2c0] sm:$0xff] }
  0x21   :  { %2124 = vmatpush3.bf16.msra.mxu0 %v2123_v46  ;;  %v130_v24 = vld [vmem:[%s3923_s1 + $0x330] sm:$0xff]  ;;  %v117_v28 = vld [vmem:[%s3923_s1 + $0x2c8] sm:$0xff]  ;;  %v148_v30 = vld [vmem:[%s3923_s1 + $0x3c0] sm:$0xff] }
  0x22   :  { %2158 = vmatprep.subr.bf16.mxu0 %v2157_v48  ;;  %v22_v29 = vld [vmem:[%s3922_s0 + $0x8] sm:$0xff]  ;;  %v2203_v35 = vpack.c.bf16 %v131_v25, %v130_v24  ;;  %v2173_v36 = vpack.c.bf16 %v117_v28, %v116_v27  ;;  %v100_v37 = vld [vmem:[%s3923_s1 + $0x240] sm:$0xff]  ;;  %v118_v44 = vld [vmem:[%s3923_s1 + $0x2d0] sm:$0xff] }
  0x23   :  { %2156 = vmatpush3.bf16.msra.mxu1 %v2155_v47  ;;  %v149_v31 = vld [vmem:[%s3923_s1 + $0x3c8] sm:$0xff]  ;;  %v451_v33 = vcombine.high %v22_v29, %v22_v29  ;;  %v132_v39 = vld [vmem:[%s3923_s1 + $0x340] sm:$0xff]  ;;  %v119_v45 = vld [vmem:[%s3923_s1 + $0x2d8] sm:$0xff] }
  0x24   :  { %2190 = vmatprep.subr.bf16.mxu1 %v2189_v52  ;;  %635 = vmatmul.mubr.f32.vlgmr.msra.gmra.mrb[0].mxu0 %v441_v23  ;;  %v99_v23 = vld [vmem:[%s3923_s1 + $0x238] sm:$0xff]  ;;  %v101_v38 = vld [vmem:[%s3923_s1 + $0x248] sm:$0xff]  ;;  %v2205_v42 = vpack.c.bf16 %v149_v31, %v148_v30  ;;  %v150_v46 = vld [vmem:[%s3923_s1 + $0x3d0] sm:$0xff]  ;;  %v2177_v51 = vpack.c.bf16 %v119_v45, %v118_v44 }
  0x25   :  { %2160 = vmatpush3.bf16.msra.mxu0 %v2159_v58  ;;  %v2171_v34 = vpack.c.bf16 %v99_v23, %v98_v20  ;;  %v2908_v41 = vrot.slane %v451_v33, %v2727_v10  ;;  %v133_v43 = vld [vmem:[%s3923_s1 + $0x348] sm:$0xff]  ;;  %v151_v47 = vld [vmem:[%s3923_s1 + $0x3d8] sm:$0xff]  ;;  %v2175_v49 = vpack.c.bf16 %v101_v38, %v100_v37  ;;  %v102_v52 = vld [vmem:[%s3923_s1 + $0x250] sm:$0xff] }
  0x26   :  { %705 = vmatmul.mubr.f32.vlgmr.msra.gmra.mrb[0].mxu1 %v448_v32  ;;  %2162 = vmatprep.subr.bf16.mxu0 %v2161_v60  ;;  %v2894_v32 = vrot.slane %v22_v29, %v2727_v10  ;;  %v2207_v50 = vpack.c.bf16 %v133_v43, %v132_v39  ;;  %v103_v53 = vld [vmem:[%s3923_s1 + $0x258] sm:$0xff]  ;;  %v134_v54 = vld [vmem:[%s3923_s1 + $0x350] sm:$0xff]  ;;  %v2209_v55 = vpack.c.bf16 %v151_v47, %v150_v46  ;;  %v120_v57 = vld [vmem:[%s3923_s1 + $0x2e0] sm:$0xff] }
  0x27   :  { %2192 = vmatpush3.bf16.msra.mxu1 %v2191_v59  ;;  %v467_v48 = vcombine.high %v2908_v41, %v2908_v41  ;;  %v135_v56 = vld [vmem:[%s3923_s1 + $0x358] sm:$0xff]  ;;  %v121_v58 = vld [vmem:[%s3923_s1 + $0x2e8] sm:$0xff]  ;;  %v152_v59 = vld [vmem:[%s3923_s1 + $0x3e0] sm:$0xff]  ;;  %v2179_v61 = vpack.c.bf16 %v103_v53, %v102_v52 }
  0x28   :  { %2194 = vmatprep.subr.bf16.mxu1 %v2193_v0  ;;  %v466_v40 = vcombine.high %v2894_v32, %v2894_v32  ;;  %v153_v60 = vld [vmem:[%s3923_s1 + $0x3e8] sm:$0xff]  ;;  %v2211_v62 = vpack.c.bf16 %v135_v56, %v134_v54  ;;  %v2181_v63 = vpack.c.bf16 %v121_v58, %v120_v57  ;;  %v104_v0 = vld [vmem:[%s3923_s1 + $0x260] sm:$0xff]  ;;  %v122_v5 = vld [vmem:[%s3923_s1 + $0x2f0] sm:$0xff] }
  0x29   :  { %2164 = vmatpush3.bf16.msra.mxu0 %v2163_v6  ;;  %844 = vmatprep.mubr.f32.mxu1 %v467_v48  ;;  %v105_v1 = vld [vmem:[%s3923_s1 + $0x268] sm:$0xff]  ;;  %v136_v2 = vld [vmem:[%s3923_s1 + $0x360] sm:$0xff]  ;;  %v2213_v3 = vpack.c.bf16 %v153_v60, %v152_v59  ;;  %v123_v6 = vld [vmem:[%s3923_s1 + $0x2f8] sm:$0xff] }
  0x2a   :  { %2166 = vmatprep.subr.bf16.mxu0 %v2165_v8  ;;  %774 = vmatprep.mubr.f32.mxu0 %v466_v40  ;;  %v137_v4 = vld [vmem:[%s3923_s1 + $0x368] sm:$0xff]  ;;  %v155_v8 = vld [vmem:[%s3923_s1 + $0x3f8] sm:$0xff]  ;;  %v2183_v9 = vpack.c.bf16 %v105_v1, %v104_v0  ;;  %v2185_v12 = vpack.c.bf16 %v123_v6, %v122_v5  ;;  %v138_v15 = vld [vmem:[%s3923_s1 + $0x370] sm:$0xff] }
  0x2b   :  { %2196 = vmatpush3.bf16.msra.mxu1 %v2195_v7  ;;  %v154_v7 = vld [vmem:[%s3923_s1 + $0x3f0] sm:$0xff]  ;;  %v2215_v11 = vpack.c.bf16 %v137_v4, %v136_v2  ;;  %v107_v14 = vld [vmem:[%s3923_s1 + $0x278] sm:$0xff]  ;;  %v172_v18 = vld [vmem:[%s3923_s1 + $0x480] sm:$0xff] }
  0x2c   :  { %2198 = vmatprep.subr.bf16.mxu1 %v2197_v13  ;;  %v106_v13 = vld [vmem:[%s3923_s1 + $0x270] sm:$0xff]  ;;  %v2217_v16 = vpack.c.bf16 %v155_v8, %v154_v7  ;;  %v139_v17 = vld [vmem:[%s3923_s1 + $0x378] sm:$0xff]  ;;  %v204_v20 = vld [vmem:[%s3923_s1 + $0x580] sm:$0xff] }
  0x2d   :  { %2168 = vmatpush3.bf16.msra.mxu0 %v2167_v19  ;;  %v173_v19 = vld [vmem:[%s3923_s1 + $0x488] sm:$0xff]  ;;  %v156_v23 = vld [vmem:[%s3923_s1 + $0x400] sm:$0xff]  ;;  %v2219_v24 = vpack.c.bf16 %v139_v17, %v138_v15  ;;  %v174_v30 = vld [vmem:[%s3923_s1 + $0x490] sm:$0xff] }
  0x2e   :  { %2170 = vmatprep.subr.bf16.mxu0 %v2169_v22  ;;  %v2187_v22 = vpack.c.bf16 %v107_v14, %v106_v13  ;;  %v2221_v25 = vpack.c.bf16 %v173_v19, %v172_v18  ;;  %v188_v27 = vld [vmem:[%s3923_s1 + $0x500] sm:$0xff]  ;;  %v189_v28 = vld [vmem:[%s3923_s1 + $0x508] sm:$0xff]  ;;  %v175_v31 = vld [vmem:[%s3923_s1 + $0x498] sm:$0xff] }
  0x2f   :  { %2200 = vmatpush3.bf16.msra.mxu1 %v2199_v21  ;;  %v205_v21 = vld [vmem:[%s3923_s1 + $0x588] sm:$0xff]  ;;  %v206_v33 = vld [vmem:[%s3923_s1 + $0x590] sm:$0xff]  ;;  %v2225_v38 = vpack.c.bf16 %v175_v31, %v174_v30  ;;  %v159_v40 = vld [vmem:[%s3923_s1 + $0x418] sm:$0xff] }
  0x30   :  { %2202 = vmatprep.subr.bf16.mxu1 %v2201_v26  ;;  %v157_v26 = vld [vmem:[%s3923_s1 + $0x408] sm:$0xff]  ;;  %v2253_v29 = vpack.c.bf16 %v205_v21, %v204_v20  ;;  %v23_v37 = vld [vmem:[%s3922_s0 + $0x10] sm:$0xff]  ;;  %v191_v46 = vld [vmem:[%s3923_s1 + $0x518] sm:$0xff] }
  0x31   :  { %2172 = vmatpush3.bf16.msra.mxu0 %v2171_v34  ;;  %v207_v34 = vld [vmem:[%s3923_s1 + $0x598] sm:$0xff]  ;;  %v158_v39 = vld [vmem:[%s3923_s1 + $0x410] sm:$0xff]  ;;  %v3036_v43 = vrot.slane %v23_v37, %v2727_v10  ;;  %v468_v44 = vcombine.high %v23_v37, %v23_v37  ;;  %v176_v47 = vld [vmem:[%s3923_s1 + $0x4a0] sm:$0xff] }
  0x32   :  { %2174 = vmatprep.subr.bf16.mxu0 %v2173_v36  ;;  %v2255_v36 = vpack.c.bf16 %v189_v28, %v188_v27  ;;  %v2257_v45 = vpack.c.bf16 %v207_v34, %v206_v33  ;;  %v177_v48 = vld [vmem:[%s3923_s1 + $0x4a8] sm:$0xff]  ;;  %v2227_v53 = vpack.c.bf16 %v159_v40, %v158_v39  ;;  %v192_v57 = vld [vmem:[%s3923_s1 + $0x520] sm:$0xff]  ;;  %v178_v60 = vld [vmem:[%s3923_s1 + $0x4b0] sm:$0xff] }
  0x33   :  { %2204 = vmatpush3.bf16.msra.mxu1 %v2203_v35  ;;  %v2223_v35 = vpack.c.bf16 %v157_v26, %v156_v23  ;;  %v3057_v52 = vrot.slane %v468_v44, %v2727_v10  ;;  %v2229_v54 = vpack.c.bf16 %v177_v48, %v176_v47  ;;  %v161_v56 = vld [vmem:[%s3923_s1 + $0x428] sm:$0xff]  ;;  %v163_v4 = vld [vmem:[%s3923_s1 + $0x438] sm:$0xff]  ;;  %v194_v5 = vld [vmem:[%s3923_s1 + $0x530] sm:$0xff] }
  0x34   :  { %2206 = vmatprep.subr.bf16.mxu1 %v2205_v42  ;;  %v190_v42 = vld [vmem:[%s3923_s1 + $0x510] sm:$0xff]  ;;  %v193_v59 = vld [vmem:[%s3923_s1 + $0x528] sm:$0xff]  ;;  %v195_v7 = vld [vmem:[%s3923_s1 + $0x538] sm:$0xff] }
  0x35   :  { %2176 = vmatpush3.bf16.msra.mxu0 %v2175_v49  ;;  %v208_v49 = vld [vmem:[%s3923_s1 + $0x5a0] sm:$0xff]  ;;  %v2263_v1 = vpack.c.bf16 %v193_v59, %v192_v57  ;;  %v2267_v14 = vpack.c.bf16 %v195_v7, %v194_v5  ;;  %v165_v17 = vld [vmem:[%s3923_s1 + $0x448] sm:$0xff]  ;;  %v182_v21 = vld [vmem:[%s3923_s1 + $0x4d0] sm:$0xff] }
  0x36   :  { %2178 = vmatprep.subr.bf16.mxu0 %v2177_v51  ;;  %v483_v51 = vcombine.high %v3036_v43, %v3036_v43  ;;  %v180_v8 = vld [vmem:[%s3923_s1 + $0x4c0] sm:$0xff]  ;;  %v197_v20 = vld [vmem:[%s3923_s1 + $0x548] sm:$0xff]  ;;  %v214_v23 = vld [vmem:[%s3923_s1 + $0x5d0] sm:$0xff] }
  0x37   :  { %2208 = vmatpush3.bf16.msra.mxu1 %v2207_v50  ;;  %v209_v50 = vld [vmem:[%s3923_s1 + $0x5a8] sm:$0xff]  ;;  %v196_v18 = vld [vmem:[%s3923_s1 + $0x540] sm:$0xff]  ;;  %v166_v28 = vld [vmem:[%s3923_s1 + $0x450] sm:$0xff] }
  0x38   :  { %2210 = vmatprep.subr.bf16.mxu1 %v2209_v55  ;;  %v160_v55 = vld [vmem:[%s3923_s1 + $0x420] sm:$0xff]  ;;  %v2261_v58 = vpack.c.bf16 %v209_v50, %v208_v49  ;;  %v2271_v26 = vpack.c.bf16 %v197_v20, %v196_v18  ;;  %v198_v30 = vld [vmem:[%s3923_s1 + $0x550] sm:$0xff]  ;;  %v199_v33 = vld [vmem:[%s3923_s1 + $0x558] sm:$0xff] }
  0x39   :  { %2180 = vmatpush3.bf16.msra.mxu0 %v2179_v61  ;;  %v179_v61 = vld [vmem:[%s3923_s1 + $0x4b8] sm:$0xff]  ;;  %v2231_v0 = vpack.c.bf16 %v161_v56, %v160_v55  ;;  %v184_v34 = vld [vmem:[%s3923_s1 + $0x4e0] sm:$0xff]  ;;  %v217_v37 = vld [vmem:[%s3923_s1 + $0x5e8] sm:$0xff]  ;;  %v2275_v39 = vpack.c.bf16 %v199_v33, %v198_v30 }
  0x3a   :  { %2182 = vmatprep.subr.bf16.mxu0 %v2181_v63  ;;  %v211_v63 = vld [vmem:[%s3923_s1 + $0x5b8] sm:$0xff]  ;;  %v2233_v2 = vpack.c.bf16 %v179_v61, %v178_v60  ;;  %v169_v44 = vld [vmem:[%s3923_s1 + $0x468] sm:$0xff]  ;;  %v186_v48 = vld [vmem:[%s3923_s1 + $0x4f0] sm:$0xff] }
  0x3b   :  { %2212 = vmatpush3.bf16.msra.mxu1 %v2211_v62  ;;  %v210_v62 = vld [vmem:[%s3923_s1 + $0x5b0] sm:$0xff]  ;;  %v201_v47 = vld [vmem:[%s3923_s1 + $0x568] sm:$0xff]  ;;  %v187_v49 = vld [vmem:[%s3923_s1 + $0x4f8] sm:$0xff] }
  0x3c   :  { %2214 = vmatprep.subr.bf16.mxu1 %v2213_v3  ;;  %v162_v3 = vld [vmem:[%s3923_s1 + $0x430] sm:$0xff]  ;;  %v2265_v6 = vpack.c.bf16 %v211_v63, %v210_v62  ;;  %v2249_v55 = vpack.c.bf16 %v187_v49, %v186_v48  ;;  %v171_v57 = vld [vmem:[%s3923_s1 + $0x478] sm:$0xff]  ;;  %v236_v60 = vld [vmem:[%s3923_s1 + $0x680] sm:$0xff] }
  0x3d   :  { %2184 = vmatpush3.bf16.msra.mxu0 %v2183_v9  ;;  %v181_v9 = vld [vmem:[%s3923_s1 + $0x4c8] sm:$0xff]  ;;  %v2235_v13 = vpack.c.bf16 %v163_v4, %v162_v3  ;;  %v218_v50 = vld [vmem:[%s3923_s1 + $0x5f0] sm:$0xff]  ;;  %v203_v59 = vld [vmem:[%s3923_s1 + $0x578] sm:$0xff] }
  0x3e   :  { %2186 = vmatprep.subr.bf16.mxu0 %v2185_v12  ;;  %v213_v12 = vld [vmem:[%s3923_s1 + $0x5c8] sm:$0xff]  ;;  %v2237_v15 = vpack.c.bf16 %v181_v9, %v180_v8  ;;  %v170_v56 = vld [vmem:[%s3923_s1 + $0x470] sm:$0xff]  ;;  %v268_v62 = vld [vmem:[%s3923_s1 + $0x780] sm:$0xff] }
  0x3f   :  { %2216 = vmatpush3.bf16.msra.mxu1 %v2215_v11  ;;  %v212_v11 = vld [vmem:[%s3923_s1 + $0x5c0] sm:$0xff]  ;;  %v237_v61 = vld [vmem:[%s3923_s1 + $0x688] sm:$0xff]  ;;  %v238_v9 = vld [vmem:[%s3923_s1 + $0x690] sm:$0xff] }
  0x40   :  { %2218 = vmatprep.subr.bf16.mxu1 %v2217_v16  ;;  %v164_v16 = vld [vmem:[%s3923_s1 + $0x440] sm:$0xff]  ;;  %v2269_v19 = vpack.c.bf16 %v213_v12, %v212_v11  ;;  %v269_v63 = vld [vmem:[%s3923_s1 + $0x788] sm:$0xff]  ;;  %v2285_v3 = vpack.c.bf16 %v237_v61, %v236_v60  ;;  %v239_v11 = vld [vmem:[%s3923_s1 + $0x698] sm:$0xff] }
  0x41   :  { %2188 = vmatpush3.bf16.msra.mxu0 %v2187_v22  ;;  %v183_v22 = vld [vmem:[%s3923_s1 + $0x4d8] sm:$0xff]  ;;  %v220_v4 = vld [vmem:[%s3923_s1 + $0x600] sm:$0xff]  ;;  %v221_v5 = vld [vmem:[%s3923_s1 + $0x608] sm:$0xff]  ;;  %v2317_v7 = vpack.c.bf16 %v269_v63, %v268_v62  ;;  %v2289_v18 = vpack.c.bf16 %v239_v11, %v238_v9 }
  0x42   :  { %2222 = vmatprep.subr.bf16.mxu0 %v2221_v25  ;;  %v2239_v25 = vpack.c.bf16 %v165_v17, %v164_v16  ;;  %v2241_v27 = vpack.c.bf16 %v183_v22, %v182_v21  ;;  %v253_v8 = vld [vmem:[%s3923_s1 + $0x708] sm:$0xff]  ;;  %v2287_v16 = vpack.c.bf16 %v221_v5, %v220_v4  ;;  %v223_v20 = vld [vmem:[%s3923_s1 + $0x618] sm:$0xff]  ;;  %v254_v21 = vld [vmem:[%s3923_s1 + $0x710] sm:$0xff] }
  0x43   :  { %2220 = vmatpush3.bf16.msra.mxu1 %v2219_v24  ;;  %v215_v24 = vld [vmem:[%s3923_s1 + $0x5d8] sm:$0xff]  ;;  %v258_v48 = vld [vmem:[%s3923_s1 + $0x730] sm:$0xff]  ;;  %v261_v61 = vld [vmem:[%s3923_s1 + $0x748] sm:$0xff] }
  0x44   :  { %2254 = vmatprep.subr.bf16.mxu1 %v2253_v29  ;;  %775 = vmatmul.mubr.f32.vlgmr.msra.gmra.mrb[2].mxu0 %v2894_v32  ;;  %v2259_v32 = vpack.c.bf16 %v191_v46, %v190_v42  ;;  %v167_v29 = vld [vmem:[%s3923_s1 + $0x458] sm:$0xff]  ;;  %v2273_v31 = vpack.c.bf16 %v215_v24, %v214_v23  ;;  %v168_v42 = vld [vmem:[%s3923_s1 + $0x460] sm:$0xff]  ;;  %v246_v62 = vld [vmem:[%s3923_s1 + $0x6d0] sm:$0xff] }
  0x45   :  { %2224 = vmatpush3.bf16.msra.mxu0 %v2223_v35  ;;  %914 = vmatprep.mubr.f32.mxu0 %v483_v51  ;;  %v185_v35 = vld [vmem:[%s3923_s1 + $0x4e8] sm:$0xff]  ;;  %v219_v51 = vld [vmem:[%s3923_s1 + $0x5f8] sm:$0xff]  ;;  %v240_v24 = vld [vmem:[%s3923_s1 + $0x6a0] sm:$0xff] }
  0x46   :  { %845 = vmatmul.mubr.f32.vlgmr.msra.gmra.mrb[2].mxu1 %v2908_v41  ;;  %2226 = vmatprep.subr.bf16.mxu0 %v2225_v38  ;;  %v484_v41 = vcombine.high %v3057_v52, %v3057_v52  ;;  %v2243_v38 = vpack.c.bf16 %v167_v29, %v166_v28  ;;  %v2245_v40 = vpack.c.bf16 %v185_v35, %v184_v34  ;;  %v255_v23 = vld [vmem:[%s3923_s1 + $0x718] sm:$0xff]  ;;  %v273_v28 = vld [vmem:[%s3923_s1 + $0x7a8] sm:$0xff]  ;;  %v256_v35 = vld [vmem:[%s3923_s1 + $0x720] sm:$0xff] }
  0x47   :  { %2256 = vmatpush3.bf16.msra.mxu1 %v2255_v36  ;;  %v216_v36 = vld [vmem:[%s3923_s1 + $0x5e0] sm:$0xff]  ;;  %v225_v34 = vld [vmem:[%s3923_s1 + $0x628] sm:$0xff]  ;;  %v247_v63 = vld [vmem:[%s3923_s1 + $0x6d8] sm:$0xff] }
  0x48   :  { %2258 = vmatprep.subr.bf16.mxu1 %v2257_v45  ;;  %984 = vmatprep.mubr.f32.mxu1 %v484_v41  ;;  %v200_v45 = vld [vmem:[%s3923_s1 + $0x560] sm:$0xff]  ;;  %v2277_v46 = vpack.c.bf16 %v217_v37, %v216_v36  ;;  %v202_v41 = vld [vmem:[%s3923_s1 + $0x570] sm:$0xff]  ;;  %v2305_v4 = vpack.c.bf16 %v247_v63, %v246_v62  ;;  %v263_v9 = vld [vmem:[%s3923_s1 + $0x758] sm:$0xff] }
  0x49   :  { %2228 = vmatpush3.bf16.msra.mxu0 %v2227_v53  ;;  %v2247_v53 = vpack.c.bf16 %v169_v44, %v168_v42  ;;  %v242_v37 = vld [vmem:[%s3923_s1 + $0x6b0] sm:$0xff]  ;;  %v248_v11 = vld [vmem:[%s3923_s1 + $0x6e0] sm:$0xff] }
  0x4a   :  { %2230 = vmatprep.subr.bf16.mxu0 %v2229_v54  ;;  %v2279_v54 = vpack.c.bf16 %v201_v47, %v200_v45  ;;  %v227_v47 = vld [vmem:[%s3923_s1 + $0x638] sm:$0xff]  ;;  %v230_v5 = vld [vmem:[%s3923_s1 + $0x650] sm:$0xff] }
  0x4b   :  { %2260 = vmatpush3.bf16.msra.mxu1 %v2259_v32  ;;  %v24_v32 = vld [vmem:[%s3922_s0 + $0x18] sm:$0xff]  ;;  %v318_v62 = vld [vmem:[%s3923_s1 + $0x910] sm:$0xff] }
  0x4c   :  { %2262 = vmatprep.subr.bf16.mxu1 %v2261_v58  ;;  %v2281_v58 = vpack.c.bf16 %v219_v51, %v218_v50  ;;  %v3228_v12 = vrot.slane %v24_v32, %v2727_v10  ;;  %v259_v50 = vld [vmem:[%s3923_s1 + $0x738] sm:$0xff]  ;;  %v244_v51 = vld [vmem:[%s3923_s1 + $0x6c0] sm:$0xff] }
  0x4d   :  { %2232 = vmatpush3.bf16.msra.mxu0 %v2231_v0  ;;  %v485_v0 = vcombine.high %v24_v32, %v24_v32  ;;  %v276_v32 = vld [vmem:[%s3923_s1 + $0x7c0] sm:$0xff] }
  0x4e   :  { %2234 = vmatprep.subr.bf16.mxu0 %v2233_v2  ;;  %v2283_v2 = vpack.c.bf16 %v203_v59, %v202_v41  ;;  %v228_v41 = vld [vmem:[%s3923_s1 + $0x640] sm:$0xff] }
  0x4f   :  { %2264 = vmatpush3.bf16.msra.mxu1 %v2263_v1  ;;  %v2251_v1 = vpack.c.bf16 %v171_v57, %v170_v56  ;;  %v2331_v56 = vpack.c.bf16 %v259_v50, %v258_v48  ;;  %v260_v59 = vld [vmem:[%s3923_s1 + $0x740] sm:$0xff]  ;;  %v285_v48 = vld [vmem:[%s3923_s1 + $0x808] sm:$0xff] }
  0x50   :  { %2266 = vmatprep.subr.bf16.mxu1 %v2265_v6  ;;  %v252_v6 = vld [vmem:[%s3923_s1 + $0x700] sm:$0xff] }
  0x51   :  { %2236 = vmatpush3.bf16.msra.mxu0 %v2235_v13  ;;  %v270_v13 = vld [vmem:[%s3923_s1 + $0x790] sm:$0xff]  ;;  %v2319_v17 = vpack.c.bf16 %v253_v8, %v252_v6  ;;  %v231_v6 = vld [vmem:[%s3923_s1 + $0x658] sm:$0xff] }
  0x52   :  { %2238 = vmatprep.subr.bf16.mxu0 %v2237_v15  ;;  %v3237_v15 = vrot.slane %v485_v0, %v2727_v10  ;;  %v278_v0 = vld [vmem:[%s3923_s1 + $0x7d0] sm:$0xff] }
  0x53   :  { %2268 = vmatpush3.bf16.msra.mxu1 %v2267_v14  ;;  %v271_v14 = vld [vmem:[%s3923_s1 + $0x798] sm:$0xff] }
  0x54   :  { %2270 = vmatprep.subr.bf16.mxu1 %v2269_v19  ;;  %v222_v19 = vld [vmem:[%s3923_s1 + $0x610] sm:$0xff]  ;;  %v2321_v22 = vpack.c.bf16 %v271_v14, %v270_v13  ;;  %v501_v29 = vcombine.high %v3237_v15, %v3237_v15  ;;  %v249_v13 = vld [vmem:[%s3923_s1 + $0x6e8] sm:$0xff]  ;;  %v280_v14 = vld [vmem:[%s3923_s1 + $0x7e0] sm:$0xff] }
  0x55   :  { %2240 = vmatpush3.bf16.msra.mxu0 %v2239_v25  ;;  %v241_v25 = vld [vmem:[%s3923_s1 + $0x6a8] sm:$0xff]  ;;  %v2291_v30 = vpack.c.bf16 %v223_v20, %v222_v19  ;;  %v2309_v19 = vpack.c.bf16 %v249_v13, %v248_v11  ;;  %v232_v20 = vld [vmem:[%s3923_s1 + $0x660] sm:$0xff] }
  0x56   :  { %2242 = vmatprep.subr.bf16.mxu0 %v2241_v27  ;;  %v272_v27 = vld [vmem:[%s3923_s1 + $0x7a0] sm:$0xff]  ;;  %v2293_v33 = vpack.c.bf16 %v241_v25, %v240_v24  ;;  %v265_v24 = vld [vmem:[%s3923_s1 + $0x768] sm:$0xff]  ;;  %v250_v25 = vld [vmem:[%s3923_s1 + $0x6f0] sm:$0xff] }
  0x57   :  { %2272 = vmatpush3.bf16.msra.mxu1 %v2271_v26  ;;  %v500_v26 = vcombine.high %v3228_v12, %v3228_v12  ;;  %v2325_v36 = vpack.c.bf16 %v273_v28, %v272_v27  ;;  %v282_v27 = vld [vmem:[%s3923_s1 + $0x7f0] sm:$0xff]  ;;  %v283_v28 = vld [vmem:[%s3923_s1 + $0x7f8] sm:$0xff]  ;;  %v289_v11 = vld [vmem:[%s3923_s1 + $0x828] sm:$0xff] }
  0x58   :  { %2274 = vmatprep.subr.bf16.mxu1 %v2273_v31  ;;  %v2323_v31 = vpack.c.bf16 %v255_v23, %v254_v21  ;;  %v233_v21 = vld [vmem:[%s3923_s1 + $0x668] sm:$0xff]  ;;  %v320_v13 = vld [vmem:[%s3923_s1 + $0x920] sm:$0xff] }
  0x59   :  { %2244 = vmatpush3.bf16.msra.mxu0 %v2243_v38  ;;  %v243_v38 = vld [vmem:[%s3923_s1 + $0x6b8] sm:$0xff] }
  0x5a   :  { %2246 = vmatprep.subr.bf16.mxu0 %v2245_v40  ;;  %v275_v40 = vld [vmem:[%s3923_s1 + $0x7b8] sm:$0xff]  ;;  %v2297_v45 = vpack.c.bf16 %v243_v38, %v242_v37  ;;  %v300_v37 = vld [vmem:[%s3923_s1 + $0x880] sm:$0xff]  ;;  %v301_v38 = vld [vmem:[%s3923_s1 + $0x888] sm:$0xff] }
  0x5b   :  { %2276 = vmatpush3.bf16.msra.mxu1 %v2275_v39  ;;  %v274_v39 = vld [vmem:[%s3923_s1 + $0x7b0] sm:$0xff] }
  0x5c   :  { %2278 = vmatprep.subr.bf16.mxu1 %v2277_v46  ;;  %v226_v46 = vld [vmem:[%s3923_s1 + $0x630] sm:$0xff]  ;;  %v2329_v49 = vpack.c.bf16 %v275_v40, %v274_v39  ;;  %v332_v39 = vld [vmem:[%s3923_s1 + $0x980] sm:$0xff]  ;;  %v333_v40 = vld [vmem:[%s3923_s1 + $0x988] sm:$0xff] }
  0x5d   :  { %2248 = vmatpush3.bf16.msra.mxu0 %v2247_v53  ;;  %v245_v53 = vld [vmem:[%s3923_s1 + $0x6c8] sm:$0xff]  ;;  %v2381_v50 = vpack.c.bf16 %v333_v40, %v332_v39 }
  0x5e   :  { %2250 = vmatprep.subr.bf16.mxu0 %v2249_v55  ;;  %v2299_v55 = vpack.c.bf16 %v227_v47, %v226_v46  ;;  %v2301_v57 = vpack.c.bf16 %v245_v53, %v244_v51  ;;  %v2349_v46 = vpack.c.bf16 %v301_v38, %v300_v37  ;;  %v284_v47 = vld [vmem:[%s3923_s1 + $0x800] sm:$0xff]  ;;  %v317_v51 = vld [vmem:[%s3923_s1 + $0x908] sm:$0xff]  ;;  %v302_v53 = vld [vmem:[%s3923_s1 + $0x890] sm:$0xff] }
  0x5f   :  { %2280 = vmatpush3.bf16.msra.mxu1 %v2279_v54  ;;  %v277_v54 = vld [vmem:[%s3923_s1 + $0x7c8] sm:$0xff] }
  0x60   :  { %2282 = vmatprep.subr.bf16.mxu1 %v2281_v58  ;;  %v229_v58 = vld [vmem:[%s3923_s1 + $0x648] sm:$0xff]  ;;  %v2333_v60 = vpack.c.bf16 %v277_v54, %v276_v32  ;;  %v303_v32 = vld [vmem:[%s3923_s1 + $0x898] sm:$0xff] }
  0x61   :  { %2252 = vmatpush3.bf16.msra.mxu0 %v2251_v1  ;;  %v279_v1 = vld [vmem:[%s3923_s1 + $0x7d8] sm:$0xff] }
  0x62   :  { %2286 = vmatprep.subr.bf16.mxu0 %v2285_v3  ;;  %v2335_v3 = vpack.c.bf16 %v261_v61, %v260_v59  ;;  %v2337_v8 = vpack.c.bf16 %v279_v1, %v278_v0  ;;  %v2353_v59 = vpack.c.bf16 %v303_v32, %v302_v53  ;;  %v287_v61 = vld [vmem:[%s3923_s1 + $0x818] sm:$0xff]  ;;  %v304_v1 = vld [vmem:[%s3923_s1 + $0x8a0] sm:$0xff] }
  0x63   :  { %2284 = vmatpush3.bf16.msra.mxu1 %v2283_v2  ;;  %v2303_v2 = vpack.c.bf16 %v229_v58, %v228_v41  ;;  %v2351_v41 = vpack.c.bf16 %v285_v48, %v284_v47  ;;  %v319_v0 = vld [vmem:[%s3923_s1 + $0x918] sm:$0xff] }
  0x64   :  { %2318 = vmatprep.subr.bf16.mxu1 %v2317_v7  ;;  %915 = vmatmul.mubr.f32.vlgmr.msra.gmra.mrb[4].mxu0 %v3036_v43  ;;  %v224_v43 = vld [vmem:[%s3923_s1 + $0x620] sm:$0xff]  ;;  %v262_v7 = vld [vmem:[%s3923_s1 + $0x750] sm:$0xff] }
  0x65   :  { %2288 = vmatpush3.bf16.msra.mxu0 %v2287_v16  ;;  %1054 = vmatprep.mubr.f32.mxu0 %v500_v26  ;;  %v2295_v42 = vpack.c.bf16 %v225_v34, %v224_v43  ;;  %v281_v16 = vld [vmem:[%s3923_s1 + $0x7e8] sm:$0xff]  ;;  %v251_v26 = vld [vmem:[%s3923_s1 + $0x6f8] sm:$0xff]  ;;  %v234_v43 = vld [vmem:[%s3923_s1 + $0x670] sm:$0xff] }
  0x66   :  { %985 = vmatmul.mubr.f32.vlgmr.msra.gmra.mrb[4].mxu1 %v3057_v52  ;;  %2290 = vmatprep.subr.bf16.mxu0 %v2289_v18  ;;  %v257_v52 = vld [vmem:[%s3923_s1 + $0x728] sm:$0xff]  ;;  %v2339_v18 = vpack.c.bf16 %v263_v9, %v262_v7  ;;  %v2341_v23 = vpack.c.bf16 %v281_v16, %v280_v14  ;;  %v235_v34 = vld [vmem:[%s3923_s1 + $0x678] sm:$0xff] }
  0x67   :  { %2320 = vmatpush3.bf16.msra.mxu1 %v2319_v17  ;;  %1124 = vmatprep.mubr.f32.mxu1 %v501_v29  ;;  %v2327_v44 = vpack.c.bf16 %v257_v52, %v256_v35  ;;  %v2307_v17 = vpack.c.bf16 %v231_v6, %v230_v5  ;;  %v2311_v29 = vpack.c.bf16 %v233_v21, %v232_v20  ;;  %v266_v35 = vld [vmem:[%s3923_s1 + $0x770] sm:$0xff]  ;;  %v267_v52 = vld [vmem:[%s3923_s1 + $0x778] sm:$0xff]  ;;  %v337_v5 = vld [vmem:[%s3923_s1 + $0x9a8] sm:$0xff] }
  0x68   :  { %2322 = vmatprep.subr.bf16.mxu1 %v2321_v22  ;;  %v264_v22 = vld [vmem:[%s3923_s1 + $0x760] sm:$0xff] }
  0x69   :  { %2292 = vmatpush3.bf16.msra.mxu0 %v2291_v30  ;;  %v25_v30 = vld [vmem:[%s3922_s0 + $0x20] sm:$0xff] }
  0x6a   :  { %2294 = vmatprep.subr.bf16.mxu0 %v2293_v33  ;;  %v2313_v33 = vpack.c.bf16 %v251_v26, %v250_v25  ;;  %v3435_v54 = vrot.slane %v25_v30, %v2727_v10 }
  0x6b   :  { %2324 = vmatpush3.bf16.msra.mxu1 %v2323_v31  ;;  %v2343_v31 = vpack.c.bf16 %v265_v24, %v264_v22 }
  0x6c   :  { %2326 = vmatprep.subr.bf16.mxu1 %v2325_v36  ;;  %v2345_v36 = vpack.c.bf16 %v283_v28, %v282_v27 }
  0x6d   :  { %2296 = vmatpush3.bf16.msra.mxu0 %v2295_v42  ;;  %v502_v42 = vcombine.high %v25_v30, %v25_v30 }
  0x6e   :  { %2298 = vmatprep.subr.bf16.mxu0 %v2297_v45  ;;  %v2347_v45 = vpack.c.bf16 %v267_v52, %v266_v35 }
  0x6f   :  { %2328 = vmatpush3.bf16.msra.mxu1 %v2327_v44  ;;  %v2315_v44 = vpack.c.bf16 %v235_v34, %v234_v43 }
  0x70   :  { %2330 = vmatprep.subr.bf16.mxu1 %v2329_v49  ;;  %v316_v49 = vld [vmem:[%s3923_s1 + $0x900] sm:$0xff] }
  0x71   :  { %2300 = vmatpush3.bf16.msra.mxu0 %v2299_v55  ;;  %v334_v55 = vld [vmem:[%s3923_s1 + $0x990] sm:$0xff]  ;;  %v2383_v58 = vpack.c.bf16 %v317_v51, %v316_v49 }
  0x72   :  { %2302 = vmatprep.subr.bf16.mxu0 %v2301_v57  ;;  %v3444_v57 = vrot.slane %v502_v42, %v2727_v10 }
  0x73   :  { %2332 = vmatpush3.bf16.msra.mxu1 %v2331_v56  ;;  %v335_v56 = vld [vmem:[%s3923_s1 + $0x998] sm:$0xff] }
  0x74   :  { %2334 = vmatprep.subr.bf16.mxu1 %v2333_v60  ;;  %v286_v60 = vld [vmem:[%s3923_s1 + $0x810] sm:$0xff]  ;;  %v2385_v63 = vpack.c.bf16 %v335_v56, %v334_v55  ;;  %v518_v6 = vcombine.high %v3444_v57, %v3444_v57 }
  0x75   :  { %2304 = vmatpush3.bf16.msra.mxu0 %v2303_v2  ;;  %v305_v2 = vld [vmem:[%s3923_s1 + $0x8a8] sm:$0xff]  ;;  %v2355_v7 = vpack.c.bf16 %v287_v61, %v286_v60 }
  0x76   :  { %2306 = vmatprep.subr.bf16.mxu0 %v2305_v4  ;;  %v336_v4 = vld [vmem:[%s3923_s1 + $0x9a0] sm:$0xff]  ;;  %v2357_v9 = vpack.c.bf16 %v305_v2, %v304_v1 }
  0x77   :  { %2336 = vmatpush3.bf16.msra.mxu1 %v2335_v3  ;;  %v517_v3 = vcombine.high %v3435_v54, %v3435_v54 }
  0x78   :  { %2338 = vmatprep.subr.bf16.mxu1 %v2337_v8  ;;  %v288_v8 = vld [vmem:[%s3923_s1 + $0x820] sm:$0xff] }
  0x79   :  { %2308 = vmatpush3.bf16.msra.mxu0 %v2307_v17 }
  0x7a   :  { %2310 = vmatprep.subr.bf16.mxu0 %v2309_v19 }
  0x7b   :  { %2340 = vmatpush3.bf16.msra.mxu1 %v2339_v18 }
  0x7c   :  { %2342 = vmatprep.subr.bf16.mxu1 %v2341_v23 }
  0x7d   :  { %2312 = vmatpush3.bf16.msra.mxu0 %v2311_v29 }
  0x7e   :  { %2314 = vmatprep.subr.bf16.mxu0 %v2313_v33 }
  0x7f   :  { %2344 = vmatpush3.bf16.msra.mxu1 %v2343_v31 }
  0x80   :  { %2346 = vmatprep.subr.bf16.mxu1 %v2345_v36 }
  0x81   :  { %2316 = vmatpush3.bf16.msra.mxu0 %v2315_v44 }
  0x82   :  { %2350 = vmatprep.subr.bf16.mxu0 %v2349_v46 }
  0x83   :  { %2348 = vmatpush3.bf16.msra.mxu1 %v2347_v45 }
  0x84   :  { %2382 = vmatprep.subr.bf16.mxu1 %v2381_v50  ;;  %1055 = vmatmul.mubr.f32.vlgmr.msra.gmra.mrb[6].mxu0 %v3228_v12  ;;  %v2387_v12 = vpack.c.bf16 %v319_v0, %v318_v62 }
  0x85   :  { %2352 = vmatpush3.bf16.msra.mxu0 %v2351_v41 }
  0x86   :  { %1125 = vmatmul.mubr.f32.vlgmr.msra.gmra.mrb[6].mxu1 %v3237_v15  ;;  %2354 = vmatprep.subr.bf16.mxu0 %v2353_v59 }
  0x87   :  { %2384 = vmatpush3.bf16.msra.mxu1 %v2383_v58 }
  0x88   :  { %10 = vsyncpa [#allocation3], 0  ;;  %2386 = vmatprep.subr.bf16.mxu1 %v2385_v63  ;;  %v2389_v15 = vpack.c.bf16 %v337_v5, %v336_v4  ;;  %v321_v14 = vld [vmem:[%s3923_s1 + $0x928] sm:$0xff]  ;;  %v306_v16 = vld [vmem:[%s3923_s1 + $0x8b0] sm:$0xff]  ;;  %1194 = vmatprep.mubr.f32.mxu0 %v517_v3  ;;  %v2359_v20 = vpack.c.bf16 %v289_v11, %v288_v8  ;;  %vm2550_vm0 = vmmov 0   ;;  %vm567_vm1 = vcmask 523264  }
  0x89   :  { %v307_v17 = vld [vmem:[%s3923_s1 + $0x8b8] sm:$0xff]  ;;  %v338_v18 = vld [vmem:[%s3923_s1 + $0x9b0] sm:$0xff]  ;;  %1264 = vmatprep.mubr.f32.mxu1 %v518_v6  ;;  %2356 = vmatpush3.bf16.msra.mxu0 %v2355_v7  ;;  %v2391_v21 = vpack.c.bf16 %v321_v14, %v320_v13  ;;  %v308_v28 = vld [vmem:[%s3923_s1 + $0x8c0] sm:$0xff]  ;;  %s2552_s21 = smov [#allocation2]  }
  0x8a   :  { %v339_v19 = vld [vmem:[%s3923_s1 + $0x9b8] sm:$0xff]  ;;  %2358 = vmatprep.subr.bf16.mxu0 %v2357_v9  ;;  %v2361_v22 = vpack.c.bf16 %v307_v17, %v306_v16  ;;  %v290_v23 = vld [vmem:[%s3923_s1 + $0x830] sm:$0xff]  ;;  %v309_v29 = vld [vmem:[%s3923_s1 + $0x8c8] sm:$0xff] }
  0x8b   :  { %2388 = vmatpush3.bf16.msra.mxu1 %v2387_v12  ;;  %v291_v24 = vld [vmem:[%s3923_s1 + $0x838] sm:$0xff]  ;;  %v322_v25 = vld [vmem:[%s3923_s1 + $0x930] sm:$0xff]  ;;  %v2393_v26 = vpack.c.bf16 %v339_v19, %v338_v18  ;;  %v340_v30 = vld [vmem:[%s3923_s1 + $0x9c0] sm:$0xff]  ;;  %v2365_v34 = vpack.c.bf16 %v309_v29, %v308_v28 }
  0x8c   :  { %2390 = vmatprep.subr.bf16.mxu1 %v2389_v15  ;;  %v323_v27 = vld [vmem:[%s3923_s1 + $0x938] sm:$0xff]  ;;  %v341_v31 = vld [vmem:[%s3923_s1 + $0x9c8] sm:$0xff]  ;;  %v2363_v33 = vpack.c.bf16 %v291_v24, %v290_v23  ;;  %v292_v35 = vld [vmem:[%s3923_s1 + $0x840] sm:$0xff] }
  0x8d   :  { %2360 = vmatpush3.bf16.msra.mxu0 %v2359_v20  ;;  %v2395_v43 = vpack.c.bf16 %v323_v27, %v322_v25  ;;  %v293_v36 = vld [vmem:[%s3923_s1 + $0x848] sm:$0xff]  ;;  %v324_v52 = vld [vmem:[%s3923_s1 + $0x940] sm:$0xff]  ;;  %v2397_v37 = vpack.c.bf16 %v341_v31, %v340_v30  ;;  %v310_v39 = vld [vmem:[%s3923_s1 + $0x8d0] sm:$0xff] }
  0x8e   :  { %2362 = vmatprep.subr.bf16.mxu0 %v2361_v22  ;;  %v325_v38 = vld [vmem:[%s3923_s1 + $0x948] sm:$0xff]  ;;  %v311_v40 = vld [vmem:[%s3923_s1 + $0x8d8] sm:$0xff]  ;;  %v342_v42 = vld [vmem:[%s3923_s1 + $0x9d0] sm:$0xff]  ;;  %v2367_v45 = vpack.c.bf16 %v293_v36, %v292_v35 }
  0x8f   :  { %2392 = vmatpush3.bf16.msra.mxu1 %v2391_v21  ;;  %v343_v44 = vld [vmem:[%s3923_s1 + $0x9d8] sm:$0xff]  ;;  %v2399_v46 = vpack.c.bf16 %v325_v38, %v324_v52  ;;  %v2369_v47 = vpack.c.bf16 %v311_v40, %v310_v39  ;;  %v294_v48 = vld [vmem:[%s3923_s1 + $0x850] sm:$0xff]  ;;  %v312_v32 = vld [vmem:[%s3923_s1 + $0x8e0] sm:$0xff] }
  0x90   :  { %2394 = vmatprep.subr.bf16.mxu1 %v2393_v26  ;;  %v295_v49 = vld [vmem:[%s3923_s1 + $0x858] sm:$0xff]  ;;  %v326_v50 = vld [vmem:[%s3923_s1 + $0x950] sm:$0xff]  ;;  %v2401_v51 = vpack.c.bf16 %v343_v44, %v342_v42  ;;  %v313_v55 = vld [vmem:[%s3923_s1 + $0x8e8] sm:$0xff] }
  0x91   :  { %2364 = vmatpush3.bf16.msra.mxu0 %v2363_v33  ;;  %v327_v53 = vld [vmem:[%s3923_s1 + $0x958] sm:$0xff]  ;;  %v344_v56 = vld [vmem:[%s3923_s1 + $0x9e0] sm:$0xff]  ;;  %v345_v41 = vld [vmem:[%s3923_s1 + $0x9e8] sm:$0xff]  ;;  %v2371_v58 = vpack.c.bf16 %v295_v49, %v294_v48  ;;  %v2373_v60 = vpack.c.bf16 %v313_v55, %v312_v32 }
  0x92   :  { %2366 = vmatprep.subr.bf16.mxu0 %v2365_v34  ;;  %v2403_v59 = vpack.c.bf16 %v327_v53, %v326_v50  ;;  %v296_v61 = vld [vmem:[%s3923_s1 + $0x860] sm:$0xff]  ;;  %v297_v62 = vld [vmem:[%s3923_s1 + $0x868] sm:$0xff]  ;;  %v2405_v0 = vpack.c.bf16 %v345_v41, %v344_v56  ;;  %v314_v2 = vld [vmem:[%s3923_s1 + $0x8f0] sm:$0xff] }
  0x93   :  { %2396 = vmatpush3.bf16.msra.mxu1 %v2395_v43  ;;  %v328_v63 = vld [vmem:[%s3923_s1 + $0x960] sm:$0xff]  ;;  %v329_v1 = vld [vmem:[%s3923_s1 + $0x968] sm:$0xff]  ;;  %v315_v3 = vld [vmem:[%s3923_s1 + $0x8f8] sm:$0xff]  ;;  %v2375_v6 = vpack.c.bf16 %v297_v62, %v296_v61 }
  0x94   :  { %2398 = vmatprep.subr.bf16.mxu1 %v2397_v37  ;;  %v346_v4 = vld [vmem:[%s3923_s1 + $0x9f0] sm:$0xff]  ;;  %v347_v5 = vld [vmem:[%s3923_s1 + $0x9f8] sm:$0xff]  ;;  %v26_v7 = vld [vmem:[%s3922_s0 + $0x28] sm:$0xff]  ;;  %v2407_v8 = vpack.c.bf16 %v329_v1, %v328_v63  ;;  %v2377_v12 = vpack.c.bf16 %v315_v3, %v314_v2 }
  0x95   :  { %2368 = vmatpush3.bf16.msra.mxu0 %v2367_v45  ;;  %v298_v9 = vld [vmem:[%s3923_s1 + $0x870] sm:$0xff]  ;;  %v299_v11 = vld [vmem:[%s3923_s1 + $0x878] sm:$0xff]  ;;  %v2409_v15 = vpack.c.bf16 %v347_v5, %v346_v4  ;;  %v364_v16 = vld [vmem:[%s3923_s1 + $0xa80] sm:$0xff]  ;;  %v519_v20 = vcombine.high %v26_v7, %v26_v7  ;;  %v3642_v31 = vrot.slane %v26_v7, %v2727_v10 }
  0x96   :  { %2370 = vmatprep.subr.bf16.mxu0 %v2369_v47  ;;  %v330_v13 = vld [vmem:[%s3923_s1 + $0x970] sm:$0xff]  ;;  %v331_v14 = vld [vmem:[%s3923_s1 + $0x978] sm:$0xff]  ;;  %v365_v17 = vld [vmem:[%s3923_s1 + $0xa88] sm:$0xff]  ;;  %v2379_v21 = vpack.c.bf16 %v299_v11, %v298_v9 }
  0x97   :  { %2400 = vmatpush3.bf16.msra.mxu1 %v2399_v46  ;;  %v396_v18 = vld [vmem:[%s3923_s1 + $0xb80] sm:$0xff]  ;;  %v397_v19 = vld [vmem:[%s3923_s1 + $0xb88] sm:$0xff]  ;;  %v2411_v22 = vpack.c.bf16 %v331_v14, %v330_v13  ;;  %v2413_v23 = vpack.c.bf16 %v365_v17, %v364_v16  ;;  %v366_v29 = vld [vmem:[%s3923_s1 + $0xa90] sm:$0xff]  ;;  %v3651_v34 = vrot.slane %v519_v20, %v2727_v10  ;;  %v534_v45 = vcombine.high %v3642_v31, %v3642_v31 }
  0x98   :  { %2402 = vmatprep.subr.bf16.mxu1 %v2401_v51  ;;  %v348_v24 = vld [vmem:[%s3923_s1 + $0xa00] sm:$0xff]  ;;  %v349_v25 = vld [vmem:[%s3923_s1 + $0xa08] sm:$0xff]  ;;  %v2445_v27 = vpack.c.bf16 %v397_v19, %v396_v18  ;;  %v367_v30 = vld [vmem:[%s3923_s1 + $0xa98] sm:$0xff] }
  0x99   :  { %2372 = vmatpush3.bf16.msra.mxu0 %v2371_v58  ;;  %v380_v26 = vld [vmem:[%s3923_s1 + $0xb00] sm:$0xff]  ;;  %v381_v28 = vld [vmem:[%s3923_s1 + $0xb08] sm:$0xff]  ;;  %v398_v33 = vld [vmem:[%s3923_s1 + $0xb90] sm:$0xff]  ;;  %v2415_v35 = vpack.c.bf16 %v349_v25, %v348_v24  ;;  %v2417_v52 = vpack.c.bf16 %v367_v30, %v366_v29  ;;  %v535_v48 = vcombine.high %v3651_v34, %v3651_v34 }
  0x9a   :  { %2374 = vmatprep.subr.bf16.mxu0 %v2373_v60  ;;  %v399_v43 = vld [vmem:[%s3923_s1 + $0xb98] sm:$0xff]  ;;  %v2447_v36 = vpack.c.bf16 %v381_v28, %v380_v26  ;;  %v350_v37 = vld [vmem:[%s3923_s1 + $0xa10] sm:$0xff]  ;;  %v368_v42 = vld [vmem:[%s3923_s1 + $0xaa0] sm:$0xff] }
  0x9b   :  { %2404 = vmatpush3.bf16.msra.mxu1 %v2403_v59  ;;  %v351_v38 = vld [vmem:[%s3923_s1 + $0xa18] sm:$0xff]  ;;  %v382_v39 = vld [vmem:[%s3923_s1 + $0xb10] sm:$0xff]  ;;  %v2449_v10 = vpack.c.bf16 %v399_v43, %v398_v33  ;;  %v369_v44 = vld [vmem:[%s3923_s1 + $0xaa8] sm:$0xff] }
  0x9c   :  { %2406 = vmatprep.subr.bf16.mxu1 %v2405_v0  ;;  %v383_v40 = vld [vmem:[%s3923_s1 + $0xb18] sm:$0xff]  ;;  %v400_v46 = vld [vmem:[%s3923_s1 + $0xba0] sm:$0xff]  ;;  %v401_v47 = vld [vmem:[%s3923_s1 + $0xba8] sm:$0xff]  ;;  %v2419_v49 = vpack.c.bf16 %v351_v38, %v350_v37  ;;  %v2421_v51 = vpack.c.bf16 %v369_v44, %v368_v42 }
  0x9d   :  { %2376 = vmatpush3.bf16.msra.mxu0 %v2375_v6  ;;  %v2451_v50 = vpack.c.bf16 %v383_v40, %v382_v39  ;;  %v353_v53 = vld [vmem:[%s3923_s1 + $0xa28] sm:$0xff]  ;;  %v384_v32 = vld [vmem:[%s3923_s1 + $0xb20] sm:$0xff]  ;;  %v2453_v55 = vpack.c.bf16 %v401_v47, %v400_v46  ;;  %v370_v56 = vld [vmem:[%s3923_s1 + $0xab0] sm:$0xff] }
  0x9e   :  { %2378 = vmatprep.subr.bf16.mxu0 %v2377_v12  ;;  %v371_v41 = vld [vmem:[%s3923_s1 + $0xab8] sm:$0xff]  ;;  %v402_v58 = vld [vmem:[%s3923_s1 + $0xbb0] sm:$0xff]  ;;  %v372_v4 = vld [vmem:[%s3923_s1 + $0xac0] sm:$0xff] }
  0x9f   :  { %2408 = vmatpush3.bf16.msra.mxu1 %v2407_v8  ;;  %v403_v59 = vld [vmem:[%s3923_s1 + $0xbb8] sm:$0xff]  ;;  %v2425_v62 = vpack.c.bf16 %v371_v41, %v370_v56  ;;  %v354_v63 = vld [vmem:[%s3923_s1 + $0xa30] sm:$0xff]  ;;  %v373_v5 = vld [vmem:[%s3923_s1 + $0xac8] sm:$0xff] }
  0xa0   :  { %2410 = vmatprep.subr.bf16.mxu1 %v2409_v15  ;;  %v355_v0 = vld [vmem:[%s3923_s1 + $0xa38] sm:$0xff]  ;;  %v386_v1 = vld [vmem:[%s3923_s1 + $0xb30] sm:$0xff]  ;;  %v2457_v2 = vpack.c.bf16 %v403_v59, %v402_v58  ;;  %v404_v6 = vld [vmem:[%s3923_s1 + $0xbc0] sm:$0xff]  ;;  %v2429_v9 = vpack.c.bf16 %v373_v5, %v372_v4  ;;  %v2549_v59 = vmov 0.0|0.0  }
  0xa1   :  { %2380 = vmatpush3.bf16.msra.mxu0 %v2379_v21  ;;  %v387_v3 = vld [vmem:[%s3923_s1 + $0xb38] sm:$0xff]  ;;  %v405_v7 = vld [vmem:[%s3923_s1 + $0xbc8] sm:$0xff]  ;;  %v2427_v8 = vpack.c.bf16 %v355_v0, %v354_v63  ;;  %v356_v11 = vld [vmem:[%s3923_s1 + $0xa40] sm:$0xff] }
  0xa2   :  { %2414 = vmatprep.subr.bf16.mxu0 %v2413_v23  ;;  %v2459_v12 = vpack.c.bf16 %v387_v3, %v386_v1  ;;  %v357_v13 = vld [vmem:[%s3923_s1 + $0xa48] sm:$0xff]  ;;  %v388_v15 = vld [vmem:[%s3923_s1 + $0xb40] sm:$0xff]  ;;  %v2461_v14 = vpack.c.bf16 %v405_v7, %v404_v6  ;;  %v374_v17 = vld [vmem:[%s3923_s1 + $0xad0] sm:$0xff]  ;;  %v2551_v1 = vmov 0.0  }
  0xa3   :  { %2412 = vmatpush3.bf16.msra.mxu1 %v2411_v22  ;;  %v389_v16 = vld [vmem:[%s3923_s1 + $0xb48] sm:$0xff]  ;;  %v375_v18 = vld [vmem:[%s3923_s1 + $0xad8] sm:$0xff]  ;;  %v406_v19 = vld [vmem:[%s3923_s1 + $0xbd0] sm:$0xff]  ;;  %v2431_v21 = vpack.c.bf16 %v357_v13, %v356_v11 }
  0xa4   :  { %2446 = vmatprep.subr.bf16.mxu1 %v2445_v27  ;;  %1195 = vmatmul.mubr.f32.vlgmr.msra.gmra.mrb[8].mxu0 %v3435_v54  ;;  %v352_v54 = vld [vmem:[%s3923_s1 + $0xa20] sm:$0xff]  ;;  %v407_v20 = vld [vmem:[%s3923_s1 + $0xbd8] sm:$0xff]  ;;  %v2463_v22 = vpack.c.bf16 %v389_v16, %v388_v15  ;;  %v2433_v23 = vpack.c.bf16 %v375_v18, %v374_v17  ;;  %v358_v24 = vld [vmem:[%s3923_s1 + $0xa50] sm:$0xff] }
  0xa5   :  { %2416 = vmatpush3.bf16.msra.mxu0 %v2415_v35  ;;  %1334 = vmatprep.mubr.f32.mxu0 %v534_v45  ;;  %v2423_v60 = vpack.c.bf16 %v353_v53, %v352_v54  ;;  %v359_v25 = vld [vmem:[%s3923_s1 + $0xa58] sm:$0xff]  ;;  %v390_v26 = vld [vmem:[%s3923_s1 + $0xb50] sm:$0xff]  ;;  %v2465_v27 = vpack.c.bf16 %v407_v20, %v406_v19  ;;  %v376_v29 = vld [vmem:[%s3923_s1 + $0xae0] sm:$0xff] }
  0xa6   :  { %1265 = vmatmul.mubr.f32.vlgmr.msra.gmra.mrb[8].mxu1 %v3444_v57  ;;  %2418 = vmatprep.subr.bf16.mxu0 %v2417_v52  ;;  %v385_v57 = vld [vmem:[%s3923_s1 + $0xb28] sm:$0xff]  ;;  %v391_v28 = vld [vmem:[%s3923_s1 + $0xb58] sm:$0xff]  ;;  %v408_v33 = vld [vmem:[%s3923_s1 + $0xbe0] sm:$0xff]  ;;  %v2435_v35 = vpack.c.bf16 %v359_v25, %v358_v24 }
  0xa7   :  { %2448 = vmatpush3.bf16.msra.mxu1 %v2447_v36  ;;  %1404 = vmatprep.mubr.f32.mxu1 %v535_v48  ;;  %v2455_v61 = vpack.c.bf16 %v385_v57, %v384_v32  ;;  %v377_v30 = vld [vmem:[%s3923_s1 + $0xae8] sm:$0xff]  ;;  %v2467_v36 = vpack.c.bf16 %v391_v28, %v390_v26  ;;  %v360_v37 = vld [vmem:[%s3923_s1 + $0xa60] sm:$0xff]  ;;  %v378_v42 = vld [vmem:[%s3923_s1 + $0xaf0] sm:$0xff] }
  0xa8   :  { %2450 = vmatprep.subr.bf16.mxu1 %v2449_v10  ;;  %v409_v43 = vld [vmem:[%s3923_s1 + $0xbe8] sm:$0xff]  ;;  %v2437_v52 = vpack.c.bf16 %v377_v30, %v376_v29  ;;  %v392_v39 = vld [vmem:[%s3923_s1 + $0xb60] sm:$0xff]  ;;  %v379_v44 = vld [vmem:[%s3923_s1 + $0xaf8] sm:$0xff] }
  0xa9   :  { %2420 = vmatpush3.bf16.msra.mxu0 %v2419_v49  ;;  %v361_v38 = vld [vmem:[%s3923_s1 + $0xa68] sm:$0xff]  ;;  %v2469_v10 = vpack.c.bf16 %v409_v43, %v408_v33  ;;  %v410_v45 = vld [vmem:[%s3923_s1 + $0xbf0] sm:$0xff]  ;;  %v411_v46 = vld [vmem:[%s3923_s1 + $0xbf8] sm:$0xff]  ;;  %v2441_v49 = vpack.c.bf16 %v379_v44, %v378_v42 }
  0xaa   :  { %2422 = vmatprep.subr.bf16.mxu0 %v2421_v51  ;;  %v393_v40 = vld [vmem:[%s3923_s1 + $0xb68] sm:$0xff]  ;;  %v2439_v47 = vpack.c.bf16 %v361_v38, %v360_v37  ;;  %v363_v51 = vld [vmem:[%s3923_s1 + $0xa78] sm:$0xff]  ;;  %v2473_v54 = vpack.c.bf16 %v411_v46, %v410_v45  ;;  %v394_v53 = vld [vmem:[%s3923_s1 + $0xb70] sm:$0xff] }
  0xab   :  { %2452 = vmatpush3.bf16.msra.mxu1 %v2451_v50  ;;  %v2471_v48 = vpack.c.bf16 %v393_v40, %v392_v39  ;;  %v362_v50 = vld [vmem:[%s3923_s1 + $0xa70] sm:$0xff]  ;;  %v395_v32 = vld [vmem:[%s3923_s1 + $0xb78] sm:$0xff]  ;;  %v412_v56 = vld [vmem:[%s3923_s1 + $0xc00] sm:$0xff] }
  0xac   :  { %2454 = vmatprep.subr.bf16.mxu1 %v2453_v55  ;;  %v2443_v55 = vpack.c.bf16 %v363_v51, %v362_v50  ;;  %v2475_v57 = vpack.c.bf16 %v395_v32, %v394_v53  ;;  %v413_v41 = vld [vmem:[%s3923_s1 + $0xc08] sm:$0xff]  ;;  %v416_v63 = vld [vmem:[%s3923_s1 + $0xc20] sm:$0xff]  ;;  %v1590_v4 = vld.sshfl [vmem:[%s3922_s0 + $0x30] sm:$0x3 pattern:$0x76325410] }
  0xad   :  { %2424 = vmatpush3.bf16.msra.mxu0 %v2423_v60  ;;  %v2478_v58 = vpack.c.bf16 %v413_v41, %v412_v56  ;;  %v414_v60 = vld [vmem:[%s3923_s1 + $0xc10] sm:$0xff]  ;;  %v417_v0 = vld [vmem:[%s3923_s1 + $0xc28] sm:$0xff]  ;;  %v1589_v6 = vld [vmem:[%s3924_s2] ss:$0 sm:$0xff]  ;;  %s1581_s2 = sshll.u32 %s2552_s21, 4  ;;  %s1582_s2 = int_to_ptr.vmem [resolvable:$true] %s1581_s2 }
  0xae   :  { %2426 = vmatprep.subr.bf16.mxu0 %v2425_v62  ;;  %v1482_v16 = vld [vmem:[%s3925_s3 + $0x8] sm:$0xff]  ;;  %v1483_v17 = vld [vmem:[%s3925_s3 + $0x10] sm:$0xff]  ;;  %v1484_v19 = vld [vmem:[%s3925_s3 + $0x18] sm:$0xff]  ;;  %s2524_s22 = scalar_lea.vmem %s1582_s2, 32  ;;  %p2529_p1 = scmp.lt.s32.totalorder %s1582_s2, %s1582_s2 }
  0xaf   :  { %2456 = vmatpush3.bf16.msra.mxu1 %v2455_v61  ;;  %v415_v61 = vld [vmem:[%s3923_s1 + $0xc18] sm:$0xff]  ;;  %v2493_v20 = vpack.c.bf16 %v1484_v19, %v1483_v17  ;;  %v1487_v24 = vld [vmem:[%s3925_s3 + $0x30] sm:$0xff]  ;;  %v1493_v42 = vld [vmem:[%s3925_s3 + $0x60] sm:$0xff]  ;;  %p2525_p0 = scmp.ne.s32.totalorder %s1582_s2, %s2524_s22  ;;  %p2530_p2 = scmp.lt.s32.totalorder %s2524_s22, %s2524_s22 }
  0xb0   :  { %2458 = vmatprep.subr.bf16.mxu1 %v2457_v2  ;;  %v2481_v62 = vpack.c.bf16 %v415_v61, %v414_v60  ;;  %v419_v2 = vld [vmem:[%s3923_s1 + $0xc38] sm:$0xff]  ;;  %v1491_v38 = vld [vmem:[%s3925_s3 + $0x50] sm:$0xff]  ;;  %v1494_v44 = vld [vmem:[%s3925_s3 + $0x68] sm:$0xff] }
  0xb1   :  { %2428 = vmatpush3.bf16.msra.mxu0 %v2427_v8  ;;  %v1488_v25 = vld [vmem:[%s3925_s3 + $0x38] sm:$0xff]  ;;  %v2508_v45 = vpack.c.bf16 %v1494_v44, %v1493_v42  ;;  %v1495_v46 = vld [vmem:[%s3925_s3 + $0x70] sm:$0xff]  ;;  %v1592_v19 = vld [vmem:[%s3926_s4] ss:$0 sm:$0xff]  ;;  %p2531_p3 = por %p2530_p2, %p2529_p1 }
  0xb2   :  { %2430 = vmatprep.subr.bf16.mxu0 %v2429_v9  ;;  %v1492_v39 = vld [vmem:[%s3925_s3 + $0x58] sm:$0xff] }
  0xb3   :  { %2460 = vmatpush3.bf16.msra.mxu1 %v2459_v12  ;;  %v2505_v40 = vpack.c.bf16 %v1492_v39, %v1491_v38  ;;  %p2532_p4 = pnand %p2531_p3, %p2525_p0 }
  0xb4   :  { %2462 = vmatprep.subr.bf16.mxu1 %v2461_v14  ;;  %v1481_v14 = vld [vmem:[%s3925_s3] sm:$0xff] }
  0xb5   :  { %2432 = vmatpush3.bf16.msra.mxu0 %v2431_v21  ;;  %v2490_v18 = vpack.c.bf16 %v1482_v16, %v1481_v14  ;;  %v1485_v21 = vld [vmem:[%s3925_s3 + $0x20] sm:$0xff] }
  0xb6   :  { %2434 = vmatprep.subr.bf16.mxu0 %v2433_v23 }
  0xb7   :  { %2464 = vmatpush3.bf16.msra.mxu1 %v2463_v22  ;;  %v1486_v22 = vld [vmem:[%s3925_s3 + $0x28] sm:$0xff] }
  0xb8   :  { %2466 = vmatprep.subr.bf16.mxu1 %v2465_v27  ;;  %v2496_v23 = vpack.c.bf16 %v1486_v22, %v1485_v21  ;;  %v2499_v27 = vpack.c.bf16 %v1488_v25, %v1487_v24 }
  0xb9   :  { %2436 = vmatpush3.bf16.msra.mxu0 %v2435_v35  ;;  %v1489_v35 = vld [vmem:[%s3925_s3 + $0x40] sm:$0xff] }
  0xba   :  { %2438 = vmatprep.subr.bf16.mxu0 %v2437_v52 }
  0xbb   :  { %2468 = vmatpush3.bf16.msra.mxu1 %v2467_v36  ;;  %v1490_v36 = vld [vmem:[%s3925_s3 + $0x48] sm:$0xff] }
  0xbc   :  { %2470 = vmatprep.subr.bf16.mxu1 %v2469_v10  ;;  %v2502_v37 = vpack.c.bf16 %v1490_v36, %v1489_v35 }
  0xbd   :  { %2440 = vmatpush3.bf16.msra.mxu0 %v2439_v47  ;;  %v1496_v47 = vld [vmem:[%s3925_s3 + $0x78] sm:$0xff] }
  0xbe   :  { %2442 = vmatprep.subr.bf16.mxu0 %v2441_v49 }
  0xbf   :  { %2472 = vmatpush3.bf16.msra.mxu1 %v2471_v48  ;;  %v2511_v48 = vpack.c.bf16 %v1496_v47, %v1495_v46 }
  0xc0   :  { %2474 = vmatprep.subr.bf16.mxu1 %v2473_v54 }
  0xc1   :  { %2444 = vmatpush3.bf16.msra.mxu0 %v2443_v55 }
  0xc2   :  { %2477 = vmatprep.subr.bf16.mxu0 %v2549_v59 }
  0xc3   :  { %2476 = vmatpush3.bf16.msra.mxu1 %v2475_v57 }
  0xc4   :  { %2489 = vmatprep.subr.bf16.mxu1 %v2549_v59  ;;  %1335 = vmatmul.mubr.f32.vlgmr.msra.gmra.mrb[10].mxu0 %v3642_v31  ;;  %v2484_v31 = vpack.c.bf16 %v417_v0, %v416_v63 }
  0xc5   :  { %2479 = vmatpush3.bf16.msra.mxu0 %v2478_v58  ;;  %2055 = vmatprep.mubr.msk.f32.mxu0 %vm2550_vm0, %v2551_v1 }
  0xc6   :  { %1405 = vmatmul.mubr.f32.vlgmr.msra.gmra.mrb[10].mxu1 %v3651_v34  ;;  %2480 = vmatprep.subr.bf16.mxu0 %v2549_v59  ;;  %v418_v34 = vld [vmem:[%s3923_s1 + $0xc30] sm:$0xff] }
  0xc7   :  { %2090 = vmatprep.mubr.msk.f32.mxu1 %vm2550_vm0, %v2551_v1  ;;  %v2487_v3 = vpack.c.bf16 %v419_v2, %v418_v34  ;;  %2491 = vmatpush3.bf16.msra.mxu1 %v2490_v18 }
  0xc8   :  { %2492 = vmatprep.subr.bf16.mxu1 %v2549_v59 }
  0xc9   :  { %2482 = vmatpush3.bf16.msra.mxu0 %v2481_v62 }
  0xca   :  { %2483 = vmatprep.subr.bf16.mxu0 %v2549_v59 }
  0xcb   :  { %2494 = vmatpush3.bf16.msra.mxu1 %v2493_v20 }
  0xcc   :  { %2495 = vmatprep.subr.bf16.mxu1 %v2549_v59 }
  0xcd   :  { %2485 = vmatpush3.bf16.msra.mxu0 %v2484_v31 }
  0xce   :  { %2486 = vmatprep.subr.bf16.mxu0 %v2549_v59 }
  0xcf   :  { %2497 = vmatpush3.bf16.msra.mxu1 %v2496_v23 }
  0xd0   :  { %2498 = vmatprep.subr.bf16.mxu1 %v2549_v59 }
  0xd1   :  { %2488 = vmatpush3.bf16.msra.mxu0 %v2487_v3 }
  0xd3   :  { %2500 = vmatpush3.bf16.msra.mxu1 %v2499_v27 }
  0xd4   :  { %2056 = vmatmul.mubr.msk.f32.vlgmr.msra.gmra.mrb[12].mxu0 %vm567_vm1, %v1590_v4  ;;  %2501 = vmatprep.subr.bf16.mxu1 %v2549_v59 }
  0xd7   :  { %2503 = vmatpush3.bf16.msra.mxu1 %v2502_v37 }
  0xd8   :  { %2504 = vmatprep.subr.bf16.mxu1 %v2549_v59 }
  0xdb   :  { %2506 = vmatpush3.bf16.msra.mxu1 %v2505_v40 }
  0xdc   :  { %2507 = vmatprep.subr.bf16.mxu1 %v2549_v59 }
  0xdf   :  { %2509 = vmatpush3.bf16.msra.mxu1 %v2508_v45 }
  0xe0   :  { %2510 = vmatprep.subr.bf16.mxu1 %v2549_v59 }
  0xe3   :  { %2512 = vmatpush3.bf16.msra.mxu1 %v2511_v48 }
  0xf7   :  { %v1625_v5 = vpop.f32.mrb[0].mxu0 }
  0xf8   :  { %v1626_v7 = vpop.f32.mrb[1].mxu0 }
  0xf9   :  { %v1660_v8 = vpop.f32.mrb[0].mxu1  ;;  %v1627_v12 = vadd.f32 %v1626_v7, %v1625_v5 }
  0xfa   :  { %v1661_v9 = vpop.f32.mrb[1].mxu1 }
  0xfb   :  { %v1662_v11 = vadd.f32 %v1661_v9, %v1660_v8  ;;  %v637_v13 = vadd.f32 %v1627_v12, %v1589_v6 }
  0xfd   :  { %v707_v15 = vadd.f32 %v1662_v11, %v637_v13 }
 0x117   :  { %v1695_v26 = vpop.f32.mrb[2].mxu0 }
 0x118   :  { %v1696_v28 = vpop.f32.mrb[3].mxu0 }
 0x119   :  { %v1730_v29 = vpop.f32.mrb[2].mxu1  ;;  %v1697_v30 = vadd.f32 %v1696_v28, %v1695_v26 }
 0x11a   :  { %v1731_v33 = vpop.f32.mrb[3].mxu1 }
 0x11b   :  { %v1732_v43 = vadd.f32 %v1731_v33, %v1730_v29  ;;  %v777_v52 = vadd.f32 %v1697_v30, %v707_v15 }
 0x11d   :  { %v847_v10 = vadd.f32 %v1732_v43, %v777_v52 }
 0x137   :  { %v1765_v49 = vpop.f32.mrb[4].mxu0 }
 0x138   :  { %v1766_v50 = vpop.f32.mrb[5].mxu0 }
 0x139   :  { %v1800_v51 = vpop.f32.mrb[4].mxu1  ;;  %v1767_v54 = vadd.f32 %v1766_v50, %v1765_v49 }
 0x13a   :  { %v1801_v53 = vpop.f32.mrb[5].mxu1 }
 0x13b   :  { %v1802_v32 = vadd.f32 %v1801_v53, %v1800_v51  ;;  %v917_v55 = vadd.f32 %v1767_v54, %v847_v10 }
 0x13d   :  { %v987_v57 = vadd.f32 %v1802_v32, %v917_v55 }
 0x157   :  { %v1835_v56 = vpop.f32.mrb[6].mxu0 }
 0x158   :  { %v1836_v41 = vpop.f32.mrb[7].mxu0 }
 0x159   :  { %v1870_v58 = vpop.f32.mrb[6].mxu1  ;;  %v1837_v59 = vadd.f32 %v1836_v41, %v1835_v56 }
 0x15a   :  { %v1871_v60 = vpop.f32.mrb[7].mxu1 }
 0x15b   :  { %v1872_v61 = vadd.f32 %v1871_v60, %v1870_v58  ;;  %v1057_v62 = vadd.f32 %v1837_v59, %v987_v57 }
 0x15d   :  { %v1127_v63 = vadd.f32 %v1872_v61, %v1057_v62 }
 0x177   :  { %v1905_v0 = vpop.f32.mrb[8].mxu0 }
 0x178   :  { %v1906_v1 = vpop.f32.mrb[9].mxu0 }
 0x179   :  { %v1940_v31 = vpop.f32.mrb[8].mxu1  ;;  %v1907_v34 = vadd.f32 %v1906_v1, %v1905_v0 }
 0x17a   :  { %v1941_v2 = vpop.f32.mrb[9].mxu1 }
 0x17b   :  { %v1942_v3 = vadd.f32 %v1941_v2, %v1940_v31  ;;  %v1197_v4 = vadd.f32 %v1907_v34, %v1127_v63 }
 0x17d   :  { %v1267_v5 = vadd.f32 %v1942_v3, %v1197_v4 }
 0x197   :  { %v1975_v6 = vpop.f32.mrb[10].mxu0 }
 0x198   :  { %v1976_v7 = vpop.f32.mrb[11].mxu0 }
 0x199   :  { %v2010_v8 = vpop.f32.mrb[10].mxu1  ;;  %v1977_v12 = vadd.f32 %v1976_v7, %v1975_v6 }
 0x19a   :  { %v2011_v9 = vpop.f32.mrb[11].mxu1 }
 0x19b   :  { %v2012_v11 = vadd.f32 %v2011_v9, %v2010_v8  ;;  %v1337_v13 = vadd.f32 %v1977_v12, %v1267_v5 }
 0x19d   :  { %v1407_v15 = vadd.f32 %v2012_v11, %v1337_v13 }
 0x1a7   :  { %v1476_v14 = vpop.f32.mrb[12].mxu0 }
 0x1a8   :  { %v1477_v16 = vadd.f32 %v1476_v14, %v1407_v15  ;;  %v2057_v17 = vpop.f32.mrb[13].mxu0 }
 0x1aa   :  { %v1480_v18 = vmax.f32 %v1477_v16, 0.0 }
 0x1ac   :  { %2091 = vmatmul.mubr.f32.vlgmr.msra.gmra.mrb[12].mxu1 %v1480_v18 }
 0x27f   :  { %v1570_v20 = vpop.f32.mrb[12].mxu1 }
 0x280   :  { %v1571_v21 = vadd.f32 %v1592_v19, %v1570_v20  ;;  %v2092_v22 = vpop.f32.mrb[13].mxu1 }
 0x282   :  { %1574 = vst [vmem:[#allocation2] sm:$0x3] %v1571_v21 }
 0x283   :  { %2535 = shalt.err (!%p2532_p4)
}
 0x284   :  { %s2536_s25 = scalar_lea.hbm %s3927_s5, 32 }
 0x285   :  { %p2537_p5 = scmp.ne.s32.totalorder %s3927_s5, %s2536_s25  ;;  %p2540_p6 = scmp.lt.u32.totalorder %s2536_s25, %s3927_s5 }
 0x287   :  { %p2542_p7 = pnand %p2540_p6, %p2537_p5 }
 0x289   :  { %2545 = shalt.err (!%p2542_p7)
}
 0x28a   :  { %1584 = dma.vmem_to_hbm [thread:$0]  %s1582_s2, 32, %s3927_s5, [#allocation3]  }
 0x28b   :  { %2546 = dma.done.wait [#allocation3], 32  }
 0x28c   :  { %2547 = vsyncadd [#allocation3], 4294967264 }
 0x28d   :  { %1588 = vsyncpa [#allocation3], 1 }

// kernel: cnn_forward.3
= control target key start
LH: loop header
LB: loop body
LE: loop exit
PB: predicated region body
PF: predicated region fallthrough
CT: control target
= control target key end

     0   :  { %s6128_s15 = smov 0   ;;  %s13632_s0 = inlined_call_operand.vmem [shape: f32[2,465,1], index: 0, kind: input, shape index: {}]   ;;  %s13633_s1 = inlined_call_operand.vmem [shape: f32[2,465,1], index: 1, kind: input, shape index: {}]   ;;  %s13634_s2 = inlined_call_operand.vmem [shape: f32[9,1,32], index: 2, kind: input, shape index: {}]   ;;  %s13635_s3 = inlined_call_operand.vmem [shape: f32[1,32], index: 3, kind: input, shape index: {}]   ;;  %s13636_s4 = inlined_call_operand.vmem [shape: f32[2,405,32], index: 4, kind: output, shape index: {}]  }
   0x1 LB: > { %s5995_s16 = sadd.s32 4294967295, %s6100_s15   ;;  %p5999_p0 = scmp.ge.s32.totalorder %s6100_s15, 1  ;;  %s6100_s15 = sphi %s6128_s15, %s14_s15  }
   0x2   : > { %p172_p1 = scmp.lt.s32.totalorder %s6100_s15, 3 }
   0x4   : > { %p173_p2 = pnand %p5999_p0, %p172_p1 }
   0x6   : > { %176 = sbr.rel (%p173_p2) target bundleno = 1147 (0x47b), region = 36 }
   0xd   : > { %p203_p3 = scmp.lt.s32.totalorder %s5995_s16, 1  ;;  %v6102_v0 = vmov 0   ;;  %vm1541_vm0 = vcmask 1040384   ;;  %vm2334_vm1 = vcmask 1041408   ;;  %vm1203_vm2 = vcmask 1046528  }
   0xe   : > { %6035 = vset.pattern.permute.xlu1 %v6102_v0  ;;  %6034 = vset.pattern.permute.xlu0 %v6102_v0  ;;  %vm5875_vm3 = vcmask 261120   ;;  %vm5926_vm4 = vcmask 258048  }
   0xf   : > { %s15619_s16 = smov (!%p203_p3, %s5995_s16), 1 }
  0x10   : > { %s6023_s17 = smul.u32 472, %s15619_s16 }
  0x11   : > { %s6024_s6 = smul.u32 408, %s15619_s16 }
  0x12   : > { %s6144_s20 = scalar_lea.vmem %s13632_s0, %s6023_s17  ;;  %s6203_s23 = scalar_lea.vmem %s13633_s1, %s6023_s17 }
  0x13   : > { %v220_v1 = vld [vmem:[%s6144_s20 + $0x10] sm:$0xff]  ;;  %v218_v2 = vld [vmem:[%s6144_s20] sm:$0xff]  ;;  %v221_v3 = vld [vmem:[%s6144_s20 + $0x18] sm:$0xff]  ;;  %s9078_s8 = scalar_lea.vmem %s13636_s4, %s6024_s6 }
  0x14   : > { %345 = vperm.xlu1 %6035, %v220_v1   ;;  %335 = vperm.xlu0 %6034, %v218_v2   ;;  %v219_v4 = vld [vmem:[%s6144_s20 + $0x8] sm:$0xff]  ;;  %v222_v6 = vld [vmem:[%s6144_s20 + $0x20] sm:$0xff]  ;;  %v225_v7 = vld [vmem:[%s6144_s20 + $0x38] sm:$0xff] }
  0x15   : > { %v223_v5 = vld [vmem:[%s6144_s20 + $0x28] sm:$0xff]  ;;  %v224_v8 = vld [vmem:[%s6144_s20 + $0x30] sm:$0xff]  ;;  %v226_v10 = vld [vmem:[%s6144_s20 + $0x40] sm:$0xff] }
  0x16   : > { %v227_v9 = vld [vmem:[%s6144_s20 + $0x48] sm:$0xff]  ;;  %v229_v11 = vld [vmem:[%s6144_s20 + $0x58] sm:$0xff]  ;;  %v228_v12 = vld [vmem:[%s6144_s20 + $0x50] sm:$0xff] }
  0x17   : > { %v231_v13 = vld [vmem:[%s6144_s20 + $0x68] sm:$0xff]  ;;  %v230_v14 = vld [vmem:[%s6144_s20 + $0x60] sm:$0xff]  ;;  %v233_v15 = vld [vmem:[%s6144_s20 + $0x78] sm:$0xff] }
  0x18   : > { %350 = vperm.xlu1 %6035, %v221_v3   ;;  %340 = vperm.xlu0 %6034, %v219_v4   ;;  %v232_v16 = vld [vmem:[%s6144_s20 + $0x70] sm:$0xff]  ;;  %v235_v17 = vld [vmem:[%s6144_s20 + $0x88] sm:$0xff]  ;;  %v234_v18 = vld [vmem:[%s6144_s20 + $0x80] sm:$0xff] }
  0x19   : > { %v237_v19 = vld [vmem:[%s6144_s20 + $0x98] sm:$0xff]  ;;  %v236_v20 = vld [vmem:[%s6144_s20 + $0x90] sm:$0xff]  ;;  %v239_v21 = vld [vmem:[%s6144_s20 + $0xa8] sm:$0xff] }
  0x1a   : > { %v238_v22 = vld [vmem:[%s6144_s20 + $0xa0] sm:$0xff]  ;;  %v241_v23 = vld [vmem:[%s6144_s20 + $0xb8] sm:$0xff]  ;;  %v240_v24 = vld [vmem:[%s6144_s20 + $0xb0] sm:$0xff] }
  0x1b   : > { %v243_v25 = vld [vmem:[%s6144_s20 + $0xc8] sm:$0xff]  ;;  %v242_v26 = vld [vmem:[%s6144_s20 + $0xc0] sm:$0xff]  ;;  %v245_v27 = vld [vmem:[%s6144_s20 + $0xd8] sm:$0xff] }
  0x1c   : > { %360 = vperm.xlu1 %6035, %v223_v5   ;;  %355 = vperm.xlu0 %6034, %v222_v6   ;;  %v244_v28 = vld [vmem:[%s6144_s20 + $0xd0] sm:$0xff]  ;;  %v247_v29 = vld [vmem:[%s6144_s20 + $0xe8] sm:$0xff]  ;;  %v246_v30 = vld [vmem:[%s6144_s20 + $0xe0] sm:$0xff] }
  0x1d   : > { %v249_v31 = vld [vmem:[%s6144_s20 + $0xf8] sm:$0xff]  ;;  %v248_v32 = vld [vmem:[%s6144_s20 + $0xf0] sm:$0xff]  ;;  %v251_v33 = vld [vmem:[%s6144_s20 + $0x108] sm:$0xff] }
  0x1e   : > { %v250_v34 = vld [vmem:[%s6144_s20 + $0x100] sm:$0xff]  ;;  %v253_v35 = vld [vmem:[%s6144_s20 + $0x118] sm:$0xff]  ;;  %v252_v36 = vld [vmem:[%s6144_s20 + $0x110] sm:$0xff] }
  0x1f   : > { %v255_v37 = vld [vmem:[%s6144_s20 + $0x128] sm:$0xff]  ;;  %v254_v38 = vld [vmem:[%s6144_s20 + $0x120] sm:$0xff]  ;;  %v257_v39 = vld [vmem:[%s6144_s20 + $0x138] sm:$0xff] }
  0x20   : > { %370 = vperm.xlu1 %6035, %v225_v7   ;;  %365 = vperm.xlu0 %6034, %v224_v8   ;;  %v256_v40 = vld [vmem:[%s6144_s20 + $0x130] sm:$0xff]  ;;  %v259_v41 = vld [vmem:[%s6144_s20 + $0x148] sm:$0xff]  ;;  %v258_v42 = vld [vmem:[%s6144_s20 + $0x140] sm:$0xff] }
  0x21   : > { %v261_v43 = vld [vmem:[%s6144_s20 + $0x158] sm:$0xff]  ;;  %v260_v44 = vld [vmem:[%s6144_s20 + $0x150] sm:$0xff]  ;;  %v263_v45 = vld [vmem:[%s6144_s20 + $0x168] sm:$0xff] }
  0x22   : > { %v262_v46 = vld [vmem:[%s6144_s20 + $0x160] sm:$0xff]  ;;  %v265_v47 = vld [vmem:[%s6144_s20 + $0x178] sm:$0xff]  ;;  %v264_v48 = vld [vmem:[%s6144_s20 + $0x170] sm:$0xff] }
  0x23   : > { %v267_v49 = vld [vmem:[%s6144_s20 + $0x188] sm:$0xff]  ;;  %v266_v50 = vld [vmem:[%s6144_s20 + $0x180] sm:$0xff]  ;;  %v269_v51 = vld [vmem:[%s6144_s20 + $0x198] sm:$0xff] }
  0x24   : > { %380 = vperm.xlu1 %6035, %v227_v9   ;;  %375 = vperm.xlu0 %6034, %v226_v10   ;;  %v268_v52 = vld [vmem:[%s6144_s20 + $0x190] sm:$0xff]  ;;  %v275_v53 = vld [vmem:[%s6203_s23] sm:$0xff]  ;;  %v276_v56 = vld [vmem:[%s6203_s23 + $0x8] sm:$0xff] }
  0x25   : > { %v270_v54 = vld [vmem:[%s6144_s20 + $0x1a0] sm:$0xff]  ;;  %v277_v55 = vld [vmem:[%s6203_s23 + $0x10] sm:$0xff]  ;;  %v278_v58 = vld [vmem:[%s6203_s23 + $0x18] sm:$0xff] }
  0x26   : > { %v279_v57 = vld [vmem:[%s6203_s23 + $0x20] sm:$0xff]  ;;  %v281_v59 = vld [vmem:[%s6203_s23 + $0x30] sm:$0xff]  ;;  %v280_v60 = vld [vmem:[%s6203_s23 + $0x28] sm:$0xff] }
  0x27   : > { %v283_v61 = vld [vmem:[%s6203_s23 + $0x40] sm:$0xff]  ;;  %v282_v62 = vld [vmem:[%s6203_s23 + $0x38] sm:$0xff]  ;;  %v285_v63 = vld [vmem:[%s6203_s23 + $0x50] sm:$0xff] }
  0x28   : > { %390 = vperm.xlu1 %6035, %v229_v11   ;;  %385 = vperm.xlu0 %6034, %v228_v12   ;;  %v284_v0 = vld [vmem:[%s6203_s23 + $0x48] sm:$0xff]  ;;  %v287_v1 = vld [vmem:[%s6203_s23 + $0x60] sm:$0xff]  ;;  %v286_v2 = vld [vmem:[%s6203_s23 + $0x58] sm:$0xff] }
  0x29   : > { %v6222_v5 = vld [vmem:[%s13634_s2 + $0x1] ss:$0 sm:$0xff]  ;;  %v6227_v6 = vld [vmem:[%s13634_s2 + $0x2] ss:$0 sm:$0xff]  ;;  %v6232_v7 = vld [vmem:[%s13634_s2] ss:$0 sm:$0xff] }
  0x2a   : > { %v289_v8 = vld [vmem:[%s6203_s23 + $0x70] sm:$0xff]  ;;  %v6238_v9 = vld [vmem:[%s13634_s2 + $0x4] ss:$0 sm:$0xff]  ;;  %v6243_v10 = vld [vmem:[%s13634_s2 + $0x5] ss:$0 sm:$0xff] }
  0x2b   : > { %v288_v11 = vld [vmem:[%s6203_s23 + $0x68] sm:$0xff] }
  0x2c   : > { %400 = vperm.xlu1 %6035, %v231_v13   ;;  %395 = vperm.xlu0 %6034, %v230_v14   ;;  %v6255_v14 = vld [vmem:[%s13634_s2 + $0x7] ss:$0 sm:$0xff] }
  0x30   : > { %410 = vperm.xlu1 %6035, %v233_v15   ;;  %405 = vperm.xlu0 %6034, %v232_v16   ;;  %v6260_v15 = vld [vmem:[%s13634_s2 + $0x8] ss:$0 sm:$0xff] }
  0x34   : > { %420 = vperm.xlu1 %6035, %v235_v17   ;;  %415 = vperm.xlu0 %6034, %v234_v18   ;;  %v6267_v17 = vld [vmem:[%s13634_s2 + $0x3] ss:$0 sm:$0xff] }
  0x38   : > { %430 = vperm.xlu1 %6035, %v237_v19   ;;  %425 = vperm.xlu0 %6034, %v236_v20  }
  0x3c   : > { %440 = vperm.xlu1 %6035, %v239_v21   ;;  %435 = vperm.xlu0 %6034, %v238_v22  }
  0x40   : > { %450 = vperm.xlu1 %6035, %v241_v23   ;;  %445 = vperm.xlu0 %6034, %v240_v24   ;;  %v291_v24 = vld [vmem:[%s6203_s23 + $0x80] sm:$0xff] }
  0x44   : > { %460 = vperm.xlu1 %6035, %v243_v25   ;;  %455 = vperm.xlu0 %6034, %v242_v26  }
  0x48   : > { %470 = vperm.xlu1 %6035, %v245_v27   ;;  %465 = vperm.xlu0 %6034, %v244_v28   ;;  %v290_v28 = vld [vmem:[%s6203_s23 + $0x78] sm:$0xff] }
  0x4c   : > { %480 = vperm.xlu1 %6035, %v247_v29   ;;  %475 = vperm.xlu0 %6034, %v246_v30  }
  0x50   : > { %490 = vperm.xlu1 %6035, %v249_v31   ;;  %485 = vperm.xlu0 %6034, %v248_v32  }
  0x54   : > { %500 = vperm.xlu1 %6035, %v251_v33   ;;  %495 = vperm.xlu0 %6034, %v250_v34  }
  0x58   : > { %510 = vperm.xlu1 %6035, %v253_v35   ;;  %505 = vperm.xlu0 %6034, %v252_v36  }
  0x5c   : > { %520 = vperm.xlu1 %6035, %v255_v37   ;;  %515 = vperm.xlu0 %6034, %v254_v38  }
  0x60   : > { %530 = vperm.xlu1 %6035, %v257_v39   ;;  %525 = vperm.xlu0 %6034, %v256_v40   ;;  %v6322_v39 = vld [vmem:[%s13634_s2 + $0x6] ss:$0 sm:$0xff] }
  0x64   : > { %540 = vperm.xlu1 %6035, %v259_v41   ;;  %535 = vperm.xlu0 %6034, %v258_v42  }
  0x68   : > { %550 = vperm.xlu1 %6035, %v261_v43   ;;  %545 = vperm.xlu0 %6034, %v260_v44  }
  0x6c   : > { %560 = vperm.xlu1 %6035, %v263_v45   ;;  %555 = vperm.xlu0 %6034, %v262_v46   ;;  %v293_v45 = vld [vmem:[%s6203_s23 + $0x90] sm:$0xff] }
  0x70   : > { %570 = vperm.xlu1 %6035, %v265_v47   ;;  %565 = vperm.xlu0 %6034, %v264_v48  }
  0x74   : > { %580 = vperm.xlu1 %6035, %v267_v49   ;;  %575 = vperm.xlu0 %6034, %v266_v50   ;;  %v292_v49 = vld [vmem:[%s6203_s23 + $0x88] sm:$0xff] }
  0x78   : > { %590 = vperm.xlu1 %6035, %v269_v51   ;;  %585 = vperm.xlu0 %6034, %v268_v52   ;;  %v296_v52 = vld [vmem:[%s6203_s23 + $0xa8] sm:$0xff] }
  0x7c   : > { %714 = vperm.xlu1 %6035, %v275_v53   ;;  %595 = vperm.xlu0 %6034, %v270_v54  }
  0x80   : > { %724 = vperm.xlu1 %6035, %v277_v55   ;;  %719 = vperm.xlu0 %6034, %v276_v56  }
  0x84   : > { %734 = vperm.xlu1 %6035, %v279_v57   ;;  %729 = vperm.xlu0 %6034, %v278_v58  }
  0x88   : > { %744 = vperm.xlu1 %6035, %v281_v59   ;;  %739 = vperm.xlu0 %6034, %v280_v60  }
  0x8c   : > { %754 = vperm.xlu1 %6035, %v283_v61   ;;  %749 = vperm.xlu0 %6034, %v282_v62   ;;  %v297_v61 = vld [vmem:[%s6203_s23 + $0xb0] sm:$0xff] }
  0x90   : > { %764 = vperm.xlu1 %6035, %v285_v63   ;;  %759 = vperm.xlu0 %6034, %v284_v0   ;;  %v295_v0 = vld [vmem:[%s6203_s23 + $0xa0] sm:$0xff] }
  0x93   : > { %v346_v3 = vpop.permute.xlu1 %345  ;;  %v336_v4 = vpop.permute.xlu0 %335 }
  0x94   : > { %774 = vperm.xlu1 %6035, %v287_v1   ;;  %769 = vperm.xlu0 %6034, %v286_v2   ;;  %v6247_v12 = vmul.f32 %v6227_v6, %v346_v3  ;;  %v6250_v13 = vmul.f32 %v6222_v5, %v346_v3  ;;  %v6270_v19 = vmul.f32 %v6227_v6, %v336_v4 }
  0x95   : > { %v6273_v20 = vmul.f32 %v6222_v5, %v336_v4  ;;  %v6276_v21 = vmul.f32 %v6232_v7, %v346_v3  ;;  %v6279_v22 = vmul.f32 %v6243_v10, %v346_v3  ;;  %v6282_v23 = vmul.f32 %v6238_v9, %v346_v3 }
  0x96   : > { %v6286_v25 = vmul.f32 %v6232_v7, %v336_v4  ;;  %v6298_v29 = vmul.f32 %v6267_v17, %v346_v3 }
  0x97   : > { %v6262_v16 = vpop.permute.xlu1 %350  ;;  %v341_v18 = vpop.permute.xlu0 %340 }
  0x98   : > { %784 = vperm.xlu1 %6035, %v289_v8   ;;  %779 = vperm.xlu0 %6034, %v288_v11   ;;  %v6290_v26 = vmul.f32 %v6260_v15, %v6262_v16  ;;  %v6294_v27 = vmul.f32 %v6255_v14, %v6262_v16  ;;  %v6303_v32 = vmul.f32 %v6227_v6, %v341_v18  ;;  %v294_v11 = vld [vmem:[%s6203_s23 + $0x98] sm:$0xff] }
  0x99   : > { %v6306_v33 = vmul.f32 %v6267_v17, %v341_v18  ;;  %v6314_v37 = vmul.f32 %v6243_v10, %v6262_v16  ;;  %v6317_v38 = vmul.f32 %v6222_v5, %v341_v18  ;;  %v6328_v41 = vmul.f32 %v6238_v9, %v6262_v16 }
  0x9a   : > { %v6346_v48 = vmul.f32 %v6232_v7, %v341_v18 }
  0x9b   : > { %v6308_v34 = vpop.permute.xlu1 %360  ;;  %14022 = vst [vmem:[#allocation3_spill] sm:$0xff] %v6314_v37  ;;  %v6324_v40 = vpop.permute.xlu0 %355  ;;  %14023 = vst [vmem:[#allocation4_spill] sm:$0xff] %v6328_v41 }
  0x9c   : > { %14021 = vst [vmem:[#allocation2_spill] sm:$0xff] %v6308_v34  ;;  %794 = vperm.xlu1 %6035, %v291_v24   ;;  %v6332_v42 = vmul.f32 %v6227_v6, %v6308_v34  ;;  %v6336_v43 = vmul.f32 %v6267_v17, %v6308_v34  ;;  %v6340_v44 = vmul.f32 %v6322_v39, %v6308_v34 }
  0x9d   : > { %789 = vperm.xlu0 %6034, %v290_v28   ;;  %v6354_v53 = vmul.f32 %v6260_v15, %v6308_v34  ;;  %v6358_v54 = vmul.f32 %v6222_v5, %v6308_v34  ;;  %v6365_v57 = vmul.f32 %v6243_v10, %v6308_v34  ;;  %v6369_v58 = vmul.f32 %v6238_v9, %v6308_v34 }
  0x9e   : > { %v6373_v59 = vmul.f32 %v6255_v14, %v6308_v34  ;;  %v6380_v63 = vmul.f32 %v6260_v15, %v6324_v40  ;;  %v6385_v1 = vmul.f32 %v6227_v6, %v6324_v40  ;;  %v6389_v2 = vmul.f32 %v6255_v14, %v6324_v40 }
  0x9f   : > { %14024 = vst [vmem:[#allocation5_spill] sm:$0xff] %v6354_v53  ;;  %v6360_v55 = vpop.permute.xlu1 %370  ;;  %14026 = vst [vmem:[#allocation7_spill] sm:$0xff] %v6365_v57  ;;  %v6399_v8 = vpop.permute.xlu0 %365  ;;  %v6415_v47 = vmul.f32 %v6243_v10, %v6324_v40  ;;  %v6419_v18 = vmul.f32 %v6238_v9, %v6324_v40 }
  0xa0   : > { %14025 = vst [vmem:[#allocation6_spill] sm:$0xff] %v6360_v55  ;;  %14027 = vst [vmem:[#allocation8_spill] sm:$0xff] %v6369_v58  ;;  %804 = vperm.xlu1 %6035, %v293_v45   ;;  %v6393_v3 = vmul.f32 %v6227_v6, %v6360_v55  ;;  %v6397_v4 = vmul.f32 %v6267_v17, %v6360_v55  ;;  %v6406_v28 = vmul.f32 %v6322_v39, %v6360_v55 }
  0xa1   : > { %14028 = vst [vmem:[#allocation9_spill] sm:$0xff] %v6373_v59  ;;  %799 = vperm.xlu0 %6034, %v292_v49   ;;  %14031 = vst [vmem:[#allocation12_spill] sm:$0xff] %v6399_v8  ;;  %v6410_v45 = vmul.f32 %v6260_v15, %v6360_v55  ;;  %v6423_v46 = vmul.f32 %v6222_v5, %v6360_v55  ;;  %v6428_v62 = vmul.f32 %v6243_v10, %v6360_v55 }
  0xa2   : > { %14029 = vst [vmem:[#allocation10_spill] sm:$0xff] %v6393_v3  ;;  %14030 = vst [vmem:[#allocation11_spill] sm:$0xff] %v6397_v4  ;;  %v6432_v49 = vmul.f32 %v6255_v14, %v6360_v55  ;;  %v6436_v60 = vmul.f32 %v6227_v6, %v6399_v8  ;;  %v6444_v36 = vmul.f32 %v6267_v17, %v6399_v8  ;;  %v312_v4 = vld [vmem:[%s6203_s23 + $0x128] sm:$0xff] }
  0xa3   : > { %14032 = vst [vmem:[#allocation13_spill] sm:$0xff] %v6406_v28  ;;  %14033 = vst [vmem:[#allocation14_spill] sm:$0xff] %v6410_v45  ;;  %v6446_v56 = vpop.permute.xlu1 %380  ;;  %v6462_v31 = vmul.f32 %v6238_v9, %v6360_v55  ;;  %v6466_v50 = vmul.f32 %v6222_v5, %v6399_v8  ;;  %v6470_v30 = vmul.f32 %v6255_v14, %v6399_v8  ;;  %v6496_v51 = vpop.permute.xlu0 %375 }
  0xa4   : > { %14034 = vst [vmem:[#allocation15_spill] sm:$0xff] %v6415_v47  ;;  %14035 = vst [vmem:[#allocation16_spill] sm:$0xff] %v6419_v18  ;;  %814 = vperm.xlu1 %6035, %v295_v0   ;;  %v6457_v0 = vmul.f32 %v6260_v15, %v6399_v8  ;;  %v6476_v24 = vmul.f32 %v6243_v10, %v6399_v8  ;;  %v6486_v28 = vmul.f32 %v6238_v9, %v6399_v8  ;;  %v314_v18 = vld [vmem:[%s6203_s23 + $0x138] sm:$0xff] }
  0xa5   : > { %14036 = vst [vmem:[#allocation17_spill] sm:$0xff] %v6423_v46  ;;  %14037 = vst [vmem:[#allocation18_spill] sm:$0xff] %v6428_v62  ;;  %809 = vperm.xlu0 %6034, %v294_v11   ;;  %v6453_v11 = vmul.f32 %v6322_v39, %v6399_v8  ;;  %v299_v62 = vld [vmem:[%s6203_s23 + $0xc0] sm:$0xff]  ;;  %v6494_v35 = vmul.f32 %v6322_v39, %v6446_v56  ;;  %v6503_v55 = vmul.f32 %v6260_v15, %v6446_v56 }
  0xa6   : > { %14038 = vst [vmem:[#allocation19_spill] sm:$0xff] %v6432_v49  ;;  %14039 = vst [vmem:[#allocation20_spill] sm:$0xff] %v6436_v60  ;;  %v298_v49 = vld [vmem:[%s6203_s23 + $0xb8] sm:$0xff]  ;;  %v6513_v57 = vmul.f32 %v6243_v10, %v6446_v56  ;;  %v6517_v45 = vmul.f32 %v6255_v14, %v6446_v56  ;;  %v6522_v59 = vmul.f32 %v6238_v9, %v6446_v56 }
  0xa7   : > { %14040 = vst [vmem:[#allocation21_spill] sm:$0xff] %v6446_v56  ;;  %14041 = vst [vmem:[#allocation22_spill] sm:$0xff] %v6453_v11  ;;  %v6526_v58 = vmul.f32 %v6227_v6, %v6496_v51 }
  0xa8   : > { %14042 = vst [vmem:[#allocation23_spill] sm:$0xff] %v6457_v0  ;;  %14043 = vst [vmem:[#allocation24_spill] sm:$0xff] %v6462_v31  ;;  %824 = vperm.xlu1 %6035, %v297_v61   ;;  %v6480_v31 = vmul.f32 %v6227_v6, %v6446_v56  ;;  %v6490_v61 = vmul.f32 %v6267_v17, %v6446_v56 }
  0xa9   : > { %14044 = vst [vmem:[#allocation25_spill] sm:$0xff] %v6466_v50  ;;  %14045 = vst [vmem:[#allocation26_spill] sm:$0xff] %v6470_v30  ;;  %819 = vperm.xlu0 %6034, %v296_v52   ;;  %v301_v30 = vld [vmem:[%s6203_s23 + $0xd0] sm:$0xff]  ;;  %v6554_v52 = vmul.f32 %v6255_v14, %v6496_v51 }
  0xaa   : > { %14046 = vst [vmem:[#allocation27_spill] sm:$0xff] %v6476_v24  ;;  %14047 = vst [vmem:[#allocation28_spill] sm:$0xff] %v6480_v31  ;;  %v6530_v24 = vmul.f32 %v6267_v17, %v6496_v51  ;;  %v300_v31 = vld [vmem:[%s6203_s23 + $0xc8] sm:$0xff]  ;;  %v313_v50 = vld [vmem:[%s6203_s23 + $0x130] sm:$0xff] }
  0xab   : > { %14048 = vst [vmem:[#allocation29_spill] sm:$0xff] %v6486_v28  ;;  %14049 = vst [vmem:[#allocation30_spill] sm:$0xff] %v6490_v61  ;;  %v6507_v28 = vmul.f32 %v6222_v5, %v6446_v56  ;;  %v6539_v56 = vmul.f32 %v6322_v39, %v6496_v51  ;;  %v303_v61 = vld [vmem:[%s6203_s23 + $0xe0] sm:$0xff] }
  0xac   : > { %14050 = vst [vmem:[#allocation31_spill] sm:$0xff] %v6494_v35  ;;  %14051 = vst [vmem:[#allocation32_spill] sm:$0xff] %v6496_v51  ;;  %834 = vperm.xlu1 %6035, %v299_v62   ;;  %v6559_v35 = vmul.f32 %v6243_v10, %v6496_v51  ;;  %v6573_v62 = vmul.f32 %v6238_v9, %v6496_v51 }
  0xad   : > { %14052 = vst [vmem:[#allocation33_spill] sm:$0xff] %v6503_v55  ;;  %14053 = vst [vmem:[#allocation34_spill] sm:$0xff] %v6507_v28  ;;  %829 = vperm.xlu0 %6034, %v298_v49   ;;  %v6550_v49 = vmul.f32 %v6222_v5, %v6496_v51 }
  0xae   : > { %14054 = vst [vmem:[#allocation35_spill] sm:$0xff] %v6513_v57  ;;  %14055 = vst [vmem:[#allocation36_spill] sm:$0xff] %v6517_v45  ;;  %v6532_v57 = vpop.permute.xlu1 %390 }
  0xaf   : > { %14056 = vst [vmem:[#allocation37_spill] sm:$0xff] %v6522_v59  ;;  %14057 = vst [vmem:[#allocation38_spill] sm:$0xff] %v6526_v58  ;;  %v6543_v59 = vmul.f32 %v6260_v15, %v6496_v51  ;;  %v6563_v0 = vmul.f32 %v6227_v6, %v6532_v57  ;;  %v6567_v53 = vmul.f32 %v6267_v17, %v6532_v57 }
  0xb0   : > { %14058 = vst [vmem:[#allocation39_spill] sm:$0xff] %v6530_v24  ;;  %14059 = vst [vmem:[#allocation40_spill] sm:$0xff] %v6532_v57  ;;  %844 = vperm.xlu1 %6035, %v301_v30   ;;  %v6577_v45 = vmul.f32 %v6322_v39, %v6532_v57  ;;  %v6586_v55 = vmul.f32 %v6260_v15, %v6532_v57  ;;  %v6590_v28 = vmul.f32 %v6222_v5, %v6532_v57 }
  0xb1   : > { %14060 = vst [vmem:[#allocation41_spill] sm:$0xff] %v6539_v56  ;;  %14061 = vst [vmem:[#allocation42_spill] sm:$0xff] %v6543_v59  ;;  %839 = vperm.xlu0 %6034, %v300_v31   ;;  %v6597_v31 = vmul.f32 %v6243_v10, %v6532_v57  ;;  %v6601_v30 = vmul.f32 %v6255_v14, %v6532_v57 }
  0xb2   : > { %14062 = vst [vmem:[#allocation43_spill] sm:$0xff] %v6550_v49  ;;  %14063 = vst [vmem:[#allocation44_spill] sm:$0xff] %v6554_v52  ;;  %v6613_v58 = vpop.permute.xlu1 %400  ;;  %v6618_v52 = vmul.f32 %v6238_v9, %v6532_v57  ;;  %v306_v49 = vld [vmem:[%s6203_s23 + $0xf8] sm:$0xff] }
  0xb3   : > { %14064 = vst [vmem:[#allocation45_spill] sm:$0xff] %v6559_v35  ;;  %14065 = vst [vmem:[#allocation46_spill] sm:$0xff] %v6563_v0  ;;  %v6579_v35 = vpop.permute.xlu0 %385  ;;  %v6647_v0 = vmul.f32 %v6227_v6, %v6613_v58  ;;  %v6684_v34 = vmul.f32 %v6255_v14, %v6613_v58 }
  0xb4   : > { %14066 = vst [vmem:[#allocation47_spill] sm:$0xff] %v6567_v53  ;;  %14067 = vst [vmem:[#allocation48_spill] sm:$0xff] %v6573_v62  ;;  %v302_v62 = vld [vmem:[%s6203_s23 + $0xd8] sm:$0xff]  ;;  %v6607_v56 = vmul.f32 %v6227_v6, %v6579_v35  ;;  %v6611_v51 = vmul.f32 %v6267_v17, %v6579_v35  ;;  %854 = vperm.xlu1 %6035, %v303_v61   ;;  %v6622_v59 = vmul.f32 %v6322_v39, %v6579_v35  ;;  %v305_v53 = vld [vmem:[%s6203_s23 + $0xf0] sm:$0xff] }
  0xb5   : > { %14068 = vst [vmem:[#allocation49_spill] sm:$0xff] %v6577_v45  ;;  %14069 = vst [vmem:[#allocation50_spill] sm:$0xff] %v6579_v35  ;;  %v6626_v11 = vmul.f32 %v6260_v15, %v6579_v35  ;;  %849 = vperm.xlu0 %6034, %v302_v62   ;;  %v304_v45 = vld [vmem:[%s6203_s23 + $0xe8] sm:$0xff]  ;;  %v6643_v62 = vmul.f32 %v6243_v10, %v6579_v35  ;;  %v6651_v61 = vmul.f32 %v6267_v17, %v6613_v58 }
  0xb6   : > { %14070 = vst [vmem:[#allocation51_spill] sm:$0xff] %v6586_v55  ;;  %14071 = vst [vmem:[#allocation52_spill] sm:$0xff] %v6590_v28  ;;  %v6657_v57 = vmul.f32 %v6238_v9, %v6579_v35  ;;  %v6669_v55 = vmul.f32 %v6260_v15, %v6613_v58  ;;  %v6673_v28 = vmul.f32 %v6222_v5, %v6613_v58 }
  0xb7   : > { %14072 = vst [vmem:[#allocation53_spill] sm:$0xff] %v6597_v31  ;;  %14073 = vst [vmem:[#allocation54_spill] sm:$0xff] %v6601_v30  ;;  %v6633_v31 = vmul.f32 %v6222_v5, %v6579_v35  ;;  %v6661_v30 = vmul.f32 %v6322_v39, %v6613_v58 }
  0xb8   : > { %14074 = vst [vmem:[#allocation55_spill] sm:$0xff] %v6607_v56  ;;  %14075 = vst [vmem:[#allocation56_spill] sm:$0xff] %v6611_v51  ;;  %864 = vperm.xlu1 %6035, %v305_v53   ;;  %v6680_v53 = vmul.f32 %v6243_v10, %v6613_v58  ;;  %v6697_v56 = vpop.permute.xlu1 %410 }
  0xb9   : > { %14076 = vst [vmem:[#allocation57_spill] sm:$0xff] %v6613_v58  ;;  %14077 = vst [vmem:[#allocation58_spill] sm:$0xff] %v6618_v52  ;;  %v6637_v52 = vmul.f32 %v6255_v14, %v6579_v35  ;;  %859 = vperm.xlu0 %6034, %v304_v45   ;;  %v6767_v51 = vmul.f32 %v6255_v14, %v6697_v56 }
  0xba   : > { %14078 = vst [vmem:[#allocation59_spill] sm:$0xff] %v6622_v59  ;;  %14079 = vst [vmem:[#allocation60_spill] sm:$0xff] %v6626_v11 }
  0xbb   : > { %14080 = vst [vmem:[#allocation61_spill] sm:$0xff] %v6633_v31  ;;  %14081 = vst [vmem:[#allocation62_spill] sm:$0xff] %v6637_v52  ;;  %v6702_v52 = vmul.f32 %v6238_v9, %v6613_v58 }
  0xbc   : > { %14082 = vst [vmem:[#allocation63_spill] sm:$0xff] %v6643_v62  ;;  %14083 = vst [vmem:[#allocation64_spill] sm:$0xff] %v6647_v0  ;;  %v6663_v62 = vpop.permute.xlu0 %395  ;;  %v308_v0 = vld [vmem:[%s6203_s23 + $0x108] sm:$0xff] }
  0xbd   : > { %14084 = vst [vmem:[#allocation65_spill] sm:$0xff] %v6651_v61  ;;  %14085 = vst [vmem:[#allocation66_spill] sm:$0xff] %v6657_v57  ;;  %v307_v57 = vld [vmem:[%s6203_s23 + $0x100] sm:$0xff]  ;;  %v6691_v45 = vmul.f32 %v6227_v6, %v6663_v62  ;;  %v6695_v35 = vmul.f32 %v6267_v17, %v6663_v62  ;;  %v6706_v59 = vmul.f32 %v6322_v39, %v6663_v62  ;;  %869 = vperm.xlu0 %6034, %v306_v49  }
  0xbe   : > { %14086 = vst [vmem:[#allocation67_spill] sm:$0xff] %v6661_v30  ;;  %14087 = vst [vmem:[#allocation68_spill] sm:$0xff] %v6663_v62  ;;  %v6710_v11 = vmul.f32 %v6260_v15, %v6663_v62  ;;  %874 = vperm.xlu1 %6035, %v307_v57   ;;  %v309_v30 = vld [vmem:[%s6203_s23 + $0x110] sm:$0xff]  ;;  %v6726_v31 = vmul.f32 %v6243_v10, %v6663_v62  ;;  %v6730_v57 = vmul.f32 %v6227_v6, %v6697_v56 }
  0xbf   : > { %14088 = vst [vmem:[#allocation69_spill] sm:$0xff] %v6669_v55  ;;  %14089 = vst [vmem:[#allocation70_spill] sm:$0xff] %v6673_v28  ;;  %v6734_v61 = vmul.f32 %v6267_v17, %v6697_v56  ;;  %v6741_v58 = vmul.f32 %v6238_v9, %v6663_v62  ;;  %v6753_v55 = vmul.f32 %v6260_v15, %v6697_v56  ;;  %v6769_v28 = vpop.permute.xlu1 %420 }
  0xc0   : > { %14090 = vst [vmem:[#allocation71_spill] sm:$0xff] %v6680_v53  ;;  %14091 = vst [vmem:[#allocation72_spill] sm:$0xff] %v6684_v34  ;;  %v6716_v53 = vmul.f32 %v6222_v5, %v6663_v62  ;;  %v6745_v34 = vmul.f32 %v6322_v39, %v6697_v56  ;;  %v6757_v49 = vmul.f32 %v6222_v5, %v6697_v56 }
  0xc1   : > { %14092 = vst [vmem:[#allocation73_spill] sm:$0xff] %v6691_v45  ;;  %14093 = vst [vmem:[#allocation74_spill] sm:$0xff] %v6695_v35  ;;  %879 = vperm.xlu0 %6034, %v308_v0   ;;  %v6839_v46 = vmul.f32 %v6232_v7, %v6769_v28  ;;  %v6865_v47 = vmul.f32 %v6243_v10, %v6769_v28 }
  0xc2   : > { %14094 = vst [vmem:[#allocation75_spill] sm:$0xff] %v6697_v56  ;;  %14095 = vst [vmem:[#allocation76_spill] sm:$0xff] %v6702_v52  ;;  %v6720_v52 = vmul.f32 %v6255_v14, %v6663_v62  ;;  %884 = vperm.xlu1 %6035, %v309_v30   ;;  %v6763_v62 = vmul.f32 %v6243_v10, %v6697_v56  ;;  %v6817_v30 = vmul.f32 %v6260_v15, %v6769_v28 }
  0xc3   : > { %14096 = vst [vmem:[#allocation77_spill] sm:$0xff] %v6706_v59  ;;  %14097 = vst [vmem:[#allocation78_spill] sm:$0xff] %v6710_v11  ;;  %v311_v11 = vld [vmem:[%s6203_s23 + $0x120] sm:$0xff] }
  0xc4   : > { %14098 = vst [vmem:[#allocation79_spill] sm:$0xff] %v6716_v53  ;;  %14099 = vst [vmem:[#allocation80_spill] sm:$0xff] %v6720_v52  ;;  %v6786_v53 = vmul.f32 %v6238_v9, %v6697_v56 }
  0xc5   : > { %14100 = vst [vmem:[#allocation81_spill] sm:$0xff] %v6726_v31  ;;  %14101 = vst [vmem:[#allocation82_spill] sm:$0xff] %v6730_v57  ;;  %v6747_v31 = vpop.permute.xlu0 %405  ;;  %v6813_v57 = vmul.f32 %v6322_v39, %v6769_v28 }
  0xc6   : > { %14102 = vst [vmem:[#allocation83_spill] sm:$0xff] %v6734_v61  ;;  %14103 = vst [vmem:[#allocation84_spill] sm:$0xff] %v6741_v58  ;;  %v6776_v58 = vmul.f32 %v6227_v6, %v6747_v31  ;;  %v6780_v45 = vmul.f32 %v6267_v17, %v6747_v31  ;;  %v6790_v0 = vmul.f32 %v6322_v39, %v6747_v31  ;;  %894 = vperm.xlu1 %6035, %v311_v11   ;;  %v315_v11 = vld [vmem:[%s6203_s23 + $0x140] sm:$0xff] }
  0xc7   : > { %14104 = vst [vmem:[#allocation85_spill] sm:$0xff] %v6745_v34  ;;  %14105 = vst [vmem:[#allocation86_spill] sm:$0xff] %v6747_v31  ;;  %v6794_v59 = vmul.f32 %v6260_v15, %v6747_v31  ;;  %v6800_v52 = vmul.f32 %v6222_v5, %v6747_v31  ;;  %v6809_v35 = vmul.f32 %v6243_v10, %v6747_v31 }
  0xc8   : > { %14106 = vst [vmem:[#allocation87_spill] sm:$0xff] %v6753_v55  ;;  %14107 = vst [vmem:[#allocation88_spill] sm:$0xff] %v6757_v49  ;;  %v6824_v56 = vmul.f32 %v6238_v9, %v6747_v31 }
  0xc9   : > { %14108 = vst [vmem:[#allocation89_spill] sm:$0xff] %v6763_v62  ;;  %14109 = vst [vmem:[#allocation90_spill] sm:$0xff] %v6767_v51  ;;  %v310_v62 = vld [vmem:[%s6203_s23 + $0x118] sm:$0xff]  ;;  %v416_v49 = vpop.permute.xlu0 %415 }
  0xca   : > { %14110 = vst [vmem:[#allocation91_spill] sm:$0xff] %v6776_v58  ;;  %14111 = vst [vmem:[#allocation92_spill] sm:$0xff] %v6780_v45  ;;  %889 = vperm.xlu0 %6034, %v310_v62   ;;  %v6835_v62 = vmul.f32 %v6255_v14, %v6747_v31  ;;  %v1448_v24 = vmul.f32 %v6267_v17, %v416_v49  ;;  %904 = vperm.xlu1 %6035, %v313_v50   ;;  %v6859_v50 = vpop.permute.xlu1 %430 }
  0xcb   : > { %14112 = vst [vmem:[#allocation93_spill] sm:$0xff] %v6786_v53  ;;  %14113 = vst [vmem:[#allocation94_spill] sm:$0xff] %v6790_v0  ;;  %v6804_v53 = vmul.f32 %v6267_v17, %v6769_v28  ;;  %v2239_v0 = vmul.f32 %v6322_v39, %v416_v49  ;;  %v4823_v45 = vmul.f32 %v6255_v14, %v416_v49 }
  0xcc   : > { %14114 = vst [vmem:[#allocation95_spill] sm:$0xff] %v6794_v59  ;;  %14115 = vst [vmem:[#allocation96_spill] sm:$0xff] %v6800_v52  ;;  %v6855_v52 = vmul.f32 %v6222_v5, %v6769_v28  ;;  %v1571_v58 = vrot.slane %v1448_v24, 7  ;;  %v6869_v31 = vmul.f32 %v6227_v6, %v416_v49  ;;  %v14126_v59 = vrot.slane %v6813_v57, 6 }
  0xcd   : > { %14116 = vst [vmem:[#allocation97_spill] sm:$0xff] %v6809_v35  ;;  %14117 = vst [vmem:[#allocation98_spill] sm:$0xff] %v6824_v56  ;;  %v6828_v35 = vmul.f32 %v6255_v14, %v6769_v28  ;;  %v6844_v56 = vmul.f32 %v6227_v6, %v6769_v28  ;;  %v14124_v24 = vrot.slane %v6804_v53, 7  ;;  %v4943_v37 = vrot.slane %v4823_v45, 7  ;;  %v317_v45 = vld [vmem:[%s6203_s23 + $0x150] sm:$0xff] }
  0xce   : > { %14118 = vst [vmem:[#allocation99_spill] sm:$0xff] %v6835_v62  ;;  %14119 = vst [vmem:[#allocation100_spill] sm:$0xff] %v6839_v46  ;;  %v2908_v46 = vmul.f32 %v6260_v15, %v416_v49  ;;  %899 = vperm.xlu0 %6034, %v312_v4   ;;  %v2360_v4 = vrot.slane %v2239_v0, 6  ;;  %914 = vperm.xlu1 %6035, %v315_v11   ;;  %v6887_v3 = vmul.f32 %v6222_v5, %v416_v49 }
  0xcf   : > { %14120 = vst [vmem:[#allocation101_spill] sm:$0xff] %v6844_v56  ;;  %14121 = vst [vmem:[#allocation102_spill] sm:$0xff] %v6855_v52  ;;  %v6874_v41 = vsel %vm1541_vm0, %v1571_v58, %v14124_v24  ;;  %v6900_v24 = vmul.f32 %v6232_v7, %v416_v49  ;;  %v6912_v11 = vmul.f32 %v6238_v9, %v416_v49  ;;  %v14141_v56 = vrot.slane %v6745_v34, 6 }
  0xd0   : > { %14122 = vst [vmem:[#allocation103_spill] sm:$0xff] %v6865_v47  ;;  %v3028_v60 = vrot.slane %v2908_v46, 7  ;;  %14123 = vst [vmem:[#allocation104_spill] sm:$0xff] %v6869_v31  ;;  %v6879_v62 = vsel %vm2334_vm1, %v2360_v4, %v14126_v59  ;;  %v14128_v46 = vrot.slane %v6817_v30, 7  ;;  %v6891_v47 = vmul.f32 %v6267_v17, %v6859_v50  ;;  %v319_v31 = vld [vmem:[%s6203_s23 + $0x160] sm:$0xff] }
  0xd1   : > { %14125 = vst [vmem:[#allocation105_spill] sm:$0xff] %v6874_v41  ;;  %14127 = vst [vmem:[#allocation106_spill] sm:$0xff] %v6879_v62  ;;  %v6897_v59 = vmul.f32 %v6238_v9, %v6769_v28  ;;  %v426_v62 = vpop.permute.xlu0 %425  ;;  %v316_v41 = vld [vmem:[%s6203_s23 + $0x148] sm:$0xff]  ;;  %v6916_v28 = vmul.f32 %v6322_v39, %v6859_v50  ;;  %v6947_v8 = vsel %vm2334_vm1, %v14141_v56, %v2360_v4 }
  0xd2   : > { %v6884_v0 = vsel %vm1541_vm0, %v3028_v60, %v14128_v46  ;;  %14130 = vst [vmem:[#allocation108_spill] sm:$0xff] %v6887_v3  ;;  %909 = vperm.xlu0 %6034, %v314_v18   ;;  %14132 = vst [vmem:[#allocation110_spill] sm:$0xff] %v6900_v24  ;;  %v14133_v46 = vrot.slane %v6828_v35, 7  ;;  %v6909_v18 = vmul.f32 %v6243_v10, %v416_v49  ;;  %924 = vperm.xlu1 %6035, %v317_v45   ;;  %v330_v3 = vld [vmem:[%s6203_s23 + $0x1b8] sm:$0xff] }
  0xd3   : > { %14129 = vst [vmem:[#allocation107_spill] sm:$0xff] %v6884_v0  ;;  %14131 = vst [vmem:[#allocation109_spill] sm:$0xff] %v6897_v59  ;;  %v6920_v59 = vmul.f32 %v6260_v15, %v6859_v50  ;;  %v6933_v49 = vmul.f32 %v6255_v14, %v6859_v50  ;;  %v14143_v45 = vrot.slane %v6753_v55, 7  ;;  %v14145_v24 = vrot.slane %v6767_v51, 7 }
  0xd4   : > { %v6905_v0 = vsel %vm1541_vm0, %v4943_v37, %v14133_v46  ;;  %14135 = vst [vmem:[#allocation112_spill] sm:$0xff] %v6909_v18  ;;  %14136 = vst [vmem:[#allocation113_spill] sm:$0xff] %v6912_v11  ;;  %v6929_v18 = vmul.f32 %v6227_v6, %v6859_v50  ;;  %v14139_v11 = vrot.slane %v6734_v61, 7  ;;  %v318_v46 = vld [vmem:[%s6203_s23 + $0x158] sm:$0xff]  ;;  %v2910_v4 = vmul.f32 %v6260_v15, %v426_v62 }
  0xd5   : > { %14134 = vst [vmem:[#allocation111_spill] sm:$0xff] %v6905_v0  ;;  %v6925_v0 = vmul.f32 %v6232_v7, %v6859_v50  ;;  %14142 = vst [vmem:[#allocation117_spill] sm:$0xff] %v6947_v8  ;;  %v6952_v61 = vsel %vm1541_vm0, %v14143_v45, %v3028_v60  ;;  %v14150_v55 = vrot.slane %v6891_v47, 7  ;;  %v321_v60 = vld [vmem:[%s6203_s23 + $0x170] sm:$0xff]  ;;  %v320_v8 = vld [vmem:[%s6203_s23 + $0x168] sm:$0xff] }
  0xd6   : > { %14138 = vst [vmem:[#allocation115_spill] sm:$0xff] %v6929_v18  ;;  %v6938_v52 = vsel %vm1541_vm0, %v14139_v11, %v1571_v58  ;;  %919 = vperm.xlu0 %6034, %v316_v41   ;;  %14144 = vst [vmem:[#allocation118_spill] sm:$0xff] %v6952_v61  ;;  %v2241_v11 = vmul.f32 %v6322_v39, %v426_v62  ;;  %v6960_v41 = vsel %vm1541_vm0, %v14145_v24, %v4943_v37  ;;  %v6967_v61 = vpop.permute.xlu1 %440 }
  0xd7   : > { %14137 = vst [vmem:[#allocation114_spill] sm:$0xff] %v6925_v0  ;;  %14140 = vst [vmem:[#allocation116_spill] sm:$0xff] %v6938_v52  ;;  %v1450_v0 = vmul.f32 %v6267_v17, %v426_v62  ;;  %v4825_v58 = vmul.f32 %v6255_v14, %v426_v62  ;;  %934 = vperm.xlu1 %6035, %v319_v31   ;;  %v6971_v37 = vmul.f32 %v6222_v5, %v6859_v50 }
  0xd8   : > { %14146 = vst [vmem:[#allocation119_spill] sm:$0xff] %v6960_v41  ;;  %v2364_v45 = vrot.slane %v2241_v11, 6  ;;  %v14148_v24 = vrot.slane %v6804_v53, 7  ;;  %v3032_v11 = vrot.slane %v2910_v4, 7  ;;  %v6985_v41 = vmul.f32 %v6227_v6, %v426_v62 }
  0xd9   : > { %v1575_v56 = vrot.slane %v1450_v0, 7  ;;  %14147 = vst [vmem:[#allocation120_spill] sm:$0xff] %v6971_v37  ;;  %v14153_v31 = vrot.slane %v6813_v57, 6  ;;  %v14155_v53 = vrot.slane %v6916_v28, 6  ;;  %v4947_v51 = vrot.slane %v4825_v58, 7 }
  0xda   : > { %929 = vperm.xlu0 %6034, %v318_v46   ;;  %14152 = vst [vmem:[#allocation123_spill] sm:$0xff] %v6985_v41  ;;  %v14158_v46 = vrot.slane %v6817_v30, 7  ;;  %v14160_v57 = vrot.slane %v6920_v59, 7  ;;  %v14162_v58 = vrot.slane %v6828_v35, 7  ;;  %v7038_v35 = vmul.f32 %v6238_v9, %v6859_v50  ;;  %v324_v41 = vld [vmem:[%s6203_s23 + $0x188] sm:$0xff] }
  0xdb   : > { %v6976_v0 = vsel %vm1541_vm0, %v14148_v24, %v1575_v56  ;;  %v6981_v34 = vsel %vm1541_vm0, %v1575_v56, %v14150_v55  ;;  %v6990_v18 = vsel %vm2334_vm1, %v14153_v31, %v2364_v45  ;;  %v6995_v24 = vsel %vm2334_vm1, %v2364_v45, %v14155_v53  ;;  %944 = vperm.xlu1 %6035, %v321_v60  }
  0xdc   : > { %14149 = vst [vmem:[#allocation121_spill] sm:$0xff] %v6976_v0  ;;  %14151 = vst [vmem:[#allocation122_spill] sm:$0xff] %v6981_v34  ;;  %v7000_v55 = vmul.f32 %v6243_v10, %v6859_v50  ;;  %v7005_v56 = vsel %vm1541_vm0, %v14158_v46, %v3032_v11  ;;  %v7010_v4 = vsel %vm1541_vm0, %v3032_v11, %v14160_v57  ;;  %v14164_v53 = vrot.slane %v6933_v49, 7  ;;  %v7034_v57 = vpop.permute.xlu0 %435 }
  0xdd   : > { %14154 = vst [vmem:[#allocation124_spill] sm:$0xff] %v6990_v18  ;;  %14156 = vst [vmem:[#allocation125_spill] sm:$0xff] %v6995_v24  ;;  %v7014_v45 = vmul.f32 %v6267_v17, %v6967_v61  ;;  %v7019_v31 = vsel %vm1541_vm0, %v14162_v58, %v4947_v51  ;;  %v7028_v46 = vmul.f32 %v6322_v39, %v6967_v61  ;;  %v325_v18 = vld [vmem:[%s6203_s23 + $0x190] sm:$0xff] }
  0xde   : > { %14157 = vst [vmem:[#allocation126_spill] sm:$0xff] %v7000_v55  ;;  %14159 = vst [vmem:[#allocation127_spill] sm:$0xff] %v7005_v56  ;;  %v7024_v30 = vsel %vm1541_vm0, %v4947_v51, %v14164_v53  ;;  %v7032_v11 = vmul.f32 %v6260_v15, %v6967_v61  ;;  %v7041_v58 = vmul.f32 %v6232_v7, %v426_v62  ;;  %939 = vperm.xlu0 %6034, %v320_v8   ;;  %v7077_v56 = vpop.permute.xlu1 %450 }
  0xdf   : > { %14161 = vst [vmem:[#allocation128_spill] sm:$0xff] %v7010_v4  ;;  %14163 = vst [vmem:[#allocation129_spill] sm:$0xff] %v7019_v31  ;;  %v7044_v51 = vmul.f32 %v6222_v5, %v426_v62  ;;  %v7048_v53 = vmul.f32 %v6255_v14, %v6967_v61  ;;  %v7054_v55 = vmul.f32 %v6243_v10, %v426_v62 }
  0xe0   : > { %14165 = vst [vmem:[#allocation130_spill] sm:$0xff] %v7024_v30  ;;  %14166 = vst [vmem:[#allocation131_spill] sm:$0xff] %v7038_v35  ;;  %v323_v30 = vld [vmem:[%s6203_s23 + $0x180] sm:$0xff]  ;;  %v7057_v50 = vmul.f32 %v6238_v9, %v426_v62  ;;  %v322_v35 = vld [vmem:[%s6203_s23 + $0x178] sm:$0xff]  ;;  %v7062_v24 = vmul.f32 %v6232_v7, %v6967_v61  ;;  %v7066_v8 = vmul.f32 %v6227_v6, %v6967_v61 }
  0xe1   : > { %14167 = vst [vmem:[#allocation132_spill] sm:$0xff] %v7041_v58  ;;  %14168 = vst [vmem:[#allocation133_spill] sm:$0xff] %v7044_v51  ;;  %v1452_v60 = vmul.f32 %v6267_v17, %v7034_v57  ;;  %954 = vperm.xlu1 %6035, %v323_v30   ;;  %v4827_v31 = vmul.f32 %v6255_v14, %v7034_v57  ;;  %v7086_v62 = vmul.f32 %v6222_v5, %v6967_v61 }
  0xe2   : > { %14169 = vst [vmem:[#allocation134_spill] sm:$0xff] %v7054_v55  ;;  %14170 = vst [vmem:[#allocation135_spill] sm:$0xff] %v7057_v50  ;;  %v2243_v50 = vmul.f32 %v6322_v39, %v7034_v57  ;;  %949 = vperm.xlu0 %6034, %v322_v35   ;;  %v7090_v37 = vmul.f32 %v6227_v6, %v7034_v57  ;;  %v14175_v55 = vrot.slane %v6891_v47, 7  ;;  %v14177_v35 = vrot.slane %v7014_v45, 7 }
  0xe3   : > { %14171 = vst [vmem:[#allocation136_spill] sm:$0xff] %v7062_v24  ;;  %14172 = vst [vmem:[#allocation137_spill] sm:$0xff] %v7066_v8  ;;  %v2912_v24 = vmul.f32 %v6260_v15, %v7034_v57  ;;  %v1579_v34 = vrot.slane %v1452_v60, 7  ;;  %v4951_v51 = vrot.slane %v4827_v31, 7  ;;  %v7105_v0 = vmul.f32 %v6267_v17, %v7077_v56 }
  0xe4   : > { %14173 = vst [vmem:[#allocation138_spill] sm:$0xff] %v7086_v62  ;;  %14174 = vst [vmem:[#allocation139_spill] sm:$0xff] %v7090_v37  ;;  %v2368_v58 = vrot.slane %v2243_v50, 6  ;;  %v14179_v50 = vrot.slane %v6916_v28, 6  ;;  %v14181_v47 = vrot.slane %v7028_v46, 6  ;;  %v14185_v31 = vrot.slane %v7032_v11, 7 }
  0xe5   : > { %v3036_v30 = vrot.slane %v2912_v24, 7  ;;  %v7096_v60 = vsel %vm1541_vm0, %v14175_v55, %v1579_v34  ;;  %v7101_v4 = vsel %vm1541_vm0, %v1579_v34, %v14177_v35  ;;  %964 = vperm.xlu1 %6035, %v325_v18   ;;  %v7145_v18 = vmul.f32 %v6238_v9, %v6967_v61  ;;  %v271_v62 = vld [vmem:[%s6144_s20 + $0x1a8] sm:$0xff]  ;;  %v329_v37 = vld [vmem:[%s6203_s23 + $0x1b0] sm:$0xff] }
  0xe6   : > { %14176 = vst [vmem:[#allocation140_spill] sm:$0xff] %v7096_v60  ;;  %14178 = vst [vmem:[#allocation141_spill] sm:$0xff] %v7101_v4  ;;  %v7110_v24 = vsel %vm2334_vm1, %v14179_v50, %v2368_v58  ;;  %v7115_v55 = vsel %vm2334_vm1, %v2368_v58, %v14181_v47  ;;  %v14183_v60 = vrot.slane %v6920_v59, 7  ;;  %v7130_v50 = vmul.f32 %v6243_v10, %v6967_v61  ;;  %v272_v4 = vld [vmem:[%s6144_s20 + $0x1b0] sm:$0xff] }
  0xe7   : > { %14180 = vst [vmem:[#allocation142_spill] sm:$0xff] %v7110_v24  ;;  %14182 = vst [vmem:[#allocation143_spill] sm:$0xff] %v7115_v55  ;;  %v7125_v35 = vsel %vm1541_vm0, %v3036_v30, %v14185_v31  ;;  %v14188_v58 = vrot.slane %v6933_v49, 7  ;;  %v14190_v59 = vrot.slane %v7048_v53, 7  ;;  %v446_v55 = vpop.permute.xlu0 %445  ;;  %959 = vperm.xlu0 %6034, %v324_v41   ;;  %v7149_v31 = vmul.f32 %v6222_v5, %v7034_v57 }
  0xe8   : > { %v7120_v34 = vsel %vm1541_vm0, %v14183_v60, %v3036_v30  ;;  %14186 = vst [vmem:[#allocation145_spill] sm:$0xff] %v7125_v35  ;;  %14187 = vst [vmem:[#allocation146_spill] sm:$0xff] %v7130_v50  ;;  %v327_v30 = vld [vmem:[%s6203_s23 + $0x1a0] sm:$0xff]  ;;  %v7153_v49 = vmul.f32 %v6322_v39, %v7077_v56  ;;  %v7163_v61 = vmul.f32 %v6232_v7, %v7034_v57  ;;  %v14202_v41 = vrot.slane %v7105_v0, 7 }
  0xe9   : > { %14184 = vst [vmem:[#allocation144_spill] sm:$0xff] %v7120_v34  ;;  %v7135_v47 = vsel %vm1541_vm0, %v14188_v58, %v4951_v51  ;;  %v7140_v60 = vsel %vm1541_vm0, %v4951_v51, %v14190_v59  ;;  %14192 = vst [vmem:[#allocation149_spill] sm:$0xff] %v7145_v18  ;;  %v7157_v58 = vmul.f32 %v6260_v15, %v7077_v56  ;;  %v326_v51 = vld [vmem:[%s6203_s23 + $0x198] sm:$0xff]  ;;  %974 = vperm.xlu1 %6035, %v327_v30  }
  0xea   : > { %14189 = vst [vmem:[#allocation147_spill] sm:$0xff] %v7135_v47  ;;  %14191 = vst [vmem:[#allocation148_spill] sm:$0xff] %v7140_v60  ;;  %v7167_v59 = vmul.f32 %v6227_v6, %v7077_v56  ;;  %v7171_v28 = vmul.f32 %v6255_v14, %v7077_v56  ;;  %v7176_v18 = vmul.f32 %v6243_v10, %v7034_v57  ;;  %v14227_v8 = vrot.slane %v7105_v0, 7 }
  0xeb   : > { %14193 = vst [vmem:[#allocation150_spill] sm:$0xff] %v7149_v31  ;;  %14194 = vst [vmem:[#allocation151_spill] sm:$0xff] %v7163_v61  ;;  %v1454_v35 = vmul.f32 %v6267_v17, %v446_v55  ;;  %v7182_v50 = vmul.f32 %v6238_v9, %v7034_v57  ;;  %v7186_v47 = vmul.f32 %v6232_v7, %v7077_v56  ;;  %969 = vperm.xlu0 %6034, %v326_v51   ;;  %v7198_v61 = vpop.permute.xlu1 %460 }
  0xec   : > { %14195 = vst [vmem:[#allocation152_spill] sm:$0xff] %v7167_v59  ;;  %14196 = vst [vmem:[#allocation153_spill] sm:$0xff] %v7176_v18  ;;  %v2245_v60 = vmul.f32 %v6322_v39, %v446_v55  ;;  %v2914_v30 = vmul.f32 %v6260_v15, %v446_v55  ;;  %v4829_v34 = vmul.f32 %v6255_v14, %v446_v55  ;;  %v14205_v59 = vrot.slane %v7028_v46, 6 }
  0xed   : > { %14197 = vst [vmem:[#allocation154_spill] sm:$0xff] %v7182_v50  ;;  %14198 = vst [vmem:[#allocation155_spill] sm:$0xff] %v7186_v47  ;;  %v1583_v24 = vrot.slane %v1454_v35, 7  ;;  %v7202_v51 = vmul.f32 %v6222_v5, %v7077_v56  ;;  %v14200_v35 = vrot.slane %v7014_v45, 7  ;;  %1424 = vperm.xlu1 %6035, %v272_v4   ;;  %v7215_v50 = vmul.f32 %v6227_v6, %v446_v55 }
  0xee   : > { %v2372_v47 = vrot.slane %v2245_v60, 6  ;;  %v3040_v60 = vrot.slane %v2914_v30, 7  ;;  %v14207_v45 = vrot.slane %v7153_v49, 6  ;;  %v14210_v4 = vrot.slane %v7032_v11, 7 }
  0xef   : > { %14199 = vst [vmem:[#allocation156_spill] sm:$0xff] %v7202_v51  ;;  %v7207_v18 = vsel %vm1541_vm0, %v14200_v35, %v1583_v24  ;;  %v7212_v57 = vsel %vm1541_vm0, %v1583_v24, %v14202_v41  ;;  %14204 = vst [vmem:[#allocation159_spill] sm:$0xff] %v7215_v50  ;;  %1419 = vperm.xlu0 %6034, %v271_v62   ;;  %v7230_v24 = vmul.f32 %v6243_v10, %v7077_v56  ;;  %v328_v62 = vld [vmem:[%s6203_s23 + $0x1a8] sm:$0xff]  ;;  %v331_v50 = vld [vmem:[%s6203_s23 + $0x1c0] sm:$0xff] }
  0xf0   : > { %14201 = vst [vmem:[#allocation157_spill] sm:$0xff] %v7207_v18  ;;  %14203 = vst [vmem:[#allocation158_spill] sm:$0xff] %v7212_v57  ;;  %v7220_v31 = vsel %vm2334_vm1, %v14205_v59, %v2372_v47  ;;  %v7225_v35 = vsel %vm2334_vm1, %v2372_v47, %v14207_v45  ;;  %v4955_v18 = vrot.slane %v4829_v34, 7  ;;  %v7235_v41 = vsel %vm1541_vm0, %v14210_v4, %v3040_v60 }
  0xf1   : > { %14206 = vst [vmem:[#allocation160_spill] sm:$0xff] %v7220_v31  ;;  %14208 = vst [vmem:[#allocation161_spill] sm:$0xff] %v7225_v35  ;;  %v14212_v46 = vrot.slane %v7157_v58, 7  ;;  %v7244_v47 = vmul.f32 %v6267_v17, %v7198_v61  ;;  %v14214_v34 = vrot.slane %v7048_v53, 7  ;;  %v14216_v11 = vrot.slane %v7171_v28, 7  ;;  %1764 = vperm.xlu1 %6035, %v329_v37  }
  0xf2   : > { %14209 = vst [vmem:[#allocation162_spill] sm:$0xff] %v7230_v24  ;;  %14211 = vst [vmem:[#allocation163_spill] sm:$0xff] %v7235_v41  ;;  %v7263_v4 = vmul.f32 %v6260_v15, %v7198_v61  ;;  %v7267_v53 = vmul.f32 %v6238_v9, %v7077_v56  ;;  %v7282_v24 = vmul.f32 %v6243_v10, %v446_v55 }
  0xf3   : > { %v7240_v59 = vsel %vm1541_vm0, %v3040_v60, %v14212_v46  ;;  %v7250_v30 = vsel %vm1541_vm0, %v14214_v34, %v4955_v18  ;;  %v7255_v45 = vsel %vm1541_vm0, %v4955_v18, %v14216_v11  ;;  %v7259_v60 = vmul.f32 %v6322_v39, %v7198_v61  ;;  %v456_v46 = vpop.permute.xlu0 %455  ;;  %1759 = vperm.xlu0 %6034, %v328_v62  }
  0xf4   : > { %14213 = vst [vmem:[#allocation164_spill] sm:$0xff] %v7240_v59  ;;  %14215 = vst [vmem:[#allocation165_spill] sm:$0xff] %v7250_v30  ;;  %v7270_v34 = vmul.f32 %v6232_v7, %v446_v55  ;;  %v7273_v18 = vmul.f32 %v6222_v5, %v446_v55  ;;  %v7277_v11 = vmul.f32 %v6255_v14, %v7198_v61  ;;  %v273_v59 = vld [vmem:[%s6144_s20 + $0x1b8] sm:$0xff] }
  0xf5   : > { %14217 = vst [vmem:[#allocation166_spill] sm:$0xff] %v7255_v45  ;;  %14218 = vst [vmem:[#allocation167_spill] sm:$0xff] %v7267_v53  ;;  %v7285_v56 = vmul.f32 %v6238_v9, %v446_v55  ;;  %v274_v53 = vld [vmem:[%s6144_s20 + $0x1c0] sm:$0xff]  ;;  %v7290_v35 = vmul.f32 %v6232_v7, %v7198_v61  ;;  %v7294_v30 = vmul.f32 %v6227_v6, %v7198_v61  ;;  %v14233_v0 = vrot.slane %v7259_v60, 6 }
  0xf6   : > { %14219 = vst [vmem:[#allocation168_spill] sm:$0xff] %v7270_v34  ;;  %14220 = vst [vmem:[#allocation169_spill] sm:$0xff] %v7273_v18  ;;  %v1456_v45 = vmul.f32 %v6267_v17, %v456_v46  ;;  %v2247_v62 = vmul.f32 %v6322_v39, %v456_v46  ;;  %v4831_v31 = vmul.f32 %v6255_v14, %v456_v46  ;;  %2217 = vperm.xlu1 %6035, %v274_v53  }
  0xf7   : > { %14221 = vst [vmem:[#allocation170_spill] sm:$0xff] %v7282_v24  ;;  %14222 = vst [vmem:[#allocation171_spill] sm:$0xff] %v7285_v56  ;;  %v2916_v56 = vmul.f32 %v6260_v15, %v456_v46  ;;  %v7303_v24 = vpop.permute.xlu1 %470  ;;  %v7310_v41 = vmul.f32 %v6222_v5, %v7198_v61  ;;  %v7313_v55 = vmul.f32 %v6227_v6, %v456_v46  ;;  %2212 = vperm.xlu0 %6034, %v273_v59  }
  0xf8   : > { %14223 = vst [vmem:[#allocation172_spill] sm:$0xff] %v7290_v35  ;;  %14224 = vst [vmem:[#allocation173_spill] sm:$0xff] %v7294_v30  ;;  %v1587_v37 = vrot.slane %v1456_v45, 7  ;;  %v2376_v51 = vrot.slane %v2247_v62, 6  ;;  %v14229_v45 = vrot.slane %v7244_v47, 7  ;;  %v4959_v57 = vrot.slane %v4831_v31, 7 }
  0xf9   : > { %14225 = vst [vmem:[#allocation174_spill] sm:$0xff] %v7310_v41  ;;  %14226 = vst [vmem:[#allocation175_spill] sm:$0xff] %v7313_v55  ;;  %v3044_v34 = vrot.slane %v2916_v56, 7  ;;  %v7328_v18 = vmul.f32 %v6267_v17, %v7303_v24  ;;  %v14231_v56 = vrot.slane %v7153_v49, 6  ;;  %v14235_v62 = vrot.slane %v7157_v58, 7 }
  0xfa   : > { %v7319_v35 = vsel %vm1541_vm0, %v14227_v8, %v1587_v37  ;;  %v7324_v53 = vsel %vm1541_vm0, %v1587_v37, %v14229_v45  ;;  %v7339_v8 = vsel %vm2334_vm1, %v2376_v51, %v14233_v0  ;;  %v14237_v31 = vrot.slane %v7263_v4, 7  ;;  %2557 = vperm.xlu1 %6035, %v331_v50   ;;  %v7437_v49 = vld [vmem:[%s13634_s2 + $0x1] ss:$0 sm:$0xff] }
  0xfb   : > { %14228 = vst [vmem:[#allocation176_spill] sm:$0xff] %v7319_v35  ;;  %14230 = vst [vmem:[#allocation177_spill] sm:$0xff] %v7324_v53  ;;  %v7334_v59 = vsel %vm2334_vm1, %v14231_v56, %v2376_v51  ;;  %v7344_v37 = vsel %vm1541_vm0, %v14235_v62, %v3044_v34  ;;  %v7354_v56 = vmul.f32 %v6243_v10, %v7198_v61  ;;  %v14240_v53 = vrot.slane %v7171_v28, 7  ;;  %v466_v62 = vpop.permute.xlu0 %465 }
  0xfc   : > { %14232 = vst [vmem:[#allocation178_spill] sm:$0xff] %v7334_v59  ;;  %14234 = vst [vmem:[#allocation179_spill] sm:$0xff] %v7339_v8  ;;  %v7349_v45 = vsel %vm1541_vm0, %v3044_v34, %v14237_v31  ;;  %v14242_v58 = vrot.slane %v7277_v11, 7  ;;  %v7368_v34 = vmul.f32 %v6238_v9, %v7198_v61  ;;  %v7371_v31 = vmul.f32 %v6222_v5, %v456_v46 }
  0xfd   : > { %14236 = vst [vmem:[#allocation180_spill] sm:$0xff] %v7344_v37  ;;  %14238 = vst [vmem:[#allocation181_spill] sm:$0xff] %v7349_v45  ;;  %v7359_v51 = vsel %vm1541_vm0, %v14240_v53, %v4959_v57  ;;  %v7375_v28 = vmul.f32 %v6322_v39, %v7303_v24  ;;  %v7379_v53 = vmul.f32 %v6260_v15, %v7303_v24  ;;  %2552 = vperm.xlu0 %6034, %v330_v3  }
  0xfe   : > { %14239 = vst [vmem:[#allocation182_spill] sm:$0xff] %v7354_v56  ;;  %14241 = vst [vmem:[#allocation183_spill] sm:$0xff] %v7359_v51  ;;  %v7364_v0 = vsel %vm1541_vm0, %v4959_v57, %v14242_v58  ;;  %v7383_v50 = vmul.f32 %v6232_v7, %v456_v46  ;;  %v7387_v9 = vmul.f32 %v6227_v6, %v7303_v24  ;;  %v7402_v7 = vld [vmem:[%s13634_s2 + $0x4] ss:$0 sm:$0xff]  ;;  %v7431_v57 = vld [vmem:[%s13634_s2 + $0x7] ss:$0 sm:$0xff] }
  0xff   : > { %14243 = vst [vmem:[#allocation184_spill] sm:$0xff] %v7364_v0  ;;  %14244 = vst [vmem:[#allocation185_spill] sm:$0xff] %v7368_v34  ;;  %v7391_v5 = vmul.f32 %v6255_v14, %v7303_v24  ;;  %v7395_v58 = vmul.f32 %v6243_v10, %v456_v46  ;;  %v1458_v3 = vmul.f32 %v6267_v17, %v466_v62  ;;  %v7410_v14 = vld [vmem:[%s13634_s2] ss:$0 sm:$0xff]  ;;  %v14252_v34 = vrot.slane %v7244_v47, 7 }
 0x100   : > { %14245 = vst [vmem:[#allocation186_spill] sm:$0xff] %v7371_v31  ;;  %14246 = vst [vmem:[#allocation187_spill] sm:$0xff] %v7383_v50  ;;  %v7405_v6 = vmul.f32 %v7402_v7, %v456_v46  ;;  %v7414_v10 = vmul.f32 %v7410_v14, %v7303_v24  ;;  %v2249_v17 = vmul.f32 %v6322_v39, %v466_v62  ;;  %v7423_v46 = vld [vmem:[%s13634_s2 + $0x8] ss:$0 sm:$0xff]  ;;  %v14257_v37 = vrot.slane %v7259_v60, 6 }
 0x101   : > { %14247 = vst [vmem:[#allocation188_spill] sm:$0xff] %v7387_v9  ;;  %14248 = vst [vmem:[#allocation189_spill] sm:$0xff] %v7395_v58  ;;  %v1591_v15 = vrot.slane %v1458_v3, 7  ;;  %v2918_v0 = vmul.f32 %v7423_v46, %v466_v62  ;;  %v4833_v61 = vmul.f32 %v7431_v57, %v466_v62  ;;  %v481_v3 = vpop.permute.xlu1 %480  ;;  %v7441_v56 = vmul.f32 %v7437_v49, %v7303_v24 }
 0x102   : > { %14249 = vst [vmem:[#allocation190_spill] sm:$0xff] %v7405_v6  ;;  %14250 = vst [vmem:[#allocation191_spill] sm:$0xff] %v7414_v10  ;;  %v2380_v45 = vrot.slane %v2249_v17, 6  ;;  %v14254_v10 = vrot.slane %v7328_v18, 7  ;;  %v7456_v6 = vld [vmem:[%s13634_s2 + $0x2] ss:$0 sm:$0xff] }
 0x103   : > { %14251 = vst [vmem:[#allocation192_spill] sm:$0xff] %v7441_v56  ;;  %v7446_v17 = vsel %vm1541_vm0, %v14252_v34, %v1591_v15  ;;  %v3048_v51 = vrot.slane %v2918_v0, 7  ;;  %v7459_v9 = vmul.f32 %v7456_v6, %v466_v62  ;;  %v14259_v34 = vrot.slane %v7375_v28, 6  ;;  %v7474_v0 = vld [vmem:[%s13634_s2 + $0x5] ss:$0 sm:$0xff] }
 0x104   : > { %14253 = vst [vmem:[#allocation193_spill] sm:$0xff] %v7446_v17  ;;  %v7451_v8 = vsel %vm1541_vm0, %v1591_v15, %v14254_v10  ;;  %v7464_v47 = vsel %vm2334_vm1, %v14257_v37, %v2380_v45  ;;  %v4963_v15 = vrot.slane %v4833_v61, 7  ;;  %v7478_v10 = vmul.f32 %v7474_v0, %v7303_v24  ;;  %v7493_v61 = vld [vmem:[%s13634_s2 + $0x3] ss:$0 sm:$0xff] }
 0x105   : > { %14255 = vst [vmem:[#allocation194_spill] sm:$0xff] %v7451_v8  ;;  %14256 = vst [vmem:[#allocation195_spill] sm:$0xff] %v7459_v9  ;;  %v7469_v58 = vsel %vm2334_vm1, %v2380_v45, %v14259_v34  ;;  %v14262_v60 = vrot.slane %v7263_v4, 7  ;;  %v14264_v8 = vrot.slane %v7379_v53, 7  ;;  %v7496_v34 = vmul.f32 %v7493_v61, %v481_v3 }
 0x106   : > { %14258 = vst [vmem:[#allocation196_spill] sm:$0xff] %v7464_v47  ;;  %14260 = vst [vmem:[#allocation197_spill] sm:$0xff] %v7469_v58  ;;  %v14279_v41 = vrot.slane %v7328_v18, 7  ;;  %v14285_v18 = vrot.slane %v7379_v53, 7 }
 0x107   : > { %14261 = vst [vmem:[#allocation198_spill] sm:$0xff] %v7478_v10  ;;  %v7483_v37 = vsel %vm1541_vm0, %v14262_v60, %v3048_v51  ;;  %v7488_v45 = vsel %vm1541_vm0, %v3048_v51, %v14264_v8  ;;  %v14266_v10 = vrot.slane %v7277_v11, 7  ;;  %v14268_v60 = vrot.slane %v7391_v5, 7 }
 0x108   : > { %14263 = vst [vmem:[#allocation199_spill] sm:$0xff] %v7483_v37  ;;  %14265 = vst [vmem:[#allocation200_spill] sm:$0xff] %v7488_v45  ;;  %v7509_v8 = vmul.f32 %v6322_v39, %v481_v3  ;;  %v7512_v51 = vmul.f32 %v7423_v46, %v481_v3  ;;  %v476_v45 = vpop.permute.xlu0 %475  ;;  %v7516_v37 = vmul.f32 %v7402_v7, %v7303_v24  ;;  %v1597_v47 = vrot.slane %v7496_v34, 7 }
 0x109   : > { %v7501_v4 = vsel %vm1541_vm0, %v14266_v10, %v4963_v15  ;;  %v7506_v58 = vsel %vm1541_vm0, %v4963_v15, %v14268_v60  ;;  %v7519_v11 = vmul.f32 %v7410_v14, %v466_v62  ;;  %v7522_v10 = vmul.f32 %v7437_v49, %v466_v62 }
 0x10a   : > { %14267 = vst [vmem:[#allocation201_spill] sm:$0xff] %v7501_v4  ;;  %14269 = vst [vmem:[#allocation202_spill] sm:$0xff] %v7506_v58  ;;  %v7525_v15 = vmul.f32 %v7431_v57, %v481_v3  ;;  %v7530_v58 = vmul.f32 %v7474_v0, %v466_v62  ;;  %v7533_v4 = vmul.f32 %v7402_v7, %v466_v62  ;;  %v2386_v39 = vrot.slane %v7509_v8, 6 }
 0x10b   : > { %14270 = vst [vmem:[#allocation203_spill] sm:$0xff] %v7516_v37  ;;  %14271 = vst [vmem:[#allocation204_spill] sm:$0xff] %v7519_v11  ;;  %v7536_v24 = vmul.f32 %v7410_v14, %v481_v3  ;;  %v7539_v37 = vmul.f32 %v7456_v6, %v481_v3  ;;  %v1460_v11 = vmul.f32 %v7493_v61, %v476_v45  ;;  %v3054_v60 = vrot.slane %v7512_v51, 7 }
 0x10c   : > { %14272 = vst [vmem:[#allocation205_spill] sm:$0xff] %v7522_v10  ;;  %14273 = vst [vmem:[#allocation206_spill] sm:$0xff] %v7530_v58  ;;  %v7548_v58 = vld [vmem:[%s13634_s2 + $0x6] ss:$0 sm:$0xff]  ;;  %v4969_v34 = vrot.slane %v7525_v15, 7  ;;  %v4835_v8 = vmul.f32 %v7431_v57, %v476_v45  ;;  %v7558_v51 = vmul.f32 %v7437_v49, %v481_v3  ;;  %v7561_v59 = vmul.f32 %v7456_v6, %v476_v45  ;;  %v486_v53 = vpop.permute.xlu0 %485 }
 0x10d   : > { %14274 = vst [vmem:[#allocation207_spill] sm:$0xff] %v7533_v4  ;;  %14275 = vst [vmem:[#allocation208_spill] sm:$0xff] %v7536_v24  ;;  %v2251_v62 = vmul.f32 %v7548_v58, %v476_v45  ;;  %v2920_v24 = vmul.f32 %v7423_v46, %v476_v45  ;;  %v7552_v4 = vpop.permute.xlu1 %490  ;;  %v1595_v9 = vrot.slane %v1460_v11, 7  ;;  %v14282_v10 = vrot.slane %v7375_v28, 6 }
 0x10e   : > { %14276 = vst [vmem:[#allocation209_spill] sm:$0xff] %v7539_v37  ;;  %14277 = vst [vmem:[#allocation210_spill] sm:$0xff] %v7558_v51  ;;  %v4967_v15 = vrot.slane %v4835_v8, 7  ;;  %v7573_v11 = vmul.f32 %v7493_v61, %v7552_v4  ;;  %v7593_v8 = vmul.f32 %v7474_v0, %v481_v3  ;;  %v14289_v28 = vrot.slane %v7391_v5, 7 }
 0x10f   : > { %14278 = vst [vmem:[#allocation211_spill] sm:$0xff] %v7561_v59  ;;  %v2384_v17 = vrot.slane %v2251_v62, 6  ;;  %v3052_v31 = vrot.slane %v2920_v24, 7  ;;  %v7566_v50 = vsel %vm1541_vm0, %v14279_v41, %v1595_v9  ;;  %v7569_v56 = vsel %vm1541_vm0, %v1595_v9, %v1597_v47 }
 0x110   : > { %14280 = vst [vmem:[#allocation212_spill] sm:$0xff] %v7566_v50  ;;  %14281 = vst [vmem:[#allocation213_spill] sm:$0xff] %v7569_v56  ;;  %v7611_v62 = vmul.f32 %v7548_v58, %v7552_v4  ;;  %v7615_v5 = vmul.f32 %v7423_v46, %v7552_v4  ;;  %v2253_v56 = vmul.f32 %v7548_v58, %v486_v53 }
 0x111   : > { %v7578_v55 = vsel %vm2334_vm1, %v14282_v10, %v2384_v17  ;;  %v7581_v24 = vsel %vm2334_vm1, %v2384_v17, %v2386_v39  ;;  %v7586_v41 = vsel %vm1541_vm0, %v14285_v18, %v3052_v31  ;;  %v7589_v9 = vsel %vm1541_vm0, %v3052_v31, %v3054_v60  ;;  %14288 = vst [vmem:[#allocation218_spill] sm:$0xff] %v7593_v8  ;;  %v501_v59 = vpop.permute.xlu1 %500 }
 0x112   : > { %14283 = vst [vmem:[#allocation214_spill] sm:$0xff] %v7578_v55  ;;  %14284 = vst [vmem:[#allocation215_spill] sm:$0xff] %v7581_v24  ;;  %v7598_v10 = vsel %vm1541_vm0, %v14289_v28, %v4967_v15  ;;  %v7601_v17 = vsel %vm1541_vm0, %v4967_v15, %v4969_v34  ;;  %v7604_v18 = vmul.f32 %v7402_v7, %v481_v3  ;;  %v1601_v8 = vrot.slane %v7573_v11, 7 }
 0x113   : > { %14286 = vst [vmem:[#allocation216_spill] sm:$0xff] %v7586_v41  ;;  %14287 = vst [vmem:[#allocation217_spill] sm:$0xff] %v7589_v9  ;;  %v7607_v31 = vmul.f32 %v7437_v49, %v476_v45  ;;  %v7619_v15 = vmul.f32 %v7410_v14, %v476_v45  ;;  %v7623_v3 = vmul.f32 %v7456_v6, %v7552_v4  ;;  %v2390_v41 = vrot.slane %v7611_v62, 6 }
 0x114   : > { %14290 = vst [vmem:[#allocation219_spill] sm:$0xff] %v7598_v10  ;;  %14291 = vst [vmem:[#allocation220_spill] sm:$0xff] %v7601_v17  ;;  %v7627_v17 = vmul.f32 %v7431_v57, %v7552_v4  ;;  %v7631_v9 = vmul.f32 %v7474_v0, %v476_v45  ;;  %v1462_v28 = vmul.f32 %v7493_v61, %v486_v53  ;;  %v3058_v55 = vrot.slane %v7615_v5, 7 }
 0x115   : > { %14292 = vst [vmem:[#allocation221_spill] sm:$0xff] %v7604_v18  ;;  %14293 = vst [vmem:[#allocation222_spill] sm:$0xff] %v7607_v31  ;;  %v7636_v24 = vmul.f32 %v7402_v7, %v476_v45  ;;  %v7640_v10 = vmul.f32 %v7410_v14, %v7552_v4  ;;  %v2922_v11 = vmul.f32 %v7423_v46, %v486_v53 }
 0x116   : > { %14294 = vst [vmem:[#allocation223_spill] sm:$0xff] %v7619_v15  ;;  %14295 = vst [vmem:[#allocation224_spill] sm:$0xff] %v7623_v3  ;;  %v4973_v45 = vrot.slane %v7627_v17, 7  ;;  %v4837_v15 = vmul.f32 %v7431_v57, %v486_v53  ;;  %v7652_v62 = vmul.f32 %v7437_v49, %v7552_v4  ;;  %v7661_v18 = vmul.f32 %v7456_v6, %v486_v53 }
 0x117   : > { %14296 = vst [vmem:[#allocation225_spill] sm:$0xff] %v7631_v9  ;;  %14297 = vst [vmem:[#allocation226_spill] sm:$0xff] %v7636_v24  ;;  %v1599_v9 = vrot.slane %v1462_v28, 7  ;;  %v2388_v24 = vrot.slane %v2253_v56, 6  ;;  %v3056_v28 = vrot.slane %v2922_v11, 7  ;;  %v7671_v3 = vmul.f32 %v7474_v0, %v7552_v4 }
 0x118   : > { %14298 = vst [vmem:[#allocation227_spill] sm:$0xff] %v7640_v10  ;;  %14299 = vst [vmem:[#allocation228_spill] sm:$0xff] %v7652_v62  ;;  %v4971_v51 = vrot.slane %v4837_v15, 7  ;;  %v7680_v11 = vmul.f32 %v7493_v61, %v501_v59  ;;  %v7689_v15 = vmul.f32 %v7548_v58, %v501_v59 }
 0x119   : > { %v7655_v10 = vsel %vm1541_vm0, %v1597_v47, %v1599_v9  ;;  %v7658_v5 = vsel %vm1541_vm0, %v1599_v9, %v1601_v8  ;;  %14302 = vst [vmem:[#allocation231_spill] sm:$0xff] %v7661_v18  ;;  %v7664_v17 = vsel %vm2334_vm1, %v2386_v39, %v2388_v24  ;;  %v7667_v56 = vsel %vm2334_vm1, %v2388_v24, %v2390_v41 }
 0x11a   : > { %14300 = vst [vmem:[#allocation229_spill] sm:$0xff] %v7655_v10  ;;  %14301 = vst [vmem:[#allocation230_spill] sm:$0xff] %v7658_v5  ;;  %v7674_v47 = vsel %vm1541_vm0, %v3054_v60, %v3056_v28  ;;  %v7677_v9 = vsel %vm1541_vm0, %v3056_v28, %v3058_v55  ;;  %v7683_v39 = vsel %vm1541_vm0, %v4969_v34, %v4971_v51  ;;  %v496_v60 = vpop.permute.xlu0 %495  ;;  %v14320_v37 = vrot.slane %v7680_v11, 7 }
 0x11b   : > { %14303 = vst [vmem:[#allocation232_spill] sm:$0xff] %v7664_v17  ;;  %14304 = vst [vmem:[#allocation233_spill] sm:$0xff] %v7667_v56  ;;  %v7686_v24 = vsel %vm1541_vm0, %v4971_v51, %v4973_v45  ;;  %v7696_v28 = vmul.f32 %v7402_v7, %v7552_v4  ;;  %v7702_v34 = vmul.f32 %v7437_v49, %v486_v53  ;;  %v511_v56 = vpop.permute.xlu1 %510  ;;  %v14324_v50 = vrot.slane %v7689_v15, 6 }
 0x11c   : > { %14305 = vst [vmem:[#allocation234_spill] sm:$0xff] %v7671_v3  ;;  %14306 = vst [vmem:[#allocation235_spill] sm:$0xff] %v7674_v47  ;;  %v7692_v3 = vmul.f32 %v7423_v46, %v501_v59  ;;  %v7705_v51 = vmul.f32 %v7431_v57, %v501_v59  ;;  %v7713_v47 = vmul.f32 %v7402_v7, %v486_v53 }
 0x11d   : > { %14307 = vst [vmem:[#allocation236_spill] sm:$0xff] %v7677_v9  ;;  %14308 = vst [vmem:[#allocation237_spill] sm:$0xff] %v7683_v39  ;;  %v7699_v9 = vmul.f32 %v7410_v14, %v486_v53  ;;  %v7710_v39 = vmul.f32 %v7474_v0, %v486_v53  ;;  %v7716_v4 = vmul.f32 %v7410_v14, %v501_v59 }
 0x11e   : > { %14309 = vst [vmem:[#allocation238_spill] sm:$0xff] %v7686_v24  ;;  %14310 = vst [vmem:[#allocation239_spill] sm:$0xff] %v7696_v28  ;;  %v7719_v28 = vmul.f32 %v7456_v6, %v501_v59  ;;  %v1464_v17 = vmul.f32 %v7493_v61, %v496_v60  ;;  %v2255_v62 = vmul.f32 %v7548_v58, %v496_v60 }
 0x11f   : > { %14311 = vst [vmem:[#allocation240_spill] sm:$0xff] %v7699_v9  ;;  %14312 = vst [vmem:[#allocation241_spill] sm:$0xff] %v7702_v34  ;;  %v4839_v9 = vmul.f32 %v7431_v57, %v496_v60  ;;  %v7731_v18 = vmul.f32 %v7437_v49, %v501_v59  ;;  %v7734_v5 = vmul.f32 %v7456_v6, %v496_v60 }
 0x120   : > { %14313 = vst [vmem:[#allocation242_spill] sm:$0xff] %v7710_v39  ;;  %14314 = vst [vmem:[#allocation243_spill] sm:$0xff] %v7713_v47  ;;  %v2924_v39 = vmul.f32 %v7423_v46, %v496_v60  ;;  %v2392_v24 = vrot.slane %v2255_v62, 6 }
 0x121   : > { %14315 = vst [vmem:[#allocation244_spill] sm:$0xff] %v7716_v4  ;;  %14316 = vst [vmem:[#allocation245_spill] sm:$0xff] %v7719_v28  ;;  %v1603_v4 = vrot.slane %v1464_v17, 7  ;;  %v7745_v17 = vmul.f32 %v7437_v49, %v496_v60  ;;  %v4975_v47 = vrot.slane %v4839_v9, 7 }
 0x122   : > { %14317 = vst [vmem:[#allocation246_spill] sm:$0xff] %v7731_v18  ;;  %14318 = vst [vmem:[#allocation247_spill] sm:$0xff] %v7734_v5  ;;  %v3060_v10 = vrot.slane %v2924_v39, 7  ;;  %v7748_v34 = vsel %vm2334_vm1, %v2390_v41, %v2392_v24  ;;  %v7753_v62 = vsel %vm2334_vm1, %v2392_v24, %v14324_v50  ;;  %v14327_v39 = vrot.slane %v7692_v3, 7 }
 0x123   : > { %v7737_v31 = vsel %vm1541_vm0, %v1601_v8, %v1603_v4  ;;  %v7742_v53 = vsel %vm1541_vm0, %v1603_v4, %v14320_v37  ;;  %14322 = vst [vmem:[#allocation250_spill] sm:$0xff] %v7745_v17  ;;  %14323 = vst [vmem:[#allocation251_spill] sm:$0xff] %v7748_v34  ;;  %v7765_v9 = vsel %vm1541_vm0, %v4973_v45, %v4975_v47  ;;  %v14330_v41 = vrot.slane %v7705_v51, 7 }
 0x124   : > { %14319 = vst [vmem:[#allocation248_spill] sm:$0xff] %v7737_v31  ;;  %14321 = vst [vmem:[#allocation249_spill] sm:$0xff] %v7742_v53  ;;  %v7756_v8 = vsel %vm1541_vm0, %v3058_v55, %v3060_v10  ;;  %v7761_v37 = vsel %vm1541_vm0, %v3060_v10, %v14327_v39  ;;  %v7773_v50 = vmul.f32 %v7456_v6, %v511_v56  ;;  %v506_v55 = vpop.permute.xlu0 %505 }
 0x125   : > { %14325 = vst [vmem:[#allocation252_spill] sm:$0xff] %v7753_v62  ;;  %14326 = vst [vmem:[#allocation253_spill] sm:$0xff] %v7756_v8  ;;  %v7770_v53 = vsel %vm1541_vm0, %v4975_v47, %v14330_v41  ;;  %v7776_v24 = vmul.f32 %v7474_v0, %v501_v59  ;;  %v7779_v10 = vmul.f32 %v7402_v7, %v501_v59  ;;  %v521_v8 = vpop.permute.xlu1 %520 }
 0x126   : > { %14328 = vst [vmem:[#allocation254_spill] sm:$0xff] %v7761_v37  ;;  %14329 = vst [vmem:[#allocation255_spill] sm:$0xff] %v7765_v9  ;;  %v7782_v39 = vmul.f32 %v7410_v14, %v496_v60  ;;  %v7785_v45 = vmul.f32 %v7493_v61, %v511_v56  ;;  %v7790_v41 = vmul.f32 %v7474_v0, %v496_v60 }
 0x127   : > { %14331 = vst [vmem:[#allocation256_spill] sm:$0xff] %v7770_v53  ;;  %14332 = vst [vmem:[#allocation257_spill] sm:$0xff] %v7773_v50  ;;  %v7793_v53 = vmul.f32 %v7402_v7, %v496_v60  ;;  %v7797_v59 = vmul.f32 %v7410_v14, %v511_v56  ;;  %v7805_v47 = vmul.f32 %v7423_v46, %v511_v56 }
 0x128   : > { %14333 = vst [vmem:[#allocation258_spill] sm:$0xff] %v7776_v24  ;;  %14334 = vst [vmem:[#allocation259_spill] sm:$0xff] %v7779_v10  ;;  %v7800_v10 = vmul.f32 %v7548_v58, %v511_v56  ;;  %v1466_v24 = vmul.f32 %v7493_v61, %v506_v55  ;;  %v7808_v62 = vmul.f32 %v7437_v49, %v511_v56 }
 0x129   : > { %14335 = vst [vmem:[#allocation260_spill] sm:$0xff] %v7782_v39  ;;  %14336 = vst [vmem:[#allocation261_spill] sm:$0xff] %v7790_v41  ;;  %v2257_v60 = vmul.f32 %v7548_v58, %v506_v55  ;;  %v7813_v9 = vmul.f32 %v7431_v57, %v511_v56  ;;  %v7820_v4 = vmul.f32 %v7474_v0, %v511_v56  ;;  %v3066_v5 = vrot.slane %v7805_v47, 7 }
 0x12a   : > { %14337 = vst [vmem:[#allocation262_spill] sm:$0xff] %v7793_v53  ;;  %14338 = vst [vmem:[#allocation263_spill] sm:$0xff] %v7797_v59  ;;  %v7816_v59 = vmul.f32 %v7456_v6, %v506_v55  ;;  %v2926_v53 = vmul.f32 %v7423_v46, %v506_v55  ;;  %v7823_v50 = vmul.f32 %v7402_v7, %v511_v56  ;;  %v1607_v41 = vrot.slane %v1466_v24, 7 }
 0x12b   : > { %14339 = vst [vmem:[#allocation264_spill] sm:$0xff] %v7808_v62  ;;  %14341 = vst [vmem:[#allocation266_spill] sm:$0xff] %v7820_v4  ;;  %v4841_v34 = vmul.f32 %v7431_v57, %v506_v55  ;;  %v2398_v37 = vrot.slane %v7800_v10, 6  ;;  %v7828_v17 = vmul.f32 %v7410_v14, %v506_v55  ;;  %v2396_v18 = vrot.slane %v2257_v60, 6 }
 0x12c   : > { %14340 = vst [vmem:[#allocation265_spill] sm:$0xff] %v7816_v59  ;;  %14342 = vst [vmem:[#allocation267_spill] sm:$0xff] %v7823_v50  ;;  %v7831_v39 = vmul.f32 %v7437_v49, %v506_v55  ;;  %v3064_v4 = vrot.slane %v2926_v53, 7  ;;  %v7836_v56 = vmul.f32 %v7456_v6, %v521_v8  ;;  %v4981_v24 = vrot.slane %v7813_v9, 7  ;;  %v516_v50 = vpop.permute.xlu0 %515 }
 0x12d   : > { %14343 = vst [vmem:[#allocation268_spill] sm:$0xff] %v7828_v17  ;;  %v7841_v10 = vmul.f32 %v7474_v0, %v506_v55  ;;  %v4979_v17 = vrot.slane %v4841_v34, 7  ;;  %v14347_v60 = vrot.slane %v7680_v11, 7  ;;  %v14349_v47 = vrot.slane %v7785_v45, 7 }
 0x12e   : > { %14344 = vst [vmem:[#allocation269_spill] sm:$0xff] %v7831_v39  ;;  %14345 = vst [vmem:[#allocation270_spill] sm:$0xff] %v7836_v56  ;;  %v7854_v28 = vmul.f32 %v7402_v7, %v506_v55  ;;  %v7857_v9 = vmul.f32 %v7410_v14, %v521_v8  ;;  %v7865_v11 = vsel %vm2334_vm1, %v2396_v18, %v2398_v37  ;;  %v14356_v55 = vrot.slane %v7692_v3, 7  ;;  %v531_v39 = vpop.permute.xlu1 %530 }
 0x12f   : > { %14346 = vst [vmem:[#allocation271_spill] sm:$0xff] %v7841_v10  ;;  %v7846_v31 = vsel %vm1541_vm0, %v14347_v60, %v1607_v41  ;;  %v7851_v53 = vsel %vm1541_vm0, %v1607_v41, %v14349_v47  ;;  %v14353_v10 = vrot.slane %v7689_v15, 6  ;;  %14355 = vst [vmem:[#allocation277_spill] sm:$0xff] %v7865_v11  ;;  %v7869_v41 = vmul.f32 %v7493_v61, %v521_v8 }
 0x130   : > { %14348 = vst [vmem:[#allocation272_spill] sm:$0xff] %v7846_v31  ;;  %14350 = vst [vmem:[#allocation273_spill] sm:$0xff] %v7851_v53  ;;  %v7874_v47 = vsel %vm1541_vm0, %v14356_v55, %v3064_v4  ;;  %v7889_v11 = vmul.f32 %v7474_v0, %v521_v8  ;;  %v7892_v3 = vmul.f32 %v7423_v46, %v521_v8 }
 0x131   : > { %14351 = vst [vmem:[#allocation274_spill] sm:$0xff] %v7854_v28  ;;  %14352 = vst [vmem:[#allocation275_spill] sm:$0xff] %v7857_v9  ;;  %v7862_v34 = vsel %vm2334_vm1, %v14353_v10, %v2396_v18  ;;  %v7877_v9 = vsel %vm1541_vm0, %v3064_v4, %v3066_v5  ;;  %v7881_v10 = vmul.f32 %v7548_v58, %v521_v8  ;;  %v14359_v18 = vrot.slane %v7705_v51, 7 }
 0x132   : > { %14354 = vst [vmem:[#allocation276_spill] sm:$0xff] %v7862_v34  ;;  %14357 = vst [vmem:[#allocation278_spill] sm:$0xff] %v7874_v47  ;;  %v1468_v55 = vmul.f32 %v7493_v61, %v516_v50  ;;  %v7896_v4 = vmul.f32 %v7437_v49, %v521_v8  ;;  %v7899_v15 = vmul.f32 %v7431_v57, %v521_v8 }
 0x133   : > { %14358 = vst [vmem:[#allocation279_spill] sm:$0xff] %v7877_v9  ;;  %v7886_v60 = vsel %vm1541_vm0, %v14359_v18, %v4979_v17  ;;  %14361 = vst [vmem:[#allocation281_spill] sm:$0xff] %v7889_v11  ;;  %v2259_v9 = vmul.f32 %v7548_v58, %v516_v50  ;;  %v2928_v51 = vmul.f32 %v7423_v46, %v516_v50  ;;  %v1613_v11 = vrot.slane %v7869_v41, 7 }
 0x134   : > { %14360 = vst [vmem:[#allocation280_spill] sm:$0xff] %v7886_v60  ;;  %14362 = vst [vmem:[#allocation282_spill] sm:$0xff] %v7896_v4  ;;  %v7904_v18 = vsel %vm1541_vm0, %v4979_v17, %v4981_v24  ;;  %v7908_v28 = vmul.f32 %v7456_v6, %v516_v50  ;;  %v4843_v60 = vmul.f32 %v7431_v57, %v516_v50  ;;  %v2402_v56 = vrot.slane %v7881_v10, 6 }
 0x135   : > { %14363 = vst [vmem:[#allocation283_spill] sm:$0xff] %v7904_v18  ;;  %v7913_v53 = vmul.f32 %v7402_v7, %v521_v8  ;;  %v1611_v47 = vrot.slane %v1468_v55, 7  ;;  %v7916_v34 = vmul.f32 %v7437_v49, %v516_v50  ;;  %v3070_v17 = vrot.slane %v7892_v3, 7 }
 0x136   : > { %14364 = vst [vmem:[#allocation284_spill] sm:$0xff] %v7908_v28  ;;  %v7920_v18 = vmul.f32 %v7410_v14, %v516_v50  ;;  %v2400_v41 = vrot.slane %v2259_v9, 6  ;;  %v3068_v62 = vrot.slane %v2928_v51, 7  ;;  %v4985_v31 = vrot.slane %v7899_v15, 7  ;;  %v526_v9 = vpop.permute.xlu0 %525 }
 0x137   : > { %14365 = vst [vmem:[#allocation285_spill] sm:$0xff] %v7913_v53  ;;  %14366 = vst [vmem:[#allocation286_spill] sm:$0xff] %v7916_v34  ;;  %v7925_v10 = vmul.f32 %v7474_v0, %v516_v50  ;;  %v4983_v8 = vrot.slane %v4843_v60, 7  ;;  %v7929_v53 = vmul.f32 %v7402_v7, %v516_v50  ;;  %v7932_v3 = vmul.f32 %v7410_v14, %v531_v39 }
 0x138   : > { %14367 = vst [vmem:[#allocation287_spill] sm:$0xff] %v7920_v18  ;;  %v7935_v18 = vmul.f32 %v7456_v6, %v531_v39  ;;  %v14372_v51 = vrot.slane %v7785_v45, 7  ;;  %v7943_v59 = vsel %vm1541_vm0, %v1611_v47, %v1613_v11  ;;  %v7947_v50 = vmul.f32 %v7493_v61, %v531_v39 }
 0x139   : > { %14368 = vst [vmem:[#allocation288_spill] sm:$0xff] %v7925_v10  ;;  %14369 = vst [vmem:[#allocation289_spill] sm:$0xff] %v7929_v53  ;;  %v7950_v55 = vsel %vm2334_vm1, %v2398_v37, %v2400_v41  ;;  %v7956_v53 = vsel %vm1541_vm0, %v3066_v5, %v3068_v62  ;;  %v7959_v45 = vsel %vm1541_vm0, %v3068_v62, %v3070_v17 }
 0x13a   : > { %14370 = vst [vmem:[#allocation290_spill] sm:$0xff] %v7932_v3  ;;  %14371 = vst [vmem:[#allocation291_spill] sm:$0xff] %v7935_v18  ;;  %v7940_v15 = vsel %vm1541_vm0, %v14372_v51, %v1611_v47  ;;  %v7953_v3 = vsel %vm2334_vm1, %v2400_v41, %v2402_v56  ;;  %v7962_v47 = vsel %vm1541_vm0, %v4981_v24, %v4983_v8 }
 0x13b   : > { %14373 = vst [vmem:[#allocation292_spill] sm:$0xff] %v7940_v15  ;;  %14374 = vst [vmem:[#allocation293_spill] sm:$0xff] %v7943_v59  ;;  %v7965_v51 = vsel %vm1541_vm0, %v4983_v8, %v4985_v31  ;;  %v7968_v60 = vmul.f32 %v7548_v58, %v531_v39  ;;  %v1470_v37 = vmul.f32 %v7493_v61, %v526_v9  ;;  %v14390_v15 = vrot.slane %v7947_v50, 7 }
 0x13c   : > { %14375 = vst [vmem:[#allocation294_spill] sm:$0xff] %v7950_v55  ;;  %14376 = vst [vmem:[#allocation295_spill] sm:$0xff] %v7953_v3  ;;  %v7973_v3 = vmul.f32 %v7423_v46, %v531_v39  ;;  %v7976_v5 = vmul.f32 %v7437_v49, %v531_v39  ;;  %v2261_v62 = vmul.f32 %v7548_v58, %v526_v9 }
 0x13d   : > { %14377 = vst [vmem:[#allocation296_spill] sm:$0xff] %v7956_v53  ;;  %14378 = vst [vmem:[#allocation297_spill] sm:$0xff] %v7959_v45  ;;  %v7981_v8 = vmul.f32 %v7431_v57, %v531_v39  ;;  %v2930_v45 = vmul.f32 %v7423_v46, %v526_v9  ;;  %v541_v53 = vpop.permute.xlu1 %540  ;;  %v7988_v41 = vmul.f32 %v7474_v0, %v531_v39  ;;  %v1615_v18 = vrot.slane %v1470_v37, 7 }
 0x13e   : > { %14379 = vst [vmem:[#allocation298_spill] sm:$0xff] %v7962_v47  ;;  %14380 = vst [vmem:[#allocation299_spill] sm:$0xff] %v7965_v51  ;;  %v7984_v51 = vmul.f32 %v7456_v6, %v526_v9  ;;  %v7991_v47 = vmul.f32 %v7402_v7, %v531_v39  ;;  %v4845_v10 = vmul.f32 %v7431_v57, %v526_v9  ;;  %v2406_v24 = vrot.slane %v7968_v60, 6 }
 0x13f   : > { %14381 = vst [vmem:[#allocation300_spill] sm:$0xff] %v7976_v5  ;;  %14383 = vst [vmem:[#allocation302_spill] sm:$0xff] %v7988_v41  ;;  %v7996_v59 = vmul.f32 %v7410_v14, %v526_v9  ;;  %v2404_v55 = vrot.slane %v2261_v62, 6  ;;  %v7999_v34 = vmul.f32 %v7437_v49, %v526_v9  ;;  %v3074_v4 = vrot.slane %v7973_v3, 7 }
 0x140   : > { %14382 = vst [vmem:[#allocation301_spill] sm:$0xff] %v7984_v51  ;;  %14384 = vst [vmem:[#allocation303_spill] sm:$0xff] %v7991_v47  ;;  %v3072_v41 = vrot.slane %v2930_v45, 7  ;;  %v8004_v39 = vmul.f32 %v7456_v6, %v541_v53  ;;  %v4989_v37 = vrot.slane %v7981_v8, 7  ;;  %v8009_v60 = vmul.f32 %v7474_v0, %v526_v9  ;;  %v536_v8 = vpop.permute.xlu0 %535 }
 0x141   : > { %14385 = vst [vmem:[#allocation304_spill] sm:$0xff] %v7996_v59  ;;  %14386 = vst [vmem:[#allocation305_spill] sm:$0xff] %v7999_v34  ;;  %v4987_v59 = vrot.slane %v4845_v10, 7  ;;  %v8012_v62 = vsel %vm1541_vm0, %v1613_v11, %v1615_v18  ;;  %v8017_v3 = vsel %vm1541_vm0, %v1615_v18, %v14390_v15  ;;  %v8020_v45 = vmul.f32 %v7402_v7, %v526_v9  ;;  %v551_v34 = vpop.permute.xlu1 %550 }
 0x142   : > { %14387 = vst [vmem:[#allocation306_spill] sm:$0xff] %v8004_v39  ;;  %14388 = vst [vmem:[#allocation307_spill] sm:$0xff] %v8009_v60  ;;  %v8023_v28 = vmul.f32 %v7410_v14, %v541_v53  ;;  %v8026_v47 = vsel %vm2334_vm1, %v2402_v56, %v2404_v55  ;;  %v8029_v10 = vsel %vm2334_vm1, %v2404_v55, %v2406_v24 }
 0x143   : > { %14389 = vst [vmem:[#allocation308_spill] sm:$0xff] %v8012_v62  ;;  %14391 = vst [vmem:[#allocation309_spill] sm:$0xff] %v8017_v3  ;;  %v8033_v60 = vmul.f32 %v7493_v61, %v541_v53  ;;  %v8036_v18 = vsel %vm1541_vm0, %v3070_v17, %v3072_v41  ;;  %v8039_v9 = vsel %vm1541_vm0, %v3072_v41, %v3074_v4 }
 0x144   : > { %14392 = vst [vmem:[#allocation310_spill] sm:$0xff] %v8020_v45  ;;  %14393 = vst [vmem:[#allocation311_spill] sm:$0xff] %v8023_v28  ;;  %v8043_v28 = vmul.f32 %v7548_v58, %v541_v53  ;;  %v8046_v56 = vsel %vm1541_vm0, %v4985_v31, %v4987_v59  ;;  %v8049_v55 = vmul.f32 %v7474_v0, %v541_v53 }
 0x145   : > { %14394 = vst [vmem:[#allocation312_spill] sm:$0xff] %v8026_v47  ;;  %14395 = vst [vmem:[#allocation313_spill] sm:$0xff] %v8029_v10  ;;  %v8052_v11 = vmul.f32 %v7423_v46, %v541_v53  ;;  %v1472_v17 = vmul.f32 %v7493_v61, %v536_v8  ;;  %v8056_v10 = vmul.f32 %v7437_v49, %v541_v53 }
 0x146   : > { %14396 = vst [vmem:[#allocation314_spill] sm:$0xff] %v8036_v18  ;;  %14397 = vst [vmem:[#allocation315_spill] sm:$0xff] %v8039_v9  ;;  %v8059_v41 = vmul.f32 %v7431_v57, %v541_v53  ;;  %v2263_v15 = vmul.f32 %v7548_v58, %v536_v8  ;;  %v2932_v9 = vmul.f32 %v7423_v46, %v536_v8 }
 0x147   : > { %14398 = vst [vmem:[#allocation316_spill] sm:$0xff] %v8046_v56  ;;  %14399 = vst [vmem:[#allocation317_spill] sm:$0xff] %v8049_v55  ;;  %v8064_v31 = vsel %vm1541_vm0, %v4987_v59, %v4989_v37  ;;  %v1621_v55 = vrot.slane %v8033_v60, 7  ;;  %v8068_v45 = vmul.f32 %v7456_v6, %v536_v8  ;;  %v4847_v18 = vmul.f32 %v7431_v57, %v536_v8 }
 0x148   : > { %14400 = vst [vmem:[#allocation318_spill] sm:$0xff] %v8056_v10  ;;  %14401 = vst [vmem:[#allocation319_spill] sm:$0xff] %v8064_v31  ;;  %v2410_v56 = vrot.slane %v8043_v28, 6  ;;  %v8073_v39 = vmul.f32 %v7402_v7, %v541_v53  ;;  %v1619_v3 = vrot.slane %v1472_v17, 7  ;;  %v8076_v47 = vmul.f32 %v7437_v49, %v536_v8 }
 0x149   : > { %14402 = vst [vmem:[#allocation320_spill] sm:$0xff] %v8068_v45  ;;  %v3078_v59 = vrot.slane %v8052_v11, 7  ;;  %v8080_v31 = vmul.f32 %v7410_v14, %v536_v8  ;;  %v2408_v60 = vrot.slane %v2263_v15, 6  ;;  %v3076_v5 = vrot.slane %v2932_v9, 7  ;;  %v546_v9 = vpop.permute.xlu0 %545 }
 0x14a   : > { %14403 = vst [vmem:[#allocation321_spill] sm:$0xff] %v8073_v39  ;;  %14404 = vst [vmem:[#allocation322_spill] sm:$0xff] %v8076_v47  ;;  %v4993_v62 = vrot.slane %v8059_v41, 7  ;;  %v8085_v28 = vmul.f32 %v7474_v0, %v536_v8  ;;  %v4991_v53 = vrot.slane %v4847_v18, 7  ;;  %v8089_v39 = vmul.f32 %v7402_v7, %v536_v8 }
 0x14b   : > { %14405 = vst [vmem:[#allocation323_spill] sm:$0xff] %v8080_v31  ;;  %v8092_v11 = vmul.f32 %v7410_v14, %v551_v34  ;;  %v8095_v31 = vmul.f32 %v7456_v6, %v551_v34  ;;  %v14410_v15 = vrot.slane %v7947_v50, 7  ;;  %v8103_v51 = vsel %vm1541_vm0, %v1619_v3, %v1621_v55 }
 0x14c   : > { %14406 = vst [vmem:[#allocation324_spill] sm:$0xff] %v8085_v28  ;;  %14407 = vst [vmem:[#allocation325_spill] sm:$0xff] %v8089_v39  ;;  %v8107_v8 = vmul.f32 %v7493_v61, %v551_v34  ;;  %v8110_v17 = vsel %vm2334_vm1, %v2406_v24, %v2408_v60  ;;  %v8116_v39 = vsel %vm1541_vm0, %v3074_v4, %v3076_v5 }
 0x14d   : > { %14408 = vst [vmem:[#allocation326_spill] sm:$0xff] %v8092_v11  ;;  %14409 = vst [vmem:[#allocation327_spill] sm:$0xff] %v8095_v31  ;;  %v8100_v41 = vsel %vm1541_vm0, %v14410_v15, %v1619_v3  ;;  %v8113_v11 = vsel %vm2334_vm1, %v2408_v60, %v2410_v56  ;;  %v8119_v50 = vsel %vm1541_vm0, %v3076_v5, %v3078_v59 }
 0x14e   : > { %14411 = vst [vmem:[#allocation328_spill] sm:$0xff] %v8100_v41  ;;  %14412 = vst [vmem:[#allocation329_spill] sm:$0xff] %v8103_v51  ;;  %v8122_v3 = vsel %vm1541_vm0, %v4989_v37, %v4991_v53  ;;  %v8125_v15 = vsel %vm1541_vm0, %v4991_v53, %v4993_v62  ;;  %v8128_v18 = vmul.f32 %v7548_v58, %v551_v34  ;;  %v14428_v41 = vrot.slane %v8107_v8, 7 }
 0x14f   : > { %14413 = vst [vmem:[#allocation330_spill] sm:$0xff] %v8110_v17  ;;  %14414 = vst [vmem:[#allocation331_spill] sm:$0xff] %v8113_v11  ;;  %v1474_v24 = vmul.f32 %v7493_v61, %v546_v9  ;;  %v8133_v11 = vmul.f32 %v7423_v46, %v551_v34  ;;  %v8136_v4 = vmul.f32 %v7437_v49, %v551_v34 }
 0x150   : > { %14415 = vst [vmem:[#allocation332_spill] sm:$0xff] %v8116_v39  ;;  %14416 = vst [vmem:[#allocation333_spill] sm:$0xff] %v8119_v50  ;;  %v2265_v5 = vmul.f32 %v7548_v58, %v546_v9  ;;  %v8141_v53 = vmul.f32 %v7431_v57, %v551_v34  ;;  %v2934_v50 = vmul.f32 %v7423_v46, %v546_v9  ;;  %v561_v39 = vpop.permute.xlu1 %560  ;;  %v2414_v37 = vrot.slane %v8128_v18, 6 }
 0x151   : > { %14417 = vst [vmem:[#allocation334_spill] sm:$0xff] %v8122_v3  ;;  %14418 = vst [vmem:[#allocation335_spill] sm:$0xff] %v8125_v15  ;;  %v8144_v15 = vmul.f32 %v7456_v6, %v546_v9  ;;  %v8148_v60 = vmul.f32 %v7474_v0, %v551_v34  ;;  %v8151_v3 = vmul.f32 %v7402_v7, %v551_v34  ;;  %v1623_v31 = vrot.slane %v1474_v24, 7 }
 0x152   : > { %14419 = vst [vmem:[#allocation336_spill] sm:$0xff] %v8136_v4  ;;  %v4849_v28 = vmul.f32 %v7431_v57, %v546_v9  ;;  %v8156_v51 = vmul.f32 %v7410_v14, %v546_v9  ;;  %v2412_v17 = vrot.slane %v2265_v5, 6  ;;  %v8159_v47 = vmul.f32 %v7437_v49, %v546_v9 }
 0x153   : > { %14420 = vst [vmem:[#allocation337_spill] sm:$0xff] %v8144_v15  ;;  %14421 = vst [vmem:[#allocation338_spill] sm:$0xff] %v8148_v60  ;;  %v3082_v10 = vrot.slane %v8133_v11, 7  ;;  %v3080_v60 = vrot.slane %v2934_v50, 7  ;;  %v8164_v34 = vmul.f32 %v7456_v6, %v561_v39  ;;  %v4997_v24 = vrot.slane %v8141_v53, 7  ;;  %v556_v53 = vpop.permute.xlu0 %555 }
 0x154   : > { %14422 = vst [vmem:[#allocation339_spill] sm:$0xff] %v8151_v3  ;;  %14423 = vst [vmem:[#allocation340_spill] sm:$0xff] %v8156_v51  ;;  %v8169_v18 = vmul.f32 %v7474_v0, %v546_v9  ;;  %v4995_v51 = vrot.slane %v4849_v28, 7  ;;  %v8172_v5 = vsel %vm1541_vm0, %v1621_v55, %v1623_v31  ;;  %v8177_v11 = vsel %vm1541_vm0, %v1623_v31, %v14428_v41 }
 0x155   : > { %14424 = vst [vmem:[#allocation341_spill] sm:$0xff] %v8159_v47  ;;  %14425 = vst [vmem:[#allocation342_spill] sm:$0xff] %v8164_v34  ;;  %v8180_v50 = vmul.f32 %v7402_v7, %v546_v9  ;;  %v8183_v45 = vmul.f32 %v7410_v14, %v561_v39  ;;  %v8186_v3 = vsel %vm2334_vm1, %v2410_v56, %v2412_v17  ;;  %v571_v47 = vpop.permute.xlu1 %570 }
 0x156   : > { %14426 = vst [vmem:[#allocation343_spill] sm:$0xff] %v8169_v18  ;;  %14427 = vst [vmem:[#allocation344_spill] sm:$0xff] %v8172_v5  ;;  %v8189_v28 = vsel %vm2334_vm1, %v2412_v17, %v2414_v37  ;;  %v8193_v18 = vmul.f32 %v7493_v61, %v561_v39  ;;  %v8196_v31 = vsel %vm1541_vm0, %v3078_v59, %v3080_v60 }
 0x157   : > { %14429 = vst [vmem:[#allocation345_spill] sm:$0xff] %v8177_v11  ;;  %14430 = vst [vmem:[#allocation346_spill] sm:$0xff] %v8180_v50  ;;  %v8199_v9 = vsel %vm1541_vm0, %v3080_v60, %v3082_v10  ;;  %v8206_v56 = vsel %vm1541_vm0, %v4993_v62, %v4995_v51  ;;  %v8209_v17 = vmul.f32 %v7474_v0, %v561_v39 }
 0x158   : > { %14431 = vst [vmem:[#allocation347_spill] sm:$0xff] %v8183_v45  ;;  %14432 = vst [vmem:[#allocation348_spill] sm:$0xff] %v8186_v3  ;;  %v8203_v45 = vmul.f32 %v7548_v58, %v561_v39  ;;  %v8212_v55 = vmul.f32 %v7423_v46, %v561_v39  ;;  %v1476_v59 = vmul.f32 %v7493_v61, %v556_v53 }
 0x159   : > { %14433 = vst [vmem:[#allocation349_spill] sm:$0xff] %v8189_v28  ;;  %14434 = vst [vmem:[#allocation350_spill] sm:$0xff] %v8196_v31  ;;  %v8216_v28 = vmul.f32 %v7437_v49, %v561_v39  ;;  %v8219_v60 = vmul.f32 %v7431_v57, %v561_v39  ;;  %v2267_v41 = vmul.f32 %v7548_v58, %v556_v53 }
 0x15a   : > { %14435 = vst [vmem:[#allocation351_spill] sm:$0xff] %v8199_v9  ;;  %14436 = vst [vmem:[#allocation352_spill] sm:$0xff] %v8206_v56  ;;  %v2936_v9 = vmul.f32 %v7423_v46, %v556_v53  ;;  %v8224_v62 = vsel %vm1541_vm0, %v4995_v51, %v4997_v24  ;;  %v8228_v50 = vmul.f32 %v7456_v6, %v556_v53  ;;  %v2418_v56 = vrot.slane %v8203_v45, 6 }
 0x15b   : > { %14437 = vst [vmem:[#allocation353_spill] sm:$0xff] %v8209_v17  ;;  %14438 = vst [vmem:[#allocation354_spill] sm:$0xff] %v8216_v28  ;;  %v1629_v17 = vrot.slane %v8193_v18, 7  ;;  %v4851_v31 = vmul.f32 %v7431_v57, %v556_v53  ;;  %v8233_v34 = vmul.f32 %v7402_v7, %v561_v39  ;;  %v1627_v11 = vrot.slane %v1476_v59, 7 }
 0x15c   : > { %14439 = vst [vmem:[#allocation355_spill] sm:$0xff] %v8224_v62  ;;  %14440 = vst [vmem:[#allocation356_spill] sm:$0xff] %v8228_v50  ;;  %v8236_v3 = vmul.f32 %v7437_v49, %v556_v53  ;;  %v3086_v51 = vrot.slane %v8212_v55, 7  ;;  %v8240_v62 = vmul.f32 %v7410_v14, %v556_v53  ;;  %v2416_v18 = vrot.slane %v2267_v41, 6 }
 0x15d   : > { %14441 = vst [vmem:[#allocation357_spill] sm:$0xff] %v8233_v34  ;;  %v3084_v4 = vrot.slane %v2936_v9, 7  ;;  %v8245_v45 = vmul.f32 %v7474_v0, %v556_v53  ;;  %v4999_v39 = vrot.slane %v4851_v31, 7  ;;  %v8249_v34 = vmul.f32 %v7402_v7, %v556_v53  ;;  %v566_v9 = vpop.permute.xlu0 %565 }
 0x15e   : > { %14442 = vst [vmem:[#allocation358_spill] sm:$0xff] %v8236_v3  ;;  %14443 = vst [vmem:[#allocation359_spill] sm:$0xff] %v8240_v62  ;;  %v8252_v55 = vmul.f32 %v7410_v14, %v571_v47  ;;  %v8255_v62 = vmul.f32 %v7456_v6, %v571_v47  ;;  %v14448_v41 = vrot.slane %v8107_v8, 7  ;;  %v8263_v5 = vsel %vm1541_vm0, %v1627_v11, %v1629_v17 }
 0x15f   : > { %14444 = vst [vmem:[#allocation360_spill] sm:$0xff] %v8245_v45  ;;  %14445 = vst [vmem:[#allocation361_spill] sm:$0xff] %v8249_v34  ;;  %v8267_v53 = vmul.f32 %v7493_v61, %v571_v47  ;;  %v8270_v59 = vsel %vm2334_vm1, %v2414_v37, %v2416_v18  ;;  %v8276_v34 = vsel %vm1541_vm0, %v3082_v10, %v3084_v4 }
 0x160   : > { %14446 = vst [vmem:[#allocation362_spill] sm:$0xff] %v8252_v55  ;;  %14447 = vst [vmem:[#allocation363_spill] sm:$0xff] %v8255_v62  ;;  %v8260_v15 = vsel %vm1541_vm0, %v14448_v41, %v1627_v11  ;;  %v8273_v55 = vsel %vm2334_vm1, %v2416_v18, %v2418_v56  ;;  %v8279_v8 = vsel %vm1541_vm0, %v3084_v4, %v3086_v51  ;;  %v14456_v41 = vrot.slane %v8219_v60, 7 }
 0x161   : > { %14449 = vst [vmem:[#allocation364_spill] sm:$0xff] %v8260_v15  ;;  %14450 = vst [vmem:[#allocation365_spill] sm:$0xff] %v8263_v5  ;;  %v8282_v11 = vsel %vm1541_vm0, %v4997_v24, %v4999_v39  ;;  %v8290_v37 = vmul.f32 %v7548_v58, %v571_v47  ;;  %v1478_v18 = vmul.f32 %v7493_v61, %v566_v9  ;;  %v14468_v28 = vrot.slane %v8267_v53, 7 }
 0x162   : > { %14451 = vst [vmem:[#allocation366_spill] sm:$0xff] %v8270_v59  ;;  %14452 = vst [vmem:[#allocation367_spill] sm:$0xff] %v8273_v55  ;;  %v8287_v31 = vsel %vm1541_vm0, %v4999_v39, %v14456_v41  ;;  %v8295_v10 = vmul.f32 %v7423_v46, %v571_v47  ;;  %v8298_v4 = vmul.f32 %v7437_v49, %v571_v47 }
 0x163   : > { %14453 = vst [vmem:[#allocation368_spill] sm:$0xff] %v8276_v34  ;;  %14454 = vst [vmem:[#allocation369_spill] sm:$0xff] %v8279_v8  ;;  %v2269_v24 = vmul.f32 %v7548_v58, %v566_v9  ;;  %v581_v8 = vpop.permute.xlu1 %580  ;;  %v8303_v39 = vmul.f32 %v7431_v57, %v571_v47  ;;  %v8306_v41 = vmul.f32 %v7456_v6, %v566_v9  ;;  %v1631_v34 = vrot.slane %v1478_v18, 7  ;;  %v576_v18 = vpop.permute.xlu0 %575 }
 0x164   : > { %14455 = vst [vmem:[#allocation370_spill] sm:$0xff] %v8282_v11  ;;  %14457 = vst [vmem:[#allocation371_spill] sm:$0xff] %v8287_v31  ;;  %v2938_v31 = vmul.f32 %v7423_v46, %v566_v9  ;;  %v8310_v55 = vmul.f32 %v7474_v0, %v571_v47  ;;  %v8313_v62 = vmul.f32 %v7402_v7, %v571_v47 }
 0x165   : > { %14458 = vst [vmem:[#allocation372_spill] sm:$0xff] %v8298_v4  ;;  %14459 = vst [vmem:[#allocation373_spill] sm:$0xff] %v8306_v41  ;;  %v4853_v45 = vmul.f32 %v7431_v57, %v566_v9  ;;  %v2420_v11 = vrot.slane %v2269_v24, 6  ;;  %v8318_v59 = vmul.f32 %v7437_v49, %v566_v9  ;;  %v8321_v3 = vmul.f32 %v7456_v6, %v581_v8 }
 0x166   : > { %14460 = vst [vmem:[#allocation374_spill] sm:$0xff] %v8310_v55  ;;  %14461 = vst [vmem:[#allocation375_spill] sm:$0xff] %v8313_v62  ;;  %v8326_v55 = vmul.f32 %v7410_v14, %v566_v9  ;;  %v3088_v47 = vrot.slane %v2938_v31, 7  ;;  %v8331_v24 = vmul.f32 %v7474_v0, %v566_v9  ;;  %v8334_v5 = vmul.f32 %v7402_v7, %v566_v9 }
 0x167   : > { %14462 = vst [vmem:[#allocation376_spill] sm:$0xff] %v8318_v59  ;;  %14463 = vst [vmem:[#allocation377_spill] sm:$0xff] %v8321_v3  ;;  %v8337_v15 = vsel %vm1541_vm0, %v1629_v17, %v1631_v34  ;;  %v8342_v50 = vsel %vm1541_vm0, %v1631_v34, %v14468_v28  ;;  %v5003_v4 = vrot.slane %v4853_v45, 7  ;;  %v8345_v31 = vmul.f32 %v7410_v14, %v581_v8 }
 0x168   : > { %14464 = vst [vmem:[#allocation378_spill] sm:$0xff] %v8326_v55  ;;  %14465 = vst [vmem:[#allocation379_spill] sm:$0xff] %v8331_v24  ;;  %v8348_v62 = vsel %vm2334_vm1, %v2418_v56, %v2420_v11  ;;  %v14472_v24 = vrot.slane %v8290_v37, 6  ;;  %v8358_v34 = vsel %vm1541_vm0, %v3086_v51, %v3088_v47  ;;  %v14475_v28 = vrot.slane %v8295_v10, 7 }
 0x169   : > { %14466 = vst [vmem:[#allocation380_spill] sm:$0xff] %v8334_v5  ;;  %14467 = vst [vmem:[#allocation381_spill] sm:$0xff] %v8337_v15  ;;  %v8366_v56 = vmul.f32 %v7493_v61, %v581_v8  ;;  %v8378_v51 = vmul.f32 %v7437_v49, %v581_v8  ;;  %v1480_v5 = vmul.f32 %v7493_v61, %v576_v18  ;;  %v14484_v3 = vrot.slane %v8303_v39, 7 }
 0x16a   : > { %14469 = vst [vmem:[#allocation382_spill] sm:$0xff] %v8342_v50  ;;  %14470 = vst [vmem:[#allocation383_spill] sm:$0xff] %v8345_v31  ;;  %v8353_v9 = vsel %vm2334_vm1, %v2420_v11, %v14472_v24  ;;  %v8363_v45 = vsel %vm1541_vm0, %v3088_v47, %v14475_v28  ;;  %v8369_v31 = vmul.f32 %v7548_v58, %v581_v8  ;;  %v14479_v47 = vrot.slane %v8219_v60, 7 }
 0x16b   : > { %14471 = vst [vmem:[#allocation384_spill] sm:$0xff] %v8348_v62  ;;  %14473 = vst [vmem:[#allocation385_spill] sm:$0xff] %v8353_v9  ;;  %v8372_v11 = vmul.f32 %v7474_v0, %v581_v8  ;;  %v8375_v24 = vmul.f32 %v7423_v46, %v581_v8  ;;  %v8387_v17 = vmul.f32 %v7431_v57, %v581_v8  ;;  %v8393_v9 = vpop.permute.xlu1 %590  ;;  %v1637_v50 = vrot.slane %v8366_v56, 7 }
 0x16c   : > { %14474 = vst [vmem:[#allocation386_spill] sm:$0xff] %v8358_v34  ;;  %14476 = vst [vmem:[#allocation387_spill] sm:$0xff] %v8363_v45  ;;  %v8384_v28 = vsel %vm1541_vm0, %v14479_v47, %v5003_v4  ;;  %v8390_v45 = vmul.f32 %v7456_v6, %v576_v18  ;;  %v8398_v34 = vsel %vm1541_vm0, %v5003_v4, %v14484_v3  ;;  %v2426_v62 = vrot.slane %v8369_v31, 6 }
 0x16d   : > { %14477 = vst [vmem:[#allocation388_spill] sm:$0xff] %v8372_v11  ;;  %14478 = vst [vmem:[#allocation389_spill] sm:$0xff] %v8378_v51  ;;  %v2271_v11 = vmul.f32 %v7548_v58, %v576_v18  ;;  %v2940_v60 = vmul.f32 %v7423_v46, %v576_v18  ;;  %v8402_v47 = vmul.f32 %v7437_v49, %v576_v18  ;;  %v1635_v41 = vrot.slane %v1480_v5, 7 }
 0x16e   : > { %14480 = vst [vmem:[#allocation390_spill] sm:$0xff] %v8384_v28  ;;  %14481 = vst [vmem:[#allocation391_spill] sm:$0xff] %v8387_v17  ;;  %v4855_v28 = vmul.f32 %v7431_v57, %v576_v18  ;;  %v8408_v59 = vmul.f32 %v7402_v7, %v581_v8  ;;  %v3094_v55 = vrot.slane %v8375_v24, 7  ;;  %v8413_v4 = vmul.f32 %v7410_v14, %v576_v18 }
 0x16f   : > { %14482 = vst [vmem:[#allocation392_spill] sm:$0xff] %v8390_v45  ;;  %14483 = vst [vmem:[#allocation393_spill] sm:$0xff] %v8393_v9  ;;  %v8422_v8 = vmul.f32 %v7474_v0, %v576_v18  ;;  %v2424_v5 = vrot.slane %v2271_v11, 6  ;;  %v3092_v24 = vrot.slane %v2940_v60, 7  ;;  %v8426_v51 = vmul.f32 %v7402_v7, %v576_v18 }
 0x170   : > { %14485 = vst [vmem:[#allocation394_spill] sm:$0xff] %v8398_v34  ;;  %14486 = vst [vmem:[#allocation395_spill] sm:$0xff] %v8402_v47  ;;  %v8417_v34 = vmul.f32 %v7456_v6, %v8393_v9  ;;  %v14492_v15 = vrot.slane %v8267_v53, 7  ;;  %v8434_v56 = vsel %vm1541_vm0, %v1635_v41, %v1637_v50  ;;  %v8438_v31 = vmul.f32 %v7493_v61, %v8393_v9 }
 0x171   : > { %14487 = vst [vmem:[#allocation396_spill] sm:$0xff] %v8408_v59  ;;  %14488 = vst [vmem:[#allocation397_spill] sm:$0xff] %v8413_v4  ;;  %v586_v59 = vpop.permute.xlu0 %585  ;;  %v5007_v4 = vrot.slane %v4855_v28, 7  ;;  %v8442_v11 = vmul.f32 %v7548_v58, %v8393_v9  ;;  %v8447_v28 = vmul.f32 %v7423_v46, %v8393_v9  ;;  %v14499_v60 = vrot.slane %v8290_v37, 6 }
 0x172   : > { %14489 = vst [vmem:[#allocation398_spill] sm:$0xff] %v8417_v34  ;;  %14490 = vst [vmem:[#allocation399_spill] sm:$0xff] %v8422_v8  ;;  %v8431_v30 = vsel %vm1541_vm0, %v14492_v15, %v1635_v41  ;;  %v8450_v15 = vmul.f32 %v7493_v61, %v586_v59  ;;  %v2273_v53 = vmul.f32 %v7548_v58, %v586_v59  ;;  %v715_v41 = vpop.permute.xlu1 %714  ;;  %v14503_v8 = vrot.slane %v8295_v10, 7 }
 0x173   : > { %14491 = vst [vmem:[#allocation400_spill] sm:$0xff] %v8426_v51  ;;  %14493 = vst [vmem:[#allocation401_spill] sm:$0xff] %v8431_v30  ;;  %v8456_v3 = vsel %vm2334_vm1, %v14499_v60, %v2424_v5  ;;  %v8459_v51 = vsel %vm2334_vm1, %v2424_v5, %v2426_v62  ;;  %v8463_v18 = vmul.f32 %v7431_v57, %v8393_v9  ;;  %v14506_v37 = vrot.slane %v8303_v39, 7 }
 0x174   : > { %14494 = vst [vmem:[#allocation402_spill] sm:$0xff] %v8434_v56  ;;  %14495 = vst [vmem:[#allocation403_spill] sm:$0xff] %v8438_v31  ;;  %v2942_v34 = vmul.f32 %v7423_v46, %v586_v59  ;;  %v8469_v56 = vsel %vm1541_vm0, %v14503_v8, %v3092_v24  ;;  %v8472_v47 = vsel %vm1541_vm0, %v3092_v24, %v3094_v55  ;;  %v14509_v8 = vrot.slane %v8387_v17, 7 }
 0x175   : > { %14496 = vst [vmem:[#allocation404_spill] sm:$0xff] %v8442_v11  ;;  %14497 = vst [vmem:[#allocation405_spill] sm:$0xff] %v8447_v28  ;;  %v8477_v60 = vsel %vm1541_vm0, %v14506_v37, %v5007_v4  ;;  %v8480_v5 = vmul.f32 %v7456_v6, %v586_v59  ;;  %v983_v10 = vmul.f32 %v7437_v49, %v715_v41  ;;  %v14536_v45 = vrot.slane %v6303_v32, 1 }
 0x176   : > { %14498 = vst [vmem:[#allocation406_spill] sm:$0xff] %v8450_v15  ;;  %14500 = vst [vmem:[#allocation407_spill] sm:$0xff] %v8456_v3  ;;  %v8488_v24 = vsel %vm1541_vm0, %v5007_v4, %v14509_v8  ;;  %v8492_v37 = vmul.f32 %v7437_v49, %v586_v59  ;;  %v8497_v46 = vmul.f32 %v7410_v14, %v586_v59  ;;  %v725_v39 = vpop.permute.xlu1 %724 }
 0x177   : > { %14501 = vst [vmem:[#allocation408_spill] sm:$0xff] %v8459_v51  ;;  %14502 = vst [vmem:[#allocation409_spill] sm:$0xff] %v8463_v18  ;;  %v2428_v51 = vrot.slane %v2273_v53, 6  ;;  %v8500_v53 = vmul.f32 %v7474_v0, %v586_v59  ;;  %v8504_v4 = vmul.f32 %v7402_v7, %v586_v59  ;;  %v1036_v8 = vadd.f32 %v983_v10, %v6286_v25  ;;  %v8537_v10 = vpop.permute.xlu0 %595 }
 0x178   : > { %14504 = vst [vmem:[#allocation410_spill] sm:$0xff] %v8469_v56  ;;  %14505 = vst [vmem:[#allocation411_spill] sm:$0xff] %v8472_v47  ;;  %v3096_v47 = vrot.slane %v2942_v34, 7  ;;  %v8507_v34 = vmul.f32 %v7431_v57, %v586_v59  ;;  %v14519_v0 = vrot.slane %v8442_v11, 6  ;;  %v14521_v7 = vrot.slane %v6303_v32, 1 }
 0x179   : > { %14507 = vst [vmem:[#allocation412_spill] sm:$0xff] %v8477_v60  ;;  %14508 = vst [vmem:[#allocation413_spill] sm:$0xff] %v8480_v5  ;;  %v14516_v60 = vrot.slane %v8450_v15, 7  ;;  %v8516_v31 = vsel %vm2334_vm1, %v2426_v62, %v2428_v51  ;;  %v14522_v57 = vrot.slane %v6270_v19, 1  ;;  %v8543_v19 = vmul.f32 %v7456_v6, %v715_v41 }
 0x17a   : > { %14510 = vst [vmem:[#allocation414_spill] sm:$0xff] %v8488_v24  ;;  %14511 = vst [vmem:[#allocation415_spill] sm:$0xff] %v8492_v37  ;;  %v8521_v56 = vsel %vm2334_vm1, %v2428_v51, %v14519_v0  ;;  %v8529_v59 = vsel %vm1541_vm0, %v3094_v55, %v3096_v47  ;;  %v1100_v51 = vmul.f32 %v7456_v6, %v6262_v16  ;;  %v14531_v11 = vrot.slane %v6273_v20, 1  ;;  %v735_v37 = vpop.permute.xlu1 %734 }
 0x17b   : > { %14512 = vst [vmem:[#allocation416_spill] sm:$0xff] %v8497_v46  ;;  %14513 = vst [vmem:[#allocation417_spill] sm:$0xff] %v8500_v53  ;;  %v8513_v9 = vsel %vm1541_vm0, %v1637_v50, %v14516_v60  ;;  %v1206_v25 = vsel %vm1203_vm2, %v14522_v57, %v14521_v7  ;;  %v14524_v50 = vrot.slane %v8447_v28, 7  ;;  %v3216_v0 = vmul.f32 %v7410_v14, %v715_v41 }
 0x17c   : > { %14514 = vst [vmem:[#allocation418_spill] sm:$0xff] %v8504_v4  ;;  %14515 = vst [vmem:[#allocation419_spill] sm:$0xff] %v8507_v34  ;;  %v8547_v55 = vmul.f32 %v7437_v49, %v6262_v16  ;;  %v985_v7 = vmul.f32 %v7437_v49, %v725_v39  ;;  %v1209_v57 = vrot.slane %v1100_v51, 1  ;;  %v1436_v62 = vmul.f32 %v7493_v61, %v6324_v40  ;;  %v8562_v4 = vld [vmem:[%s13634_s2 + $0x4] ss:$0 sm:$0xff] }
 0x17d   : > { %14517 = vst [vmem:[#allocation420_spill] sm:$0xff] %v8513_v9  ;;  %14518 = vst [vmem:[#allocation421_spill] sm:$0xff] %v8516_v31  ;;  %v8534_v60 = vsel %vm1541_vm0, %v3096_v47, %v14524_v50  ;;  %v1362_v47 = vadd.f32 %v1206_v25, %v1036_v8  ;;  %v8552_v50 = vmul.f32 %v7493_v61, %v6262_v16  ;;  %v1211_v41 = vrot.slane %v6385_v1, 1  ;;  %v8573_v61 = vld [vmem:[%s13634_s2] ss:$0 sm:$0xff] }
 0x17e   : > { %14520 = vst [vmem:[#allocation422_spill] sm:$0xff] %v8521_v56  ;;  %14523 = vst [vmem:[#allocation423_spill] sm:$0xff] %v8529_v59  ;;  %v1038_v6 = vadd.f32 %v985_v7, %v6276_v21  ;;  %v8565_v49 = vmul.f32 %v8562_v4, %v725_v39  ;;  %v14527_v8 = vrot.slane %v6247_v12, 1  ;;  %v1547_v51 = vrot.slane %v1436_v62, 7  ;;  %v8579_v1 = vld [vmem:[%s13634_s2 + $0x1] ss:$0 sm:$0xff] }
 0x17f   : > { %14525 = vst [vmem:[#allocation424_spill] sm:$0xff] %v8534_v60  ;;  %14526 = vst [vmem:[#allocation425_spill] sm:$0xff] %v8537_v10  ;;  %v3218_v21 = vmul.f32 %v8573_v61, %v725_v39  ;;  %v8583_v7 = vmul.f32 %v8579_v1, %v6324_v40  ;;  %v14528_v14 = vrot.slane %v6298_v29, 7  ;;  %v14529_v62 = vrot.slane %v6306_v33, 7  ;;  %v8598_v60 = vld [vmem:[%s13634_s2 + $0x2] ss:$0 sm:$0xff] }
 0x180   : > { %v1210_v25 = vsel %vm1203_vm2, %v14527_v8, %v1209_v57  ;;  %v14530_v28 = vrot.slane %v6317_v38, 1  ;;  %v8601_v5 = vmul.f32 %v8598_v60, %v725_v39  ;;  %v3745_v33 = vrot.slane %v8543_v19, 1  ;;  %v8640_v31 = vld [vmem:[%s13634_s2 + $0x5] ss:$0 sm:$0xff] }
 0x181   : > { %v1544_v8 = vsel %vm1541_vm0, %v14529_v62, %v14528_v14  ;;  %v1364_v15 = vadd.f32 %v1210_v25, %v1038_v6  ;;  %v1545_v14 = vrot.slane %v8552_v50, 7  ;;  %v720_v62 = vpop.permute.xlu0 %719  ;;  %v14532_v20 = vrot.slane %v8547_v55, 1 }
 0x182   : > { %v3430_v53 = vsel %vm1203_vm2, %v14531_v11, %v14530_v28  ;;  %v1702_v24 = vadd.f32 %v1544_v8, %v1362_v47  ;;  %v14533_v11 = vrot.slane %v6250_v13, 1  ;;  %v8611_v6 = vsel %vm1203_vm2, %v1209_v57, %v1211_v41 }
 0x183   : > { %v3586_v59 = vadd.f32 %v3430_v53, %v3216_v0  ;;  %v8617_v53 = vld [vmem:[%s13634_s2 + $0x3] ss:$0 sm:$0xff]  ;;  %v1548_v19 = vsel %vm1541_vm0, %v1545_v14, %v1547_v51  ;;  %v14534_v47 = vrot.slane %v6336_v43, 7  ;;  %v3435_v57 = vrot.slane %v8583_v7, 1 }
 0x184   : > { %v3434_v28 = vsel %vm1203_vm2, %v14533_v11, %v14532_v20  ;;  %v8620_v0 = vmul.f32 %v8617_v53, %v725_v39  ;;  %v8631_v20 = vadd.f32 %v1548_v19, %v1364_v15  ;;  %v2226_v25 = vmul.f32 %v7548_v58, %v6262_v16 }
 0x185   : > { %v8626_v50 = vsel %vm1541_vm0, %v1547_v51, %v14534_v47  ;;  %v8629_v8 = vadd.f32 %v3434_v28, %v3218_v21  ;;  %v984_v56 = vmul.f32 %v8579_v1, %v720_v62  ;;  %v8643_v51 = vmul.f32 %v8640_v31, %v725_v39 }
 0x186   : > { %v2227_v15 = vmul.f32 %v7548_v58, %v6324_v40  ;;  %v1773_v21 = vmul.f32 %v8562_v4, %v720_v62  ;;  %v3640_v7 = vmul.f32 %v8598_v60, %v720_v62  ;;  %v3217_v47 = vmul.f32 %v8573_v61, %v720_v62 }
 0x187   : > { %v1037_v19 = vadd.f32 %v984_v56, %v6346_v48  ;;  %v3956_v11 = vmul.f32 %v8617_v53, %v720_v62  ;;  %v608_v39 = vmul.f32 %v8573_v61, %v6324_v40  ;;  %v987_v9 = vmul.f32 %v8579_v1, %v735_v37 }
 0x188   : > { %v1881_v46 = vrot.slane %v1773_v21, 7  ;;  %v3746_v3 = vrot.slane %v3640_v7, 1  ;;  %v14535_v58 = vrot.slane %v6247_v12, 1  ;;  %v2335_v28 = vrot.slane %v2226_v25, 6 }
 0x189   : > { %v14537_v48 = vrot.slane %v6250_v13, 1  ;;  %v14538_v56 = vrot.slane %v6317_v38, 1  ;;  %v4064_v21 = vrot.slane %v3956_v11, 7  ;;  %v2336_v7 = vrot.slane %v2227_v15, 6 }
 0x18a   : > { %v1208_v30 = vsel %vm1203_vm2, %v14536_v45, %v14535_v58  ;;  %v14539_v18 = vrot.slane %v8565_v49, 7  ;;  %v3747_v10 = vsel %vm1203_vm2, %v3745_v33, %v3746_v3  ;;  %v1040_v12 = vadd.f32 %v987_v9, %v608_v39 }
 0x18b   : > { %v3432_v62 = vsel %vm1203_vm2, %v14538_v56, %v14537_v48  ;;  %v1363_v17 = vadd.f32 %v1208_v30, %v1037_v19  ;;  %v3903_v45 = vadd.f32 %v3747_v10, %v3586_v59  ;;  %v14540_v25 = vrot.slane %v8601_v5, 1 }
 0x18c   : > { %v1883_v40 = vsel %vm1541_vm0, %v1881_v46, %v14539_v18  ;;  %v3587_v34 = vadd.f32 %v3432_v62, %v3217_v47  ;;  %v14541_v38 = vrot.slane %v8620_v0, 7  ;;  %v14542_v15 = vrot.slane %v6332_v42, 1  ;;  %v730_v62 = vpop.permute.xlu0 %729 }
 0x18d   : > { %v2041_v32 = vadd.f32 %v1883_v40, %v1702_v24  ;;  %v3749_v13 = vsel %vm1203_vm2, %v3746_v3, %v14540_v25  ;;  %v8680_v18 = vmul.f32 %v8562_v4, %v735_v37  ;;  %v8686_v24 = vld [vmem:[%s13634_s2 + $0x7] ss:$0 sm:$0xff]  ;;  %v14543_v59 = vrot.slane %v8547_v55, 1 }
 0x18e   : > { %v4066_v11 = vsel %vm1541_vm0, %v4064_v21, %v14541_v38  ;;  %v1214_v58 = vsel %vm1203_vm2, %v1211_v41, %v14542_v15  ;;  %v8689_v3 = vmul.f32 %v8686_v24, %v735_v37  ;;  %v14544_v41 = vrot.slane %v6298_v29, 7 }
 0x18f   : > { %v2155_v30 = vadd.f32 %v6279_v22, %v2041_v32  ;;  %v4224_v9 = vadd.f32 %v4066_v11, %v3903_v45  ;;  %v1366_v46 = vadd.f32 %v1214_v58, %v1040_v12  ;;  %v3436_v10 = vsel %vm1203_vm2, %v14543_v59, %v3435_v57 }
 0x190   : > { %v1546_v33 = vsel %vm1541_vm0, %v14544_v41, %v1545_v14  ;;  %v3220_v22 = vmul.f32 %v8573_v61, %v735_v37  ;;  %v8699_v19 = vmul.f32 %v8598_v60, %v735_v37  ;;  %v2337_v47 = vsel %vm2334_vm1, %v2335_v28, %v2336_v7 }
 0x191   : > { %v14545_v39 = vrot.slane %v6340_v44, 6  ;;  %v1703_v56 = vadd.f32 %v1546_v33, %v1363_v17  ;;  %v3904_v55 = vadd.f32 %v3749_v13, %v3587_v34  ;;  %v2495_v21 = vadd.f32 %v2337_v47, %v2155_v30 }
 0x192   : > { %v14546_v29 = vrot.slane %v6444_v36, 7  ;;  %v14547_v14 = vrot.slane %v6336_v43, 7  ;;  %v13924_v12 = vrot.slane %v8680_v18, 7  ;;  %v14548_v32 = vrot.slane %v6358_v54, 1 }
 0x193   : > { %v8705_v48 = vsel %vm2334_vm1, %v2336_v7, %v14545_v39  ;;  %v4330_v45 = vadd.f32 %v6282_v23, %v4224_v9  ;;  %v13923_v17 = vrot.slane %v8689_v3, 6  ;;  %v13922_v25 = vrot.slane %v8699_v19, 1  ;;  %v8735_v23 = vld [vmem:[%s13634_s2 + $0x6] ss:$0 sm:$0xff] }
 0x194   : > { %v1552_v40 = vsel %vm1541_vm0, %v14547_v14, %v14546_v29  ;;  %v3438_v28 = vsel %vm1203_vm2, %v3435_v57, %v14548_v32  ;;  %v8724_v43 = vmul.f32 %v8617_v53, %v735_v37  ;;  %v607_v13 = vmul.f32 %v8573_v61, %v6262_v16  ;;  %v8745_v16 = vld [vmem:[%s13634_s2 + $0x8] ss:$0 sm:$0xff] }
 0x195   : > { %v8717_v7 = vadd.f32 %v1552_v40, %v1366_v46  ;;  %v8720_v34 = vadd.f32 %v3438_v28, %v3220_v22  ;;  %v986_v38 = vmul.f32 %v8579_v1, %v730_v62  ;;  %v8730_v57 = vmul.f32 %v8640_v31, %v735_v37 }
 0x196   : > { %v8738_v11 = vmul.f32 %v8735_v23, %v735_v37  ;;  %v1775_v15 = vmul.f32 %v8562_v4, %v730_v62  ;;  %v2566_v58 = vmul.f32 %v8686_v24, %v730_v62  ;;  %v8748_v30 = vmul.f32 %v8745_v16, %v735_v37 }
 0x197   : > { %v1039_v9 = vadd.f32 %v986_v38, %v607_v13  ;;  %v3642_v46 = vmul.f32 %v8598_v60, %v730_v62  ;;  %v3958_v59 = vmul.f32 %v8617_v53, %v730_v62  ;;  %v4436_v41 = vadd.f32 %v8643_v51, %v4330_v45 }
 0x198   : > { %v1884_v33 = vrot.slane %v1775_v15, 7  ;;  %v2674_v22 = vrot.slane %v2566_v58, 6  ;;  %v4489_v47 = vmul.f32 %v8735_v23, %v730_v62  ;;  %v3219_v29 = vmul.f32 %v8573_v61, %v730_v62 }
 0x199   : > { %v3750_v14 = vrot.slane %v3642_v46, 1  ;;  %v4067_v40 = vrot.slane %v3958_v59, 7  ;;  %v13920_v37 = vrot.slane %v8738_v11, 6  ;;  %v1365_v32 = vadd.f32 %v8611_v6, %v1039_v9 }
 0x19a   : > { %v14549_v28 = vrot.slane %v8565_v49, 7  ;;  %v4597_v38 = vrot.slane %v4489_v47, 6  ;;  %v13921_v51 = vrot.slane %v8748_v30, 7  ;;  %v14550_v45 = vrot.slane %v6380_v63, 7 }
 0x19b   : > { %v14551_v15 = vrot.slane %v6290_v26, 7  ;;  %v14552_v46 = vrot.slane %v6389_v2, 7  ;;  %v14553_v59 = vrot.slane %v6294_v27, 7  ;;  %v1887_v49 = vsel %vm1541_vm0, %v1884_v33, %v13924_v12  ;;  %v745_v27 = vpop.permute.xlu1 %744  ;;  %v14586_v12 = vld [vmem:[#allocation5_spill] sm:$0xff] }
 0x19c   : > { %v1885_v13 = vsel %vm1541_vm0, %v14549_v28, %v1884_v33  ;;  %v2676_v9 = vsel %vm2334_vm1, %v2674_v22, %v13923_v17  ;;  %v14554_v47 = vrot.slane %v8601_v5, 1  ;;  %v14555_v28 = vrot.slane %v8620_v0, 7  ;;  %v740_v17 = vpop.permute.xlu0 %739 }
 0x19d   : > { %v3005_v58 = vsel %vm1541_vm0, %v14551_v15, %v14550_v45  ;;  %v4920_v39 = vsel %vm1541_vm0, %v14553_v59, %v14552_v46  ;;  %v2042_v6 = vadd.f32 %v1885_v13, %v1703_v56  ;;  %v2834_v15 = vadd.f32 %v2676_v9, %v2495_v21  ;;  %v14557_v21 = vld [vmem:[#allocation3_spill] sm:$0xff] }
 0x19e   : > { %v3751_v26 = vsel %vm1203_vm2, %v14554_v47, %v3750_v14  ;;  %v4068_v45 = vsel %vm1541_vm0, %v14555_v28, %v4067_v40  ;;  %v3589_v46 = vadd.f32 %v3436_v10, %v3219_v29  ;;  %v4384_v33 = vmul.f32 %v8640_v31, %v730_v62  ;;  %v14556_v28 = vld [vmem:[#allocation12_spill] sm:$0xff] }
 0x19f   : > { %v3905_v59 = vadd.f32 %v3751_v26, %v8629_v8  ;;  %v8787_v56 = vadd.f32 %v8626_v50, %v1365_v32  ;;  %v4225_v13 = vadd.f32 %v4068_v45, %v3904_v55  ;;  %v4599_v5 = vsel %vm2334_vm1, %v4597_v38, %v13920_v37 }
 0x1a0   : > { %v5131_v22 = vmul.f32 %v8745_v16, %v730_v62  ;;  %v2043_v0 = vadd.f32 %v1887_v49, %v8631_v20  ;;  %v4757_v47 = vadd.f32 %v4599_v5, %v4436_v41  ;;  %v610_v10 = vmul.f32 %v8573_v61, %v14556_v28  ;;  %v14559_v49 = vld [vmem:[#allocation4_spill] sm:$0xff] }
 0x1a1   : > { %v989_v8 = vmul.f32 %v8579_v1, %v745_v27  ;;  %v2156_v29 = vadd.f32 %v14557_v21, %v2042_v6  ;;  %v3753_v50 = vsel %vm1203_vm2, %v3750_v14, %v13922_v25  ;;  %v14558_v55 = vrot.slane %v8724_v43, 7  ;;  %v14560_v6 = vld [vmem:[#allocation10_spill] sm:$0xff]  ;;  %v14562_v28 = vld [vmem:[#allocation20_spill] sm:$0xff] }
 0x1a2   : > { %v5239_v38 = vrot.slane %v5131_v22, 7  ;;  %v3163_v62 = vadd.f32 %v3005_v58, %v2834_v15  ;;  %v5078_v20 = vadd.f32 %v4920_v39, %v4757_v47  ;;  %v4331_v26 = vadd.f32 %v14559_v49, %v4225_v13  ;;  %v14564_v13 = vld [vmem:[#allocation15_spill] sm:$0xff] }
 0x1a3   : > { %v4070_v32 = vsel %vm1541_vm0, %v4067_v40, %v14558_v55  ;;  %v1042_v41 = vadd.f32 %v989_v8, %v610_v10  ;;  %v14561_v5 = vrot.slane %v14560_v6, 1  ;;  %v14563_v21 = vrot.slane %v14562_v28, 1  ;;  %v14565_v55 = vld [vmem:[#allocation16_spill] sm:$0xff]  ;;  %v14568_v49 = vld [vmem:[#allocation11_spill] sm:$0xff] }
 0x1a4   : > { %v4226_v9 = vadd.f32 %v4070_v32, %v3905_v59  ;;  %v5241_v45 = vsel %vm1541_vm0, %v5239_v38, %v13921_v51  ;;  %v8814_v37 = vmul.f32 %v8562_v4, %v745_v27  ;;  %v8817_v39 = vmul.f32 %v8686_v24, %v745_v27  ;;  %v8823_v59 = vld [vmem:[%s13635_s3] ss:$0 sm:$0xff] }
 0x1a5   : > { %v1218_v14 = vsel %vm1203_vm2, %v14563_v21, %v14561_v5  ;;  %v5399_v40 = vadd.f32 %v5241_v45, %v5078_v20  ;;  %v3222_v15 = vmul.f32 %v8573_v61, %v745_v27  ;;  %v2157_v22 = vadd.f32 %v14564_v13, %v2043_v0  ;;  %v14566_v20 = vld [vmem:[#allocation39_spill] sm:$0xff]  ;;  %v14572_v13 = vld [vmem:[#allocation25_spill] sm:$0xff] }
 0x1a6   : > { %v1368_v58 = vadd.f32 %v1218_v14, %v1042_v41  ;;  %v8826_v47 = vadd.f32 %v3753_v50, %v3589_v46  ;;  %v8829_v10 = vmul.f32 %v8598_v60, %v745_v27  ;;  %v8832_v8 = vmul.f32 %v8617_v53, %v745_v27  ;;  %v14570_v50 = vld [vmem:[#allocation17_spill] sm:$0xff] }
 0x1a7   : > { %v4332_v32 = vadd.f32 %v14565_v55, %v4226_v9  ;;  %v5452_v38 = vmax.f32 %v3163_v62, %v5399_v40  ;;  %v14567_v41 = vrot.slane %v14566_v20, 7  ;;  %v14569_v45 = vrot.slane %v14568_v49, 7 }
 0x1a8   : > { %v8841_v21 = vmul.f32 %v8735_v23, %v745_v27  ;;  %v8843_v46 = vadd.f32 %v4384_v33, %v4331_v26  ;;  %v14571_v14 = vrot.slane %v14570_v50, 1  ;;  %v14573_v51 = vrot.slane %v14572_v13, 1 }
 0x1a9   : > { %v1556_v5 = vsel %vm1541_vm0, %v14569_v45, %v14567_v41  ;;  %v8852_v62 = vmul.f32 %v8745_v16, %v745_v27  ;;  %v8855_v40 = vadd.f32 %v8823_v59, %v5452_v38  ;;  %v8865_v25 = vmul.f32 %v8640_v31, %v745_v27  ;;  %v14589_v41 = vld [vmem:[#allocation23_spill] sm:$0xff] }
 0x1aa   : > { %v3442_v9 = vsel %vm1203_vm2, %v14573_v51, %v14571_v14  ;;  %v8857_v55 = vadd.f32 %v1556_v5, %v1368_v58  ;;  %v14578_v51 = vld [vmem:[#allocation2_spill] sm:$0xff]  ;;  %v14579_v5 = vrot.slane %v14562_v28, 1  ;;  %v14581_v26 = vmov %v14569_v45 }
 0x1ab   : > { %14574 = vst [vmem:[#allocation12_spill] sm:$0xff] %v8855_v40  ;;  %v8860_v33 = vadd.f32 %v3442_v9, %v3222_v15  ;;  %14577 = vst [vmem:[#allocation10_spill] sm:$0xff] %v8865_v25  ;;  %v609_v14 = vmul.f32 %v8573_v61, %v14578_v51  ;;  %v14580_v15 = vrot.slane %v6332_v42, 1  ;;  %v14582_v45 = vrot.slane %v6444_v36, 7  ;;  %v14583_v51 = vld [vmem:[#allocation22_spill] sm:$0xff] }
 0x1ac   : > { %14575 = vst [vmem:[#allocation3_spill] sm:$0xff] %v8857_v55  ;;  %v14584_v0 = vrot.slane %v14583_v51, 6  ;;  %v14585_v38 = vrot.slane %v6340_v44, 6  ;;  %v2496_v28 = vadd.f32 %v8705_v48, %v2156_v29  ;;  %v14587_v42 = vrot.slane %v14586_v12, 7  ;;  %v14594_v12 = vld [vmem:[#allocation9_spill] sm:$0xff] }
 0x1ad   : > { %14576 = vst [vmem:[#allocation4_spill] sm:$0xff] %v8860_v33  ;;  %v1216_v9 = vsel %vm1203_vm2, %v14580_v15, %v14579_v5  ;;  %v1554_v27 = vsel %vm1541_vm0, %v14582_v45, %v14581_v26  ;;  %v14588_v5 = vrot.slane %v6380_v63, 7  ;;  %v988_v36 = vmul.f32 %v8579_v1, %v740_v17 }
 0x1ae   : > { %v2341_v58 = vsel %vm2334_vm1, %v14585_v38, %v14584_v0  ;;  %v1777_v26 = vmul.f32 %v8562_v4, %v740_v17  ;;  %v2568_v45 = vmul.f32 %v8686_v24, %v740_v17  ;;  %v14590_v35 = vrot.slane %v14589_v41, 7 }
 0x1af   : > { %v3007_v49 = vsel %vm1541_vm0, %v14588_v5, %v14587_v42  ;;  %v2497_v15 = vadd.f32 %v2341_v58, %v2157_v22  ;;  %v14591_v44 = vmov %v14587_v42  ;;  %v3644_v48 = vmul.f32 %v8598_v60, %v740_v17 }
 0x1b0   : > { %v3009_v0 = vsel %vm1541_vm0, %v14591_v44, %v14590_v35  ;;  %v3960_v29 = vmul.f32 %v8617_v53, %v740_v17  ;;  %v4491_v63 = vmul.f32 %v8735_v23, %v740_v17  ;;  %v14592_v22 = vrot.slane %v14572_v13, 1 }
 0x1b1   : > { %v14593_v38 = vrot.slane %v6358_v54, 1  ;;  %v1041_v42 = vadd.f32 %v988_v36, %v609_v14  ;;  %v1888_v5 = vrot.slane %v1777_v26, 7  ;;  %v2677_v52 = vrot.slane %v2568_v45, 6 }
 0x1b2   : > { %v4438_v33 = vadd.f32 %v8730_v57, %v4332_v32  ;;  %v14595_v55 = vrot.slane %v14594_v12, 7  ;;  %v14596_v35 = vrot.slane %v6389_v2, 7  ;;  %v3221_v25 = vmul.f32 %v8573_v61, %v740_v17  ;;  %v14599_v57 = vld [vmem:[#allocation26_spill] sm:$0xff] }
 0x1b3   : > { %v3440_v58 = vsel %vm1203_vm2, %v14593_v38, %v14592_v22  ;;  %v3754_v50 = vrot.slane %v3644_v48, 1  ;;  %v1367_v40 = vadd.f32 %v1216_v9, %v1041_v42  ;;  %v14597_v13 = vrot.slane %v8680_v18, 7 }
 0x1b4   : > { %v4922_v44 = vsel %vm1541_vm0, %v14596_v35, %v14595_v55  ;;  %v14598_v14 = vrot.slane %v8814_v37, 7  ;;  %v4071_v26 = vrot.slane %v3960_v29, 7  ;;  %v14600_v32 = vrot.slane %v14599_v57, 7 }
 0x1b5   : > { %v1889_v54 = vsel %vm1541_vm0, %v14597_v13, %v1888_v5  ;;  %v14601_v45 = vmov %v14595_v55  ;;  %v4386_v48 = vmul.f32 %v8640_v31, %v740_v17  ;;  %v4600_v9 = vrot.slane %v4491_v63, 6 }
 0x1b6   : > { %v1891_v36 = vsel %vm1541_vm0, %v1888_v5, %v14598_v14  ;;  %v4924_v2 = vsel %vm1541_vm0, %v14601_v45, %v14600_v32  ;;  %v2044_v55 = vadd.f32 %v1889_v54, %v8787_v56  ;;  %v14602_v22 = vrot.slane %v8689_v3, 6 }
 0x1b7   : > { %v2045_v18 = vadd.f32 %v1891_v36, %v8717_v7  ;;  %v14603_v42 = vrot.slane %v8699_v19, 1  ;;  %v5133_v5 = vmul.f32 %v8745_v16, %v740_v17  ;;  %v8937_v12 = vadd.f32 %v1554_v27, %v1367_v40  ;;  %v755_v17 = vpop.permute.xlu1 %754  ;;  %v14607_v40 = vld [vmem:[#allocation7_spill] sm:$0xff] }
 0x1b8   : > { %v2678_v38 = vsel %vm2334_vm1, %v14602_v22, %v2677_v52  ;;  %v14604_v35 = vrot.slane %v8817_v39, 6  ;;  %v3591_v63 = vadd.f32 %v3440_v58, %v3221_v25  ;;  %v14605_v7 = vrot.slane %v8829_v10, 1 }
 0x1b9   : > { %v3755_v29 = vsel %vm1203_vm2, %v14603_v42, %v3754_v50  ;;  %v2835_v13 = vadd.f32 %v2678_v38, %v2496_v28  ;;  %v14606_v19 = vrot.slane %v8724_v43, 7  ;;  %v8950_v27 = vadd.f32 %v14607_v40, %v2044_v55  ;;  %v14612_v38 = vld [vmem:[#allocation32_spill] sm:$0xff] }
 0x1ba   : > { %v2680_v56 = vsel %vm2334_vm1, %v2677_v52, %v14604_v35  ;;  %v3757_v3 = vsel %vm1203_vm2, %v3754_v50, %v14605_v7  ;;  %v3907_v14 = vadd.f32 %v3755_v29, %v8720_v34  ;;  %v14608_v52 = vrot.slane %v8738_v11, 6  ;;  %v14616_v40 = vld [vmem:[#allocation28_spill] sm:$0xff] }
 0x1bb   : > { %v2836_v54 = vadd.f32 %v2680_v56, %v2497_v15  ;;  %v4072_v36 = vsel %vm1541_vm0, %v14606_v19, %v4071_v26  ;;  %v14609_v28 = vrot.slane %v8841_v21, 6  ;;  %v14610_v15 = vld [vmem:[#allocation27_spill] sm:$0xff]  ;;  %v5242_v45 = vrot.slane %v5133_v5, 7 }
 0x1bc   : > { %v4227_v32 = vadd.f32 %v4072_v36, %v8826_v47  ;;  %v4601_v25 = vsel %vm2334_vm1, %v14608_v52, %v4600_v9  ;;  %v8960_v34 = vadd.f32 %v14610_v15, %v2045_v18  ;;  %v3164_v22 = vadd.f32 %v3007_v49, %v2835_v13  ;;  %v14613_v18 = vld [vmem:[#allocation8_spill] sm:$0xff] }
 0x1bd   : > { %v4603_v50 = vsel %vm2334_vm1, %v4600_v9, %v14609_v28  ;;  %v4758_v43 = vadd.f32 %v4601_v25, %v8843_v46  ;;  %v14611_v55 = vrot.slane %v8832_v8, 7  ;;  %v612_v11 = vmul.f32 %v8573_v61, %v14612_v38  ;;  %v14625_v38 = vld [vmem:[#allocation34_spill] sm:$0xff] }
 0x1be   : > { %v4759_v58 = vadd.f32 %v4603_v50, %v4438_v33  ;;  %v991_v42 = vmul.f32 %v8579_v1, %v755_v17  ;;  %v3165_v29 = vadd.f32 %v3009_v0, %v2836_v54  ;;  %v4333_v7 = vadd.f32 %v14613_v18, %v4227_v32  ;;  %v14618_v54 = vld [vmem:[#allocation38_spill] sm:$0xff] }
 0x1bf   : > { %v4074_v47 = vsel %vm1541_vm0, %v4071_v26, %v14611_v55  ;;  %v5079_v9 = vadd.f32 %v4922_v44, %v4758_v43  ;;  %v14614_v46 = vrot.slane %v8748_v30, 7  ;;  %v14615_v49 = vrot.slane %v8852_v62, 7  ;;  %v14621_v43 = vld [vmem:[#allocation56_spill] sm:$0xff] }
 0x1c0   : > { %v4228_v35 = vadd.f32 %v4074_v47, %v3907_v14  ;;  %v5080_v56 = vadd.f32 %v4924_v2, %v4759_v58  ;;  %v1044_v26 = vadd.f32 %v991_v42, %v612_v11  ;;  %v8976_v13 = vadd.f32 %v3757_v3, %v3591_v63  ;;  %v14620_v63 = vld [vmem:[#allocation29_spill] sm:$0xff]  ;;  %v14627_v42 = vld [vmem:[#allocation43_spill] sm:$0xff] }
 0x1c1   : > { %v5243_v33 = vsel %vm1541_vm0, %v14614_v46, %v5242_v45  ;;  %v5245_v5 = vsel %vm1541_vm0, %v5242_v45, %v14615_v49  ;;  %v14617_v0 = vrot.slane %v14616_v40, 1  ;;  %v14619_v44 = vrot.slane %v14618_v54, 1  ;;  %v14623_v45 = vld [vmem:[#allocation30_spill] sm:$0xff] }
 0x1c2   : > { %v5400_v19 = vadd.f32 %v5243_v33, %v5079_v9  ;;  %v5401_v36 = vadd.f32 %v5245_v5, %v5080_v56  ;;  %v8984_v30 = vmul.f32 %v8562_v4, %v755_v17  ;;  %v8987_v32 = vmul.f32 %v8686_v24, %v755_v17 }
 0x1c3   : > { %v1222_v2 = vsel %vm1203_vm2, %v14619_v44, %v14617_v0  ;;  %v3224_v52 = vmul.f32 %v8573_v61, %v755_v17  ;;  %v4334_v3 = vadd.f32 %v14620_v63, %v4228_v35  ;;  %v8992_v50 = vmul.f32 %v8598_v60, %v755_v17  ;;  %v14632_v44 = vld [vmem:[#allocation6_spill] sm:$0xff] }
 0x1c4   : > { %v1370_v14 = vadd.f32 %v1222_v2, %v1044_v26  ;;  %v5453_v25 = vmax.f32 %v3164_v22, %v5400_v19  ;;  %v5454_v28 = vmax.f32 %v3165_v29, %v5401_v36  ;;  %v8994_v15 = vadd.f32 %v4386_v48, %v4333_v7 }
 0x1c5   : > { %v14622_v58 = vrot.slane %v14621_v43, 7  ;;  %v14624_v55 = vrot.slane %v14623_v45, 7  ;;  %v14626_v11 = vrot.slane %v14625_v38, 1  ;;  %v14628_v9 = vrot.slane %v14627_v42, 1 }
 0x1c6   : > { %v9007_v22 = vmul.f32 %v8617_v53, %v755_v17  ;;  %v9010_v29 = vadd.f32 %v8823_v59, %v5453_v25  ;;  %v9013_v48 = vadd.f32 %v8823_v59, %v5454_v28  ;;  %v9016_v56 = vmul.f32 %v8735_v23, %v755_v17 }
 0x1c7   : > { %v1560_v47 = vsel %vm1541_vm0, %v14624_v55, %v14622_v58  ;;  %v3446_v35 = vsel %vm1203_vm2, %v14628_v9, %v14626_v11  ;;  %v9019_v18 = vmul.f32 %v8745_v16, %v755_v17  ;;  %v9032_v36 = vmul.f32 %v8640_v31, %v755_v17  ;;  %v14637_v11 = vld [vmem:[#allocation13_spill] sm:$0xff] }
 0x1c8   : > { %v9021_v7 = vadd.f32 %v1560_v47, %v1370_v14  ;;  %v9025_v49 = vadd.f32 %v3446_v35, %v3224_v52  ;;  %v13927_v5 = vmax.f32 %v9010_v29, 0.0  ;;  %v13926_v26 = vmax.f32 %v9013_v48, 0.0  ;;  %v14640_v35 = vld [vmem:[#allocation41_spill] sm:$0xff] }
 0x1c9   : > { %14631 = vst [vmem:[#allocation16_spill] sm:$0xff] %v9032_v36  ;;  %v611_v2 = vmul.f32 %v8573_v61, %v14632_v44  ;;  %v14633_v14 = vrot.slane %v14618_v54, 1  ;;  %v14634_v52 = vrot.slane %v14560_v6, 1  ;;  %v14635_v25 = vmov %v14624_v55  ;;  %v750_v55 = vpop.permute.xlu0 %749  ;;  %v14646_v54 = vld [vmem:[#allocation42_spill] sm:$0xff] }
 0x1ca   : > { %14629 = vst [vmem:[#allocation20_spill] sm:$0xff] %v9021_v7  ;;  %14630 = vst [vmem:[#allocation15_spill] sm:$0xff] %v9025_v49  ;;  %v14636_v28 = vrot.slane %v14566_v20, 7  ;;  %v5670_v17 = vrot.slane %v13927_v5, 7  ;;  %v9051_v47 = vrot.slane %v13926_v26, 7  ;;  %v14638_v9 = vrot.slane %v14637_v11, 6 }
 0x1cb   : > { %v1220_v63 = vsel %vm1203_vm2, %v14634_v52, %v14633_v14  ;;  %v14639_v45 = vrot.slane %v14583_v51, 6  ;;  %v14641_v44 = vrot.slane %v14640_v35, 6  ;;  %v14645_v26 = vrot.slane %v14589_v41, 7  ;;  %v14652_v49 = vld [vmem:[#allocation17_spill] sm:$0xff] }
 0x1cc   : > { %v1558_v58 = vsel %vm1541_vm0, %v14636_v28, %v14635_v25  ;;  %v14642_v14 = vmov %v14638_v9  ;;  %v14643_v25 = vld [vmem:[#allocation14_spill] sm:$0xff]  ;;  %v14647_v6 = vrot.slane %v14646_v54, 7  ;;  %v5672_v11 = vsel %vm1541_vm0, %v5670_v17, %v9051_v47 }
 0x1cd   : > { %v2343_v20 = vsel %vm2334_vm1, %v14639_v45, %v14638_v9  ;;  %v2345_v52 = vsel %vm2334_vm1, %v14642_v14, %v14641_v44  ;;  %v14644_v28 = vrot.slane %v14643_v25, 7  ;;  %v990_v9 = vmul.f32 %v8579_v1, %v750_v55  ;;  %v14649_v45 = vld [vmem:[#allocation12_spill] sm:$0xff] }
 0x1ce   : > { %v1779_v41 = vmul.f32 %v8562_v4, %v750_v55  ;;  %v14650_v44 = vmax.f32 %v14649_v45, 0.0  ;;  %v3962_v25 = vmul.f32 %v8617_v53, %v750_v55  ;;  %v14651_v46 = vrot.slane %v14627_v42, 1  ;;  %v14657_v42 = vld [vmem:[#allocation19_spill] sm:$0xff] }
 0x1cf   : > { %v3011_v5 = vsel %vm1541_vm0, %v14645_v26, %v14644_v28  ;;  %v14648_v0 = vmov %v14644_v28  ;;  %v2570_v26 = vmul.f32 %v8686_v24, %v750_v55  ;;  %v2499_v28 = vadd.f32 %v2345_v52, %v8960_v34 }
 0x1d0   : > { %v3013_v51 = vsel %vm1541_vm0, %v14648_v0, %v14647_v6  ;;  %v5824_v14 = vmax.f32 %v14650_v44, %v5672_v11  ;;  %v2498_v0 = vadd.f32 %v2343_v20, %v8950_v27  ;;  %v3646_v6 = vmul.f32 %v8598_v60, %v750_v55  ;;  %v14654_v11 = vld [vmem:[#allocation10_spill] sm:$0xff] }
 0x1d1   : > { %v1043_v19 = vadd.f32 %v990_v9, %v611_v2  ;;  %v1892_v33 = vrot.slane %v1779_v41, 7  ;;  %v2681_v17 = vrot.slane %v2570_v26, 6  ;;  %v14653_v7 = vrot.slane %v14652_v49, 1 }
 0x1d2   : > { %5876 = vst.msk [vmem:[%s9078_s8] sm:$0xff] %vm5875_vm3, %v5824_v14  ;;  %v4440_v44 = vadd.f32 %v14654_v11, %v4334_v3  ;;  %v3223_v27 = vmul.f32 %v8573_v61, %v750_v55  ;;  %v3758_v20 = vrot.slane %v3646_v6, 1  ;;  %v14655_v38 = vrot.slane %v8814_v37, 7 }
 0x1d3   : > { %v3444_v45 = vsel %vm1203_vm2, %v14653_v7, %v14651_v46  ;;  %v1369_v36 = vadd.f32 %v1220_v63, %v1043_v19  ;;  %v14656_v2 = vrot.slane %v8984_v30, 7  ;;  %v4075_v9 = vrot.slane %v3962_v25, 7  ;;  %v14664_v25 = vld [vmem:[#allocation44_spill] sm:$0xff] }
 0x1d4   : > { %v1893_v34 = vsel %vm1541_vm0, %v14655_v38, %v1892_v33  ;;  %v14658_v41 = vrot.slane %v14657_v42, 7  ;;  %v14659_v49 = vrot.slane %v14599_v57, 7  ;;  %v14660_v46 = vrot.slane %v8817_v39, 6  ;;  %v14661_v38 = vld [vmem:[#allocation3_spill] sm:$0xff] }
 0x1d5   : > { %v1895_v52 = vsel %vm1541_vm0, %v1892_v33, %v14656_v2  ;;  %v2046_v3 = vadd.f32 %v1893_v34, %v8937_v12  ;;  %v4493_v37 = vmul.f32 %v8735_v23, %v750_v55  ;;  %v14662_v26 = vrot.slane %v8987_v32, 6 }
 0x1d6   : > { %v4926_v7 = vsel %vm1541_vm0, %v14659_v49, %v14658_v41  ;;  %v2682_v19 = vsel %vm2334_vm1, %v14660_v46, %v2681_v17  ;;  %v2047_v63 = vadd.f32 %v1895_v52, %v14661_v38  ;;  %v14663_v6 = vrot.slane %v8829_v10, 1  ;;  %v765_v52 = vpop.permute.xlu1 %764  ;;  %v14667_v46 = vld [vmem:[#allocation18_spill] sm:$0xff]  ;;  %v14670_v38 = vld [vmem:[#allocation4_spill] sm:$0xff] }
 0x1d7   : > { %v2684_v33 = vsel %vm2334_vm1, %v2681_v17, %v14662_v26  ;;  %v2837_v14 = vadd.f32 %v2682_v19, %v2498_v0  ;;  %v14665_v11 = vrot.slane %v14664_v25, 7  ;;  %v14666_v12 = vmov %v14658_v41 }
 0x1d8   : > { %v3759_v57 = vsel %vm1203_vm2, %v14663_v6, %v3758_v20  ;;  %v2838_v34 = vadd.f32 %v2684_v33, %v2499_v28  ;;  %v3593_v2 = vadd.f32 %v3444_v45, %v3223_v27  ;;  %v4388_v41 = vmul.f32 %v8640_v31, %v750_v55 }
 0x1d9   : > { %v4928_v39 = vsel %vm1541_vm0, %v14666_v12, %v14665_v11  ;;  %v9129_v49 = vadd.f32 %v1558_v58, %v1369_v36  ;;  %v9132_v17 = vadd.f32 %v14667_v46, %v2046_v3  ;;  %v14668_v10 = vrot.slane %v8992_v50, 1  ;;  %v14671_v36 = vld [vmem:[#allocation45_spill] sm:$0xff]  ;;  %v14672_v3 = vld [vmem:[#allocation50_spill] sm:$0xff] }
 0x1da   : > { %v14669_v19 = vrot.slane %v8832_v8, 7  ;;  %v3909_v26 = vadd.f32 %v3759_v57, %v14670_v38  ;;  %v4604_v45 = vrot.slane %v4493_v37, 6  ;;  %v5135_v27 = vmul.f32 %v8745_v16, %v750_v55  ;;  %v14679_v38 = vld [vmem:[#allocation55_spill] sm:$0xff] }
 0x1db   : > { %v3761_v0 = vsel %vm1203_vm2, %v3758_v20, %v14668_v10  ;;  %v2161_v58 = vadd.f32 %v14671_v36, %v2047_v63  ;;  %v3166_v33 = vadd.f32 %v3011_v5, %v2837_v14  ;;  %v614_v6 = vmul.f32 %v8573_v61, %v14672_v3 }
 0x1dc   : > { %v4076_v42 = vsel %vm1541_vm0, %v14669_v19, %v4075_v9  ;;  %v993_v11 = vmul.f32 %v8579_v1, %v765_v52  ;;  %v3167_v20 = vadd.f32 %v3013_v51, %v2838_v34  ;;  %v14673_v8 = vrot.slane %v9007_v22, 7  ;;  %v14676_v34 = vld [vmem:[#allocation24_spill] sm:$0xff] }
 0x1dd   : > { %v4229_v28 = vadd.f32 %v4076_v42, %v8976_v13  ;;  %v14674_v57 = vrot.slane %v8841_v21, 6  ;;  %v14675_v37 = vrot.slane %v9016_v56, 6  ;;  %v5246_v14 = vrot.slane %v5135_v27, 7  ;;  %v14677_v42 = vld [vmem:[#allocation46_spill] sm:$0xff] }
 0x1de   : > { %v4078_v12 = vsel %vm1541_vm0, %v4075_v9, %v14673_v8  ;;  %v1046_v46 = vadd.f32 %v993_v11, %v614_v6  ;;  %v9157_v10 = vadd.f32 %v3761_v0, %v3593_v2  ;;  %v14678_v9 = vrot.slane %v14677_v42, 1 }
 0x1df   : > { %v4605_v13 = vsel %vm2334_vm1, %v14674_v57, %v4604_v45  ;;  %v4607_v55 = vsel %vm2334_vm1, %v4604_v45, %v14675_v37  ;;  %v4230_v51 = vadd.f32 %v4078_v12, %v3909_v26  ;;  %v4335_v19 = vadd.f32 %v14676_v34, %v4229_v28  ;;  %v14685_v12 = vld [vmem:[#allocation47_spill] sm:$0xff] }
 0x1e0   : > { %v4760_v5 = vadd.f32 %v4605_v13, %v8994_v15  ;;  %v4761_v63 = vadd.f32 %v4607_v55, %v4440_v44  ;;  %v14680_v21 = vrot.slane %v14679_v38, 1  ;;  %v9166_v45 = vmul.f32 %v8562_v4, %v765_v52 }
 0x1e1   : > { %v9169_v15 = vmul.f32 %v8686_v24, %v765_v52  ;;  %v14681_v44 = vrot.slane %v8852_v62, 7  ;;  %v14682_v0 = vrot.slane %v9019_v18, 7  ;;  %v3226_v27 = vmul.f32 %v8573_v61, %v765_v52  ;;  %v14687_v62 = vld [vmem:[#allocation48_spill] sm:$0xff] }
 0x1e2   : > { %v1226_v36 = vsel %vm1203_vm2, %v14680_v21, %v14678_v9  ;;  %v5081_v3 = vadd.f32 %v4926_v7, %v4760_v5  ;;  %v5082_v8 = vadd.f32 %v4928_v39, %v4761_v63  ;;  %v14683_v39 = vld [vmem:[#allocation74_spill] sm:$0xff]  ;;  %v14686_v57 = vrot.slane %v14685_v12, 7  ;;  %v14688_v9 = vld [vmem:[#allocation52_spill] sm:$0xff] }
 0x1e3   : > { %v5247_v2 = vsel %vm1541_vm0, %v14681_v44, %v5246_v14  ;;  %v5249_v26 = vsel %vm1541_vm0, %v5246_v14, %v14682_v0  ;;  %v1372_v28 = vadd.f32 %v1226_v36, %v1046_v46  ;;  %v14684_v11 = vrot.slane %v14683_v39, 7  ;;  %v14690_v36 = vld [vmem:[#allocation61_spill] sm:$0xff] }
 0x1e4   : > { %v5402_v6 = vadd.f32 %v5247_v2, %v5081_v3  ;;  %v5403_v7 = vadd.f32 %v5249_v26, %v5082_v8  ;;  %v9184_v37 = vmul.f32 %v8598_v60, %v765_v52  ;;  %v4336_v55 = vadd.f32 %v14687_v62, %v4230_v51  ;;  %v9228_v62 = vpop.permute.xlu0 %759 }
 0x1e5   : > { %v1564_v13 = vsel %vm1541_vm0, %v14686_v57, %v14684_v11  ;;  %v9187_v5 = vadd.f32 %v4388_v41, %v4335_v19  ;;  %v9190_v63 = vmul.f32 %v8617_v53, %v765_v52  ;;  %v9193_v14 = vmul.f32 %v8735_v23, %v765_v52  ;;  %v14706_v19 = vld [vmem:[#allocation33_spill] sm:$0xff] }
 0x1e6   : > { %v5455_v46 = vmax.f32 %v3166_v33, %v5402_v6  ;;  %v5456_v34 = vmax.f32 %v3167_v20, %v5403_v7  ;;  %v14689_v21 = vrot.slane %v14688_v9, 1  ;;  %v14691_v3 = vrot.slane %v14690_v36, 1  ;;  %v14695_v7 = vld [vmem:[#allocation21_spill] sm:$0xff] }
 0x1e7   : > { %v9201_v44 = vmul.f32 %v8745_v16, %v765_v52  ;;  %v9203_v51 = vadd.f32 %v1564_v13, %v1372_v28  ;;  %v9217_v26 = vmul.f32 %v8640_v31, %v765_v52  ;;  %v613_v11 = vmul.f32 %v8573_v61, %v14695_v7 }
 0x1e8   : > { %v3450_v8 = vsel %vm1203_vm2, %v14691_v3, %v14689_v21  ;;  %v9210_v33 = vadd.f32 %v8823_v59, %v5455_v46  ;;  %v9213_v20 = vadd.f32 %v8823_v59, %v5456_v34  ;;  %v14697_v57 = vrot.slane %v14616_v40, 1  ;;  %v14698_v21 = vld [vmem:[#allocation31_spill] sm:$0xff] }
 0x1e9   : > { %14692 = vst [vmem:[#allocation39_spill] sm:$0xff] %v9203_v51  ;;  %v9207_v2 = vadd.f32 %v3450_v8, %v3226_v27  ;;  %14694 = vst [vmem:[#allocation25_spill] sm:$0xff] %v9217_v26  ;;  %v14696_v27 = vrot.slane %v14679_v38, 1  ;;  %v14699_v3 = vrot.slane %v14698_v21, 6  ;;  %v14700_v8 = vrot.slane %v14640_v35, 6 }
 0x1ea   : > { %v13929_v46 = vmax.f32 %v9210_v33, 0.0  ;;  %v13928_v52 = vmax.f32 %v9213_v20, 0.0  ;;  %v14701_v38 = vrot.slane %v14685_v12, 7  ;;  %v14702_v40 = vrot.slane %v14621_v43, 7 }
 0x1eb   : > { %14693 = vst [vmem:[#allocation11_spill] sm:$0xff] %v9207_v2  ;;  %v1224_v13 = vsel %vm1203_vm2, %v14697_v57, %v14696_v27  ;;  %v2347_v7 = vsel %vm2334_vm1, %v14700_v8, %v14699_v3  ;;  %v14703_v57 = vld [vmem:[#allocation59_spill] sm:$0xff]  ;;  %v14705_v28 = vmov %v14699_v3  ;;  %v14707_v41 = vrot.slane %v14706_v19, 7 }
 0x1ec   : > { %v1562_v27 = vsel %vm1541_vm0, %v14702_v40, %v14701_v38  ;;  %v14704_v6 = vrot.slane %v14703_v57, 6  ;;  %v2500_v34 = vadd.f32 %v2347_v7, %v9132_v17  ;;  %v14708_v35 = vrot.slane %v14646_v54, 7 }
 0x1ed   : > { %v5673_v12 = vrot.slane %v13929_v46, 7  ;;  %v9258_v43 = vrot.slane %v13928_v52, 7  ;;  %v992_v21 = vmul.f32 %v8579_v1, %v9228_v62  ;;  %v2572_v54 = vmul.f32 %v8686_v24, %v9228_v62 }
 0x1ee   : > { %v2349_v0 = vsel %vm2334_vm1, %v14705_v28, %v14704_v6  ;;  %v3015_v3 = vsel %vm1541_vm0, %v14708_v35, %v14707_v41  ;;  %v1781_v28 = vmul.f32 %v8562_v4, %v9228_v62  ;;  %v3225_v41 = vmul.f32 %v8573_v61, %v9228_v62 }
 0x1ef   : > { %v2501_v17 = vadd.f32 %v2349_v0, %v2161_v58  ;;  %v3648_v6 = vmul.f32 %v8598_v60, %v9228_v62  ;;  %v5674_v8 = vsel %vm1541_vm0, %v9051_v47, %v5673_v12  ;;  %v5676_v7 = vsel %vm1541_vm0, %v5673_v12, %v9258_v43 }
 0x1f0   : > { %v1045_v38 = vadd.f32 %v992_v21, %v613_v11  ;;  %v1896_v40 = vrot.slane %v1781_v28, 7  ;;  %v14709_v58 = vmax.f32 %v9010_v29, 0.0  ;;  %v14710_v35 = vmax.f32 %v9013_v48, 0.0  ;;  %v14713_v29 = vld [vmem:[#allocation60_spill] sm:$0xff] }
 0x1f1   : > { %v2685_v46 = vrot.slane %v2572_v54, 6  ;;  %v3964_v2 = vmul.f32 %v8617_v53, %v9228_v62  ;;  %v14711_v26 = vrot.slane %v8984_v30, 7  ;;  %v14712_v9 = vrot.slane %v9166_v45, 7  ;;  %v14717_v30 = vld [vmem:[#allocation34_spill] sm:$0xff] }
 0x1f2   : > { %v5825_v0 = vmax.f32 %v14709_v58, %v5674_v8  ;;  %v5826_v52 = vmax.f32 %v14710_v35, %v5676_v7  ;;  %v1371_v51 = vadd.f32 %v1224_v13, %v1045_v38  ;;  %v3762_v12 = vrot.slane %v3648_v6, 1  ;;  %v14719_v8 = vld [vmem:[#allocation16_spill] sm:$0xff]  ;;  %v14723_v58 = vld [vmem:[#allocation62_spill] sm:$0xff] }
 0x1f3   : > { %v1897_v47 = vsel %vm1541_vm0, %v14711_v26, %v1896_v40  ;;  %v1899_v11 = vsel %vm1541_vm0, %v1896_v40, %v14712_v9  ;;  %v14714_v48 = vrot.slane %v14713_v29, 7  ;;  %v14715_v21 = vrot.slane %v14706_v19, 7  ;;  %v14720_v6 = vld [vmem:[#allocation36_spill] sm:$0xff] }
 0x1f4   : > { %5877 = vst.msk [vmem:[%s9078_s8 + $0x8] sm:$0xff] %vm5875_vm3, %v5825_v0  ;;  %5878 = vst.msk [vmem:[%s9078_s8 + $0x10] sm:$0xff] %vm5875_vm3, %v5826_v52  ;;  %v14716_v13 = vrot.slane %v14690_v36, 1  ;;  %v14718_v54 = vrot.slane %v14717_v30, 1  ;;  %v4442_v7 = vadd.f32 %v14719_v8, %v4336_v55  ;;  %v2048_v9 = vadd.f32 %v1897_v47, %v9129_v49  ;;  %v14727_v55 = vld [vmem:[#allocation20_spill] sm:$0xff] }
 0x1f5   : > { %v3017_v28 = vsel %vm1541_vm0, %v14715_v21, %v14714_v48  ;;  %v14721_v38 = vrot.slane %v14720_v6, 7  ;;  %v14722_v52 = vrot.slane %v14664_v25, 7  ;;  %v14724_v19 = vrot.slane %v14723_v58, 7  ;;  %v775_v6 = vpop.permute.xlu1 %774 }
 0x1f6   : > { %v3448_v26 = vsel %vm1203_vm2, %v14718_v54, %v14716_v13  ;;  %v14726_v48 = vrot.slane %v8992_v50, 1  ;;  %v2049_v13 = vadd.f32 %v1899_v11, %v14727_v55  ;;  %v14728_v49 = vrot.slane %v8987_v32, 6  ;;  %v14730_v54 = vld [vmem:[#allocation15_spill] sm:$0xff] }
 0x1f7   : > { %v4930_v40 = vsel %vm1541_vm0, %v14722_v52, %v14721_v38  ;;  %v14725_v0 = vmov %v14721_v38  ;;  %v3595_v35 = vadd.f32 %v3448_v26, %v3225_v41  ;;  %v14729_v25 = vrot.slane %v9169_v15, 6  ;;  %v14731_v52 = vld [vmem:[#allocation35_spill] sm:$0xff] }
 0x1f8   : > { %v4932_v36 = vsel %vm1541_vm0, %v14725_v0, %v14724_v19  ;;  %v3763_v21 = vsel %vm1203_vm2, %v14726_v48, %v3762_v12  ;;  %v2686_v47 = vsel %vm2334_vm1, %v14728_v49, %v2685_v46  ;;  %v9323_v38 = vadd.f32 %v1562_v27, %v1371_v51  ;;  %v14735_v27 = vld [vmem:[#allocation68_spill] sm:$0xff] }
 0x1f9   : > { %v2688_v30 = vsel %vm2334_vm1, %v2685_v46, %v14729_v25  ;;  %v3911_v8 = vadd.f32 %v3763_v21, %v14730_v54  ;;  %v2839_v41 = vadd.f32 %v2686_v47, %v2500_v34  ;;  %v4079_v50 = vrot.slane %v3964_v2, 7 }
 0x1fa   : > { %v2840_v26 = vadd.f32 %v2688_v30, %v2501_v17  ;;  %v9326_v19 = vadd.f32 %v14731_v52, %v2048_v9  ;;  %v14732_v11 = vrot.slane %v9184_v37, 1  ;;  %v4495_v0 = vmul.f32 %v8735_v23, %v9228_v62 }
 0x1fb   : > { %v5137_v46 = vmul.f32 %v8745_v16, %v9228_v62  ;;  %v14733_v48 = vrot.slane %v9007_v22, 7  ;;  %v14734_v34 = vrot.slane %v9190_v63, 7  ;;  %v616_v17 = vmul.f32 %v8573_v61, %v14735_v27 }
 0x1fc   : > { %v3765_v32 = vsel %vm1203_vm2, %v3762_v12, %v14732_v11  ;;  %v995_v9 = vmul.f32 %v8579_v1, %v775_v6  ;;  %v14736_v12 = vld [vmem:[#allocation63_spill] sm:$0xff]  ;;  %v4608_v47 = vrot.slane %v4495_v0, 6  ;;  %v3168_v25 = vadd.f32 %v3015_v3, %v2839_v41  ;;  %v14740_v41 = vld [vmem:[#allocation64_spill] sm:$0xff] }
 0x1fd   : > { %v4080_v51 = vsel %vm1541_vm0, %v14733_v48, %v4079_v50  ;;  %v4082_v2 = vsel %vm1541_vm0, %v4079_v50, %v14734_v34  ;;  %v2163_v21 = vadd.f32 %v14736_v12, %v2049_v13  ;;  %v3169_v30 = vadd.f32 %v3017_v28, %v2840_v26 }
 0x1fe   : > { %v4231_v55 = vadd.f32 %v4080_v51, %v9157_v10  ;;  %v4232_v49 = vadd.f32 %v4082_v2, %v3911_v8  ;;  %v5250_v22 = vrot.slane %v5137_v46, 7  ;;  %v1048_v54 = vadd.f32 %v995_v9, %v616_v17  ;;  %v14739_v10 = vld [vmem:[#allocation37_spill] sm:$0xff] }
 0x1ff   : > { %v9346_v52 = vadd.f32 %v3765_v32, %v3595_v35  ;;  %v4390_v50 = vmul.f32 %v8640_v31, %v9228_v62  ;;  %v14737_v11 = vrot.slane %v9016_v56, 6  ;;  %v14738_v34 = vrot.slane %v9193_v14, 6  ;;  %v14742_v35 = vld [vmem:[#allocation73_spill] sm:$0xff]  ;;  %v14744_v62 = vld [vmem:[#allocation66_spill] sm:$0xff]  ;;  %v14745_v56 = vld [vmem:[#allocation92_spill] sm:$0xff] }
 0x200   : > { %v4337_v8 = vadd.f32 %v14739_v10, %v4231_v55  ;;  %v14741_v26 = vrot.slane %v14740_v41, 1  ;;  %v14743_v32 = vrot.slane %v14742_v35, 1  ;;  %v9364_v46 = vadd.f32 %v14744_v62, %v4232_v49  ;;  %v14747_v2 = vld [vmem:[#allocation65_spill] sm:$0xff] }
 0x201   : > { %v4609_v48 = vsel %vm2334_vm1, %v14737_v11, %v4608_v47  ;;  %v4611_v13 = vsel %vm2334_vm1, %v4608_v47, %v14738_v34  ;;  %v14746_v51 = vrot.slane %v14745_v56, 7  ;;  %v14748_v27 = vrot.slane %v14747_v2, 7 }
 0x202   : > { %v4762_v3 = vadd.f32 %v4609_v48, %v9187_v5  ;;  %v4763_v28 = vadd.f32 %v4611_v13, %v4442_v7  ;;  %v1230_v0 = vsel %vm1203_vm2, %v14743_v32, %v14741_v26  ;;  %v9372_v9 = vmul.f32 %v8562_v4, %v775_v6  ;;  %v14753_v32 = vld [vmem:[#allocation79_spill] sm:$0xff] }
 0x203   : > { %v1568_v17 = vsel %vm1541_vm0, %v14748_v27, %v14746_v51  ;;  %v9375_v5 = vmul.f32 %v8686_v24, %v775_v6  ;;  %v14749_v55 = vrot.slane %v9019_v18, 7  ;;  %v1374_v49 = vadd.f32 %v1230_v0, %v1048_v54 }
 0x204   : > { %v5083_v7 = vadd.f32 %v4930_v40, %v4762_v3  ;;  %v5084_v12 = vadd.f32 %v4932_v36, %v4763_v28  ;;  %v14750_v11 = vrot.slane %v9201_v44, 7  ;;  %v3228_v34 = vmul.f32 %v8573_v61, %v775_v6 }
 0x205   : > { %v5251_v47 = vsel %vm1541_vm0, %v14749_v55, %v5250_v22  ;;  %v9385_v13 = vmul.f32 %v8598_v60, %v775_v6  ;;  %v9388_v10 = vmul.f32 %v8617_v53, %v775_v6  ;;  %v9390_v26 = vadd.f32 %v4390_v50, %v4337_v8 }
 0x206   : > { %v5253_v48 = vsel %vm1541_vm0, %v5250_v22, %v14750_v11  ;;  %v5404_v40 = vadd.f32 %v5251_v47, %v5083_v7  ;;  %v9393_v18 = vmul.f32 %v8735_v23, %v775_v6  ;;  %v14751_v22 = vld [vmem:[#allocation70_spill] sm:$0xff]  ;;  %v14754_v0 = vrot.slane %v14753_v32, 1  ;;  %v14756_v11 = vld [vmem:[#allocation40_spill] sm:$0xff] }
 0x207   : > { %v5405_v36 = vadd.f32 %v5253_v48, %v5084_v12  ;;  %v14752_v28 = vrot.slane %v14751_v22, 1  ;;  %v9403_v51 = vmul.f32 %v8745_v16, %v775_v6  ;;  %v9405_v27 = vadd.f32 %v1568_v17, %v1374_v49 }
 0x208   : > { %v5457_v50 = vmax.f32 %v3168_v25, %v5404_v40  ;;  %v9408_v7 = vmul.f32 %v8640_v31, %v775_v6  ;;  %v615_v48 = vmul.f32 %v8573_v61, %v14756_v11  ;;  %v14757_v6 = vrot.slane %v14742_v35, 1 }
 0x209   : > { %v3454_v62 = vsel %vm1203_vm2, %v14754_v0, %v14752_v28  ;;  %v5458_v8 = vmax.f32 %v3169_v30, %v5405_v36  ;;  %v14758_v17 = vrot.slane %v14677_v42, 1  ;;  %v14759_v36 = vrot.slane %v14747_v2, 7  ;;  %v14764_v30 = vld [vmem:[#allocation77_spill] sm:$0xff] }
 0x20a   : > { %v9410_v12 = vadd.f32 %v3454_v62, %v3228_v34  ;;  %v9417_v28 = vadd.f32 %v8823_v59, %v5457_v50  ;;  %v9428_v34 = vpop.permute.xlu0 %769  ;;  %v14760_v0 = vrot.slane %v14683_v39, 7  ;;  %v14761_v50 = vld [vmem:[#allocation49_spill] sm:$0xff]  ;;  %v14763_v11 = vrot.slane %v14703_v57, 6 }
 0x20b   : > { %v9420_v25 = vadd.f32 %v8823_v59, %v5458_v8  ;;  %v1228_v49 = vsel %vm1203_vm2, %v14758_v17, %v14757_v6  ;;  %v14762_v8 = vrot.slane %v14761_v50, 6  ;;  %v14765_v42 = vrot.slane %v14764_v30, 6 }
 0x20c   : > { %14755 = vst [vmem:[#allocation2_spill] sm:$0xff] %v9410_v12  ;;  %v1566_v62 = vsel %vm1541_vm0, %v14760_v0, %v14759_v36  ;;  %v13931_v40 = vmax.f32 %v9417_v28, 0.0  ;;  %v14767_v36 = vld [vmem:[#allocation51_spill] sm:$0xff]  ;;  %v14769_v55 = vrot.slane %v14713_v29, 7  ;;  %v1783_v50 = vmul.f32 %v8562_v4, %v9428_v34 }
 0x20d   : > { %v2351_v35 = vsel %vm2334_vm1, %v14763_v11, %v14762_v8  ;;  %v14766_v6 = vmov %v14762_v8  ;;  %v13930_v2 = vmax.f32 %v9420_v25, 0.0  ;;  %v14768_v0 = vrot.slane %v14767_v36, 7 }
 0x20e   : > { %v2353_v17 = vsel %vm2334_vm1, %v14766_v6, %v14765_v42  ;;  %v2502_v39 = vadd.f32 %v2351_v35, %v9326_v19  ;;  %v994_v8 = vmul.f32 %v8579_v1, %v9428_v34  ;;  %v2574_v11 = vmul.f32 %v8686_v24, %v9428_v34  ;;  %v14770_v1 = vld [vmem:[#allocation78_spill] sm:$0xff] }
 0x20f   : > { %v2503_v47 = vadd.f32 %v2353_v17, %v2163_v21  ;;  %v3019_v57 = vsel %vm1541_vm0, %v14769_v55, %v14768_v0  ;;  %v5677_v42 = vrot.slane %v13931_v40, 7  ;;  %v9464_v19 = vrot.slane %v13930_v2, 7 }
 0x210   : > { %v3650_v29 = vmul.f32 %v8598_v60, %v9428_v34  ;;  %v3966_v21 = vmul.f32 %v8617_v53, %v9428_v34  ;;  %v14771_v55 = vrot.slane %v14770_v1, 7  ;;  %v14772_v4 = vmov %v14768_v0 }
 0x211   : > { %v1047_v6 = vadd.f32 %v994_v8, %v615_v48  ;;  %v1900_v17 = vrot.slane %v1783_v50, 7  ;;  %v2689_v0 = vrot.slane %v2574_v11, 6  ;;  %v5678_v2 = vsel %vm1541_vm0, %v9258_v43, %v5677_v42  ;;  %v14777_v50 = vld [vmem:[#allocation52_spill] sm:$0xff] }
 0x212   : > { %v3021_v35 = vsel %vm1541_vm0, %v14772_v4, %v14771_v55  ;;  %v5680_v60 = vsel %vm1541_vm0, %v5677_v42, %v9464_v19  ;;  %v3766_v40 = vrot.slane %v3650_v29, 1  ;;  %v4083_v3 = vrot.slane %v3966_v21, 7  ;;  %v14781_v21 = vld [vmem:[#allocation54_spill] sm:$0xff] }
 0x213   : > { %v14773_v53 = vmax.f32 %v9210_v33, 0.0  ;;  %v14774_v36 = vmax.f32 %v9213_v20, 0.0  ;;  %v14775_v55 = vrot.slane %v9166_v45, 7  ;;  %v3227_v8 = vmul.f32 %v8573_v61, %v9428_v34  ;;  %v14780_v45 = vld [vmem:[#allocation25_spill] sm:$0xff] }
 0x214   : > { %v14776_v43 = vrot.slane %v14753_v32, 1  ;;  %v14778_v11 = vrot.slane %v14777_v50, 1  ;;  %v1373_v29 = vadd.f32 %v1228_v49, %v1047_v6  ;;  %v14779_v33 = vrot.slane %v9372_v9, 7  ;;  %v14784_v49 = vld [vmem:[#allocation80_spill] sm:$0xff] }
 0x215   : > { %v5827_v54 = vmax.f32 %v14773_v53, %v5678_v2  ;;  %v5828_v12 = vmax.f32 %v14774_v36, %v5680_v60  ;;  %v1901_v48 = vsel %vm1541_vm0, %v14775_v55, %v1900_v17  ;;  %v4444_v61 = vadd.f32 %v14780_v45, %v9364_v46 }
 0x216   : > { %v3452_v42 = vsel %vm1203_vm2, %v14778_v11, %v14776_v43  ;;  %v1903_v2 = vsel %vm1541_vm0, %v1900_v17, %v14779_v33  ;;  %v2050_v20 = vadd.f32 %v1901_v48, %v9323_v38  ;;  %v14782_v32 = vrot.slane %v14781_v21, 7  ;;  %v14787_v38 = vld [vmem:[#allocation39_spill] sm:$0xff] }
 0x217   : > { %5879 = vst.msk [vmem:[%s9078_s8 + $0x18] sm:$0xff] %vm5875_vm3, %v5827_v54  ;;  %5880 = vst.msk [vmem:[%s9078_s8 + $0x20] sm:$0xff] %vm5875_vm3, %v5828_v12  ;;  %v14783_v4 = vrot.slane %v14723_v58, 7  ;;  %v14785_v6 = vrot.slane %v14784_v49, 7  ;;  %v2051_v36 = vadd.f32 %v1903_v2, %v14787_v38  ;;  %v14788_v54 = vrot.slane %v9169_v15, 6  ;;  %v14792_v2 = vld [vmem:[#allocation11_spill] sm:$0xff]  ;;  %v785_v15 = vpop.permute.xlu1 %784 }
 0x218   : > { %v14786_v53 = vmov %v14782_v32  ;;  %v14789_v46 = vrot.slane %v9375_v5, 6  ;;  %v14790_v58 = vrot.slane %v9184_v37, 1  ;;  %v14791_v43 = vrot.slane %v9190_v63, 7  ;;  %v14795_v63 = vld [vmem:[#allocation81_spill] sm:$0xff] }
 0x219   : > { %v4934_v60 = vsel %vm1541_vm0, %v14783_v4, %v14782_v32  ;;  %v4936_v17 = vsel %vm1541_vm0, %v14786_v53, %v14785_v6  ;;  %v2690_v12 = vsel %vm2334_vm1, %v14788_v54, %v2689_v0  ;;  %v3597_v45 = vadd.f32 %v3452_v42, %v3227_v8  ;;  %v14793_v4 = vld [vmem:[#allocation53_spill] sm:$0xff] }
 0x21a   : > { %v2692_v55 = vsel %vm2334_vm1, %v2689_v0, %v14789_v46  ;;  %v3767_v48 = vsel %vm1203_vm2, %v14790_v58, %v3766_v40  ;;  %v4084_v50 = vsel %vm1541_vm0, %v14791_v43, %v4083_v3  ;;  %v2841_v11 = vadd.f32 %v2690_v12, %v2502_v39 }
 0x21b   : > { %v2842_v33 = vadd.f32 %v2692_v55, %v2503_v47  ;;  %v3913_v21 = vadd.f32 %v3767_v48, %v14792_v2  ;;  %v9527_v32 = vadd.f32 %v1566_v62, %v1373_v29  ;;  %v9530_v6 = vadd.f32 %v14793_v4, %v2050_v20  ;;  %v14797_v29 = vld [vmem:[#allocation58_spill] sm:$0xff] }
 0x21c   : > { %v14794_v0 = vrot.slane %v9385_v13, 1  ;;  %v4233_v53 = vadd.f32 %v4084_v50, %v9346_v52  ;;  %v9537_v38 = vadd.f32 %v14795_v63, %v2051_v36  ;;  %v14796_v47 = vrot.slane %v9388_v10, 7  ;;  %v9550_v52 = vld [vmem:[%s13634_s2] ss:$0 sm:$0xff]  ;;  %v9567_v2 = vld [vmem:[%s13634_s2 + $0x4] ss:$0 sm:$0xff] }
 0x21d   : > { %v4497_v62 = vmul.f32 %v8735_v23, %v9428_v34  ;;  %v5139_v8 = vmul.f32 %v8745_v16, %v9428_v34  ;;  %v3170_v12 = vadd.f32 %v3019_v57, %v2841_v11  ;;  %v3171_v46 = vadd.f32 %v3021_v35, %v2842_v33  ;;  %v14801_v33 = vld [vmem:[#allocation82_spill] sm:$0xff] }
 0x21e   : > { %v3769_v37 = vsel %vm1203_vm2, %v3766_v40, %v14794_v0  ;;  %v4086_v39 = vsel %vm1541_vm0, %v4083_v3, %v14796_v47  ;;  %v4339_v20 = vadd.f32 %v14797_v29, %v4233_v53  ;;  %v14798_v40 = vld [vmem:[#allocation86_spill] sm:$0xff]  ;;  %v4392_v48 = vmul.f32 %v8640_v31, %v9428_v34  ;;  %v14803_v34 = vld [vmem:[#allocation91_spill] sm:$0xff]  ;;  %v14805_v53 = vld [vmem:[#allocation84_spill] sm:$0xff] }
 0x21f   : > { %v4234_v42 = vadd.f32 %v4086_v39, %v3913_v21  ;;  %v618_v36 = vmul.f32 %v9550_v52, %v14798_v40  ;;  %v9557_v3 = vld [vmem:[%s13634_s2 + $0x1] ss:$0 sm:$0xff]  ;;  %v9560_v55 = vadd.f32 %v3769_v37, %v3597_v45  ;;  %v4612_v58 = vrot.slane %v4497_v62, 6  ;;  %v9596_v29 = vld [vmem:[%s13634_s2 + $0x2] ss:$0 sm:$0xff] }
 0x220   : > { %v997_v54 = vmul.f32 %v9557_v3, %v785_v15  ;;  %v5254_v43 = vrot.slane %v5139_v8, 7  ;;  %v9570_v21 = vmul.f32 %v9567_v2, %v785_v15  ;;  %v14799_v4 = vrot.slane %v9193_v14, 6 }
 0x221   : > { %v14800_v35 = vrot.slane %v9393_v18, 6  ;;  %v14802_v31 = vrot.slane %v14801_v33, 1  ;;  %v14804_v45 = vrot.slane %v14803_v34, 1  ;;  %v9584_v37 = vmul.f32 %v8686_v24, %v785_v15  ;;  %v9604_v24 = vld [vmem:[%s13634_s2 + $0x3] ss:$0 sm:$0xff] }
 0x222   : > { %v1050_v50 = vadd.f32 %v997_v54, %v618_v36  ;;  %v4613_v57 = vsel %vm2334_vm1, %v14799_v4, %v4612_v58  ;;  %v9587_v63 = vadd.f32 %v14805_v53, %v4234_v42  ;;  %v9589_v47 = vadd.f32 %v4392_v48, %v4339_v20 }
 0x223   : > { %v4615_v11 = vsel %vm2334_vm1, %v4612_v58, %v14800_v35  ;;  %v1234_v0 = vsel %vm1203_vm2, %v14804_v45, %v14802_v31  ;;  %v4764_v14 = vadd.f32 %v4613_v57, %v9390_v26  ;;  %v3230_v8 = vmul.f32 %v9550_v52, %v785_v15  ;;  %v14808_v35 = vld [vmem:[#allocation88_spill] sm:$0xff] }
 0x224   : > { %v4765_v39 = vadd.f32 %v4615_v11, %v4444_v61  ;;  %v1376_v62 = vadd.f32 %v1234_v0, %v1050_v50  ;;  %v9599_v40 = vmul.f32 %v9596_v29, %v785_v15  ;;  %v9607_v42 = vmul.f32 %v9604_v24, %v785_v15  ;;  %v14810_v11 = vld [vmem:[#allocation96_spill] sm:$0xff] }
 0x225   : > { %v5085_v26 = vadd.f32 %v4934_v60, %v4764_v14  ;;  %v14806_v20 = vrot.slane %v9201_v44, 7  ;;  %v14807_v58 = vrot.slane %v9403_v51, 7  ;;  %v9618_v4 = vmul.f32 %v8735_v23, %v785_v15  ;;  %v14813_v23 = vld [vmem:[#allocation116_spill] sm:$0xff] }
 0x226   : > { %v5086_v61 = vadd.f32 %v4936_v17, %v4765_v39  ;;  %v9621_v57 = vmul.f32 %v8745_v16, %v785_v15  ;;  %v14809_v44 = vrot.slane %v14808_v35, 1  ;;  %v14811_v31 = vrot.slane %v14810_v11, 1 }
 0x227   : > { %v5255_v36 = vsel %vm1541_vm0, %v14806_v20, %v5254_v43  ;;  %v5257_v48 = vsel %vm1541_vm0, %v5254_v43, %v14807_v58  ;;  %v9631_v43 = vld [vmem:[%s13634_s2 + $0x5] ss:$0 sm:$0xff]  ;;  %v9637_v53 = vadd.f32 %v14813_v23, %v1376_v62  ;;  %v14816_v20 = vld [vmem:[#allocation57_spill] sm:$0xff]  ;;  %v14817_v58 = vrot.slane %v14803_v34, 1 }
 0x228   : > { %v5406_v60 = vadd.f32 %v5255_v36, %v5085_v26  ;;  %v5407_v17 = vadd.f32 %v5257_v48, %v5086_v61  ;;  %v3458_v45 = vsel %vm1203_vm2, %v14811_v31, %v14809_v44  ;;  %v9634_v0 = vmul.f32 %v9631_v43, %v785_v15  ;;  %v9650_v44 = vpop.permute.xlu0 %779  ;;  %v14819_v31 = vld [vmem:[#allocation83_spill] sm:$0xff] }
 0x229   : > { %14814 = vst [vmem:[#allocation5_spill] sm:$0xff] %v9637_v53  ;;  %v9639_v16 = vadd.f32 %v3458_v45, %v3230_v8  ;;  %v617_v36 = vmul.f32 %v9550_v52, %v14816_v20  ;;  %v14818_v48 = vrot.slane %v14740_v41, 1  ;;  %v14820_v45 = vrot.slane %v14819_v31, 7 }
 0x22a   : > { %14812 = vst [vmem:[#allocation22_spill] sm:$0xff] %v9634_v0  ;;  %v5459_v26 = vmax.f32 %v3170_v12, %v5406_v60  ;;  %v5460_v61 = vmax.f32 %v3171_v46, %v5407_v17  ;;  %v14821_v12 = vrot.slane %v14745_v56, 7  ;;  %v14822_v60 = vld [vmem:[#allocation67_spill] sm:$0xff]  ;;  %v14824_v34 = vrot.slane %v14764_v30, 6 }
 0x22b   : > { %14815 = vst [vmem:[#allocation23_spill] sm:$0xff] %v9639_v16  ;;  %v1232_v15 = vsel %vm1203_vm2, %v14818_v48, %v14817_v58  ;;  %v14823_v17 = vrot.slane %v14822_v60, 6  ;;  %v14825_v58 = vld [vmem:[#allocation94_spill] sm:$0xff]  ;;  %v996_v30 = vmul.f32 %v9557_v3, %v9650_v44  ;;  %v14834_v39 = vrot.slane %v14810_v11, 1  ;;  %v14844_v0 = vld [vmem:[#allocation99_spill] sm:$0xff] }
 0x22c   : > { %v1570_v46 = vsel %vm1541_vm0, %v14821_v12, %v14820_v45  ;;  %v9665_v23 = vadd.f32 %v8823_v59, %v5459_v26  ;;  %v9668_v20 = vadd.f32 %v8823_v59, %v5460_v61  ;;  %v14826_v48 = vrot.slane %v14825_v58, 6  ;;  %v9684_v59 = vld [vmem:[%s13634_s2 + $0x7] ss:$0 sm:$0xff] }
 0x22d   : > { %v2355_v41 = vsel %vm2334_vm1, %v14824_v34, %v14823_v17  ;;  %v14827_v31 = vmov %v14823_v17  ;;  %v1785_v26 = vmul.f32 %v9567_v2, %v9650_v44  ;;  %v2576_v61 = vmul.f32 %v9684_v59, %v9650_v44  ;;  %v14828_v17 = vld [vmem:[#allocation69_spill] sm:$0xff] }
 0x22e   : > { %v2357_v56 = vsel %vm2334_vm1, %v14827_v31, %v14826_v48  ;;  %v2504_v45 = vadd.f32 %v2355_v41, %v9530_v6  ;;  %v13932_v60 = vmax.f32 %v9665_v23, 0.0  ;;  %v14830_v34 = vrot.slane %v14770_v1, 7  ;;  %v14831_v31 = vld [vmem:[#allocation95_spill] sm:$0xff] }
 0x22f   : > { %v2505_v12 = vadd.f32 %v2357_v56, %v9537_v38  ;;  %v14829_v38 = vrot.slane %v14828_v17, 7  ;;  %v3652_v48 = vmul.f32 %v9596_v29, %v9650_v44  ;;  %v14832_v56 = vrot.slane %v14831_v31, 7 }
 0x230   : > { %v14835_v14 = vrot.slane %v14751_v22, 1  ;;  %v1049_v54 = vadd.f32 %v996_v30, %v617_v36  ;;  %v1904_v6 = vrot.slane %v1785_v26, 7  ;;  %v5681_v1 = vrot.slane %v13932_v60, 7 }
 0x231   : > { %v3023_v41 = vsel %vm1541_vm0, %v14830_v34, %v14829_v38  ;;  %v14833_v8 = vmov %v14829_v38  ;;  %v14836_v38 = vmax.f32 %v9668_v20, 0.0  ;;  %v2693_v16 = vrot.slane %v2576_v61, 6 }
 0x232   : > { %v3025_v62 = vsel %vm1541_vm0, %v14833_v8, %v14832_v56  ;;  %v3456_v50 = vsel %vm1203_vm2, %v14835_v14, %v14834_v39  ;;  %v3229_v17 = vmul.f32 %v9550_v52, %v9650_v44  ;;  %v14837_v8 = vrot.slane %v9372_v9, 7 }
 0x233   : > { %v9711_v34 = vrot.slane %v14836_v38, 7  ;;  %v14838_v22 = vrot.slane %v9570_v21, 7  ;;  %v3770_v39 = vrot.slane %v3652_v48, 1  ;;  %v3968_v36 = vmul.f32 %v9604_v24, %v9650_v44 }
 0x234   : > { %v1905_v11 = vsel %vm1541_vm0, %v14837_v8, %v1904_v6  ;;  %v5682_v30 = vsel %vm1541_vm0, %v9464_v19, %v5681_v1  ;;  %v1375_v61 = vadd.f32 %v1232_v15, %v1049_v54  ;;  %v14839_v56 = vmax.f32 %v9417_v28, 0.0 }
 0x235   : > { %v1907_v14 = vsel %vm1541_vm0, %v1904_v6, %v14838_v22  ;;  %v5684_v26 = vsel %vm1541_vm0, %v5681_v1, %v9711_v34  ;;  %v2052_v9 = vadd.f32 %v1905_v11, %v9527_v32  ;;  %v14840_v8 = vmax.f32 %v9420_v25, 0.0  ;;  %v14841_v22 = vld [vmem:[#allocation72_spill] sm:$0xff] }
 0x236   : > { %v5829_v38 = vmax.f32 %v14839_v56, %v5682_v30  ;;  %v4446_v48 = vadd.f32 %v9408_v7, %v9587_v63  ;;  %v14842_v60 = vrot.slane %v14841_v22, 7  ;;  %v14843_v53 = vrot.slane %v14784_v49, 7 }
 0x237   : > { %v5830_v6 = vmax.f32 %v14840_v8, %v5684_v26  ;;  %v14845_v1 = vrot.slane %v14844_v0, 7  ;;  %v2053_v28 = vadd.f32 %v1907_v14, %v9405_v27  ;;  %v14847_v25 = vrot.slane %v9375_v5, 6  ;;  %v795_v27 = vpop.permute.xlu1 %794  ;;  %v14850_v5 = vld [vmem:[#allocation71_spill] sm:$0xff] }
 0x238   : > { %v4938_v19 = vsel %vm1541_vm0, %v14843_v53, %v14842_v60  ;;  %v14846_v54 = vmov %v14842_v60  ;;  %v3599_v11 = vadd.f32 %v3456_v50, %v3229_v17  ;;  %5881 = vst.msk [vmem:[%s9078_s8 + $0x28] sm:$0xff] %vm5875_vm3, %v5829_v38  ;;  %v14848_v7 = vrot.slane %v9584_v37, 6  ;;  %v14851_v17 = vld [vmem:[#allocation2_spill] sm:$0xff] }
 0x239   : > { %v4940_v32 = vsel %vm1541_vm0, %v14846_v54, %v14845_v1  ;;  %v2694_v15 = vsel %vm2334_vm1, %v14847_v25, %v2693_v16  ;;  %5882 = vst.msk [vmem:[%s9078_s8 + $0x30] sm:$0xff] %vm5875_vm3, %v5830_v6  ;;  %v14849_v53 = vrot.slane %v9385_v13, 1  ;;  %v4087_v30 = vrot.slane %v3968_v36, 7  ;;  %v14854_v36 = vld [vmem:[#allocation97_spill] sm:$0xff]  ;;  %v14857_v1 = vld [vmem:[#allocation104_spill] sm:$0xff] }
 0x23a   : > { %v2696_v49 = vsel %vm2334_vm1, %v2693_v16, %v14848_v7  ;;  %v2843_v63 = vadd.f32 %v2694_v15, %v2504_v45  ;;  %v9758_v14 = vadd.f32 %v1570_v46, %v1375_v61  ;;  %v9761_v26 = vadd.f32 %v14850_v5, %v2052_v9  ;;  %v9773_v45 = vld [vmem:[%s13634_s2 + $0x6] ss:$0 sm:$0xff]  ;;  %v14855_v6 = vld [vmem:[#allocation101_spill] sm:$0xff] }
 0x23b   : > { %v3771_v60 = vsel %vm1203_vm2, %v14849_v53, %v3770_v39  ;;  %v2844_v50 = vadd.f32 %v2696_v49, %v2505_v12  ;;  %v14852_v38 = vrot.slane %v9599_v40, 1  ;;  %v14853_v16 = vrot.slane %v9388_v10, 7  ;;  %v9780_v12 = vld [vmem:[%s13634_s2 + $0x8] ss:$0 sm:$0xff] }
 0x23c   : > { %v3915_v56 = vadd.f32 %v3771_v60, %v14851_v17  ;;  %v4499_v46 = vmul.f32 %v9773_v45, %v9650_v44  ;;  %v2167_v10 = vadd.f32 %v14854_v36, %v2053_v28  ;;  %v999_v9 = vmul.f32 %v9557_v3, %v795_v27  ;;  %v14860_v17 = vld [vmem:[#allocation110_spill] sm:$0xff] }
 0x23d   : > { %v3773_v8 = vsel %vm1203_vm2, %v3770_v39, %v14852_v38  ;;  %v4088_v13 = vsel %vm1541_vm0, %v14853_v16, %v4087_v30  ;;  %v5141_v39 = vmul.f32 %v9780_v12, %v9650_v44  ;;  %v14856_v22 = vrot.slane %v14855_v6, 1 }
 0x23e   : > { %v4235_v61 = vadd.f32 %v4088_v13, %v9560_v55  ;;  %v14858_v54 = vrot.slane %v14857_v1, 1  ;;  %v3172_v15 = vadd.f32 %v3023_v41, %v2843_v63  ;;  %v14859_v7 = vrot.slane %v9607_v42, 7 }
 0x23f   : > { %v4394_v53 = vmul.f32 %v9631_v43, %v9650_v44  ;;  %v4616_v60 = vrot.slane %v4499_v46, 6  ;;  %v3173_v28 = vadd.f32 %v3025_v62, %v2844_v50  ;;  %v9797_v5 = vadd.f32 %v3773_v8, %v3599_v11  ;;  %v14863_v44 = vld [vmem:[#allocation76_spill] sm:$0xff]  ;;  %v14864_v8 = vld [vmem:[#allocation102_spill] sm:$0xff] }
 0x240   : > { %v1238_v25 = vsel %vm1203_vm2, %v14858_v54, %v14856_v22  ;;  %v4090_v49 = vsel %vm1541_vm0, %v4087_v30, %v14859_v7  ;;  %v1052_v38 = vadd.f32 %v999_v9, %v14860_v17  ;;  %v14861_v16 = vrot.slane %v9393_v18, 6  ;;  %v14866_v22 = vld [vmem:[#allocation108_spill] sm:$0xff] }
 0x241   : > { %v4236_v55 = vadd.f32 %v4090_v49, %v3915_v56  ;;  %v14862_v41 = vrot.slane %v9618_v4, 6  ;;  %v5258_v36 = vrot.slane %v5141_v39, 7  ;;  %v9807_v30 = vmul.f32 %v9567_v2, %v795_v27  ;;  %v14868_v49 = vld [vmem:[#allocation98_spill] sm:$0xff] }
 0x242   : > { %v4617_v13 = vsel %vm2334_vm1, %v14861_v16, %v4616_v60  ;;  %v4341_v46 = vadd.f32 %v14863_v44, %v4235_v61  ;;  %v1378_v50 = vadd.f32 %v1238_v25, %v1052_v38  ;;  %v9812_v56 = vmul.f32 %v9684_v59, %v795_v27 }
 0x243   : > { %v4619_v63 = vsel %vm2334_vm1, %v4616_v60, %v14862_v41  ;;  %v4766_v62 = vadd.f32 %v4617_v13, %v9589_v47  ;;  %v3232_v18 = vmul.f32 %v9550_v52, %v795_v27  ;;  %v14865_v9 = vrot.slane %v14864_v8, 1 }
 0x244   : > { %v4767_v11 = vadd.f32 %v4619_v63, %v4446_v48  ;;  %v14867_v54 = vrot.slane %v14866_v22, 1  ;;  %v9821_v7 = vmul.f32 %v9596_v29, %v795_v27  ;;  %v4342_v61 = vadd.f32 %v14868_v49, %v4236_v55  ;;  %v14869_v48 = vld [vmem:[#allocation121_spill] sm:$0xff] }
 0x245   : > { %v5087_v60 = vadd.f32 %v4938_v19, %v4766_v62  ;;  %v9825_v25 = vadd.f32 %v14869_v48, %v1378_v50  ;;  %v14870_v17 = vrot.slane %v9403_v51, 7  ;;  %v14871_v16 = vrot.slane %v9621_v57, 7  ;;  %v9849_v50 = vpop.permute.xlu0 %789 }
 0x246   : > { %v3462_v39 = vsel %vm1203_vm2, %v14867_v54, %v14865_v9  ;;  %v5088_v47 = vadd.f32 %v4940_v32, %v4767_v11  ;;  %v9834_v41 = vmul.f32 %v9604_v24, %v795_v27  ;;  %v9837_v63 = vmul.f32 %v9773_v45, %v795_v27 }
 0x247   : > { %v5259_v38 = vsel %vm1541_vm0, %v14870_v17, %v5258_v36  ;;  %v5261_v13 = vsel %vm1541_vm0, %v5258_v36, %v14871_v16  ;;  %v9839_v55 = vadd.f32 %v4394_v53, %v4341_v46  ;;  %v9842_v44 = vmul.f32 %v9780_v12, %v795_v27  ;;  %v14873_v46 = vld [vmem:[#allocation75_spill] sm:$0xff]  ;;  %v14876_v17 = vld [vmem:[#allocation85_spill] sm:$0xff] }
 0x248   : > { %v5408_v19 = vadd.f32 %v5259_v38, %v5087_v60  ;;  %v5409_v32 = vadd.f32 %v5261_v13, %v5088_v47  ;;  %v9846_v11 = vadd.f32 %v3462_v39, %v3232_v18  ;;  %v9852_v53 = vmul.f32 %v9631_v43, %v795_v27 }
 0x249   : > { %v619_v49 = vmul.f32 %v9550_v52, %v14873_v46  ;;  %v14874_v48 = vrot.slane %v14857_v1, 1  ;;  %v14875_v18 = vrot.slane %v14801_v33, 1  ;;  %v14877_v38 = vrot.slane %v14876_v17, 6  ;;  %v14879_v17 = vld [vmem:[#allocation117_spill] sm:$0xff] }
 0x24a   : > { %v5461_v9 = vmax.f32 %v3172_v15, %v5408_v19  ;;  %v5462_v54 = vmax.f32 %v3173_v28, %v5409_v32  ;;  %14872 = vst [vmem:[#allocation9_spill] sm:$0xff] %v9852_v53  ;;  %v14878_v15 = vrot.slane %v14825_v58, 6  ;;  %v9871_v28 = vld [vmem:[%s13635_s3] ss:$0 sm:$0xff]  ;;  %v998_v13 = vmul.f32 %v9557_v3, %v9849_v50 }
 0x24b   : > { %v1236_v39 = vsel %vm1203_vm2, %v14875_v18, %v14874_v48  ;;  %v1787_v19 = vmul.f32 %v9567_v2, %v9849_v50  ;;  %v2578_v32 = vmul.f32 %v9684_v59, %v9849_v50  ;;  %v3970_v18 = vmul.f32 %v9604_v24, %v9849_v50 }
 0x24c   : > { %v2359_v27 = vsel %vm2334_vm1, %v14878_v15, %v14877_v38  ;;  %v9874_v16 = vadd.f32 %v9871_v28, %v5461_v9  ;;  %v9877_v1 = vadd.f32 %v9871_v28, %v5462_v54  ;;  %v3654_v9 = vmul.f32 %v9596_v29, %v9849_v50 }
 0x24d   : > { %v2506_v58 = vadd.f32 %v2359_v27, %v9761_v26  ;;  %v1051_v48 = vadd.f32 %v998_v13, %v619_v49  ;;  %v2507_v38 = vadd.f32 %v14879_v17, %v2167_v10  ;;  %v14880_v26 = vld [vmem:[#allocation87_spill] sm:$0xff]  ;;  %v14882_v27 = vrot.slane %v14831_v31, 7 }
 0x24e   : > { %v13934_v46 = vmax.f32 %v9874_v16, 0.0  ;;  %v13933_v54 = vmax.f32 %v9877_v1, 0.0  ;;  %v14881_v15 = vrot.slane %v14880_v26, 7  ;;  %v1908_v47 = vrot.slane %v1787_v19, 7 }
 0x24f   : > { %v2697_v60 = vrot.slane %v2578_v32, 6  ;;  %v1377_v49 = vadd.f32 %v1236_v39, %v1051_v48  ;;  %v3774_v13 = vrot.slane %v3654_v9, 1  ;;  %v14883_v51 = vrot.slane %v9570_v21, 7  ;;  %v14885_v9 = vld [vmem:[#allocation105_spill] sm:$0xff] }
 0x250   : > { %v3027_v33 = vsel %vm1541_vm0, %v14882_v27, %v14881_v15  ;;  %v5685_v36 = vrot.slane %v13934_v46, 7  ;;  %v9903_v62 = vrot.slane %v13933_v54, 7  ;;  %v14884_v17 = vrot.slane %v9807_v30, 7  ;;  %v14890_v54 = vld [vmem:[#allocation22_spill] sm:$0xff] }
 0x251   : > { %v1909_v10 = vsel %vm1541_vm0, %v14883_v51, %v1908_v47  ;;  %v3231_v19 = vmul.f32 %v9550_v52, %v9849_v50  ;;  %v4091_v32 = vrot.slane %v3970_v18, 7  ;;  %v9918_v21 = vadd.f32 %v14885_v9, %v1377_v49  ;;  %v805_v9 = vpop.permute.xlu1 %804 }
 0x252   : > { %v1911_v31 = vsel %vm1541_vm0, %v1908_v47, %v14884_v17  ;;  %v5686_v26 = vsel %vm1541_vm0, %v9711_v34, %v5685_v36  ;;  %v5688_v39 = vsel %vm1541_vm0, %v5685_v36, %v9903_v62  ;;  %v2054_v51 = vadd.f32 %v1909_v10, %v9758_v14  ;;  %v14891_v36 = vld [vmem:[#allocation90_spill] sm:$0xff]  ;;  %v14894_v10 = vld [vmem:[#allocation5_spill] sm:$0xff] }
 0x253   : > { %v14886_v48 = vmax.f32 %v9665_v23, 0.0  ;;  %v14887_v47 = vmax.f32 %v9668_v20, 0.0  ;;  %v14888_v17 = vrot.slane %v14866_v22, 1  ;;  %v14889_v18 = vrot.slane %v14808_v35, 1 }
 0x254   : > { %v4448_v46 = vadd.f32 %v14890_v54, %v4342_v61  ;;  %v14892_v53 = vrot.slane %v14891_v36, 7  ;;  %v14893_v49 = vrot.slane %v14844_v0, 7  ;;  %v2055_v23 = vadd.f32 %v1911_v31, %v14894_v10  ;;  %v14906_v10 = vld [vmem:[#allocation123_spill] sm:$0xff] }
 0x255   : > { %v5831_v15 = vmax.f32 %v14886_v48, %v5686_v26  ;;  %v5832_v27 = vmax.f32 %v14887_v47, %v5688_v39  ;;  %v3460_v34 = vsel %vm1203_vm2, %v14889_v18, %v14888_v17  ;;  %v14895_v26 = vrot.slane %v9584_v37, 6  ;;  %v14898_v39 = vld [vmem:[#allocation23_spill] sm:$0xff]  ;;  %v14899_v37 = vld [vmem:[#allocation89_spill] sm:$0xff] }
 0x256   : > { %v4942_v14 = vsel %vm1541_vm0, %v14893_v49, %v14892_v53  ;;  %v14896_v22 = vrot.slane %v9599_v40, 1  ;;  %v14897_v61 = vrot.slane %v9812_v56, 6  ;;  %v3601_v53 = vadd.f32 %v3460_v34, %v3231_v19 }
 0x257   : > { %v2698_v20 = vsel %vm2334_vm1, %v14895_v26, %v2697_v60  ;;  %5883 = vst.msk [vmem:[%s9078_s8 + $0x38] sm:$0xff] %vm5875_vm3, %v5831_v15  ;;  %5884 = vst.msk [vmem:[%s9078_s8 + $0x40] sm:$0xff] %vm5875_vm3, %v5832_v27  ;;  %v2168_v48 = vadd.f32 %v14899_v37, %v2054_v51  ;;  %v14900_v40 = vrot.slane %v9821_v7, 1  ;;  %v14901_v15 = vrot.slane %v9607_v42, 7  ;;  %v14903_v51 = vld [vmem:[#allocation112_spill] sm:$0xff]  ;;  %v14904_v42 = vld [vmem:[#allocation115_spill] sm:$0xff] }
 0x258   : > { %v3775_v35 = vsel %vm1203_vm2, %v14896_v22, %v3774_v13  ;;  %v2700_v0 = vsel %vm2334_vm1, %v2697_v60, %v14897_v61  ;;  %v2845_v54 = vadd.f32 %v2698_v20, %v2506_v58  ;;  %v14902_v18 = vrot.slane %v9834_v41, 7  ;;  %v14908_v61 = vld [vmem:[#allocation118_spill] sm:$0xff] }
 0x259   : > { %v3917_v31 = vadd.f32 %v3775_v35, %v14898_v39  ;;  %v2846_v47 = vadd.f32 %v2700_v0, %v2507_v38  ;;  %v3777_v17 = vsel %vm1203_vm2, %v3774_v13, %v14900_v40  ;;  %v4092_v27 = vsel %vm1541_vm0, %v14901_v15, %v4091_v32  ;;  %v14909_v39 = vld [vmem:[#allocation132_spill] sm:$0xff]  ;;  %v14910_v40 = vld [vmem:[#allocation93_spill] sm:$0xff] }
 0x25a   : > { %v4094_v60 = vsel %vm1541_vm0, %v4091_v32, %v14902_v18  ;;  %v4237_v58 = vadd.f32 %v4092_v27, %v9797_v5  ;;  %v4501_v19 = vmul.f32 %v9773_v45, %v9849_v50  ;;  %v5143_v38 = vmul.f32 %v9780_v12, %v9849_v50 }
 0x25b   : > { %v2169_v34 = vadd.f32 %v14903_v51, %v2055_v23  ;;  %v4238_v36 = vadd.f32 %v4094_v60, %v3917_v31  ;;  %v1001_v13 = vmul.f32 %v9557_v3, %v805_v9  ;;  %v14905_v49 = vrot.slane %v14904_v42, 1 }
 0x25c   : > { %v14907_v26 = vrot.slane %v14906_v10, 1  ;;  %v3174_v32 = vadd.f32 %v3027_v33, %v2845_v54  ;;  %v9973_v22 = vadd.f32 %v3777_v17, %v3601_v53  ;;  %v4620_v5 = vrot.slane %v4501_v19, 6 }
 0x25d   : > { %v9976_v35 = vmul.f32 %v9567_v2, %v805_v9  ;;  %v3175_v0 = vadd.f32 %v14908_v61, %v2846_v47  ;;  %v4396_v23 = vmul.f32 %v9631_v43, %v9849_v50  ;;  %v1054_v31 = vadd.f32 %v1001_v13, %v14909_v39  ;;  %v14913_v47 = vld [vmem:[#allocation113_spill] sm:$0xff]  ;;  %v14914_v13 = vld [vmem:[#allocation120_spill] sm:$0xff] }
 0x25e   : > { %v1242_v20 = vsel %vm1203_vm2, %v14907_v26, %v14905_v49  ;;  %v9983_v37 = vmul.f32 %v9684_v59, %v805_v9  ;;  %v4343_v15 = vadd.f32 %v14910_v40, %v4237_v58  ;;  %v14911_v33 = vrot.slane %v9618_v4, 6  ;;  %v14916_v49 = vld [vmem:[#allocation133_spill] sm:$0xff] }
 0x25f   : > { %v14912_v53 = vrot.slane %v9837_v63, 6  ;;  %v5262_v27 = vrot.slane %v5143_v38, 7  ;;  %v9993_v18 = vadd.f32 %v14913_v47, %v4238_v36  ;;  %v1380_v19 = vadd.f32 %v1242_v20, %v1054_v31 }
 0x260   : > { %v4621_v54 = vsel %vm2334_vm1, %v14911_v33, %v4620_v5  ;;  %v1914_v51 = vrot.slane %v9976_v35, 7  ;;  %v14915_v58 = vrot.slane %v14914_v13, 1  ;;  %v14917_v4 = vrot.slane %v14916_v49, 1 }
 0x261   : > { %v4623_v17 = vsel %vm2334_vm1, %v4620_v5, %v14912_v53  ;;  %v4768_v50 = vadd.f32 %v4621_v54, %v9839_v55  ;;  %v10005_v61 = vmul.f32 %v9596_v29, %v805_v9  ;;  %v10008_v38 = vmul.f32 %v9604_v24, %v805_v9  ;;  %v14918_v5 = vld [vmem:[#allocation119_spill] sm:$0xff] }
 0x262   : > { %v4769_v60 = vadd.f32 %v4623_v17, %v4448_v46  ;;  %v10002_v26 = vsel %vm1203_vm2, %v14917_v4, %v14915_v58  ;;  %v14919_v46 = vld [vmem:[#allocation140_spill] sm:$0xff]  ;;  %v2703_v39 = vrot.slane %v9983_v37, 6  ;;  %v10015_v31 = vadd.f32 %v4396_v23, %v4343_v15 }
 0x263   : > { %v5089_v36 = vadd.f32 %v4942_v14, %v4768_v50  ;;  %v10012_v20 = vadd.f32 %v14919_v46, %v1380_v19  ;;  %v14920_v40 = vrot.slane %v9621_v57, 7  ;;  %v14921_v54 = vrot.slane %v9842_v44, 7  ;;  %v10026_v14 = vpop.permute.xlu0 %799  ;;  %v14924_v58 = vld [vmem:[#allocation124_spill] sm:$0xff] }
 0x264   : > { %v5090_v55 = vadd.f32 %v14918_v5, %v4769_v60  ;;  %v10024_v17 = vmul.f32 %v9550_v52, %v805_v9  ;;  %v10029_v60 = vmul.f32 %v9631_v43, %v805_v9  ;;  %v14922_v23 = vrot.slane %v14906_v10, 1 }
 0x265   : > { %v5263_v33 = vsel %vm1541_vm0, %v14920_v40, %v5262_v27  ;;  %v5265_v53 = vsel %vm1541_vm0, %v5262_v27, %v14921_v54  ;;  %v14923_v57 = vrot.slane %v14855_v6, 1  ;;  %v2509_v4 = vadd.f32 %v14924_v58, %v2169_v34  ;;  %v14927_v54 = vld [vmem:[#allocation100_spill] sm:$0xff] }
 0x266   : > { %v5410_v47 = vadd.f32 %v5263_v33, %v5089_v36  ;;  %v5411_v50 = vadd.f32 %v5265_v53, %v5090_v55  ;;  %v14925_v5 = vrot.slane %v14916_v49, 1  ;;  %v14926_v36 = vrot.slane %v14864_v8, 1 }
 0x267   : > { %v1240_v15 = vsel %vm1203_vm2, %v14923_v57, %v14922_v23  ;;  %v10045_v10 = vmul.f32 %v9773_v45, %v805_v9  ;;  %v1000_v6 = vmul.f32 %v9557_v3, %v10026_v14  ;;  %v10050_v33 = vmul.f32 %v9780_v12, %v805_v9 }
 0x268   : > { %v3464_v55 = vsel %vm1203_vm2, %v14926_v36, %v14925_v5  ;;  %v5463_v46 = vmax.f32 %v3174_v32, %v5410_v47  ;;  %v5464_v40 = vmax.f32 %v3175_v0, %v5411_v50  ;;  %v1789_v34 = vmul.f32 %v9567_v2, %v10026_v14  ;;  %v14928_v47 = vld [vmem:[#allocation106_spill] sm:$0xff] }
 0x269   : > { %v2580_v49 = vmul.f32 %v9684_v59, %v10026_v14  ;;  %v3656_v8 = vmul.f32 %v9596_v29, %v10026_v14  ;;  %v1053_v53 = vadd.f32 %v1000_v6, %v14927_v54  ;;  %v3972_v9 = vmul.f32 %v9604_v24, %v10026_v14 }
 0x26a   : > { %v10059_v32 = vadd.f32 %v9871_v28, %v5463_v46  ;;  %v10062_v0 = vadd.f32 %v9871_v28, %v5464_v40  ;;  %v2508_v50 = vadd.f32 %v14928_v47, %v2168_v48  ;;  %v1912_v23 = vrot.slane %v1789_v34, 7 }
 0x26b   : > { %v2701_v57 = vrot.slane %v2580_v49, 6  ;;  %v3778_v58 = vrot.slane %v3656_v8, 1  ;;  %v1379_v19 = vadd.f32 %v1240_v15, %v1053_v53  ;;  %v4095_v46 = vrot.slane %v3972_v9, 7 }
 0x26c   : > { %v13936_v5 = vmax.f32 %v10059_v32, 0.0  ;;  %v13935_v36 = vmax.f32 %v10062_v0, 0.0  ;;  %v14929_v27 = vrot.slane %v9807_v30, 7  ;;  %v1915_v6 = vsel %vm1541_vm0, %v1912_v23, %v1914_v51 }
 0x26d   : > { %v14930_v54 = vrot.slane %v9812_v56, 6  ;;  %v2704_v34 = vsel %vm2334_vm1, %v2701_v57, %v2703_v39  ;;  %v2057_v56 = vadd.f32 %v1915_v6, %v9825_v25  ;;  %v14932_v47 = vrot.slane %v9821_v7, 1 }
 0x26e   : > { %v1913_v40 = vsel %vm1541_vm0, %v14929_v27, %v1912_v23  ;;  %v5689_v15 = vrot.slane %v13936_v5, 7  ;;  %v10086_v30 = vrot.slane %v13935_v36, 7  ;;  %v14931_v27 = vld [vmem:[#allocation122_spill] sm:$0xff]  ;;  %v2848_v9 = vadd.f32 %v2704_v34, %v2509_v4 }
 0x26f   : > { %v2702_v48 = vsel %vm2334_vm1, %v14930_v54, %v2701_v57  ;;  %v10089_v49 = vadd.f32 %v14931_v27, %v1379_v19  ;;  %v2056_v8 = vadd.f32 %v1913_v40, %v9918_v21  ;;  %v3779_v23 = vsel %vm1203_vm2, %v14932_v47, %v3778_v58  ;;  %v14933_v19 = vld [vmem:[#allocation103_spill] sm:$0xff]  ;;  %v14936_v40 = vld [vmem:[#allocation134_spill] sm:$0xff]  ;;  %v10109_v47 = vpop.permute.xlu1 %814 }
 0x270   : > { %v2847_v53 = vadd.f32 %v2702_v48, %v2508_v50  ;;  %v5690_v57 = vsel %vm1541_vm0, %v9903_v62, %v5689_v15  ;;  %v5692_v54 = vsel %vm1541_vm0, %v5689_v15, %v10086_v30  ;;  %v3233_v21 = vmul.f32 %v9550_v52, %v10026_v14  ;;  %v14937_v48 = vld [vmem:[#allocation107_spill] sm:$0xff] }
 0x271   : > { %v2170_v27 = vadd.f32 %v14933_v19, %v2056_v8  ;;  %v14934_v25 = vmax.f32 %v9874_v16, 0.0  ;;  %v14935_v4 = vmax.f32 %v9877_v1, 0.0  ;;  %v2171_v6 = vadd.f32 %v14936_v40, %v2057_v56  ;;  %v14938_v15 = vld [vmem:[#allocation127_spill] sm:$0xff]  ;;  %v14940_v1 = vld [vmem:[#allocation9_spill] sm:$0xff] }
 0x272   : > { %v3176_v34 = vadd.f32 %v14937_v48, %v2847_v53  ;;  %v13938_v62 = vrot.slane %v10045_v10, 6  ;;  %v3177_v36 = vadd.f32 %v14938_v15, %v2848_v9  ;;  %v3919_v8 = vadd.f32 %v3779_v23, %v9846_v11  ;;  %v14946_v40 = vld [vmem:[#allocation109_spill] sm:$0xff] }
 0x273   : > { %v5833_v50 = vmax.f32 %v14934_v25, %v5690_v57  ;;  %v5834_v7 = vmax.f32 %v14935_v4, %v5692_v54  ;;  %v14939_v19 = vrot.slane %v9834_v41, 7  ;;  %v4450_v56 = vadd.f32 %v14940_v1, %v9993_v18  ;;  %v14942_v25 = vld [vmem:[#allocation137_spill] sm:$0xff]  ;;  %v14944_v4 = vld [vmem:[#allocation139_spill] sm:$0xff] }
 0x274   : > { %v14941_v53 = vrot.slane %v10008_v38, 7  ;;  %v4503_v11 = vmul.f32 %v9773_v45, %v10026_v14  ;;  %v5145_v41 = vmul.f32 %v9780_v12, %v10026_v14  ;;  %v1003_v23 = vmul.f32 %v9557_v3, %v10109_v47  ;;  %v14948_v1 = vld [vmem:[#allocation135_spill] sm:$0xff] }
 0x275   : > { %v4096_v16 = vsel %vm1541_vm0, %v14939_v19, %v4095_v46  ;;  %5885 = vst.msk [vmem:[%s9078_s8 + $0x48] sm:$0xff] %vm5875_vm3, %v5833_v50  ;;  %5886 = vst.msk [vmem:[%s9078_s8 + $0x50] sm:$0xff] %vm5875_vm3, %v5834_v7  ;;  %v14943_v50 = vrot.slane %v14942_v25, 1  ;;  %v14945_v18 = vrot.slane %v14944_v4, 1  ;;  %v14947_v19 = vrot.slane %v10005_v61, 1 }
 0x276   : > { %v4098_v57 = vsel %vm1541_vm0, %v4095_v46, %v14941_v53  ;;  %v4239_v54 = vadd.f32 %v4096_v16, %v9973_v22  ;;  %v10140_v46 = vadd.f32 %v10002_v26, %v10024_v17  ;;  %v3603_v22 = vadd.f32 %v3464_v55, %v3233_v21 }
 0x277   : > { %v4240_v9 = vadd.f32 %v4098_v57, %v3919_v8  ;;  %v1246_v7 = vsel %vm1203_vm2, %v14945_v18, %v14943_v50  ;;  %v4624_v15 = vrot.slane %v4503_v11, 6  ;;  %v13937_v8 = vrot.slane %v10050_v33, 7  ;;  %v14949_v57 = vld [vmem:[#allocation151_spill] sm:$0xff]  ;;  %v14951_v18 = vld [vmem:[#allocation138_spill] sm:$0xff] }
 0x278   : > { %v4345_v48 = vadd.f32 %v14946_v40, %v4239_v54  ;;  %v3781_v16 = vsel %vm1203_vm2, %v3778_v58, %v14947_v19  ;;  %v1056_v5 = vadd.f32 %v1003_v23, %v14949_v57  ;;  %v14950_v50 = vrot.slane %v9837_v63, 6  ;;  %v14956_v57 = vld [vmem:[#allocation129_spill] sm:$0xff] }
 0x279   : > { %v10148_v53 = vadd.f32 %v14948_v1, %v4240_v9  ;;  %v4627_v17 = vsel %vm2334_vm1, %v4624_v15, %v13938_v62  ;;  %v5266_v55 = vrot.slane %v5145_v41, 7  ;;  %v10159_v21 = vmul.f32 %v9567_v2, %v10109_v47 }
 0x27a   : > { %v4625_v26 = vsel %vm2334_vm1, %v14950_v50, %v4624_v15  ;;  %v4398_v58 = vmul.f32 %v9631_v43, %v10026_v14  ;;  %v4771_v11 = vadd.f32 %v4627_v17, %v4450_v56  ;;  %v10166_v63 = vmul.f32 %v9684_v59, %v10109_v47  ;;  %v14953_v15 = vld [vmem:[#allocation150_spill] sm:$0xff] }
 0x27b   : > { %v4770_v54 = vadd.f32 %v4625_v26, %v10015_v31  ;;  %v10168_v9 = vadd.f32 %v3781_v16, %v3603_v22  ;;  %v1382_v23 = vadd.f32 %v1246_v7, %v1056_v5  ;;  %v3236_v41 = vmul.f32 %v9550_v52, %v10109_v47  ;;  %v14955_v31 = vld [vmem:[#allocation111_spill] sm:$0xff]  ;;  %v14958_v26 = vld [vmem:[#allocation157_spill] sm:$0xff] }
 0x27c   : > { %v14952_v40 = vrot.slane %v14951_v18, 1  ;;  %v14954_v19 = vrot.slane %v14953_v15, 1  ;;  %v10177_v14 = vadd.f32 %v4398_v58, %v4345_v48  ;;  %v5092_v50 = vadd.f32 %v14956_v57, %v4771_v11  ;;  %v14961_v57 = vld [vmem:[#allocation125_spill] sm:$0xff] }
 0x27d   : > { %v5091_v56 = vadd.f32 %v14955_v31, %v4770_v54  ;;  %v10183_v22 = vmul.f32 %v9596_v29, %v10109_v47  ;;  %v14957_v5 = vrot.slane %v9842_v44, 7  ;;  %v5269_v16 = vsel %vm1541_vm0, %v5266_v55, %v13937_v8  ;;  %v10200_v44 = vpop.permute.xlu0 %809 }
 0x27e   : > { %v3470_v1 = vsel %vm1203_vm2, %v14954_v19, %v14952_v40  ;;  %v10192_v17 = vadd.f32 %v14958_v26, %v1382_v23  ;;  %v13943_v48 = vrot.slane %v10159_v21, 7  ;;  %v5413_v54 = vadd.f32 %v5269_v16, %v5092_v50 }
 0x27f   : > { %v5267_v7 = vsel %vm1541_vm0, %v14957_v5, %v5266_v55  ;;  %v13941_v11 = vrot.slane %v10166_v63, 6  ;;  %v10198_v40 = vmul.f32 %v9604_v24, %v10109_v47  ;;  %v10202_v19 = vadd.f32 %v3470_v1, %v3236_v41 }
 0x280   : > { %v5412_v58 = vadd.f32 %v5267_v7, %v5091_v56  ;;  %v14959_v31 = vrot.slane %v14944_v4, 1  ;;  %v14960_v55 = vrot.slane %v14904_v42, 1  ;;  %v2510_v5 = vadd.f32 %v14961_v57, %v2170_v27  ;;  %v14962_v56 = vld [vmem:[#allocation142_spill] sm:$0xff] }
 0x281   : > { %v2511_v50 = vadd.f32 %v14962_v56, %v2171_v6  ;;  %v5466_v16 = vmax.f32 %v3177_v36, %v5413_v54  ;;  %v3784_v26 = vrot.slane %v10183_v22, 1  ;;  %v14963_v8 = vrot.slane %v14953_v15, 1  ;;  %v15008_v22 = vld [vmem:[#allocation163_spill] sm:$0xff] }
 0x282   : > { %v1244_v23 = vsel %vm1203_vm2, %v14960_v55, %v14959_v31  ;;  %v5465_v7 = vmax.f32 %v3176_v34, %v5412_v58  ;;  %v14964_v62 = vrot.slane %v14914_v13, 1  ;;  %v10219_v4 = vmul.f32 %v9773_v45, %v10109_v47 }
 0x283   : > { %v1002_v42 = vmul.f32 %v9557_v3, %v10200_v44  ;;  %v1791_v27 = vmul.f32 %v9567_v2, %v10200_v44  ;;  %v2582_v36 = vmul.f32 %v9684_v59, %v10200_v44  ;;  %v10231_v13 = vadd.f32 %v9871_v28, %v5466_v16 }
 0x284   : > { %v3468_v41 = vsel %vm1203_vm2, %v14964_v62, %v14963_v8  ;;  %v10228_v6 = vadd.f32 %v9871_v28, %v5465_v7  ;;  %v13942_v34 = vrot.slane %v10198_v40, 7  ;;  %v3658_v62 = vmul.f32 %v9596_v29, %v10200_v44  ;;  %v14965_v8 = vld [vmem:[#allocation114_spill] sm:$0xff] }
 0x285   : > { %v1055_v15 = vadd.f32 %v1002_v42, %v14965_v8  ;;  %v1916_v1 = vrot.slane %v1791_v27, 7  ;;  %v2705_v58 = vrot.slane %v2582_v36, 6  ;;  %v3235_v54 = vmul.f32 %v9550_v52, %v10200_v44 }
 0x286   : > { %v13940_v31 = vmax.f32 %v10228_v6, 0.0  ;;  %v13939_v55 = vmax.f32 %v10231_v13, 0.0  ;;  %v3782_v57 = vrot.slane %v3658_v62, 1  ;;  %v3974_v56 = vmul.f32 %v9604_v24, %v10200_v44 }
 0x287   : > { %v1381_v7 = vadd.f32 %v1244_v23, %v1055_v15  ;;  %v1917_v16 = vsel %vm1541_vm0, %v1914_v51, %v1916_v1  ;;  %v1919_v42 = vsel %vm1541_vm0, %v1916_v1, %v13943_v48  ;;  %v2706_v27 = vsel %vm2334_vm1, %v2703_v39, %v2705_v58  ;;  %v14966_v51 = vld [vmem:[#allocation141_spill] sm:$0xff]  ;;  %v14981_v48 = vld [vmem:[#allocation154_spill] sm:$0xff] }
 0x288   : > { %v5693_v36 = vrot.slane %v13940_v31, 7  ;;  %v10256_v62 = vrot.slane %v13939_v55, 7  ;;  %v2058_v23 = vadd.f32 %v1917_v16, %v10089_v49  ;;  %v2059_v35 = vadd.f32 %v1919_v42, %v10012_v20  ;;  %v14968_v49 = vld [vmem:[#allocation126_spill] sm:$0xff]  ;;  %v14969_v16 = vld [vmem:[#allocation153_spill] sm:$0xff]  ;;  %v14972_v31 = vld [vmem:[#allocation128_spill] sm:$0xff] }
 0x289   : > { %v10261_v8 = vadd.f32 %v14966_v51, %v1381_v7  ;;  %v2708_v37 = vsel %vm2334_vm1, %v2705_v58, %v13941_v11  ;;  %v2849_v39 = vadd.f32 %v2706_v27, %v2510_v5  ;;  %v14967_v15 = vrot.slane %v10005_v61, 1 }
 0x28a   : > { %v5694_v55 = vsel %vm1541_vm0, %v10086_v30, %v5693_v36  ;;  %v5696_v20 = vsel %vm1541_vm0, %v5693_v36, %v10256_v62  ;;  %v2172_v7 = vadd.f32 %v14968_v49, %v2058_v23  ;;  %v2173_v42 = vadd.f32 %v14969_v16, %v2059_v35 }
 0x28b   : > { %v3783_v1 = vsel %vm1203_vm2, %v14967_v15, %v3782_v57  ;;  %v14970_v51 = vmax.f32 %v10059_v32, 0.0  ;;  %v14971_v5 = vmax.f32 %v10062_v0, 0.0  ;;  %v2850_v61 = vadd.f32 %v2708_v37, %v2511_v50  ;;  %v10280_v15 = vpop.permute.xlu1 %824  ;;  %v14973_v0 = vld [vmem:[#allocation144_spill] sm:$0xff] }
 0x28c   : > { %v3178_v11 = vadd.f32 %v14972_v31, %v2849_v39  ;;  %v10285_v36 = vmul.f32 %v9780_v12, %v10109_v47  ;;  %v3921_v23 = vadd.f32 %v3783_v1, %v10140_v46  ;;  %v4099_v35 = vrot.slane %v3974_v56, 7  ;;  %v14977_v1 = vld [vmem:[#allocation159_spill] sm:$0xff] }
 0x28d   : > { %v5835_v58 = vmax.f32 %v14970_v51, %v5694_v55  ;;  %v5836_v27 = vmax.f32 %v14971_v5, %v5696_v20  ;;  %v4452_v32 = vadd.f32 %v10029_v60, %v10148_v53  ;;  %v3179_v50 = vadd.f32 %v14973_v0, %v2850_v61  ;;  %v14975_v60 = vld [vmem:[#allocation152_spill] sm:$0xff] }
 0x28e   : > { %v4505_v31 = vmul.f32 %v9773_v45, %v10200_v44  ;;  %v5147_v55 = vmul.f32 %v9780_v12, %v10200_v44  ;;  %v14974_v37 = vrot.slane %v10008_v38, 7  ;;  %v4102_v56 = vsel %vm1541_vm0, %v4099_v35, %v13942_v34 }
 0x28f   : > { %5887 = vst.msk [vmem:[%s9078_s8 + $0x58] sm:$0xff] %vm5875_vm3, %v5835_v58  ;;  %5888 = vst.msk [vmem:[%s9078_s8 + $0x60] sm:$0xff] %vm5875_vm3, %v5836_v27  ;;  %v1005_v39 = vmul.f32 %v9557_v3, %v10280_v15  ;;  %v14976_v53 = vrot.slane %v14975_v60, 1  ;;  %v14978_v20 = vrot.slane %v14977_v1, 1  ;;  %v3605_v16 = vadd.f32 %v3468_v41, %v3235_v54 }
 0x290   : > { %v4100_v46 = vsel %vm1541_vm0, %v14974_v37, %v4099_v35  ;;  %v4242_v58 = vadd.f32 %v4102_v56, %v3921_v23  ;;  %v4628_v38 = vrot.slane %v4505_v31, 6  ;;  %v13944_v5 = vrot.slane %v10285_v36, 7  ;;  %v14979_v35 = vld [vmem:[#allocation168_spill] sm:$0xff]  ;;  %v14980_v37 = vld [vmem:[#allocation131_spill] sm:$0xff] }
 0x291   : > { %v1250_v49 = vsel %vm1203_vm2, %v14978_v20, %v14976_v53  ;;  %v4241_v51 = vadd.f32 %v4100_v46, %v10168_v9  ;;  %v3785_v27 = vsel %vm1203_vm2, %v3782_v57, %v3784_v26  ;;  %v5270_v61 = vrot.slane %v5147_v55, 7  ;;  %v14984_v53 = vld [vmem:[#allocation130_spill] sm:$0xff]  ;;  %v14985_v20 = vld [vmem:[#allocation147_spill] sm:$0xff] }
 0x292   : > { %v1058_v0 = vadd.f32 %v1005_v39, %v14979_v35  ;;  %v10320_v30 = vadd.f32 %v14981_v48, %v4242_v58  ;;  %v14982_v41 = vrot.slane %v10045_v10, 6  ;;  %v14983_v54 = vrot.slane %v10219_v4, 6 }
 0x293   : > { %v4347_v34 = vadd.f32 %v14980_v37, %v4241_v51  ;;  %v10330_v31 = vmul.f32 %v9631_v43, %v10109_v47  ;;  %v10335_v46 = vmul.f32 %v9567_v2, %v10280_v15  ;;  %v10337_v48 = vadd.f32 %v3785_v27, %v3605_v16 }
 0x294   : > { %v4629_v9 = vsel %vm2334_vm1, %v14982_v41, %v4628_v38  ;;  %v4631_v23 = vsel %vm2334_vm1, %v4628_v38, %v14983_v54  ;;  %v4400_v10 = vmul.f32 %v9631_v43, %v10200_v44  ;;  %v1384_v56 = vadd.f32 %v1250_v49, %v1058_v0  ;;  %v14988_v38 = vld [vmem:[#allocation169_spill] sm:$0xff]  ;;  %v14991_v0 = vld [vmem:[#allocation176_spill] sm:$0xff] }
 0x295   : > { %v4772_v57 = vadd.f32 %v4629_v9, %v10177_v14  ;;  %v4773_v55 = vadd.f32 %v4631_v23, %v4452_v32  ;;  %v10343_v39 = vmul.f32 %v9684_v59, %v10280_v15  ;;  %v3238_v14 = vmul.f32 %v9550_v52, %v10280_v15  ;;  %v14986_v32 = vld [vmem:[#allocation156_spill] sm:$0xff] }
 0x296   : > { %v14987_v58 = vrot.slane %v14986_v32, 1  ;;  %v14989_v16 = vrot.slane %v14988_v38, 1  ;;  %v14990_v44 = vrot.slane %v10050_v33, 7  ;;  %v5273_v35 = vsel %vm1541_vm0, %v5270_v61, %v13944_v5  ;;  %v10370_v33 = vpop.permute.xlu0 %819 }
 0x297   : > { %v5093_v47 = vadd.f32 %v14984_v53, %v4772_v57  ;;  %v5094_v51 = vadd.f32 %v14985_v20, %v4773_v55  ;;  %v10361_v37 = vadd.f32 %v14991_v0, %v1384_v56  ;;  %v10365_v41 = vmul.f32 %v9596_v29, %v10280_v15 }
 0x298   : > { %v3474_v27 = vsel %vm1203_vm2, %v14989_v16, %v14987_v58  ;;  %v5271_v49 = vsel %vm1541_vm0, %v14990_v44, %v5270_v61  ;;  %v10367_v9 = vadd.f32 %v4400_v10, %v4347_v34  ;;  %v13947_v57 = vrot.slane %v10335_v46, 7  ;;  %v14994_v34 = vld [vmem:[#allocation143_spill] sm:$0xff]  ;;  %v14995_v16 = vld [vmem:[#allocation160_spill] sm:$0xff] }
 0x299   : > { %v5414_v54 = vadd.f32 %v5271_v49, %v5093_v47  ;;  %v5415_v23 = vadd.f32 %v5273_v35, %v5094_v51  ;;  %v2711_v55 = vrot.slane %v10343_v39, 6  ;;  %v10375_v61 = vmul.f32 %v9604_v24, %v10280_v15 }
 0x29a   : > { %v14992_v56 = vrot.slane %v14977_v1, 1  ;;  %v14993_v53 = vrot.slane %v14942_v25, 1  ;;  %v2512_v10 = vadd.f32 %v14994_v34, %v2172_v7  ;;  %v10383_v58 = vadd.f32 %v3474_v27, %v3238_v14 }
 0x29b   : > { %v5467_v47 = vmax.f32 %v3178_v11, %v5414_v54  ;;  %v5468_v51 = vmax.f32 %v3179_v50, %v5415_v23  ;;  %v2513_v44 = vadd.f32 %v14995_v16, %v2173_v42  ;;  %v10389_v35 = vmul.f32 %v9773_v45, %v10280_v15 }
 0x29c   : > { %v1248_v20 = vsel %vm1203_vm2, %v14993_v53, %v14992_v56  ;;  %v14996_v1 = vrot.slane %v14988_v38, 1  ;;  %v14997_v25 = vrot.slane %v14951_v18, 1  ;;  %v1004_v11 = vmul.f32 %v9557_v3, %v10370_v33  ;;  %v14998_v18 = vld [vmem:[#allocation136_spill] sm:$0xff] }
 0x29d   : > { %v10399_v7 = vadd.f32 %v9871_v28, %v5467_v47  ;;  %v10402_v42 = vadd.f32 %v9871_v28, %v5468_v51  ;;  %v1793_v50 = vmul.f32 %v9567_v2, %v10370_v33  ;;  %v2584_v14 = vmul.f32 %v9684_v59, %v10370_v33 }
 0x29e   : > { %v3472_v0 = vsel %vm1203_vm2, %v14997_v25, %v14996_v1  ;;  %v1057_v27 = vadd.f32 %v1004_v11, %v14998_v18  ;;  %v3660_v54 = vmul.f32 %v9596_v29, %v10370_v33  ;;  %v3976_v23 = vmul.f32 %v9604_v24, %v10370_v33 }
 0x29f   : > { %v13946_v56 = vmax.f32 %v10399_v7, 0.0  ;;  %v13945_v53 = vmax.f32 %v10402_v42, 0.0  ;;  %v1920_v34 = vrot.slane %v1793_v50, 7  ;;  %v2709_v47 = vrot.slane %v2584_v14, 6  ;;  %v15000_v14 = vld [vmem:[#allocation158_spill] sm:$0xff] }
 0x2a0   : > { %v10418_v51 = vmul.f32 %v9780_v12, %v10280_v15  ;;  %v1383_v16 = vadd.f32 %v1248_v20, %v1057_v27  ;;  %v3786_v1 = vrot.slane %v3660_v54, 1  ;;  %v4103_v25 = vrot.slane %v3976_v23, 7 }
 0x2a1   : > { %v5697_v11 = vrot.slane %v13946_v56, 7  ;;  %v10424_v18 = vrot.slane %v13945_v53, 7  ;;  %v14999_v5 = vrot.slane %v10159_v21, 7  ;;  %v1923_v50 = vsel %vm1541_vm0, %v1920_v34, %v13947_v57 }
 0x2a2   : > { %v10433_v38 = vadd.f32 %v15000_v14, %v1383_v16  ;;  %v2061_v27 = vadd.f32 %v1923_v50, %v10192_v17  ;;  %v15001_v54 = vrot.slane %v10166_v63, 6  ;;  %v15003_v17 = vmax.f32 %v10231_v13, 0.0  ;;  %v15004_v50 = vld [vmem:[#allocation146_spill] sm:$0xff] }
 0x2a3   : > { %v1921_v49 = vsel %vm1541_vm0, %v14999_v5, %v1920_v34  ;;  %v5698_v21 = vsel %vm1541_vm0, %v10256_v62, %v5697_v11  ;;  %v5700_v5 = vsel %vm1541_vm0, %v5697_v11, %v10424_v18  ;;  %v2712_v34 = vsel %vm2334_vm1, %v2709_v47, %v2711_v55  ;;  %v15006_v62 = vld [vmem:[#allocation145_spill] sm:$0xff] }
 0x2a4   : > { %v2060_v20 = vadd.f32 %v1921_v49, %v10261_v8  ;;  %v2710_v23 = vsel %vm2334_vm1, %v15001_v54, %v2709_v47  ;;  %v15002_v8 = vmax.f32 %v10228_v6, 0.0  ;;  %v5838_v63 = vmax.f32 %v15003_v17, %v5700_v5  ;;  %v15005_v54 = vld [vmem:[#allocation170_spill] sm:$0xff]  ;;  %v10461_v6 = vpop.permute.xlu1 %834  ;;  %v15014_v17 = vld [vmem:[#allocation149_spill] sm:$0xff] }
 0x2a5   : > { %v2851_v16 = vadd.f32 %v2710_v23, %v2512_v10  ;;  %v2175_v53 = vadd.f32 %v15005_v54, %v2061_v27  ;;  %v2852_v56 = vadd.f32 %v2712_v34, %v2513_v44  ;;  %v3237_v11 = vmul.f32 %v9550_v52, %v10370_v33 }
 0x2a6   : > { %v5837_v49 = vmax.f32 %v15002_v8, %v5698_v21  ;;  %v2174_v14 = vadd.f32 %v15004_v50, %v2060_v20  ;;  %v3787_v10 = vsel %vm1203_vm2, %v3784_v26, %v3786_v1  ;;  %5890 = vst.msk [vmem:[%s9078_s8 + $0x70] sm:$0xff] %vm5875_vm3, %v5838_v63  ;;  %v4634_v13 = vrot.slane %v10389_v35, 6  ;;  %v15012_v8 = vld [vmem:[#allocation175_spill] sm:$0xff] }
 0x2a7   : > { %v10454_v57 = vadd.f32 %v15006_v62, %v2851_v16  ;;  %v4454_v44 = vadd.f32 %v10330_v31, %v10320_v30  ;;  %v3923_v47 = vadd.f32 %v3787_v10, %v10202_v19  ;;  %v15007_v20 = vrot.slane %v10198_v40, 7  ;;  %v15010_v19 = vld [vmem:[#allocation173_spill] sm:$0xff]  ;;  %v15016_v10 = vld [vmem:[#allocation171_spill] sm:$0xff] }
 0x2a8   : > { %5889 = vst.msk [vmem:[%s9078_s8 + $0x68] sm:$0xff] %vm5875_vm3, %v5837_v49  ;;  %v3181_v23 = vadd.f32 %v15008_v22, %v2852_v56  ;;  %v15009_v26 = vrot.slane %v10375_v61, 7  ;;  %v4507_v34 = vmul.f32 %v9773_v45, %v10370_v33  ;;  %v5149_v30 = vmul.f32 %v9780_v12, %v10370_v33 }
 0x2a9   : > { %v4104_v27 = vsel %vm1541_vm0, %v15007_v20, %v4103_v25  ;;  %v1007_v40 = vmul.f32 %v9557_v3, %v10461_v6  ;;  %v15011_v31 = vrot.slane %v15010_v19, 1  ;;  %v15013_v56 = vrot.slane %v15012_v8, 1  ;;  %v15017_v20 = vld [vmem:[#allocation187_spill] sm:$0xff] }
 0x2aa   : > { %v4106_v21 = vsel %vm1541_vm0, %v4103_v25, %v15009_v26  ;;  %v4243_v5 = vadd.f32 %v4104_v27, %v10337_v48  ;;  %v10492_v25 = vmul.f32 %v9631_v43, %v10280_v15  ;;  %v3607_v48 = vadd.f32 %v3472_v0, %v3237_v11 }
 0x2ab   : > { %v4244_v16 = vadd.f32 %v4106_v21, %v3923_v47  ;;  %v1254_v49 = vsel %vm1203_vm2, %v15013_v56, %v15011_v31  ;;  %v4632_v50 = vrot.slane %v4507_v34, 6  ;;  %v5276_v54 = vrot.slane %v10418_v51, 7 }
 0x2ac   : > { %v4349_v63 = vadd.f32 %v15014_v17, %v4243_v5  ;;  %v15015_v62 = vrot.slane %v10365_v41, 1  ;;  %v1060_v27 = vadd.f32 %v1007_v40, %v15017_v20  ;;  %v15018_v22 = vrot.slane %v10219_v4, 6  ;;  %v15019_v40 = vld [vmem:[#allocation174_spill] sm:$0xff] }
 0x2ad   : > { %v10500_v47 = vadd.f32 %v15016_v10, %v4244_v16  ;;  %v4635_v0 = vsel %vm2334_vm1, %v4632_v50, %v4634_v13  ;;  %v5274_v11 = vrot.slane %v5149_v30, 7  ;;  %v10511_v26 = vmul.f32 %v9567_v2, %v10461_v6  ;;  %v15021_v2 = vld [vmem:[#allocation186_spill] sm:$0xff] }
 0x2ae   : > { %v3789_v3 = vsel %vm1203_vm2, %v3786_v1, %v15015_v62  ;;  %v4633_v15 = vsel %vm2334_vm1, %v15018_v22, %v4632_v50  ;;  %v4402_v1 = vmul.f32 %v9631_v43, %v10370_v33  ;;  %v4775_v5 = vadd.f32 %v4635_v0, %v4454_v44  ;;  %v15024_v44 = vld [vmem:[#allocation165_spill] sm:$0xff] }
 0x2af   : > { %v4774_v21 = vadd.f32 %v4633_v15, %v10367_v9  ;;  %v10518_v4 = vmul.f32 %v9684_v59, %v10461_v6  ;;  %v10520_v34 = vadd.f32 %v3789_v3, %v3607_v48  ;;  %v1386_v16 = vadd.f32 %v1254_v49, %v1060_v27  ;;  %v15023_v9 = vld [vmem:[#allocation148_spill] sm:$0xff]  ;;  %v15026_v3 = vld [vmem:[#allocation193_spill] sm:$0xff] }
 0x2b0   : > { %v3240_v30 = vmul.f32 %v9550_v52, %v10461_v6  ;;  %v15020_v31 = vrot.slane %v15019_v40, 1  ;;  %v15022_v56 = vrot.slane %v15021_v2, 1  ;;  %v10529_v43 = vadd.f32 %v4402_v1, %v4349_v63 }
 0x2b1   : > { %v5095_v33 = vadd.f32 %v15023_v9, %v4774_v21  ;;  %v5096_v50 = vadd.f32 %v15024_v44, %v4775_v5  ;;  %v10535_v48 = vmul.f32 %v9596_v29, %v10461_v6  ;;  %v15025_v49 = vrot.slane %v10285_v36, 7  ;;  %v10552_v36 = vpop.permute.xlu0 %829  ;;  %v15029_v5 = vld [vmem:[#allocation161_spill] sm:$0xff] }
 0x2b2   : > { %v3478_v17 = vsel %vm1203_vm2, %v15022_v56, %v15020_v31  ;;  %v5277_v62 = vsel %vm1541_vm0, %v5274_v11, %v5276_v54  ;;  %v10544_v10 = vadd.f32 %v15026_v3, %v1386_v16  ;;  %v1926_v63 = vrot.slane %v10511_v26, 7  ;;  %v15030_v31 = vld [vmem:[#allocation178_spill] sm:$0xff] }
 0x2b3   : > { %v5275_v52 = vsel %vm1541_vm0, %v15025_v49, %v5274_v11  ;;  %v5417_v27 = vadd.f32 %v5277_v62, %v5096_v50  ;;  %v2715_v22 = vrot.slane %v10518_v4, 6  ;;  %v10550_v15 = vmul.f32 %v9604_v24, %v10461_v6 }
 0x2b4   : > { %v5416_v20 = vadd.f32 %v5275_v52, %v5095_v33  ;;  %v10554_v0 = vadd.f32 %v3478_v17, %v3240_v30  ;;  %v15027_v1 = vrot.slane %v15012_v8, 1  ;;  %v15028_v11 = vrot.slane %v14975_v60, 1  ;;  %v15033_v52 = vld [vmem:[#allocation155_spill] sm:$0xff] }
 0x2b5   : > { %v2514_v16 = vadd.f32 %v15029_v5, %v2174_v14  ;;  %v2515_v56 = vadd.f32 %v15030_v31, %v2175_v53  ;;  %v5470_v33 = vmax.f32 %v3181_v23, %v5417_v27  ;;  %v13953_v24 = vrot.slane %v10535_v48, 1  ;;  %v10577_v14 = vld [vmem:[%s13634_s2 + $0x1] ss:$0 sm:$0xff]  ;;  %v10584_v53 = vld [vmem:[%s13634_s2 + $0x4] ss:$0 sm:$0xff] }
 0x2b6   : > { %v1252_v21 = vsel %vm1203_vm2, %v15028_v11, %v15027_v1  ;;  %v5469_v9 = vmax.f32 %v10454_v57, %v5416_v20  ;;  %v15031_v44 = vrot.slane %v15021_v2, 1  ;;  %v15032_v30 = vrot.slane %v14986_v32, 1  ;;  %v10603_v27 = vld [vmem:[%s13634_s2] ss:$0 sm:$0xff] }
 0x2b7   : > { %v10572_v60 = vmul.f32 %v9773_v45, %v10461_v6  ;;  %v1006_v57 = vmul.f32 %v10577_v14, %v10552_v36  ;;  %v1795_v32 = vmul.f32 %v10584_v53, %v10552_v36  ;;  %v2586_v23 = vmul.f32 %v9684_v59, %v10552_v36 }
 0x2b8   : > { %v3476_v17 = vsel %vm1203_vm2, %v15032_v30, %v15031_v44  ;;  %v10591_v8 = vadd.f32 %v9871_v28, %v5469_v9  ;;  %v10594_v2 = vadd.f32 %v9871_v28, %v5470_v33  ;;  %v13950_v50 = vrot.slane %v10550_v15, 7 }
 0x2b9   : > { %v3662_v49 = vmul.f32 %v9596_v29, %v10552_v36  ;;  %v1059_v62 = vadd.f32 %v1006_v57, %v15033_v52  ;;  %v1924_v3 = vrot.slane %v1795_v32, 7  ;;  %v2713_v20 = vrot.slane %v2586_v23, 6  ;;  %v10612_v29 = vld [vmem:[%s13634_s2 + $0x3] ss:$0 sm:$0xff] }
 0x2ba   : > { %v3239_v59 = vmul.f32 %v10603_v27, %v10552_v36  ;;  %v13949_v1 = vmax.f32 %v10591_v8, 0.0  ;;  %v13948_v11 = vmax.f32 %v10594_v2, 0.0  ;;  %v3978_v31 = vmul.f32 %v10612_v29, %v10552_v36 }
 0x2bb   : > { %v3790_v5 = vrot.slane %v3662_v49, 1  ;;  %v1385_v9 = vadd.f32 %v1252_v21, %v1059_v62  ;;  %v15034_v33 = vrot.slane %v10335_v46, 7  ;;  %v1927_v30 = vsel %vm1541_vm0, %v1924_v3, %v1926_v63  ;;  %v15035_v49 = vld [vmem:[#allocation177_spill] sm:$0xff] }
 0x2bc   : > { %v2714_v57 = vsel %vm2334_vm1, %v2711_v55, %v2713_v20  ;;  %v5701_v32 = vrot.slane %v13949_v1, 7  ;;  %v10629_v23 = vrot.slane %v13948_v11, 7  ;;  %v2063_v46 = vadd.f32 %v1927_v30, %v10361_v37  ;;  %v15041_v11 = vld [vmem:[#allocation164_spill] sm:$0xff]  ;;  %v10657_v1 = vpop.permute.xlu1 %844 }
 0x2bd   : > { %v1925_v44 = vsel %vm1541_vm0, %v15034_v33, %v1924_v3  ;;  %v10634_v52 = vadd.f32 %v15035_v49, %v1385_v9  ;;  %v2716_v39 = vsel %vm2334_vm1, %v2713_v20, %v2715_v22  ;;  %v2853_v55 = vadd.f32 %v2714_v57, %v2514_v16 }
 0x2be   : > { %v2062_v21 = vadd.f32 %v1925_v44, %v10433_v38  ;;  %v15036_v62 = vrot.slane %v10365_v41, 1  ;;  %v5702_v33 = vsel %vm1541_vm0, %v10424_v18, %v5701_v32  ;;  %v5704_v37 = vsel %vm1541_vm0, %v5701_v32, %v10629_v23  ;;  %v15037_v38 = vld [vmem:[#allocation162_spill] sm:$0xff]  ;;  %v15038_v44 = vld [vmem:[#allocation189_spill] sm:$0xff] }
 0x2bf   : > { %v10648_v30 = vadd.f32 %v15038_v44, %v2063_v46  ;;  %v15039_v20 = vmax.f32 %v10399_v7, 0.0  ;;  %v15040_v16 = vmax.f32 %v10402_v42, 0.0  ;;  %v2854_v57 = vadd.f32 %v2716_v39, %v2515_v56  ;;  %v15042_v42 = vld [vmem:[#allocation180_spill] sm:$0xff] }
 0x2c0   : > { %v3791_v3 = vsel %vm1203_vm2, %v15036_v62, %v3790_v5  ;;  %v2176_v9 = vadd.f32 %v15037_v38, %v2062_v21  ;;  %v10655_v62 = vadd.f32 %v15041_v11, %v2853_v55  ;;  %v13952_v18 = vrot.slane %v10572_v60, 6 }
 0x2c1   : > { %v5839_v49 = vmax.f32 %v15039_v20, %v5702_v33  ;;  %v5840_v41 = vmax.f32 %v15040_v16, %v5704_v37  ;;  %v10662_v32 = vmul.f32 %v9780_v12, %v10461_v6  ;;  %v3925_v21 = vadd.f32 %v3791_v3, %v10383_v58  ;;  %v15046_v33 = vld [vmem:[#allocation195_spill] sm:$0xff] }
 0x2c2   : > { %v4107_v46 = vrot.slane %v3978_v31, 7  ;;  %v4456_v7 = vadd.f32 %v10492_v25, %v10500_v47  ;;  %v3183_v56 = vadd.f32 %v15042_v42, %v2854_v57  ;;  %v4509_v11 = vmul.f32 %v9773_v45, %v10552_v36  ;;  %v15044_v25 = vld [vmem:[#allocation188_spill] sm:$0xff] }
 0x2c3   : > { %5891 = vst.msk [vmem:[%s9078_s8 + $0x78] sm:$0xff] %vm5875_vm3, %v5839_v49  ;;  %5892 = vst.msk [vmem:[%s9078_s8 + $0x80] sm:$0xff] %vm5875_vm3, %v5840_v41  ;;  %v5151_v39 = vmul.f32 %v9780_v12, %v10552_v36  ;;  %v15043_v55 = vrot.slane %v10375_v61, 7  ;;  %v1009_v3 = vmul.f32 %v10577_v14, %v10657_v1  ;;  %v15045_v47 = vrot.slane %v15044_v25, 1  ;;  %v15048_v41 = vld [vmem:[#allocation204_spill] sm:$0xff] }
 0x2c4   : > { %v4110_v31 = vsel %vm1541_vm0, %v4107_v46, %v13950_v50  ;;  %v15047_v37 = vrot.slane %v15046_v33, 1  ;;  %v3609_v38 = vadd.f32 %v3476_v17, %v3239_v59  ;;  %v4636_v61 = vrot.slane %v4509_v11, 6  ;;  %v10708_v59 = vld [vmem:[%s13634_s2 + $0x5] ss:$0 sm:$0xff] }
 0x2c5   : > { %v4108_v58 = vsel %vm1541_vm0, %v15043_v55, %v4107_v46  ;;  %v4246_v44 = vadd.f32 %v4110_v31, %v3925_v21  ;;  %v13951_v20 = vrot.slane %v10662_v32, 7  ;;  %v3793_v49 = vsel %vm1203_vm2, %v3790_v5, %v13953_v24  ;;  %v15049_v46 = vld [vmem:[#allocation167_spill] sm:$0xff]  ;;  %v15050_v55 = vld [vmem:[#allocation190_spill] sm:$0xff] }
 0x2c6   : > { %v1258_v45 = vsel %vm1203_vm2, %v15047_v37, %v15045_v47  ;;  %v4245_v12 = vadd.f32 %v4108_v58, %v10520_v34  ;;  %v5278_v16 = vrot.slane %v5151_v39, 7  ;;  %v1062_v57 = vadd.f32 %v1009_v3, %v15048_v41  ;;  %v10726_v31 = vld [vmem:[%s13634_s2 + $0x7] ss:$0 sm:$0xff]  ;;  %v15053_v47 = vld [vmem:[#allocation192_spill] sm:$0xff] }
 0x2c7   : > { %v10697_v50 = vadd.f32 %v15050_v55, %v4246_v44  ;;  %v4637_v34 = vsel %vm2334_vm1, %v4634_v13, %v4636_v61  ;;  %v4639_v17 = vsel %vm2334_vm1, %v4636_v61, %v13952_v18  ;;  %v10712_v5 = vmul.f32 %v10708_v59, %v10461_v6  ;;  %v10744_v44 = vld [vmem:[%s13634_s2 + $0x2] ss:$0 sm:$0xff] }
 0x2c8   : > { %v4351_v42 = vadd.f32 %v15049_v46, %v4245_v12  ;;  %v4404_v21 = vmul.f32 %v10708_v59, %v10552_v36  ;;  %v4776_v35 = vadd.f32 %v4637_v34, %v10529_v43  ;;  %v4777_v11 = vadd.f32 %v4639_v17, %v4456_v7  ;;  %v15051_v36 = vld [vmem:[#allocation166_spill] sm:$0xff]  ;;  %v15052_v43 = vld [vmem:[#allocation183_spill] sm:$0xff] }
 0x2c9   : > { %v10717_v13 = vadd.f32 %v3793_v49, %v3609_v38  ;;  %v1388_v39 = vadd.f32 %v1258_v45, %v1062_v57  ;;  %v10721_v58 = vmul.f32 %v10584_v53, %v10657_v1  ;;  %v10730_v6 = vmul.f32 %v10726_v31, %v10657_v1  ;;  %v15055_v45 = vld [vmem:[#allocation205_spill] sm:$0xff]  ;;  %v15057_v57 = vld [vmem:[#allocation212_spill] sm:$0xff] }
 0x2ca   : > { %v5097_v3 = vadd.f32 %v15051_v36, %v4776_v35  ;;  %v5098_v7 = vadd.f32 %v15052_v43, %v4777_v11  ;;  %v15054_v37 = vrot.slane %v15053_v47, 1  ;;  %v15056_v38 = vrot.slane %v15055_v45, 1 }
 0x2cb   : > { %v10748_v61 = vmul.f32 %v10744_v44, %v10657_v1  ;;  %v5279_v49 = vsel %vm1541_vm0, %v5276_v54, %v5278_v16  ;;  %v5281_v41 = vsel %vm1541_vm0, %v5278_v16, %v13951_v20  ;;  %v10757_v46 = vadd.f32 %v15057_v57, %v1388_v39  ;;  %v10769_v54 = vpop.permute.xlu0 %839 }
 0x2cc   : > { %v10739_v12 = vsel %vm1203_vm2, %v15056_v38, %v15054_v37  ;;  %v10761_v55 = vmul.f32 %v10612_v29, %v10657_v1  ;;  %v10763_v34 = vadd.f32 %v4404_v21, %v4351_v42  ;;  %v5418_v17 = vadd.f32 %v5279_v49, %v5097_v3  ;;  %v15060_v42 = vld [vmem:[#allocation179_spill] sm:$0xff]  ;;  %v15061_v38 = vld [vmem:[#allocation196_spill] sm:$0xff] }
 0x2cd   : > { %v5419_v35 = vadd.f32 %v5281_v41, %v5098_v7  ;;  %v10767_v51 = vmul.f32 %v10603_v27, %v10657_v1  ;;  %v13956_v11 = vrot.slane %v10721_v58, 7  ;;  %v2719_v16 = vrot.slane %v10730_v6, 6 }
 0x2ce   : > { %v15058_v39 = vrot.slane %v15046_v33, 1  ;;  %v15059_v36 = vrot.slane %v15010_v19, 1  ;;  %v2516_v21 = vadd.f32 %v15060_v42, %v2176_v9  ;;  %v5471_v3 = vmax.f32 %v10655_v62, %v5418_v17  ;;  %v10787_v33 = vld [vmem:[%s13634_s2 + $0x6] ss:$0 sm:$0xff] }
 0x2cf   : > { %v5472_v7 = vmax.f32 %v3183_v56, %v5419_v35  ;;  %v2517_v49 = vadd.f32 %v15061_v38, %v10648_v30  ;;  %v10791_v19 = vmul.f32 %v10787_v33, %v10657_v1  ;;  %v15062_v9 = vrot.slane %v15055_v45, 1 }
 0x2d0   : > { %v1256_v43 = vsel %vm1203_vm2, %v15059_v36, %v15058_v39  ;;  %v15063_v62 = vrot.slane %v15019_v40, 1  ;;  %v1008_v30 = vmul.f32 %v10577_v14, %v10769_v54  ;;  %v10801_v57 = vadd.f32 %v9871_v28, %v5471_v3  ;;  %v10813_v40 = vld [vmem:[%s13634_s2 + $0x8] ss:$0 sm:$0xff]  ;;  %v15065_v36 = vld [vmem:[#allocation172_spill] sm:$0xff] }
 0x2d1   : > { %v10804_v17 = vadd.f32 %v9871_v28, %v5472_v7  ;;  %v1797_v35 = vmul.f32 %v10584_v53, %v10769_v54  ;;  %v2588_v39 = vmul.f32 %v10726_v31, %v10769_v54  ;;  %v10817_v45 = vmul.f32 %v10813_v40, %v10657_v1 }
 0x2d2   : > { %v3480_v56 = vsel %vm1203_vm2, %v15063_v62, %v15062_v9  ;;  %v1061_v42 = vadd.f32 %v1008_v30, %v15065_v36  ;;  %v3664_v28 = vmul.f32 %v10744_v44, %v10769_v54  ;;  %v3980_v3 = vmul.f32 %v10612_v29, %v10769_v54 }
 0x2d3   : > { %15064 = vst [vmem:[#allocation26_spill] sm:$0xff] %v10804_v17  ;;  %v13955_v7 = vmax.f32 %v10801_v57, 0.0  ;;  %v13954_v38 = vmax.f32 %v10804_v17, 0.0  ;;  %v1928_v9 = vrot.slane %v1797_v35, 7  ;;  %v2717_v62 = vrot.slane %v2588_v39, 6  ;;  %v15066_v35 = vld [vmem:[#allocation194_spill] sm:$0xff] }
 0x2d4   : > { %v1387_v20 = vadd.f32 %v1256_v43, %v1061_v42  ;;  %v3241_v18 = vmul.f32 %v10603_v27, %v10769_v54  ;;  %v3794_v37 = vrot.slane %v3664_v28, 1  ;;  %v4111_v41 = vrot.slane %v3980_v3, 7 }
 0x2d5   : > { %v5705_v30 = vrot.slane %v13955_v7, 7  ;;  %v10832_v36 = vrot.slane %v13954_v38, 7  ;;  %v1929_v24 = vsel %vm1541_vm0, %v1926_v63, %v1928_v9  ;;  %v1931_v43 = vsel %vm1541_vm0, %v1928_v9, %v13956_v11  ;;  %v15071_v11 = vld [vmem:[#allocation181_spill] sm:$0xff] }
 0x2d6   : > { %v10841_v39 = vadd.f32 %v15066_v35, %v1387_v20  ;;  %v2064_v42 = vadd.f32 %v1929_v24, %v10634_v52  ;;  %v2065_v28 = vadd.f32 %v1931_v43, %v10544_v10  ;;  %v2718_v3 = vsel %vm2334_vm1, %v2715_v22, %v2717_v62  ;;  %v15069_v43 = vld [vmem:[#allocation182_spill] sm:$0xff] }
 0x2d7   : > { %v5706_v26 = vsel %vm1541_vm0, %v10629_v23, %v5705_v30  ;;  %v5708_v63 = vsel %vm1541_vm0, %v5705_v30, %v10832_v36  ;;  %v2720_v20 = vsel %vm2334_vm1, %v2717_v62, %v2719_v16  ;;  %v2855_v9 = vadd.f32 %v2718_v3, %v2516_v21  ;;  %v15070_v22 = vld [vmem:[#allocation206_spill] sm:$0xff]  ;;  %v10868_v62 = vpop.permute.xlu1 %854 }
 0x2d8   : > { %v15067_v24 = vmax.f32 %v10591_v8, 0.0  ;;  %v15068_v10 = vmax.f32 %v10594_v2, 0.0  ;;  %v2178_v35 = vadd.f32 %v15069_v43, %v2064_v42  ;;  %v2179_v38 = vadd.f32 %v15070_v22, %v2065_v28  ;;  %v15074_v28 = vld [vmem:[#allocation199_spill] sm:$0xff] }
 0x2d9   : > { %v13959_v23 = vrot.slane %v10791_v19, 6  ;;  %v2856_v7 = vadd.f32 %v2720_v20, %v2517_v49  ;;  %v10863_v30 = vadd.f32 %v15071_v11, %v2855_v9  ;;  %v15072_v17 = vrot.slane %v10535_v48, 1 }
 0x2da   : > { %v5841_v52 = vmax.f32 %v15067_v24, %v5706_v26  ;;  %v5842_v4 = vmax.f32 %v15068_v10, %v5708_v63  ;;  %v4458_v8 = vadd.f32 %v10712_v5, %v10697_v50  ;;  %v3611_v2 = vadd.f32 %v3480_v56, %v3241_v18  ;;  %v15078_v5 = vld [vmem:[#allocation211_spill] sm:$0xff] }
 0x2db   : > { %v3795_v21 = vsel %vm1203_vm2, %v15072_v17, %v3794_v37  ;;  %v15073_v49 = vrot.slane %v10550_v15, 7  ;;  %v3185_v48 = vadd.f32 %v15074_v28, %v2856_v7  ;;  %v15075_v17 = vrot.slane %v10761_v55, 7 }
 0x2dc   : > { %5893 = vst.msk [vmem:[%s9078_s8 + $0x88] sm:$0xff] %vm5875_vm3, %v5841_v52  ;;  %5894 = vst.msk [vmem:[%s9078_s8 + $0x90] sm:$0xff] %vm5875_vm3, %v5842_v4  ;;  %v3927_v42 = vadd.f32 %v3795_v21, %v10554_v0  ;;  %v4511_v63 = vmul.f32 %v10787_v33, %v10769_v54  ;;  %v5153_v50 = vmul.f32 %v10813_v40, %v10769_v54  ;;  %v15076_v0 = vld [vmem:[#allocation209_spill] sm:$0xff]  ;;  %v15079_v56 = vrot.slane %v15078_v5, 1  ;;  %v15083_v21 = vld [vmem:[#allocation207_spill] sm:$0xff] }
 0x2dd   : > { %v4112_v11 = vsel %vm1541_vm0, %v15073_v49, %v4111_v41  ;;  %v4114_v3 = vsel %vm1541_vm0, %v4111_v41, %v15075_v17  ;;  %v1011_v15 = vmul.f32 %v10577_v14, %v10868_v62  ;;  %v15077_v18 = vrot.slane %v15076_v0, 1  ;;  %v15082_v52 = vld [vmem:[#allocation185_spill] sm:$0xff]  ;;  %v15084_v49 = vld [vmem:[#allocation223_spill] sm:$0xff] }
 0x2de   : > { %v4247_v26 = vadd.f32 %v4112_v11, %v10717_v13  ;;  %v4248_v20 = vadd.f32 %v4114_v3, %v3927_v42  ;;  %v15081_v13 = vrot.slane %v10748_v61, 1  ;;  %v4640_v4 = vrot.slane %v4511_v63, 6 }
 0x2df   : > { %v1262_v7 = vsel %vm1203_vm2, %v15079_v56, %v15077_v18  ;;  %v10903_v43 = vadd.f32 %v10739_v12, %v10767_v51  ;;  %v10907_v22 = vmul.f32 %v10708_v59, %v10657_v1  ;;  %v1064_v11 = vadd.f32 %v1011_v15, %v15084_v49  ;;  %v15086_v18 = vld [vmem:[#allocation210_spill] sm:$0xff] }
 0x2e0   : > { %v3797_v24 = vsel %vm1203_vm2, %v3794_v37, %v15081_v13  ;;  %v4353_v10 = vadd.f32 %v15082_v52, %v4247_v26  ;;  %v10910_v42 = vadd.f32 %v15083_v21, %v4248_v20  ;;  %v13958_v28 = vrot.slane %v10817_v45, 7 }
 0x2e1   : > { %v15085_v37 = vrot.slane %v10572_v60, 6  ;;  %v4643_v12 = vsel %vm2334_vm1, %v4640_v4, %v13959_v23  ;;  %v5282_v51 = vrot.slane %v5153_v50, 7  ;;  %v10920_v3 = vadd.f32 %v3797_v24, %v3611_v2  ;;  %v15088_v50 = vld [vmem:[#allocation222_spill] sm:$0xff]  ;;  %v15091_v24 = vld [vmem:[#allocation201_spill] sm:$0xff] }
 0x2e2   : > { %v4779_v26 = vadd.f32 %v4643_v12, %v4458_v8  ;;  %v10925_v63 = vmul.f32 %v10584_v53, %v10868_v62  ;;  %v4406_v20 = vmul.f32 %v10708_v59, %v10769_v54  ;;  %v1390_v60 = vadd.f32 %v1262_v7, %v1064_v11 }
 0x2e3   : > { %v4641_v17 = vsel %vm2334_vm1, %v15085_v37, %v4640_v4  ;;  %v10931_v15 = vmul.f32 %v10726_v31, %v10868_v62  ;;  %v15087_v56 = vrot.slane %v15086_v18, 1  ;;  %v15089_v2 = vrot.slane %v15088_v50, 1  ;;  %v15093_v37 = vld [vmem:[#allocation229_spill] sm:$0xff] }
 0x2e4   : > { %v4778_v1 = vadd.f32 %v4641_v17, %v10763_v34  ;;  %v15090_v34 = vld [vmem:[#allocation184_spill] sm:$0xff]  ;;  %v5100_v52 = vadd.f32 %v15091_v24, %v4779_v26  ;;  %v10944_v4 = vmul.f32 %v10603_v27, %v10868_v62  ;;  %v10948_v54 = vmul.f32 %v10744_v44, %v10868_v62 }
 0x2e5   : > { %v10938_v13 = vsel %vm1203_vm2, %v15089_v2, %v15087_v56  ;;  %v10950_v7 = vadd.f32 %v4406_v20, %v4353_v10  ;;  %v15092_v21 = vrot.slane %v10662_v32, 7  ;;  %v5285_v11 = vsel %vm1541_vm0, %v5282_v51, %v13958_v28  ;;  %v10966_v10 = vpop.permute.xlu0 %849 }
 0x2e6   : > { %v5099_v8 = vadd.f32 %v15090_v34, %v4778_v1  ;;  %v10959_v17 = vadd.f32 %v15093_v37, %v1390_v60  ;;  %v5421_v1 = vadd.f32 %v5285_v11, %v5100_v52  ;;  %v13963_v26 = vrot.slane %v10925_v63, 7  ;;  %v15096_v60 = vld [vmem:[#allocation197_spill] sm:$0xff] }
 0x2e7   : > { %v5283_v49 = vsel %vm1541_vm0, %v15092_v21, %v5282_v51  ;;  %v10964_v56 = vmul.f32 %v10612_v29, %v10868_v62  ;;  %v13962_v32 = vrot.slane %v10931_v15, 6  ;;  %v15094_v20 = vrot.slane %v15078_v5, 1 }
 0x2e8   : > { %v5420_v12 = vadd.f32 %v5283_v49, %v5099_v8  ;;  %v15095_v2 = vrot.slane %v15044_v25, 1  ;;  %v2518_v34 = vadd.f32 %v15096_v60, %v2178_v35  ;;  %v15097_v8 = vld [vmem:[#allocation214_spill] sm:$0xff]  ;;  %v5474_v21 = vmax.f32 %v3185_v48, %v5421_v1  ;;  %v15100_v1 = vld [vmem:[#allocation191_spill] sm:$0xff] }
 0x2e9   : > { %v2519_v24 = vadd.f32 %v15097_v8, %v2179_v38  ;;  %v15098_v11 = vrot.slane %v15088_v50, 1  ;;  %v15099_v37 = vrot.slane %v15053_v47, 1  ;;  %v10985_v25 = vmul.f32 %v10787_v33, %v10868_v62  ;;  %v10996_v48 = vld [vmem:[%s13635_s3] ss:$0 sm:$0xff] }
 0x2ea   : > { %v1260_v51 = vsel %vm1203_vm2, %v15095_v2, %v15094_v20  ;;  %v5473_v52 = vmax.f32 %v10863_v30, %v5420_v12  ;;  %v1010_v35 = vmul.f32 %v10577_v14, %v10966_v10  ;;  %v1799_v38 = vmul.f32 %v10584_v53, %v10966_v10 }
 0x2eb   : > { %v3484_v41 = vsel %vm1203_vm2, %v15099_v37, %v15098_v11  ;;  %v2590_v30 = vmul.f32 %v10726_v31, %v10966_v10  ;;  %v11002_v5 = vadd.f32 %v10996_v48, %v5474_v21  ;;  %v13964_v50 = vrot.slane %v10964_v56, 7 }
 0x2ec   : > { %v10999_v47 = vadd.f32 %v10996_v48, %v5473_v52  ;;  %v3666_v12 = vmul.f32 %v10744_v44, %v10966_v10  ;;  %v1063_v20 = vadd.f32 %v1010_v35, %v15100_v1  ;;  %v1932_v2 = vrot.slane %v1799_v38, 7 }
 0x2ed   : > { %v2721_v60 = vrot.slane %v2590_v30, 6  ;;  %v3243_v8 = vmul.f32 %v10603_v27, %v10966_v10  ;;  %v13960_v52 = vmax.f32 %v11002_v5, 0.0  ;;  %v3982_v21 = vmul.f32 %v10612_v29, %v10966_v10 }
 0x2ee   : > { %v13961_v11 = vmax.f32 %v10999_v47, 0.0  ;;  %v3798_v37 = vrot.slane %v3666_v12, 1  ;;  %v1389_v28 = vadd.f32 %v1260_v51, %v1063_v20  ;;  %v15101_v23 = vrot.slane %v10721_v58, 7 }
 0x2ef   : > { %v1935_v35 = vsel %vm1541_vm0, %v1932_v2, %v13963_v26  ;;  %v2722_v38 = vsel %vm2334_vm1, %v2719_v16, %v2721_v60  ;;  %v11027_v12 = vrot.slane %v13960_v52, 7  ;;  %v2724_v6 = vsel %vm2334_vm1, %v2721_v60, %v13962_v32  ;;  %v15109_v32 = vld [vmem:[#allocation200_spill] sm:$0xff] }
 0x2f0   : > { %v1933_v49 = vsel %vm1541_vm0, %v15101_v23, %v1932_v2  ;;  %v5709_v30 = vrot.slane %v13961_v11, 7  ;;  %v2067_v58 = vadd.f32 %v1935_v35, %v10757_v46  ;;  %v15102_v23 = vld [vmem:[#allocation213_spill] sm:$0xff]  ;;  %v2857_v16 = vadd.f32 %v2722_v38, %v2518_v34  ;;  %v15107_v11 = vld [vmem:[#allocation26_spill] sm:$0xff] }
 0x2f1   : > { %v2066_v51 = vadd.f32 %v1933_v49, %v10841_v39  ;;  %v11032_v1 = vadd.f32 %v15102_v23, %v1389_v28  ;;  %v15103_v20 = vrot.slane %v10748_v61, 1  ;;  %v15104_v39 = vld [vmem:[#allocation198_spill] sm:$0xff]  ;;  %v15105_v49 = vld [vmem:[#allocation225_spill] sm:$0xff]  ;;  %v15106_v23 = vmax.f32 %v10801_v57, 0.0 }
 0x2f2   : > { %v5710_v52 = vsel %vm1541_vm0, %v10832_v36, %v5709_v30  ;;  %v5712_v46 = vsel %vm1541_vm0, %v5709_v30, %v11027_v12  ;;  %v2181_v35 = vadd.f32 %v15105_v49, %v2067_v58  ;;  %v15108_v34 = vmax.f32 %v15107_v11, 0.0 }
 0x2f3   : > { %v3799_v2 = vsel %vm1203_vm2, %v15103_v20, %v3798_v37  ;;  %v2180_v28 = vadd.f32 %v15104_v39, %v2066_v51  ;;  %v5843_v60 = vmax.f32 %v15106_v23, %v5710_v52  ;;  %v2858_v61 = vadd.f32 %v2724_v6, %v2519_v24  ;;  %v11051_v20 = vpop.permute.xlu1 %864  ;;  %v15110_v24 = vld [vmem:[#allocation216_spill] sm:$0xff] }
 0x2f4   : > { %v5844_v38 = vmax.f32 %v15108_v34, %v5712_v46  ;;  %v3186_v26 = vadd.f32 %v15109_v32, %v2857_v16  ;;  %v11056_v30 = vmul.f32 %v10813_v40, %v10868_v62  ;;  %v3929_v51 = vadd.f32 %v3799_v2, %v10903_v43  ;;  %v15114_v2 = vld [vmem:[#allocation231_spill] sm:$0xff] }
 0x2f5   : > { %v4115_v58 = vrot.slane %v3982_v21, 7  ;;  %5895 = vst.msk [vmem:[%s9078_s8 + $0x98] sm:$0xff] %vm5875_vm3, %v5843_v60  ;;  %v4460_v57 = vadd.f32 %v10907_v22, %v10910_v42  ;;  %v3187_v32 = vadd.f32 %v15110_v24, %v2858_v61  ;;  %v4513_v11 = vmul.f32 %v10787_v33, %v10966_v10  ;;  %v15112_v22 = vld [vmem:[#allocation224_spill] sm:$0xff] }
 0x2f6   : > { %5896 = vst.msk [vmem:[%s9078_s8 + $0xa0] sm:$0xff] %vm5875_vm3, %v5844_v38  ;;  %v5155_v52 = vmul.f32 %v10813_v40, %v10966_v10  ;;  %v15111_v6 = vrot.slane %v10761_v55, 7  ;;  %v1013_v16 = vmul.f32 %v10577_v14, %v11051_v20  ;;  %v15113_v42 = vrot.slane %v15112_v22, 1  ;;  %v15117_v24 = vld [vmem:[#allocation240_spill] sm:$0xff]  ;;  %v15119_v22 = vld [vmem:[#allocation226_spill] sm:$0xff] }
 0x2f7   : > { %v4118_v21 = vsel %vm1541_vm0, %v4115_v58, %v13964_v50  ;;  %v15115_v46 = vrot.slane %v15114_v2, 1  ;;  %v3613_v49 = vadd.f32 %v3484_v41, %v3243_v8  ;;  %v4644_v55 = vrot.slane %v4513_v11, 6  ;;  %v15118_v50 = vld [vmem:[#allocation203_spill] sm:$0xff] }
 0x2f8   : > { %v4116_v43 = vsel %vm1541_vm0, %v15111_v6, %v4115_v58  ;;  %v4250_v60 = vadd.f32 %v4118_v21, %v3929_v51  ;;  %v13965_v34 = vrot.slane %v11056_v30, 7  ;;  %v15116_v38 = vrot.slane %v10948_v54, 1 }
 0x2f9   : > { %v1266_v39 = vsel %vm1203_vm2, %v15115_v46, %v15113_v42  ;;  %v4249_v23 = vadd.f32 %v4116_v43, %v10920_v3  ;;  %v5286_v58 = vrot.slane %v5155_v52, 7  ;;  %v1066_v6 = vadd.f32 %v1013_v16, %v15117_v24  ;;  %v15126_v46 = vld [vmem:[#allocation241_spill] sm:$0xff] }
 0x2fa   : > { %v3801_v61 = vsel %vm1203_vm2, %v3798_v37, %v15116_v38  ;;  %v11091_v9 = vadd.f32 %v15119_v22, %v4250_v60  ;;  %v15120_v41 = vrot.slane %v10791_v19, 6  ;;  %v15121_v8 = vrot.slane %v10985_v25, 6  ;;  %v15122_v22 = vld [vmem:[#allocation202_spill] sm:$0xff] }
 0x2fb   : > { %v4355_v36 = vadd.f32 %v15118_v50, %v4249_v23  ;;  %v11101_v11 = vadd.f32 %v10938_v13, %v10944_v4  ;;  %v11105_v37 = vmul.f32 %v10708_v59, %v10868_v62  ;;  %v11108_v43 = vadd.f32 %v3801_v61, %v3613_v49  ;;  %v15123_v4 = vld [vmem:[#allocation219_spill] sm:$0xff] }
 0x2fc   : > { %v4645_v3 = vsel %vm2334_vm1, %v15120_v41, %v4644_v55  ;;  %v4647_v51 = vsel %vm2334_vm1, %v4644_v55, %v15121_v8  ;;  %v4408_v19 = vmul.f32 %v10708_v59, %v10966_v10  ;;  %v1392_v21 = vadd.f32 %v1266_v39, %v1066_v6  ;;  %v15129_v55 = vld [vmem:[#allocation248_spill] sm:$0xff] }
 0x2fd   : > { %v4780_v50 = vadd.f32 %v4645_v3, %v10950_v7  ;;  %v4781_v52 = vadd.f32 %v4647_v51, %v4460_v57  ;;  %v11114_v16 = vmul.f32 %v10584_v53, %v11051_v20  ;;  %v11120_v62 = vmul.f32 %v10726_v31, %v11051_v20  ;;  %v15124_v7 = vld [vmem:[#allocation228_spill] sm:$0xff]  ;;  %v11148_v3 = vpop.permute.xlu0 %859 }
 0x2fe   : > { %v15125_v57 = vrot.slane %v15124_v7, 1  ;;  %v15127_v49 = vrot.slane %v15126_v46, 1  ;;  %v15128_v10 = vrot.slane %v10817_v45, 7  ;;  %v5289_v60 = vsel %vm1541_vm0, %v5286_v58, %v13965_v34 }
 0x2ff   : > { %v5101_v13 = vadd.f32 %v15122_v22, %v4780_v50  ;;  %v5102_v42 = vadd.f32 %v15123_v4, %v4781_v52  ;;  %v11136_v38 = vadd.f32 %v15129_v55, %v1392_v21  ;;  %v11140_v61 = vmul.f32 %v10744_v44, %v11051_v20  ;;  %v15132_v52 = vld [vmem:[#allocation215_spill] sm:$0xff]  ;;  %v15133_v4 = vld [vmem:[#allocation232_spill] sm:$0xff] }
 0x300   : > { %v11127_v23 = vsel %vm1203_vm2, %v15127_v49, %v15125_v57  ;;  %v5287_v39 = vsel %vm1541_vm0, %v15128_v10, %v5286_v58  ;;  %v11142_v24 = vadd.f32 %v4408_v19, %v4355_v36  ;;  %v11146_v45 = vmul.f32 %v10603_v27, %v11051_v20 }
 0x301   : > { %v5422_v6 = vadd.f32 %v5287_v39, %v5101_v13  ;;  %v5423_v41 = vadd.f32 %v5289_v60, %v5102_v42  ;;  %v13968_v8 = vrot.slane %v11114_v16, 7  ;;  %v11153_v58 = vmul.f32 %v10612_v29, %v11051_v20 }
 0x302   : > { %v15130_v51 = vrot.slane %v15114_v2, 1  ;;  %v15131_v50 = vrot.slane %v15076_v0, 1  ;;  %v2520_v19 = vadd.f32 %v15132_v52, %v2180_v28  ;;  %v13972_v13 = vrot.slane %v11120_v62, 6 }
 0x303   : > { %v5475_v21 = vmax.f32 %v3186_v26, %v5422_v6  ;;  %v5476_v22 = vmax.f32 %v3187_v32, %v5423_v41  ;;  %v2521_v42 = vadd.f32 %v15133_v4, %v2181_v35  ;;  %v11166_v49 = vmul.f32 %v10787_v33, %v11051_v20 }
 0x304   : > { %v1264_v36 = vsel %vm1203_vm2, %v15131_v50, %v15130_v51  ;;  %v15134_v2 = vrot.slane %v15126_v46, 1  ;;  %v15135_v0 = vrot.slane %v15086_v18, 1  ;;  %v1012_v26 = vmul.f32 %v10577_v14, %v11148_v3  ;;  %v15136_v18 = vld [vmem:[#allocation208_spill] sm:$0xff] }
 0x305   : > { %v11176_v28 = vadd.f32 %v10996_v48, %v5475_v21  ;;  %v11179_v35 = vadd.f32 %v10996_v48, %v5476_v22  ;;  %v1801_v32 = vmul.f32 %v10584_v53, %v11148_v3  ;;  %v2592_v39 = vmul.f32 %v10726_v31, %v11148_v3 }
 0x306   : > { %v3488_v10 = vsel %vm1203_vm2, %v15135_v0, %v15134_v2  ;;  %v13969_v46 = vrot.slane %v11153_v58, 7  ;;  %v1065_v60 = vadd.f32 %v1012_v26, %v15136_v18  ;;  %v3668_v55 = vmul.f32 %v10744_v44, %v11148_v3 }
 0x307   : > { %v3984_v6 = vmul.f32 %v10612_v29, %v11148_v3  ;;  %v13967_v41 = vmax.f32 %v11176_v28, 0.0  ;;  %v13966_v51 = vmax.f32 %v11179_v35, 0.0  ;;  %v1936_v50 = vrot.slane %v1801_v32, 7 }
 0x308   : > { %v2725_v52 = vrot.slane %v2592_v39, 6  ;;  %v11195_v21 = vmul.f32 %v10813_v40, %v11051_v20  ;;  %v1391_v22 = vadd.f32 %v1264_v36, %v1065_v60  ;;  %v3802_v4 = vrot.slane %v3668_v55, 1  ;;  %v15138_v39 = vld [vmem:[#allocation230_spill] sm:$0xff] }
 0x309   : > { %v4119_v2 = vrot.slane %v3984_v6, 7  ;;  %v5713_v0 = vrot.slane %v13967_v41, 7  ;;  %v11201_v26 = vrot.slane %v13966_v51, 7  ;;  %v15137_v18 = vrot.slane %v10925_v63, 7 }
 0x30a   : > { %v1939_v32 = vsel %vm1541_vm0, %v1936_v50, %v13968_v8  ;;  %v11210_v57 = vadd.f32 %v15138_v39, %v1391_v22  ;;  %v15139_v55 = vrot.slane %v10931_v15, 6 }
 0x30b   : > { %v1937_v34 = vsel %vm1541_vm0, %v15137_v18, %v1936_v50  ;;  %v2069_v60 = vadd.f32 %v1939_v32, %v10959_v17  ;;  %v5714_v63 = vsel %vm1541_vm0, %v11027_v12, %v5713_v0  ;;  %v5716_v18 = vsel %vm1541_vm0, %v5713_v0, %v11201_v26  ;;  %v15142_v32 = vld [vmem:[#allocation218_spill] sm:$0xff]  ;;  %v15144_v12 = vld [vmem:[#allocation217_spill] sm:$0xff] }
 0x30c   : > { %v2068_v36 = vadd.f32 %v1937_v34, %v11032_v1  ;;  %v2726_v6 = vsel %vm2334_vm1, %v15139_v55, %v2725_v52  ;;  %v2728_v50 = vsel %vm2334_vm1, %v2725_v52, %v13972_v13  ;;  %v15140_v1 = vmax.f32 %v10999_v47, 0.0  ;;  %v15143_v55 = vld [vmem:[#allocation242_spill] sm:$0xff]  ;;  %v11238_v47 = vpop.permute.xlu1 %874 }
 0x30d   : > { %v2859_v22 = vadd.f32 %v2726_v6, %v2520_v19  ;;  %v15141_v17 = vmax.f32 %v11002_v5, 0.0  ;;  %v2183_v51 = vadd.f32 %v15143_v55, %v2069_v60  ;;  %v2860_v41 = vadd.f32 %v2728_v50, %v2521_v42 }
 0x30e   : > { %v5845_v34 = vmax.f32 %v15140_v1, %v5714_v63  ;;  %v2182_v39 = vadd.f32 %v15142_v32, %v2068_v36  ;;  %v3245_v0 = vmul.f32 %v10603_v27, %v11148_v3  ;;  %v15145_v52 = vrot.slane %v10948_v54, 1  ;;  %v15147_v54 = vld [vmem:[#allocation235_spill] sm:$0xff] }
 0x30f   : > { %v5846_v15 = vmax.f32 %v15141_v17, %v5716_v18  ;;  %v11231_v8 = vadd.f32 %v15144_v12, %v2859_v22  ;;  %v13971_v5 = vrot.slane %v11166_v49, 6  ;;  %v4462_v42 = vadd.f32 %v11105_v37, %v11091_v9  ;;  %v15154_v32 = vld [vmem:[#allocation391_spill] sm:$0xff] }
 0x310   : > { %v3803_v19 = vsel %vm1203_vm2, %v15145_v52, %v3802_v4  ;;  %5897 = vst.msk [vmem:[%s9078_s8 + $0xa8] sm:$0xff] %vm5875_vm3, %v5845_v34  ;;  %v15146_v60 = vrot.slane %v10964_v56, 7  ;;  %v3189_v63 = vadd.f32 %v15147_v54, %v2860_v41  ;;  %v4122_v18 = vsel %vm1541_vm0, %v4119_v2, %v13969_v46  ;;  %v15150_v34 = vld [vmem:[#allocation247_spill] sm:$0xff]  ;;  %v15157_v52 = vld [vmem:[#allocation221_spill] sm:$0xff]  ;;  %v15162_v46 = vld [vmem:[#allocation260_spill] sm:$0xff] }
 0x311   : > { %5898 = vst.msk [vmem:[%s9078_s8 + $0xb0] sm:$0xff] %vm5875_vm3, %v5846_v15  ;;  %v3931_v36 = vadd.f32 %v3803_v19, %v11101_v11  ;;  %v4515_v22 = vmul.f32 %v10787_v33, %v11148_v3  ;;  %v5157_v9 = vmul.f32 %v10813_v40, %v11148_v3  ;;  %v1015_v56 = vmul.f32 %v10577_v14, %v11238_v47  ;;  %v15148_v11 = vld [vmem:[#allocation245_spill] sm:$0xff]  ;;  %v15152_v15 = vld [vmem:[#allocation419_spill] sm:$0xff] }
 0x312   : > { %v4120_v6 = vsel %vm1541_vm0, %v15146_v60, %v4119_v2  ;;  %v15149_v37 = vrot.slane %v15148_v11, 1  ;;  %v15151_v41 = vrot.slane %v15150_v34, 1  ;;  %v15153_v2 = vrot.slane %v15152_v15, 7  ;;  %v15158_v60 = vld [vmem:[#allocation425_spill] sm:$0xff] }
 0x313   : > { %v4251_v50 = vadd.f32 %v4120_v6, %v11108_v43  ;;  %v4252_v1 = vadd.f32 %v4122_v18, %v3931_v36  ;;  %v15155_v43 = vrot.slane %v15154_v32, 7  ;;  %v3615_v12 = vadd.f32 %v3488_v10, %v3245_v0 }
 0x314   : > { %v1270_v17 = vsel %vm1203_vm2, %v15151_v41, %v15149_v37  ;;  %v4648_v36 = vrot.slane %v4515_v22, 6  ;;  %v11277_v6 = vmul.f32 %v10612_v29, %v15158_v60  ;;  %v15160_v54 = vrot.slane %v11140_v61, 1  ;;  %v15161_v37 = vld [vmem:[#allocation243_spill] sm:$0xff] }
 0x315   : > { %v11272_v55 = vsel %vm1541_vm0, %v15155_v43, %v15153_v2  ;;  %v4357_v19 = vadd.f32 %v15157_v52, %v4251_v50  ;;  %v11283_v41 = vadd.f32 %v15161_v37, %v4252_v1  ;;  %v1068_v32 = vadd.f32 %v1015_v56, %v15162_v46 }
 0x316   : > { %15156 = vst [vmem:[#allocation7_spill] sm:$0xff] %v11272_v55  ;;  %15159 = vst [vmem:[#allocation27_spill] sm:$0xff] %v11277_v6  ;;  %v3805_v18 = vsel %vm1203_vm2, %v3802_v4, %v15160_v54  ;;  %v13970_v2 = vrot.slane %v11195_v21, 7  ;;  %v15163_v10 = vrot.slane %v10985_v25, 6  ;;  %v4651_v50 = vsel %vm2334_vm1, %v4648_v36, %v13971_v5  ;;  %v15166_v54 = vld [vmem:[#allocation250_spill] sm:$0xff] }
 0x317   : > { %v5290_v22 = vrot.slane %v5157_v9, 7  ;;  %v11295_v43 = vadd.f32 %v11127_v23, %v11146_v45  ;;  %v4783_v1 = vadd.f32 %v4651_v50, %v4462_v42  ;;  %v11300_v46 = vmul.f32 %v10584_v53, %v11238_v47  ;;  %v15168_v45 = vld [vmem:[#allocation220_spill] sm:$0xff] }
 0x318   : > { %v4649_v0 = vsel %vm2334_vm1, %v15163_v10, %v4648_v36  ;;  %v11304_v25 = vmul.f32 %v10708_v59, %v11051_v20  ;;  %v11306_v56 = vadd.f32 %v3805_v18, %v3615_v12  ;;  %v1394_v52 = vadd.f32 %v1270_v17, %v1068_v32  ;;  %v15164_v36 = vld [vmem:[#allocation246_spill] sm:$0xff]  ;;  %v15169_v10 = vld [vmem:[#allocation237_spill] sm:$0xff]  ;;  %v15171_v32 = vld [vmem:[#allocation272_spill] sm:$0xff] }
 0x319   : > { %v4782_v4 = vadd.f32 %v4649_v0, %v11142_v24  ;;  %v15165_v9 = vrot.slane %v15164_v36, 1  ;;  %v15167_v37 = vrot.slane %v15166_v54, 1  ;;  %v4410_v24 = vmul.f32 %v10708_v59, %v11148_v3 }
 0x31a   : > { %v5104_v0 = vadd.f32 %v15169_v10, %v4783_v1  ;;  %v11321_v20 = vmul.f32 %v10726_v31, %v11238_v47  ;;  %v15170_v17 = vrot.slane %v11056_v30, 7  ;;  %v5293_v18 = vsel %vm1541_vm0, %v5290_v22, %v13970_v2  ;;  %v11339_v30 = vpop.permute.xlu0 %869 }
 0x31b   : > { %v11313_v23 = vsel %vm1203_vm2, %v15167_v37, %v15165_v9  ;;  %v5103_v42 = vadd.f32 %v15168_v45, %v4782_v4  ;;  %v11330_v50 = vadd.f32 %v15171_v32, %v1394_v52  ;;  %v11334_v3 = vmul.f32 %v10603_v27, %v11238_v47  ;;  %v15173_v52 = vld [vmem:[#allocation224_spill] sm:$0xff]  ;;  %v15175_v32 = vld [vmem:[#allocation233_spill] sm:$0xff] }
 0x31c   : > { %v5291_v12 = vsel %vm1541_vm0, %v15170_v17, %v5290_v22  ;;  %v11336_v4 = vadd.f32 %v4410_v24, %v4357_v19  ;;  %v5425_v9 = vadd.f32 %v5293_v18, %v5104_v0  ;;  %v11343_v45 = vmul.f32 %v10612_v29, %v11238_v47  ;;  %v15176_v19 = vld [vmem:[#allocation251_spill] sm:$0xff] }
 0x31d   : > { %v5424_v1 = vadd.f32 %v5291_v12, %v5103_v42  ;;  %v15172_v22 = vrot.slane %v15150_v34, 1  ;;  %v15174_v10 = vrot.slane %v15173_v52, 1  ;;  %v2522_v2 = vadd.f32 %v15175_v32, %v2182_v39 }
 0x31e   : > { %v2523_v24 = vadd.f32 %v15176_v19, %v2183_v51  ;;  %v5478_v0 = vmax.f32 %v3189_v63, %v5425_v9  ;;  %v15177_v18 = vmov %v15167_v37  ;;  %v15178_v5 = vrot.slane %v15124_v7, 1  ;;  %v15179_v9 = vld [vmem:[#allocation227_spill] sm:$0xff] }
 0x31f   : > { %v1268_v17 = vsel %vm1203_vm2, %v15174_v10, %v15172_v22  ;;  %v5477_v42 = vmax.f32 %v11231_v8, %v5424_v1  ;;  %v11363_v34 = vmul.f32 %v10744_v44, %v11238_v47  ;;  %v1014_v39 = vmul.f32 %v10577_v14, %v11339_v30 }
 0x320   : > { %v11359_v13 = vsel %vm1203_vm2, %v15178_v5, %v15177_v18  ;;  %v1803_v8 = vmul.f32 %v10584_v53, %v11339_v30  ;;  %v2594_v51 = vmul.f32 %v10726_v31, %v11339_v30  ;;  %v11375_v7 = vadd.f32 %v10996_v48, %v5478_v0 }
 0x321   : > { %v11372_v63 = vadd.f32 %v10996_v48, %v5477_v42  ;;  %v11379_v5 = vmul.f32 %v10787_v33, %v11238_v47  ;;  %v11383_v54 = vmul.f32 %v10744_v44, %v11339_v30  ;;  %v1067_v22 = vadd.f32 %v1014_v39, %v15179_v9 }
 0x322   : > { %v1940_v52 = vrot.slane %v1803_v8, 7  ;;  %v2729_v10 = vrot.slane %v2594_v51, 6  ;;  %v13974_v19 = vmax.f32 %v11375_v7, 0.0  ;;  %v3986_v0 = vmul.f32 %v10612_v29, %v11339_v30 }
 0x323   : > { %v13973_v32 = vmax.f32 %v11372_v63, 0.0  ;;  %v3806_v42 = vrot.slane %v11383_v54, 1  ;;  %v1393_v18 = vadd.f32 %v1268_v17, %v1067_v22  ;;  %v15180_v12 = vrot.slane %v11114_v16, 7 }
 0x324   : > { %v15181_v1 = vrot.slane %v11300_v46, 7  ;;  %v15182_v8 = vrot.slane %v11120_v62, 6  ;;  %v11405_v54 = vrot.slane %v13974_v19, 7 }
 0x325   : > { %v1941_v37 = vsel %vm1541_vm0, %v15180_v12, %v1940_v52  ;;  %v5717_v9 = vrot.slane %v13973_v32, 7  ;;  %v15183_v12 = vld [vmem:[#allocation249_spill] sm:$0xff] }
 0x326   : > { %v1943_v39 = vsel %vm1541_vm0, %v1940_v52, %v15181_v1  ;;  %v2730_v51 = vsel %vm2334_vm1, %v15182_v8, %v2729_v10  ;;  %v2070_v17 = vadd.f32 %v1941_v37, %v11210_v57  ;;  %v11410_v22 = vadd.f32 %v15183_v12, %v1393_v18  ;;  %v15186_v57 = vld [vmem:[#allocation234_spill] sm:$0xff]  ;;  %v15187_v18 = vld [vmem:[#allocation261_spill] sm:$0xff] }
 0x327   : > { %v2071_v16 = vadd.f32 %v1943_v39, %v11136_v38  ;;  %v15184_v1 = vrot.slane %v11321_v20, 6  ;;  %v2861_v52 = vadd.f32 %v2730_v51, %v2522_v2  ;;  %v15185_v8 = vrot.slane %v11140_v61, 1 }
 0x328   : > { %v5718_v19 = vsel %vm1541_vm0, %v11201_v26, %v5717_v9  ;;  %v5720_v38 = vsel %vm1541_vm0, %v5717_v9, %v11405_v54  ;;  %v2184_v37 = vadd.f32 %v15186_v57, %v2070_v17  ;;  %v15188_v12 = vmax.f32 %v11176_v28, 0.0  ;;  %v15200_v26 = vld [vmem:[#allocation262_spill] sm:$0xff] }
 0x329   : > { %v2732_v62 = vsel %vm2334_vm1, %v2729_v10, %v15184_v1  ;;  %v3807_v32 = vsel %vm1203_vm2, %v15185_v8, %v3806_v42  ;;  %v2185_v39 = vadd.f32 %v15187_v18, %v2071_v16  ;;  %v15189_v2 = vmax.f32 %v11179_v35, 0.0  ;;  %v15190_v1 = vld [vmem:[#allocation236_spill] sm:$0xff]  ;;  %v11429_v8 = vpop.permute.xlu1 %884  ;;  %v15191_v35 = vld [vmem:[#allocation253_spill] sm:$0xff] }
 0x32a   : > { %v5847_v10 = vmax.f32 %v15188_v12, %v5718_v19  ;;  %v2862_v61 = vadd.f32 %v2732_v62, %v2523_v24  ;;  %v3190_v60 = vadd.f32 %v15190_v1, %v2861_v52  ;;  %v11434_v9 = vmul.f32 %v10813_v40, %v11238_v47 }
 0x32b   : > { %v5848_v51 = vmax.f32 %v15189_v2, %v5720_v38  ;;  %v3933_v17 = vadd.f32 %v3807_v32, %v11295_v43  ;;  %v4123_v16 = vrot.slane %v3986_v0, 7  ;;  %v4464_v28 = vadd.f32 %v11304_v25, %v11283_v41 }
 0x32c   : > { %5899 = vst.msk [vmem:[%s9078_s8 + $0xb8] sm:$0xff] %vm5875_vm3, %v5847_v10  ;;  %v3191_v24 = vadd.f32 %v15191_v35, %v2862_v61  ;;  %v4517_v19 = vmul.f32 %v10787_v33, %v11339_v30  ;;  %v5159_v62 = vmul.f32 %v10813_v40, %v11339_v30  ;;  %v3247_v52 = vmul.f32 %v10603_v27, %v11339_v30  ;;  %v15194_v10 = vld [vmem:[#allocation409_spill] sm:$0xff] }
 0x32d   : > { %5900 = vst.msk [vmem:[%s9078_s8 + $0xc0] sm:$0xff] %vm5875_vm3, %v5848_v51  ;;  %v15192_v43 = vrot.slane %v11153_v58, 7  ;;  %v15193_v0 = vrot.slane %v11343_v45, 7  ;;  %v1017_v41 = vmul.f32 %v10577_v14, %v11429_v8  ;;  %v15195_v2 = vrot.slane %v15194_v10, 7 }
 0x32e   : > { %v4652_v12 = vrot.slane %v4517_v19, 6  ;;  %v15196_v51 = vrot.slane %v15152_v15, 7  ;;  %v13975_v61 = vrot.slane %v11434_v9, 7  ;;  %v5294_v1 = vrot.slane %v5159_v62, 7 }
 0x32f   : > { %v4124_v32 = vsel %vm1541_vm0, %v15192_v43, %v4123_v16  ;;  %v4126_v38 = vsel %vm1541_vm0, %v4123_v16, %v15193_v0  ;;  %v15198_v16 = vld [vmem:[#allocation268_spill] sm:$0xff]  ;;  %v15199_v43 = vld [vmem:[#allocation239_spill] sm:$0xff]  ;;  %v15202_v19 = vrot.slane %v11379_v5, 6 }
 0x330   : > { %v4253_v57 = vadd.f32 %v4124_v32, %v11306_v56  ;;  %v4254_v18 = vadd.f32 %v4126_v38, %v3933_v17  ;;  %v11465_v58 = vsel %vm1541_vm0, %v15196_v51, %v15195_v2  ;;  %v1070_v35 = vadd.f32 %v1017_v41, %v15198_v16  ;;  %v15208_v51 = vld [vmem:[#allocation265_spill] sm:$0xff] }
 0x331   : > { %15197 = vst [vmem:[#allocation32_spill] sm:$0xff] %v11465_v58  ;;  %v15201_v56 = vrot.slane %v11166_v49, 6  ;;  %v4655_v15 = vsel %vm2334_vm1, %v4652_v12, %v15202_v19  ;;  %v3617_v38 = vadd.f32 %v11359_v13, %v3247_v52  ;;  %v4412_v13 = vmul.f32 %v10708_v59, %v11339_v30  ;;  %v15205_v52 = vld [vmem:[#allocation255_spill] sm:$0xff] }
 0x332   : > { %v4359_v0 = vadd.f32 %v15199_v43, %v4253_v57  ;;  %v11471_v25 = vadd.f32 %v15200_v26, %v4254_v18  ;;  %v4785_v41 = vadd.f32 %v4655_v15, %v4464_v28  ;;  %v11484_v57 = vadd.f32 %v11313_v23, %v11334_v3  ;;  %v15206_v3 = vld [vmem:[#allocation257_spill] sm:$0xff] }
 0x333   : > { %v4653_v17 = vsel %vm2334_vm1, %v15201_v56, %v4652_v12  ;;  %v15203_v26 = vrot.slane %v11363_v34, 1  ;;  %v11491_v18 = vmul.f32 %v10584_v53, %v11429_v8  ;;  %v11495_v12 = vmul.f32 %v10726_v31, %v11429_v8 }
 0x334   : > { %v4784_v62 = vadd.f32 %v4653_v17, %v11336_v4  ;;  %v15204_v4 = vld [vmem:[#allocation238_spill] sm:$0xff]  ;;  %v5106_v23 = vadd.f32 %v15205_v52, %v4785_v41  ;;  %v15207_v2 = vrot.slane %v15206_v3, 1  ;;  %v15209_v16 = vrot.slane %v15208_v51, 1 }
 0x335   : > { %v3809_v49 = vsel %vm1203_vm2, %v3806_v42, %v15203_v26  ;;  %v15210_v43 = vrot.slane %v11195_v21, 7  ;;  %v5297_v17 = vsel %vm1541_vm0, %v5294_v1, %v13975_v61  ;;  %v3250_v30 = vmul.f32 %v10603_v27, %v11429_v8  ;;  %v15214_v61 = vld [vmem:[#allocation269_spill] sm:$0xff] }
 0x336   : > { %v5105_v28 = vadd.f32 %v15204_v4, %v4784_v62  ;;  %v1274_v42 = vsel %vm1203_vm2, %v15209_v16, %v15207_v2  ;;  %v11516_v15 = vmul.f32 %v10708_v59, %v11238_v47  ;;  %v3934_v62 = vadd.f32 %v3809_v49, %v3617_v38  ;;  %v15211_v2 = vld [vmem:[#allocation252_spill] sm:$0xff] }
 0x337   : > { %v5295_v56 = vsel %vm1541_vm0, %v15210_v43, %v5294_v1  ;;  %v1396_v19 = vadd.f32 %v1274_v42, %v1070_v35  ;;  %v5427_v26 = vadd.f32 %v5297_v17, %v5106_v23  ;;  %v11518_v4 = vadd.f32 %v4412_v13, %v4359_v0  ;;  %v11523_v1 = vpop.permute.xlu0 %879  ;;  %v15212_v43 = vld [vmem:[#allocation264_spill] sm:$0xff] }
 0x338   : > { %v5426_v41 = vadd.f32 %v5295_v56, %v5105_v28  ;;  %v2524_v16 = vadd.f32 %v15211_v2, %v2184_v37  ;;  %v15213_v32 = vrot.slane %v15212_v43, 1  ;;  %v15215_v47 = vrot.slane %v15214_v61, 1  ;;  %v15216_v49 = vld [vmem:[#allocation276_spill] sm:$0xff] }
 0x339   : > { %v5480_v42 = vmax.f32 %v3191_v24, %v5427_v26  ;;  %v2525_v28 = vadd.f32 %v15216_v49, %v2185_v39  ;;  %v15217_v0 = vld [vmem:[#allocation292_spill] sm:$0xff]  ;;  %v11538_v37 = vmul.f32 %v10744_v44, %v11429_v8  ;;  %v1805_v39 = vmul.f32 %v10584_v53, %v11523_v1 }
 0x33a   : > { %v5479_v35 = vmax.f32 %v3190_v60, %v5426_v41  ;;  %v3498_v38 = vsel %vm1203_vm2, %v15215_v47, %v15213_v32  ;;  %v11532_v13 = vadd.f32 %v15217_v0, %v1396_v19  ;;  %v11542_v60 = vmul.f32 %v10612_v29, %v11429_v8 }
 0x33b   : > { %v11534_v23 = vadd.f32 %v3498_v38, %v3250_v30  ;;  %v11548_v32 = vadd.f32 %v10996_v48, %v5480_v42  ;;  %v2596_v56 = vmul.f32 %v10726_v31, %v11523_v1  ;;  %v11556_v17 = vmul.f32 %v10708_v59, %v11429_v8  ;;  %v15219_v42 = vld [vmem:[#allocation244_spill] sm:$0xff] }
 0x33c   : > { %v11545_v24 = vadd.f32 %v10996_v48, %v5479_v35  ;;  %v1016_v19 = vmul.f32 %v10577_v14, %v11523_v1  ;;  %v3672_v30 = vmul.f32 %v10744_v44, %v11523_v1  ;;  %v3988_v41 = vmul.f32 %v10612_v29, %v11523_v1 }
 0x33d   : > { %v13977_v53 = vmax.f32 %v11548_v32, 0.0  ;;  %v1944_v2 = vrot.slane %v1805_v39, 7  ;;  %v2733_v35 = vrot.slane %v2596_v56, 6  ;;  %v11570_v38 = vmul.f32 %v10787_v33, %v11429_v8 }
 0x33e   : > { %v13976_v26 = vmax.f32 %v11545_v24, 0.0  ;;  %v11574_v14 = vmul.f32 %v10813_v40, %v11429_v8  ;;  %v15218_v0 = vrot.slane %v11300_v46, 7  ;;  %v3810_v56 = vrot.slane %v3672_v30, 1 }
 0x33f   : > { %v11580_v49 = vrot.slane %v13977_v53, 7  ;;  %v1069_v47 = vadd.f32 %v1016_v19, %v15219_v42  ;;  %v15220_v52 = vrot.slane %v11321_v20, 6  ;;  %v15222_v30 = vrot.slane %v15148_v11, 1 }
 0x340   : > { %v5721_v29 = vrot.slane %v13976_v26, 7  ;;  %v1945_v39 = vsel %vm1541_vm0, %v15218_v0, %v1944_v2  ;;  %v4127_v26 = vrot.slane %v3988_v41, 7  ;;  %v15221_v0 = vrot.slane %v15208_v51, 1  ;;  %v15225_v41 = vld [vmem:[#allocation258_spill] sm:$0xff] }
 0x341   : > { %v2072_v21 = vadd.f32 %v1945_v39, %v11410_v22  ;;  %v2734_v8 = vsel %vm2334_vm1, %v15220_v52, %v2733_v35  ;;  %v15223_v20 = vmax.f32 %v11372_v63, 0.0  ;;  %v15224_v52 = vmax.f32 %v11375_v7, 0.0 }
 0x342   : > { %v5722_v53 = vsel %vm1541_vm0, %v11405_v54, %v5721_v29  ;;  %v5724_v46 = vsel %vm1541_vm0, %v5721_v29, %v11580_v49  ;;  %v1272_v19 = vsel %vm1203_vm2, %v15222_v30, %v15221_v0  ;;  %v2863_v22 = vadd.f32 %v2734_v8, %v2524_v16  ;;  %v15228_v0 = vld [vmem:[#allocation254_spill] sm:$0xff] }
 0x343   : > { %v5849_v42 = vmax.f32 %v15223_v20, %v5722_v53  ;;  %v5850_v39 = vmax.f32 %v15224_v52, %v5724_v46  ;;  %v11604_v10 = vadd.f32 %v15225_v41, %v2072_v21  ;;  %v15226_v54 = vrot.slane %v11495_v12, 6  ;;  %v11618_v53 = vpop.permute.xlu1 %894  ;;  %v15231_v46 = vld [vmem:[#allocation278_spill] sm:$0xff] }
 0x344   : > { %v15227_v51 = vrot.slane %v11491_v18, 7  ;;  %v11613_v16 = vadd.f32 %v15228_v0, %v2863_v22  ;;  %v15229_v63 = vrot.slane %v11363_v34, 1  ;;  %v13979_v21 = vrot.slane %v11570_v38, 6 }
 0x345   : > { %v2736_v29 = vsel %vm2334_vm1, %v2733_v35, %v15226_v54  ;;  %5901 = vst.msk [vmem:[%s9078_s8 + $0xc8] sm:$0xff] %vm5875_vm3, %v5849_v42  ;;  %5902 = vst.msk [vmem:[%s9078_s8 + $0xd0] sm:$0xff] %vm5875_vm3, %v5850_v39  ;;  %v1395_v35 = vadd.f32 %v1272_v19, %v1069_v47  ;;  %v4519_v20 = vmul.f32 %v10787_v33, %v11523_v1  ;;  %v15233_v19 = vrot.slane %v15164_v36, 1  ;;  %v15235_v39 = vld [vmem:[#allocation273_spill] sm:$0xff] }
 0x346   : > { %v1947_v11 = vsel %vm1541_vm0, %v1944_v2, %v15227_v51  ;;  %v2864_v58 = vadd.f32 %v2736_v29, %v2525_v28  ;;  %v3811_v7 = vsel %vm1203_vm2, %v15229_v63, %v3810_v56  ;;  %v3249_v2 = vmul.f32 %v10603_v27, %v11523_v1 }
 0x347   : > { %v15230_v28 = vrot.slane %v11343_v45, 7  ;;  %v3935_v30 = vadd.f32 %v3811_v7, %v11484_v57  ;;  %v4466_v42 = vadd.f32 %v11516_v15, %v11471_v25  ;;  %v2073_v47 = vadd.f32 %v1947_v11, %v11330_v50  ;;  %v11642_v45 = vld [vmem:[%s13634_s2 + $0x1] ss:$0 sm:$0xff]  ;;  %v15234_v50 = vld [vmem:[#allocation259_spill] sm:$0xff] }
 0x348   : > { %v3193_v34 = vadd.f32 %v15231_v46, %v2864_v58  ;;  %v5161_v27 = vmul.f32 %v10813_v40, %v11523_v1  ;;  %v1019_v58 = vmul.f32 %v11642_v45, %v11618_v53  ;;  %v13978_v57 = vrot.slane %v11574_v14, 7  ;;  %v15237_v11 = vld [vmem:[#allocation287_spill] sm:$0xff] }
 0x349   : > { %v4128_v8 = vsel %vm1541_vm0, %v15230_v28, %v4127_v26  ;;  %v4656_v52 = vrot.slane %v4519_v20, 6  ;;  %v11654_v41 = vadd.f32 %v15235_v39, %v1395_v35  ;;  %v15236_v29 = vrot.slane %v11542_v60, 7 }
 0x34a   : > { %v4255_v22 = vadd.f32 %v4128_v8, %v3934_v62  ;;  %v15232_v62 = vrot.slane %v15214_v61, 1  ;;  %v1072_v0 = vadd.f32 %v1019_v58, %v15237_v11  ;;  %v15238_v61 = vrot.slane %v11379_v5, 6  ;;  %v15239_v8 = vld [vmem:[#allocation271_spill] sm:$0xff]  ;;  %v15241_v5 = vld [vmem:[#allocation270_spill] sm:$0xff]  ;;  %v15243_v58 = vld [vmem:[#allocation284_spill] sm:$0xff] }
 0x34b   : > { %v4130_v51 = vsel %vm1541_vm0, %v4127_v26, %v15236_v29  ;;  %v4659_v7 = vsel %vm2334_vm1, %v4656_v52, %v13979_v21  ;;  %v5298_v28 = vrot.slane %v5161_v27, 7  ;;  %v2187_v35 = vadd.f32 %v15239_v8, %v2073_v47  ;;  %v11681_v47 = vld [vmem:[%s13634_s2 + $0x4] ss:$0 sm:$0xff]  ;;  %v15246_v27 = vld [vmem:[#allocation280_spill] sm:$0xff] }
 0x34c   : > { %v3496_v25 = vsel %vm1203_vm2, %v15233_v19, %v15232_v62  ;;  %v4361_v15 = vadd.f32 %v15234_v50, %v4255_v22  ;;  %v4256_v63 = vadd.f32 %v4130_v51, %v3935_v30  ;;  %v4657_v36 = vsel %vm2334_vm1, %v15238_v61, %v4656_v52  ;;  %v11696_v52 = vld [vmem:[%s13634_s2] ss:$0 sm:$0xff] }
 0x34d   : > { %v3619_v54 = vadd.f32 %v3496_v25, %v3249_v2  ;;  %v15240_v2 = vrot.slane %v11538_v37, 1  ;;  %v4786_v26 = vadd.f32 %v4657_v36, %v11518_v4  ;;  %v4787_v22 = vadd.f32 %v4659_v7, %v4466_v42  ;;  %v15247_v51 = vld [vmem:[#allocation274_spill] sm:$0xff] }
 0x34e   : > { %v4414_v30 = vmul.f32 %v10708_v59, %v11523_v1  ;;  %v15242_v20 = vrot.slane %v15241_v5, 1  ;;  %v15244_v62 = vrot.slane %v15243_v58, 1  ;;  %v11689_v4 = vmul.f32 %v10726_v31, %v11618_v53  ;;  %v15245_v1 = vld [vmem:[#allocation256_spill] sm:$0xff] }
 0x34f   : > { %v3813_v46 = vsel %vm1203_vm2, %v3810_v56, %v15240_v2  ;;  %v11685_v56 = vmul.f32 %v11681_v47, %v11618_v53  ;;  %v5107_v42 = vadd.f32 %v15245_v1, %v4786_v26  ;;  %v5108_v25 = vadd.f32 %v15246_v27, %v4787_v22 }
 0x350   : > { %v1278_v19 = vsel %vm1203_vm2, %v15244_v62, %v15242_v20  ;;  %v3252_v39 = vmul.f32 %v11696_v52, %v11618_v53  ;;  %v11700_v29 = vadd.f32 %v3813_v46, %v3619_v54  ;;  %v4362_v11 = vadd.f32 %v15247_v51, %v4256_v63  ;;  %v11715_v54 = vpop.permute.xlu0 %889  ;;  %v15249_v46 = vld [vmem:[#allocation282_spill] sm:$0xff] }
 0x351   : > { %v1398_v50 = vadd.f32 %v1278_v19, %v1072_v0  ;;  %v15248_v61 = vrot.slane %v11434_v9, 7  ;;  %v5301_v0 = vsel %vm1541_vm0, %v5298_v28, %v13978_v57  ;;  %v11709_v7 = vadd.f32 %v4414_v30, %v4361_v15  ;;  %v15251_v20 = vld [vmem:[#allocation286_spill] sm:$0xff] }
 0x352   : > { %v5429_v2 = vadd.f32 %v5301_v0, %v5108_v25  ;;  %v11713_v26 = vmul.f32 %v10744_v44, %v11618_v53  ;;  %v13982_v63 = vrot.slane %v11685_v56, 7  ;;  %v13983_v9 = vrot.slane %v11689_v4, 6  ;;  %v11727_v15 = vld [vmem:[%s13634_s2 + $0x3] ss:$0 sm:$0xff] }
 0x353   : > { %v5299_v36 = vsel %vm1541_vm0, %v15248_v61, %v5298_v28  ;;  %v15250_v22 = vrot.slane %v15249_v46, 1  ;;  %v15252_v62 = vrot.slane %v15251_v20, 1  ;;  %v11731_v30 = vmul.f32 %v11727_v15, %v11618_v53 }
 0x354   : > { %v5428_v8 = vadd.f32 %v5299_v36, %v5107_v42  ;;  %v5482_v1 = vmax.f32 %v3193_v34, %v5429_v2  ;;  %v15253_v42 = vld [vmem:[#allocation308_spill] sm:$0xff]  ;;  %v11741_v51 = vmul.f32 %v10787_v33, %v11618_v53  ;;  %v1018_v61 = vmul.f32 %v11642_v45, %v11715_v54 }
 0x355   : > { %v3502_v28 = vsel %vm1203_vm2, %v15252_v62, %v15250_v22  ;;  %v11735_v27 = vadd.f32 %v15253_v42, %v1398_v50  ;;  %v1807_v36 = vmul.f32 %v11681_v47, %v11715_v54  ;;  %v2598_v0 = vmul.f32 %v10726_v31, %v11715_v54  ;;  %v15257_v50 = vld [vmem:[#allocation277_spill] sm:$0xff] }
 0x356   : > { %v5481_v19 = vmax.f32 %v11613_v16, %v5428_v8  ;;  %v11737_v25 = vadd.f32 %v3502_v28, %v3252_v39  ;;  %v11753_v34 = vadd.f32 %v10996_v48, %v5482_v1  ;;  %v3674_v33 = vmul.f32 %v10744_v44, %v11715_v54  ;;  %v15254_v28 = vld [vmem:[#allocation263_spill] sm:$0xff]  ;;  %v11811_v44 = vpop.permute.xlu1 %904 }
 0x357   : > { %v11761_v8 = vmul.f32 %v10708_v59, %v11618_v53  ;;  %v11765_v31 = vmul.f32 %v10813_v40, %v11618_v53  ;;  %v1948_v2 = vrot.slane %v1807_v36, 7  ;;  %v2737_v1 = vrot.slane %v2598_v0, 6 }
 0x358   : > { %v11750_v16 = vadd.f32 %v10996_v48, %v5481_v19  ;;  %v13980_v62 = vmax.f32 %v11753_v34, 0.0  ;;  %v1071_v19 = vadd.f32 %v1018_v61, %v15254_v28  ;;  %v15255_v42 = vrot.slane %v15243_v58, 1  ;;  %v15259_v58 = vld [vmem:[#allocation294_spill] sm:$0xff] }
 0x359   : > { %v15256_v57 = vrot.slane %v15206_v3, 1  ;;  %v2526_v53 = vadd.f32 %v15257_v50, %v11604_v10  ;;  %v3814_v21 = vrot.slane %v3674_v33, 1  ;;  %v15258_v61 = vrot.slane %v11491_v18, 7 }
 0x35a   : > { %v13981_v22 = vmax.f32 %v11750_v16, 0.0  ;;  %v11782_v39 = vrot.slane %v13980_v62, 7  ;;  %v3990_v3 = vmul.f32 %v11727_v15, %v11715_v54  ;;  %v2527_v28 = vadd.f32 %v15259_v58, %v2187_v35 }
 0x35b   : > { %v1276_v59 = vsel %vm1203_vm2, %v15256_v57, %v15255_v42  ;;  %v1949_v0 = vsel %vm1541_vm0, %v15258_v61, %v1948_v2  ;;  %v1951_v10 = vsel %vm1541_vm0, %v1948_v2, %v13982_v63  ;;  %v3251_v50 = vmul.f32 %v11696_v52, %v11715_v54 }
 0x35c   : > { %v5725_v36 = vrot.slane %v13981_v22, 7  ;;  %v1397_v42 = vadd.f32 %v1276_v59, %v1071_v19  ;;  %v15260_v61 = vrot.slane %v11495_v12, 6  ;;  %v15261_v58 = vmax.f32 %v11545_v24, 0.0 }
 0x35d   : > { %v15262_v2 = vmax.f32 %v11548_v32, 0.0  ;;  %v2074_v63 = vadd.f32 %v1949_v0, %v11654_v41  ;;  %v15263_v57 = vrot.slane %v11538_v37, 1  ;;  %v15264_v19 = vrot.slane %v15251_v20, 1  ;;  %v11827_v41 = vld [vmem:[%s13634_s2 + $0x6] ss:$0 sm:$0xff]  ;;  %v15266_v20 = vld [vmem:[#allocation293_spill] sm:$0xff] }
 0x35e   : > { %v5726_v18 = vsel %vm1541_vm0, %v11580_v49, %v5725_v36  ;;  %v5728_v33 = vsel %vm1541_vm0, %v5725_v36, %v11782_v39  ;;  %v2738_v35 = vsel %vm2334_vm1, %v15260_v61, %v2737_v1  ;;  %v15265_v12 = vrot.slane %v15212_v43, 1  ;;  %v15268_v0 = vld [vmem:[#allocation266_spill] sm:$0xff]  ;;  %v15271_v61 = vld [vmem:[#allocation304_spill] sm:$0xff] }
 0x35f   : > { %v5851_v62 = vmax.f32 %v15261_v58, %v5726_v18  ;;  %v5852_v22 = vmax.f32 %v15262_v2, %v5728_v33  ;;  %v3815_v49 = vsel %vm1203_vm2, %v15263_v57, %v3814_v21  ;;  %v2075_v24 = vadd.f32 %v1951_v10, %v11532_v13 }
 0x360   : > { %v3500_v59 = vsel %vm1203_vm2, %v15265_v12, %v15264_v19  ;;  %v2865_v36 = vadd.f32 %v2738_v35, %v2526_v53  ;;  %v4131_v18 = vrot.slane %v3990_v3, 7  ;;  %v4468_v37 = vadd.f32 %v11556_v17, %v4362_v11 }
 0x361   : > { %5903 = vst.msk [vmem:[%s9078_s8 + $0xd8] sm:$0xff] %vm5875_vm3, %v5851_v62  ;;  %5904 = vst.msk [vmem:[%s9078_s8 + $0xe0] sm:$0xff] %vm5875_vm3, %v5852_v22  ;;  %v3621_v32 = vadd.f32 %v3500_v59, %v3251_v50  ;;  %v4521_v43 = vmul.f32 %v11827_v41, %v11715_v54  ;;  %v5163_v13 = vmul.f32 %v10813_v40, %v11715_v54  ;;  %v15267_v22 = vrot.slane %v11542_v60, 7  ;;  %v15269_v50 = vld [vmem:[#allocation288_spill] sm:$0xff]  ;;  %v15270_v60 = vld [vmem:[#allocation279_spill] sm:$0xff] }
 0x362   : > { %v11834_v53 = vadd.f32 %v15266_v20, %v1397_v42  ;;  %v3937_v62 = vadd.f32 %v3815_v49, %v11534_v23  ;;  %v1021_v11 = vmul.f32 %v11642_v45, %v11811_v44  ;;  %v11843_v3 = vadd.f32 %v15268_v0, %v2074_v63 }
 0x363   : > { %v4132_v17 = vsel %vm1541_vm0, %v15267_v22, %v4131_v18  ;;  %v2740_v57 = vsel %vm2334_vm1, %v2737_v1, %v13983_v9  ;;  %v4660_v10 = vrot.slane %v4521_v43, 6  ;;  %v11850_v33 = vadd.f32 %v15269_v50, %v2075_v24  ;;  %v15276_v43 = vld [vmem:[#allocation267_spill] sm:$0xff] }
 0x364   : > { %v4257_v40 = vadd.f32 %v4132_v17, %v11700_v29  ;;  %v2866_v23 = vadd.f32 %v2740_v57, %v2527_v28  ;;  %v3194_v42 = vadd.f32 %v15270_v60, %v2865_v36  ;;  %v1074_v35 = vadd.f32 %v1021_v11, %v15271_v61  ;;  %v15283_v60 = vld [vmem:[#allocation296_spill] sm:$0xff] }
 0x365   : > { %v15272_v58 = vrot.slane %v11731_v30, 7  ;;  %v15273_v2 = vrot.slane %v11570_v38, 6  ;;  %v15274_v1 = vrot.slane %v11741_v51, 6  ;;  %v5302_v19 = vrot.slane %v5163_v13, 7  ;;  %v15279_v38 = vld [vmem:[#allocation301_spill] sm:$0xff] }
 0x366   : > { %v15275_v12 = vrot.slane %v11713_v26, 1  ;;  %v4363_v20 = vadd.f32 %v15276_v43, %v4257_v40  ;;  %v15280_v17 = vrot.slane %v15279_v38, 1  ;;  %v11875_v0 = vmul.f32 %v11681_v47, %v11811_v44  ;;  %v15282_v40 = vld [vmem:[#allocation298_spill] sm:$0xff] }
 0x367   : > { %v4134_v63 = vsel %vm1541_vm0, %v4131_v18, %v15272_v58  ;;  %v4661_v49 = vsel %vm2334_vm1, %v15273_v2, %v4660_v10  ;;  %v4663_v29 = vsel %vm2334_vm1, %v4660_v10, %v15274_v1  ;;  %v15277_v18 = vld [vmem:[#allocation291_spill] sm:$0xff]  ;;  %v3195_v61 = vadd.f32 %v15283_v60, %v2866_v23 }
 0x368   : > { %v3817_v28 = vsel %vm1203_vm2, %v3814_v21, %v15275_v12  ;;  %v4258_v59 = vadd.f32 %v4134_v63, %v3937_v62  ;;  %v4788_v24 = vadd.f32 %v4661_v49, %v11709_v7  ;;  %v4789_v36 = vadd.f32 %v4663_v29, %v4468_v37  ;;  %v11880_v21 = vld [vmem:[%s13634_s2 + $0x7] ss:$0 sm:$0xff]  ;;  %v11889_v37 = vld [vmem:[%s13634_s2 + $0x5] ss:$0 sm:$0xff]  ;;  %v15281_v62 = vld [vmem:[#allocation283_spill] sm:$0xff] }
 0x369   : > { %v15278_v22 = vrot.slane %v15277_v18, 1  ;;  %v11884_v7 = vmul.f32 %v11880_v21, %v11811_v44  ;;  %v4416_v13 = vmul.f32 %v11889_v37, %v11715_v54  ;;  %v15284_v58 = vrot.slane %v11574_v14, 7  ;;  %v15286_v54 = vld [vmem:[#allocation289_spill] sm:$0xff] }
 0x36a   : > { %v5109_v57 = vadd.f32 %v15281_v62, %v4788_v24  ;;  %v5110_v10 = vadd.f32 %v15282_v40, %v4789_v36  ;;  %v15285_v2 = vrot.slane %v11765_v31, 7  ;;  %v3254_v1 = vmul.f32 %v11696_v52, %v11811_v44 }
 0x36b   : > { %v1282_v11 = vsel %vm1203_vm2, %v15280_v17, %v15278_v22  ;;  %v5303_v63 = vsel %vm1541_vm0, %v15284_v58, %v5302_v19  ;;  %v11904_v29 = vadd.f32 %v3817_v28, %v3621_v32  ;;  %v4364_v12 = vadd.f32 %v15286_v54, %v4258_v59  ;;  %v15287_v22 = vld [vmem:[#allocation328_spill] sm:$0xff] }
 0x36c   : > { %v1400_v50 = vadd.f32 %v1282_v11, %v1074_v35  ;;  %v5305_v49 = vsel %vm1541_vm0, %v5302_v19, %v15285_v2  ;;  %v5430_v24 = vadd.f32 %v5303_v63, %v5109_v57  ;;  %v11907_v35 = vpop.permute.xlu0 %899  ;;  %v11909_v23 = vadd.f32 %v4416_v13, %v4363_v20  ;;  %v11916_v19 = vld [vmem:[%s13634_s2 + $0x2] ss:$0 sm:$0xff]  ;;  %v15288_v20 = vld [vmem:[#allocation300_spill] sm:$0xff]  ;;  %v15290_v13 = vld [vmem:[#allocation305_spill] sm:$0xff] }
 0x36d   : > { %v5431_v36 = vadd.f32 %v5305_v49, %v5110_v10  ;;  %v11920_v32 = vmul.f32 %v11916_v19, %v11811_v44  ;;  %v15289_v11 = vrot.slane %v15288_v20, 1  ;;  %v15291_v62 = vrot.slane %v15290_v13, 1 }
 0x36e   : > { %v5483_v28 = vmax.f32 %v3194_v42, %v5430_v24  ;;  %v11923_v17 = vadd.f32 %v15287_v22, %v1400_v50  ;;  %v11934_v10 = vmul.f32 %v11727_v15, %v11811_v44  ;;  %v11938_v60 = vmul.f32 %v11889_v37, %v11811_v44 }
 0x36f   : > { %v5484_v59 = vmax.f32 %v3195_v61, %v5431_v36  ;;  %v3506_v57 = vsel %vm1203_vm2, %v15291_v62, %v15289_v11  ;;  %v1020_v42 = vmul.f32 %v11642_v45, %v11907_v35  ;;  %v1809_v58 = vmul.f32 %v11681_v47, %v11907_v35  ;;  %v15292_v36 = vld [vmem:[#allocation275_spill] sm:$0xff] }
 0x370   : > { %v11930_v40 = vadd.f32 %v3506_v57, %v3254_v1  ;;  %v11943_v50 = vadd.f32 %v10996_v48, %v5483_v28  ;;  %v2600_v63 = vmul.f32 %v11880_v21, %v11907_v35  ;;  %v11955_v49 = vmul.f32 %v11827_v41, %v11811_v44  ;;  %v11968_v11 = vld [vmem:[%s13634_s2 + $0x8] ss:$0 sm:$0xff] }
 0x371   : > { %v11946_v61 = vadd.f32 %v10996_v48, %v5484_v59  ;;  %v3676_v1 = vmul.f32 %v11916_v19, %v11907_v35  ;;  %v3992_v54 = vmul.f32 %v11727_v15, %v11907_v35  ;;  %v1073_v28 = vadd.f32 %v1020_v42, %v15292_v36  ;;  %v15295_v42 = vld [vmem:[#allocation295_spill] sm:$0xff] }
 0x372   : > { %v13985_v48 = vmax.f32 %v11943_v50, 0.0  ;;  %v1952_v59 = vrot.slane %v1809_v58, 7  ;;  %v11972_v62 = vmul.f32 %v11968_v11, %v11811_v44  ;;  %v15293_v57 = vrot.slane %v15279_v38, 1 }
 0x373   : > { %v13984_v24 = vmax.f32 %v11946_v61, 0.0  ;;  %v15294_v2 = vrot.slane %v15241_v5, 1  ;;  %v2528_v58 = vadd.f32 %v15295_v42, %v11843_v3  ;;  %v2741_v9 = vrot.slane %v2600_v63, 6 }
 0x374   : > { %v5729_v36 = vrot.slane %v13985_v48, 7  ;;  %v3818_v14 = vrot.slane %v3676_v1, 1  ;;  %v15296_v38 = vrot.slane %v11685_v56, 7  ;;  %v15298_v56 = vmax.f32 %v11750_v16, 0.0 }
 0x375   : > { %v1280_v43 = vsel %vm1203_vm2, %v15294_v2, %v15293_v57  ;;  %v11985_v22 = vrot.slane %v13984_v24, 7  ;;  %v15297_v2 = vrot.slane %v11875_v0, 7  ;;  %v4135_v57 = vrot.slane %v3992_v54, 7  ;;  %v15300_v54 = vld [vmem:[#allocation312_spill] sm:$0xff] }
 0x376   : > { %v1953_v5 = vsel %vm1541_vm0, %v15296_v38, %v1952_v59  ;;  %v5730_v42 = vsel %vm1541_vm0, %v11782_v39, %v5729_v36  ;;  %v1399_v1 = vadd.f32 %v1280_v43, %v1073_v28  ;;  %v3253_v24 = vmul.f32 %v11696_v52, %v11907_v35 }
 0x377   : > { %v1955_v3 = vsel %vm1541_vm0, %v1952_v59, %v15297_v2  ;;  %v5732_v63 = vsel %vm1541_vm0, %v5729_v36, %v11985_v22  ;;  %v5853_v38 = vmax.f32 %v15298_v56, %v5730_v42  ;;  %v15299_v48 = vmax.f32 %v11753_v34, 0.0  ;;  %v12015_v42 = vpop.permute.xlu1 %914 }
 0x378   : > { %v13988_v59 = vrot.slane %v11972_v62, 7  ;;  %v2529_v2 = vadd.f32 %v15300_v54, %v11850_v33  ;;  %v2076_v39 = vadd.f32 %v1953_v5, %v11834_v53  ;;  %v2077_v6 = vadd.f32 %v1955_v3, %v11735_v27  ;;  %v15306_v5 = vld [vmem:[#allocation309_spill] sm:$0xff] }
 0x379   : > { %v5854_v44 = vmax.f32 %v15299_v48, %v5732_v63  ;;  %v15301_v43 = vrot.slane %v11689_v4, 6  ;;  %v15302_v36 = vrot.slane %v11713_v26, 1  ;;  %5905 = vst.msk [vmem:[%s9078_s8 + $0xe8] sm:$0xff] %vm5875_vm3, %v5853_v38  ;;  %v15303_v34 = vrot.slane %v15290_v13, 1 }
 0x37a   : > { %v15304_v53 = vrot.slane %v15249_v46, 1  ;;  %v4470_v4 = vadd.f32 %v11761_v8, %v4364_v12  ;;  %v15305_v48 = vrot.slane %v11731_v30, 7  ;;  %v12031_v3 = vadd.f32 %v15306_v5, %v1399_v1 }
 0x37b   : > { %v2742_v28 = vsel %vm2334_vm1, %v15301_v43, %v2741_v9  ;;  %v3819_v16 = vsel %vm1203_vm2, %v15302_v36, %v3818_v14  ;;  %5906 = vst.msk [vmem:[%s9078_s8 + $0xf0] sm:$0xff] %vm5875_vm3, %v5854_v44  ;;  %v4523_v13 = vmul.f32 %v11827_v41, %v11907_v35  ;;  %v15307_v46 = vrot.slane %v11884_v7, 6 }
 0x37c   : > { %v3504_v27 = vsel %vm1203_vm2, %v15304_v53, %v15303_v34  ;;  %v2867_v33 = vadd.f32 %v2742_v28, %v2528_v58  ;;  %v4136_v26 = vsel %vm1541_vm0, %v15305_v48, %v4135_v57  ;;  %v3939_v56 = vadd.f32 %v3819_v16, %v11737_v25  ;;  %v15308_v58 = vld [vmem:[#allocation281_spill] sm:$0xff]  ;;  %v15313_v34 = vld [vmem:[#allocation323_spill] sm:$0xff] }
 0x37d   : > { %v3623_v63 = vadd.f32 %v3504_v27, %v3253_v24  ;;  %v2744_v44 = vsel %vm2334_vm1, %v2741_v9, %v15307_v46  ;;  %v4259_v8 = vadd.f32 %v4136_v26, %v11904_v29  ;;  %v5165_v30 = vmul.f32 %v11968_v11, %v11907_v35  ;;  %v15309_v24 = vld [vmem:[#allocation307_spill] sm:$0xff]  ;;  %v15311_v9 = vld [vmem:[#allocation297_spill] sm:$0xff] }
 0x37e   : > { %v1023_v12 = vmul.f32 %v11642_v45, %v12015_v42  ;;  %v2190_v1 = vadd.f32 %v15308_v58, %v2076_v39  ;;  %v12046_v38 = vadd.f32 %v15309_v24, %v2077_v6  ;;  %v15310_v25 = vrot.slane %v11920_v32, 1 }
 0x37f   : > { %v4664_v43 = vrot.slane %v4523_v13, 6  ;;  %v2868_v28 = vadd.f32 %v2744_v44, %v2529_v2  ;;  %v3196_v36 = vadd.f32 %v15311_v9, %v2867_v33  ;;  %v15312_v29 = vrot.slane %v11934_v10, 7  ;;  %v15316_v2 = vld [vmem:[#allocation285_spill] sm:$0xff]  ;;  %v15324_v9 = vld [vmem:[#allocation310_spill] sm:$0xff] }
 0x380   : > { %v3821_v54 = vsel %vm1203_vm2, %v3818_v14, %v15310_v25  ;;  %v1076_v53 = vadd.f32 %v1023_v12, %v15313_v34  ;;  %v15314_v39 = vrot.slane %v11741_v51, 6  ;;  %v15315_v48 = vrot.slane %v11955_v49, 6  ;;  %v15319_v51 = vld [vmem:[#allocation320_spill] sm:$0xff] }
 0x381   : > { %v4138_v16 = vsel %vm1541_vm0, %v4135_v57, %v15312_v29  ;;  %v5306_v14 = vrot.slane %v5165_v30, 7  ;;  %v12062_v5 = vadd.f32 %v3821_v54, %v3623_v63  ;;  %v4365_v33 = vadd.f32 %v15316_v2, %v4259_v8  ;;  %v15321_v8 = vld [vmem:[#allocation299_spill] sm:$0xff]  ;;  %v15323_v54 = vld [vmem:[#allocation314_spill] sm:$0xff]  ;;  %v12099_v2 = vpop.permute.xlu0 %909 }
 0x382   : > { %v4260_v27 = vadd.f32 %v4138_v16, %v3939_v56  ;;  %v4665_v6 = vsel %vm2334_vm1, %v15314_v39, %v4664_v43  ;;  %v4667_v26 = vsel %vm2334_vm1, %v4664_v43, %v15315_v48  ;;  %v4418_v57 = vmul.f32 %v11889_v37, %v11907_v35  ;;  %v15317_v56 = vld [vmem:[#allocation306_spill] sm:$0xff] }
 0x383   : > { %v4790_v13 = vadd.f32 %v4665_v6, %v11909_v23  ;;  %v4791_v46 = vadd.f32 %v4667_v26, %v4470_v4  ;;  %v15318_v44 = vrot.slane %v15317_v56, 1  ;;  %v15320_v12 = vrot.slane %v15319_v51, 1  ;;  %v15322_v4 = vld [vmem:[#allocation316_spill] sm:$0xff] }
 0x384   : > { %v12075_v24 = vmul.f32 %v11681_v47, %v12015_v42  ;;  %v12079_v63 = vmul.f32 %v11880_v21, %v12015_v42  ;;  %v3256_v35 = vmul.f32 %v11696_v52, %v12015_v42  ;;  %v3197_v43 = vadd.f32 %v15323_v54, %v2868_v28 }
 0x385   : > { %v1286_v58 = vsel %vm1203_vm2, %v15320_v12, %v15318_v44  ;;  %v5111_v23 = vadd.f32 %v15321_v8, %v4790_v13  ;;  %v5112_v30 = vadd.f32 %v15322_v4, %v4791_v46  ;;  %v4366_v29 = vadd.f32 %v15324_v9, %v4260_v27  ;;  %v15326_v27 = vld [vmem:[#allocation318_spill] sm:$0xff] }
 0x386   : > { %v1402_v25 = vadd.f32 %v1286_v58, %v1076_v53  ;;  %v15325_v16 = vrot.slane %v11765_v31, 7  ;;  %v5309_v39 = vsel %vm1541_vm0, %v5306_v14, %v13988_v59  ;;  %v12093_v6 = vadd.f32 %v4418_v57, %v4365_v33  ;;  %v15328_v46 = vld [vmem:[#allocation322_spill] sm:$0xff]  ;;  %v15330_v58 = vld [vmem:[#allocation344_spill] sm:$0xff]  ;;  %v15335_v31 = vld [vmem:[#allocation313_spill] sm:$0xff] }
 0x387   : > { %v5433_v26 = vadd.f32 %v5309_v39, %v5112_v30  ;;  %v12097_v53 = vmul.f32 %v11916_v19, %v12015_v42  ;;  %v15327_v13 = vrot.slane %v15326_v27, 1  ;;  %v15329_v44 = vrot.slane %v15328_v46, 1 }
 0x388   : > { %v5307_v34 = vsel %vm1541_vm0, %v15325_v16, %v5306_v14  ;;  %v12110_v33 = vmul.f32 %v11727_v15, %v12015_v42  ;;  %v12113_v8 = vadd.f32 %v15330_v58, %v1402_v25  ;;  %v12119_v4 = vmul.f32 %v11827_v41, %v12015_v42 }
 0x389   : > { %v5432_v48 = vadd.f32 %v5307_v34, %v5111_v23  ;;  %v3510_v14 = vsel %vm1203_vm2, %v15329_v44, %v15327_v13  ;;  %v5486_v12 = vmax.f32 %v3197_v43, %v5433_v26  ;;  %v1022_v30 = vmul.f32 %v11642_v45, %v12099_v2 }
 0x38a   : > { %v12115_v23 = vadd.f32 %v3510_v14, %v3256_v35  ;;  %v1811_v54 = vmul.f32 %v11681_v47, %v12099_v2  ;;  %v2602_v9 = vmul.f32 %v11880_v21, %v12099_v2  ;;  %v3678_v16 = vmul.f32 %v11916_v19, %v12099_v2  ;;  %v15332_v14 = vld [vmem:[#allocation290_spill] sm:$0xff] }
 0x38b   : > { %v5485_v57 = vmax.f32 %v3196_v36, %v5432_v48  ;;  %v12130_v36 = vld [vmem:[%s13635_s3] ss:$0 sm:$0xff]  ;;  %v12144_v39 = vmul.f32 %v11889_v37, %v12015_v42  ;;  %v12148_v48 = vmul.f32 %v11968_v11, %v12015_v42  ;;  %v15333_v59 = vrot.slane %v15319_v51, 1 }
 0x38c   : > { %15331 = vst [vmem:[#allocation8_spill] sm:$0xff] %v12115_v23  ;;  %v12136_v35 = vadd.f32 %v12130_v36, %v5486_v12  ;;  %v1956_v26 = vrot.slane %v1811_v54, 7  ;;  %v2745_v12 = vrot.slane %v2602_v9, 6  ;;  %v15334_v43 = vrot.slane %v15277_v18, 1  ;;  %v12194_v23 = vpop.permute.xlu1 %924 }
 0x38d   : > { %v12133_v25 = vadd.f32 %v12130_v36, %v5485_v57  ;;  %v1075_v57 = vadd.f32 %v1022_v30, %v15332_v14  ;;  %v2530_v28 = vadd.f32 %v15335_v31, %v2190_v1  ;;  %v3822_v42 = vrot.slane %v3678_v16, 1 }
 0x38e   : > { %v13989_v44 = vmax.f32 %v12136_v35, 0.0  ;;  %v1284_v34 = vsel %vm1203_vm2, %v15334_v43, %v15333_v59  ;;  %v15336_v30 = vrot.slane %v11875_v0, 7  ;;  %v3994_v51 = vmul.f32 %v11727_v15, %v12099_v2  ;;  %v15337_v59 = vld [vmem:[#allocation330_spill] sm:$0xff] }
 0x38f   : > { %v13990_v13 = vmax.f32 %v12133_v25, 0.0  ;;  %v2531_v1 = vadd.f32 %v15337_v59, %v12046_v38  ;;  %v15338_v31 = vrot.slane %v12075_v24, 7  ;;  %v3255_v16 = vmul.f32 %v11696_v52, %v12099_v2 }
 0x390   : > { %v12164_v55 = vrot.slane %v13989_v44, 7  ;;  %v1957_v9 = vsel %vm1541_vm0, %v15336_v30, %v1956_v26  ;;  %v1401_v30 = vadd.f32 %v1284_v34, %v1075_v57  ;;  %v15339_v44 = vrot.slane %v11884_v7, 6 }
 0x391   : > { %v5733_v54 = vrot.slane %v13990_v13, 7  ;;  %v1959_v43 = vsel %vm1541_vm0, %v1956_v26, %v15338_v31  ;;  %v15340_v59 = vmax.f32 %v11943_v50, 0.0  ;;  %v15341_v26 = vmax.f32 %v11946_v61, 0.0 }
 0x392   : > { %v2746_v38 = vsel %vm2334_vm1, %v15339_v44, %v2745_v12  ;;  %v2078_v18 = vadd.f32 %v1957_v9, %v12031_v3  ;;  %v15342_v58 = vrot.slane %v11920_v32, 1  ;;  %v15343_v34 = vrot.slane %v15328_v46, 1 }
 0x393   : > { %v5734_v0 = vsel %vm1541_vm0, %v11985_v22, %v5733_v54  ;;  %v5736_v14 = vsel %vm1541_vm0, %v5733_v54, %v12164_v55  ;;  %v15344_v7 = vrot.slane %v15288_v20, 1  ;;  %v2079_v50 = vadd.f32 %v1959_v43, %v11923_v17  ;;  %v15345_v20 = vld [vmem:[#allocation329_spill] sm:$0xff] }
 0x394   : > { %v5855_v13 = vmax.f32 %v15340_v59, %v5734_v0  ;;  %v5856_v31 = vmax.f32 %v15341_v26, %v5736_v14  ;;  %v3823_v22 = vsel %vm1203_vm2, %v15342_v58, %v3822_v42  ;;  %v2869_v57 = vadd.f32 %v2746_v38, %v2530_v28  ;;  %v15349_v14 = vld [vmem:[#allocation324_spill] sm:$0xff]  ;;  %v15350_v38 = vld [vmem:[#allocation315_spill] sm:$0xff] }
 0x395   : > { %v3508_v44 = vsel %vm1203_vm2, %v15344_v7, %v15343_v34  ;;  %v4139_v54 = vrot.slane %v3994_v51, 7  ;;  %v4472_v32 = vadd.f32 %v11938_v60, %v4366_v29  ;;  %v4525_v3 = vmul.f32 %v11827_v41, %v12099_v2  ;;  %v15347_v60 = vld [vmem:[#allocation302_spill] sm:$0xff]  ;;  %v15351_v59 = vld [vmem:[#allocation340_spill] sm:$0xff] }
 0x396   : > { %5907 = vst.msk [vmem:[%s9078_s8 + $0xf8] sm:$0xff] %vm5875_vm3, %v5855_v13  ;;  %5908 = vst.msk [vmem:[%s9078_s8 + $0x100] sm:$0xff] %vm5875_vm3, %v5856_v31  ;;  %v3625_v61 = vadd.f32 %v3508_v44, %v3255_v16  ;;  %v5167_v46 = vmul.f32 %v11968_v11, %v12099_v2  ;;  %v12212_v58 = vadd.f32 %v15345_v20, %v1401_v30  ;;  %v15346_v28 = vrot.slane %v11934_v10, 7  ;;  %v15356_v20 = vld [vmem:[#allocation303_spill] sm:$0xff] }
 0x397   : > { %v3941_v17 = vadd.f32 %v3823_v22, %v11930_v40  ;;  %v1025_v9 = vmul.f32 %v11642_v45, %v12194_v23  ;;  %v2192_v29 = vadd.f32 %v15347_v60, %v2078_v18  ;;  %v15348_v51 = vrot.slane %v12079_v63, 6 }
 0x398   : > { %v4140_v13 = vsel %vm1541_vm0, %v15346_v28, %v4139_v54  ;;  %v4668_v0 = vrot.slane %v4525_v3, 6  ;;  %v12226_v30 = vadd.f32 %v15349_v14, %v2079_v50  ;;  %v3198_v10 = vadd.f32 %v15350_v38, %v2869_v57 }
 0x399   : > { %v2748_v43 = vsel %vm2334_vm1, %v2745_v12, %v15348_v51  ;;  %v4261_v16 = vadd.f32 %v4140_v13, %v12062_v5  ;;  %v1078_v26 = vadd.f32 %v1025_v9, %v15351_v59  ;;  %v15352_v31 = vrot.slane %v12110_v33, 7 }
 0x39a   : > { %v2870_v40 = vadd.f32 %v2748_v43, %v2531_v1  ;;  %v15353_v18 = vrot.slane %v11955_v49, 6  ;;  %v15354_v12 = vrot.slane %v12119_v4, 6  ;;  %v5310_v7 = vrot.slane %v5167_v46, 7  ;;  %v15359_v49 = vld [vmem:[#allocation337_spill] sm:$0xff] }
 0x39b   : > { %v4142_v22 = vsel %vm1541_vm0, %v4139_v54, %v15352_v31  ;;  %v15355_v44 = vrot.slane %v12097_v53, 1  ;;  %v4367_v28 = vadd.f32 %v15356_v20, %v4261_v16  ;;  %v15357_v54 = vld [vmem:[#allocation327_spill] sm:$0xff]  ;;  %v15360_v9 = vrot.slane %v15359_v49, 1 }
 0x39c   : > { %v4669_v34 = vsel %vm2334_vm1, %v15353_v18, %v4668_v0  ;;  %v4671_v5 = vsel %vm2334_vm1, %v4668_v0, %v15354_v12  ;;  %v4262_v50 = vadd.f32 %v4142_v22, %v3941_v17  ;;  %v15358_v13 = vrot.slane %v15357_v54, 1  ;;  %v15362_v17 = vld [vmem:[#allocation334_spill] sm:$0xff]  ;;  %v15363_v0 = vld [vmem:[#allocation332_spill] sm:$0xff] }
 0x39d   : > { %v3825_v1 = vsel %vm1203_vm2, %v3822_v42, %v15355_v44  ;;  %v4792_v57 = vadd.f32 %v4669_v34, %v12093_v6  ;;  %v4793_v3 = vadd.f32 %v4671_v5, %v4472_v32  ;;  %v12251_v51 = vmul.f32 %v11681_v47, %v12194_v23  ;;  %v15361_v42 = vld [vmem:[#allocation319_spill] sm:$0xff] }
 0x39e   : > { %v1290_v60 = vsel %vm1203_vm2, %v15360_v9, %v15358_v13  ;;  %v12255_v46 = vmul.f32 %v11880_v21, %v12194_v23  ;;  %v4420_v6 = vmul.f32 %v11889_v37, %v12099_v2  ;;  %v3199_v14 = vadd.f32 %v15363_v0, %v2870_v40  ;;  %v15366_v2 = vld [vmem:[#allocation325_spill] sm:$0xff] }
 0x39f   : > { %v5113_v32 = vadd.f32 %v15361_v42, %v4792_v57  ;;  %v5114_v43 = vadd.f32 %v15362_v17, %v4793_v3  ;;  %v1404_v16 = vadd.f32 %v1290_v60, %v1078_v26  ;;  %v15364_v38 = vrot.slane %v11972_v62, 7  ;;  %v12273_v26 = vpop.permute.xlu0 %919  ;;  %v15370_v9 = vld [vmem:[#allocation341_spill] sm:$0xff] }
 0x3a0   : > { %v15365_v31 = vrot.slane %v12148_v48, 7  ;;  %v3258_v18 = vmul.f32 %v11696_v52, %v12194_v23  ;;  %v12270_v34 = vadd.f32 %v3825_v1, %v3625_v61  ;;  %v4368_v12 = vadd.f32 %v15366_v2, %v4262_v50  ;;  %v15367_v61 = vld [vmem:[#allocation364_spill] sm:$0xff]  ;;  %v15372_v2 = vld [vmem:[#allocation311_spill] sm:$0xff] }
 0x3a1   : > { %v5311_v59 = vsel %vm1541_vm0, %v15364_v38, %v5310_v7  ;;  %v12275_v40 = vadd.f32 %v4420_v6, %v4367_v28  ;;  %v13993_v62 = vrot.slane %v12251_v51, 7  ;;  %v12284_v1 = vadd.f32 %v15367_v61, %v1404_v16  ;;  %v15368_v50 = vld [vmem:[#allocation336_spill] sm:$0xff] }
 0x3a2   : > { %v5313_v22 = vsel %vm1541_vm0, %v5310_v7, %v15365_v31  ;;  %v5434_v5 = vadd.f32 %v5311_v59, %v5113_v32  ;;  %v12281_v7 = vmul.f32 %v11916_v19, %v12194_v23  ;;  %v15369_v13 = vrot.slane %v15368_v50, 1 }
 0x3a3   : > { %v5435_v44 = vadd.f32 %v5313_v22, %v5114_v43  ;;  %v15371_v60 = vrot.slane %v15370_v9, 1  ;;  %v12295_v42 = vmul.f32 %v11727_v15, %v12194_v23  ;;  %v12299_v32 = vmul.f32 %v11889_v37, %v12194_v23 }
 0x3a4   : > { %v5487_v3 = vmax.f32 %v3198_v10, %v5434_v5  ;;  %v1024_v10 = vmul.f32 %v11642_v45, %v12273_v26  ;;  %v1813_v16 = vmul.f32 %v11681_v47, %v12273_v26  ;;  %v2604_v0 = vmul.f32 %v11880_v21, %v12273_v26 }
 0x3a5   : > { %v5488_v20 = vmax.f32 %v3199_v14, %v5435_v44  ;;  %v3514_v28 = vsel %vm1203_vm2, %v15371_v60, %v15369_v13  ;;  %v12316_v38 = vmul.f32 %v11827_v41, %v12194_v23  ;;  %v3680_v59 = vmul.f32 %v11916_v19, %v12273_v26 }
 0x3a6   : > { %v12291_v6 = vadd.f32 %v3514_v28, %v3258_v18  ;;  %v12304_v17 = vadd.f32 %v12130_v36, %v5487_v3  ;;  %v3996_v31 = vmul.f32 %v11727_v15, %v12273_v26  ;;  %v1077_v5 = vadd.f32 %v1024_v10, %v15372_v2  ;;  %v15375_v28 = vld [vmem:[#allocation331_spill] sm:$0xff] }
 0x3a7   : > { %v12307_v43 = vadd.f32 %v12130_v36, %v5488_v20  ;;  %v1960_v44 = vrot.slane %v1813_v16, 7  ;;  %v12328_v20 = vmul.f32 %v11968_v11, %v12194_v23  ;;  %v15373_v61 = vrot.slane %v15359_v49, 1 }
 0x3a8   : > { %v13992_v22 = vmax.f32 %v12304_v17, 0.0  ;;  %v15374_v13 = vrot.slane %v15317_v56, 1  ;;  %v2532_v14 = vadd.f32 %v15375_v28, %v2192_v29  ;;  %v2749_v16 = vrot.slane %v2604_v0, 6 }
 0x3a9   : > { %v13991_v18 = vmax.f32 %v12307_v43, 0.0  ;;  %v3826_v2 = vrot.slane %v3680_v59, 1  ;;  %v13995_v23 = vrot.slane %v12316_v38, 6  ;;  %v15376_v3 = vrot.slane %v12075_v24, 7 }
 0x3aa   : > { %v1288_v60 = vsel %vm1203_vm2, %v15374_v13, %v15373_v61  ;;  %v5737_v57 = vrot.slane %v13992_v22, 7  ;;  %v1963_v56 = vsel %vm1541_vm0, %v1960_v44, %v13993_v62  ;;  %v4143_v29 = vrot.slane %v3996_v31, 7  ;;  %v15379_v31 = vld [vmem:[#allocation348_spill] sm:$0xff] }
 0x3ab   : > { %v12340_v10 = vrot.slane %v13991_v18, 7  ;;  %v1961_v49 = vsel %vm1541_vm0, %v15376_v3, %v1960_v44  ;;  %v1403_v59 = vadd.f32 %v1288_v60, %v1077_v5  ;;  %v3257_v13 = vmul.f32 %v11696_v52, %v12273_v26 }
 0x3ac   : > { %v5738_v61 = vsel %vm1541_vm0, %v12164_v55, %v5737_v57  ;;  %v15377_v24 = vmax.f32 %v12133_v25, 0.0  ;;  %v15378_v28 = vmax.f32 %v12136_v35, 0.0  ;;  %v13994_v44 = vrot.slane %v12328_v20, 7 }
 0x3ad   : > { %v5740_v0 = vsel %vm1541_vm0, %v5737_v57, %v12340_v10  ;;  %v2533_v22 = vadd.f32 %v15379_v31, %v12226_v30  ;;  %v2080_v55 = vadd.f32 %v1961_v49, %v12212_v58  ;;  %v2081_v62 = vadd.f32 %v1963_v56, %v12113_v8  ;;  %v15385_v56 = vld [vmem:[#allocation345_spill] sm:$0xff] }
 0x3ae   : > { %v5857_v3 = vmax.f32 %v15377_v24, %v5738_v61  ;;  %v5858_v18 = vmax.f32 %v15378_v28, %v5740_v0  ;;  %v15380_v57 = vrot.slane %v12079_v63, 6  ;;  %v15381_v60 = vrot.slane %v12097_v53, 1  ;;  %v12370_v61 = vpop.permute.xlu1 %934 }
 0x3af   : > { %v15382_v35 = vrot.slane %v15370_v9, 1  ;;  %v15383_v58 = vrot.slane %v15326_v27, 1  ;;  %v4474_v63 = vadd.f32 %v12144_v39, %v4368_v12  ;;  %v15384_v49 = vrot.slane %v12110_v33, 7 }
 0x3b0   : > { %v2750_v5 = vsel %vm2334_vm1, %v15380_v57, %v2749_v16  ;;  %v3827_v25 = vsel %vm1203_vm2, %v15381_v60, %v3826_v2  ;;  %5909 = vst.msk [vmem:[%s9078_s8 + $0x108] sm:$0xff] %vm5875_vm3, %v5857_v3  ;;  %5910 = vst.msk [vmem:[%s9078_s8 + $0x110] sm:$0xff] %vm5875_vm3, %v5858_v18  ;;  %v12386_v0 = vadd.f32 %v15385_v56, %v1403_v59  ;;  %v15386_v3 = vld [vmem:[#allocation8_spill] sm:$0xff]  ;;  %v15387_v27 = vrot.slane %v12255_v46, 6 }
 0x3b1   : > { %v3512_v8 = vsel %vm1203_vm2, %v15383_v58, %v15382_v35  ;;  %v2871_v30 = vadd.f32 %v2750_v5, %v2532_v14  ;;  %v4144_v53 = vsel %vm1541_vm0, %v15384_v49, %v4143_v29  ;;  %v3943_v28 = vadd.f32 %v3827_v25, %v15386_v3  ;;  %v15388_v14 = vld [vmem:[#allocation317_spill] sm:$0xff] }
 0x3b2   : > { %v3627_v24 = vadd.f32 %v3512_v8, %v3257_v13  ;;  %v4527_v9 = vmul.f32 %v11827_v41, %v12273_v26  ;;  %v2752_v18 = vsel %vm2334_vm1, %v2749_v16, %v15387_v27  ;;  %v4263_v39 = vadd.f32 %v4144_v53, %v12270_v34  ;;  %v15389_v13 = vld [vmem:[#allocation343_spill] sm:$0xff]  ;;  %v15391_v16 = vld [vmem:[#allocation333_spill] sm:$0xff] }
 0x3b3   : > { %v5169_v33 = vmul.f32 %v11968_v11, %v12273_v26  ;;  %v1027_v12 = vmul.f32 %v11642_v45, %v12370_v61  ;;  %v2194_v59 = vadd.f32 %v15388_v14, %v2080_v55  ;;  %v12401_v31 = vadd.f32 %v15389_v13, %v2081_v62  ;;  %v15393_v8 = vld [vmem:[#allocation359_spill] sm:$0xff] }
 0x3b4   : > { %v15390_v57 = vrot.slane %v12281_v7, 1  ;;  %v4672_v60 = vrot.slane %v4527_v9, 6  ;;  %v2872_v25 = vadd.f32 %v2752_v18, %v2533_v22  ;;  %v3200_v35 = vadd.f32 %v15391_v16, %v2871_v30  ;;  %v15395_v22 = vld [vmem:[#allocation321_spill] sm:$0xff]  ;;  %v15403_v16 = vld [vmem:[#allocation346_spill] sm:$0xff] }
 0x3b5   : > { %v15392_v34 = vrot.slane %v12295_v42, 7  ;;  %v1080_v49 = vadd.f32 %v1027_v12, %v15393_v8  ;;  %v15394_v55 = vrot.slane %v12119_v4, 6  ;;  %v4369_v30 = vadd.f32 %v15395_v22, %v4263_v39  ;;  %v15398_v4 = vld [vmem:[#allocation356_spill] sm:$0xff]  ;;  %v15400_v39 = vld [vmem:[#allocation335_spill] sm:$0xff] }
 0x3b6   : > { %v3829_v5 = vsel %vm1203_vm2, %v3826_v2, %v15390_v57  ;;  %v4675_v56 = vsel %vm2334_vm1, %v4672_v60, %v13995_v23  ;;  %v5314_v2 = vrot.slane %v5169_v33, 7  ;;  %v15399_v12 = vrot.slane %v15398_v4, 1 }
 0x3b7   : > { %v4146_v58 = vsel %vm1541_vm0, %v4143_v29, %v15392_v34  ;;  %v4673_v62 = vsel %vm2334_vm1, %v15394_v55, %v4672_v60  ;;  %v12417_v3 = vadd.f32 %v3829_v5, %v3627_v24  ;;  %v4795_v27 = vadd.f32 %v4675_v56, %v4474_v63  ;;  %v15401_v63 = vld [vmem:[#allocation352_spill] sm:$0xff]  ;;  %v15402_v5 = vld [vmem:[#allocation350_spill] sm:$0xff] }
 0x3b8   : > { %v4264_v53 = vadd.f32 %v4146_v58, %v3943_v28  ;;  %v4794_v9 = vadd.f32 %v4673_v62, %v12275_v40  ;;  %v4422_v29 = vmul.f32 %v11889_v37, %v12273_v26  ;;  %v15396_v28 = vld [vmem:[#allocation342_spill] sm:$0xff]  ;;  %v12430_v13 = vmul.f32 %v11681_v47, %v12370_v61 }
 0x3b9   : > { %v15397_v18 = vrot.slane %v15396_v28, 1  ;;  %v12434_v24 = vmul.f32 %v11880_v21, %v12370_v61  ;;  %v5116_v33 = vadd.f32 %v15401_v63, %v4795_v27  ;;  %v3260_v26 = vmul.f32 %v11696_v52, %v12370_v61 }
 0x3ba   : > { %v5115_v40 = vadd.f32 %v15400_v39, %v4794_v9  ;;  %v3201_v60 = vadd.f32 %v15402_v5, %v2872_v25  ;;  %v4370_v34 = vadd.f32 %v15403_v16, %v4264_v53  ;;  %v15404_v58 = vrot.slane %v12148_v48, 7  ;;  %v12454_v9 = vpop.permute.xlu0 %929  ;;  %v15405_v53 = vld [vmem:[#allocation354_spill] sm:$0xff]  ;;  %v15409_v39 = vld [vmem:[#allocation381_spill] sm:$0xff] }
 0x3bb   : > { %v1294_v14 = vsel %vm1203_vm2, %v15399_v12, %v15397_v18  ;;  %v5317_v55 = vsel %vm1541_vm0, %v5314_v2, %v13994_v44  ;;  %v12448_v62 = vadd.f32 %v4422_v29, %v4369_v30  ;;  %v15406_v27 = vrot.slane %v15405_v53, 1  ;;  %v15407_v18 = vld [vmem:[#allocation358_spill] sm:$0xff] }
 0x3bc   : > { %v1406_v57 = vadd.f32 %v1294_v14, %v1080_v49  ;;  %v5315_v8 = vsel %vm1541_vm0, %v15404_v58, %v5314_v2  ;;  %v5437_v22 = vadd.f32 %v5317_v55, %v5116_v33  ;;  %v12452_v49 = vmul.f32 %v11916_v19, %v12370_v61 }
 0x3bd   : > { %v5436_v56 = vadd.f32 %v5315_v8, %v5115_v40  ;;  %v15408_v12 = vrot.slane %v15407_v18, 1  ;;  %v12465_v30 = vmul.f32 %v11727_v15, %v12370_v61  ;;  %v12474_v33 = vmul.f32 %v11827_v41, %v12370_v61  ;;  %v15414_v8 = vld [vmem:[#allocation349_spill] sm:$0xff] }
 0x3be   : > { %v5490_v14 = vmax.f32 %v3201_v60, %v5437_v22  ;;  %v12468_v40 = vadd.f32 %v15409_v39, %v1406_v57  ;;  %v1026_v5 = vmul.f32 %v11642_v45, %v12454_v9  ;;  %v1815_v16 = vmul.f32 %v11681_v47, %v12454_v9 }
 0x3bf   : > { %v3518_v2 = vsel %vm1203_vm2, %v15408_v12, %v15406_v27  ;;  %v5489_v29 = vmax.f32 %v3200_v35, %v5436_v56  ;;  %v2606_v58 = vmul.f32 %v11880_v21, %v12454_v9  ;;  %v3682_v60 = vmul.f32 %v11916_v19, %v12454_v9 }
 0x3c0   : > { %v12470_v63 = vadd.f32 %v3518_v2, %v3260_v26  ;;  %v12486_v57 = vadd.f32 %v12130_v36, %v5490_v14  ;;  %v12494_v55 = vmul.f32 %v11889_v37, %v12370_v61  ;;  %v12498_v56 = vmul.f32 %v11968_v11, %v12370_v61  ;;  %v15411_v2 = vld [vmem:[#allocation326_spill] sm:$0xff] }
 0x3c1   : > { %v12483_v35 = vadd.f32 %v12130_v36, %v5489_v29  ;;  %v1964_v22 = vrot.slane %v1815_v16, 7  ;;  %v1079_v29 = vadd.f32 %v1026_v5, %v15411_v2  ;;  %v2753_v14 = vrot.slane %v2606_v58, 6 }
 0x3c2   : > { %15410 = vst [vmem:[#allocation28_spill] sm:$0xff] %v12470_v63  ;;  %v13996_v12 = vmax.f32 %v12486_v57, 0.0  ;;  %v15412_v44 = vrot.slane %v15398_v4, 1  ;;  %v15413_v26 = vrot.slane %v15357_v54, 1  ;;  %v2534_v48 = vadd.f32 %v15414_v8, %v2194_v59  ;;  %v12544_v63 = vpop.permute.xlu1 %944 }
 0x3c3   : > { %v13997_v27 = vmax.f32 %v12483_v35, 0.0  ;;  %v3830_v61 = vrot.slane %v3682_v60, 1  ;;  %v15415_v5 = vrot.slane %v12251_v51, 7  ;;  %v3998_v4 = vmul.f32 %v11727_v15, %v12454_v9 }
 0x3c4   : > { %v1292_v23 = vsel %vm1203_vm2, %v15413_v26, %v15412_v44  ;;  %v12514_v25 = vrot.slane %v13996_v12, 7  ;;  %v15416_v44 = vld [vmem:[#allocation366_spill] sm:$0xff]  ;;  %v15417_v26 = vrot.slane %v12430_v13, 7  ;;  %v3259_v8 = vmul.f32 %v11696_v52, %v12454_v9 }
 0x3c5   : > { %v5741_v16 = vrot.slane %v13997_v27, 7  ;;  %v1965_v58 = vsel %vm1541_vm0, %v15415_v5, %v1964_v22  ;;  %v2535_v59 = vadd.f32 %v15416_v44, %v12401_v31  ;;  %v1405_v5 = vadd.f32 %v1292_v23, %v1079_v29 }
 0x3c6   : > { %v1967_v60 = vsel %vm1541_vm0, %v1964_v22, %v15417_v26  ;;  %v15418_v12 = vrot.slane %v12255_v46, 6  ;;  %v15419_v44 = vmax.f32 %v12304_v17, 0.0  ;;  %v15420_v22 = vmax.f32 %v12307_v43, 0.0 }
 0x3c7   : > { %v5742_v51 = vsel %vm1541_vm0, %v12340_v10, %v5741_v16  ;;  %v5744_v2 = vsel %vm1541_vm0, %v5741_v16, %v12514_v25  ;;  %v2082_v54 = vadd.f32 %v1965_v58, %v12386_v0  ;;  %v15421_v39 = vrot.slane %v12281_v7, 1 }
 0x3c8   : > { %v2754_v31 = vsel %vm2334_vm1, %v15418_v12, %v2753_v14  ;;  %v5859_v27 = vmax.f32 %v15419_v44, %v5742_v51  ;;  %v5860_v26 = vmax.f32 %v15420_v22, %v5744_v2  ;;  %v15422_v23 = vrot.slane %v15407_v18, 1  ;;  %v15428_v2 = vld [vmem:[#allocation360_spill] sm:$0xff] }
 0x3c9   : > { %v3831_v10 = vsel %vm1203_vm2, %v15421_v39, %v3830_v61  ;;  %v15423_v46 = vrot.slane %v15368_v50, 1  ;;  %v2083_v17 = vadd.f32 %v1967_v60, %v12284_v1  ;;  %v2873_v29 = vadd.f32 %v2754_v31, %v2534_v48  ;;  %v15424_v50 = vld [vmem:[#allocation365_spill] sm:$0xff]  ;;  %v15429_v31 = vld [vmem:[#allocation351_spill] sm:$0xff] }
 0x3ca   : > { %v4147_v16 = vrot.slane %v3998_v4, 7  ;;  %5911 = vst.msk [vmem:[%s9078_s8 + $0x118] sm:$0xff] %vm5875_vm3, %v5859_v27  ;;  %5912 = vst.msk [vmem:[%s9078_s8 + $0x120] sm:$0xff] %vm5875_vm3, %v5860_v26  ;;  %v4476_v7 = vadd.f32 %v12299_v32, %v4370_v34  ;;  %v4529_v0 = vmul.f32 %v11827_v41, %v12454_v9  ;;  %v5171_v18 = vmul.f32 %v11968_v11, %v12454_v9  ;;  %v15426_v32 = vld [vmem:[#allocation338_spill] sm:$0xff] }
 0x3cb   : > { %v3516_v12 = vsel %vm1203_vm2, %v15423_v46, %v15422_v23  ;;  %v12562_v39 = vadd.f32 %v15424_v50, %v1405_v5  ;;  %v3945_v1 = vadd.f32 %v3831_v10, %v12291_v6  ;;  %v15425_v48 = vrot.slane %v12295_v42, 7  ;;  %v15433_v10 = vld [vmem:[#allocation378_spill] sm:$0xff] }
 0x3cc   : > { %v3629_v43 = vadd.f32 %v3516_v12, %v3259_v8  ;;  %v1029_v58 = vmul.f32 %v11642_v45, %v12544_v63  ;;  %v2196_v34 = vadd.f32 %v15426_v32, %v2082_v54  ;;  %v15427_v4 = vrot.slane %v12434_v24, 6 }
 0x3cd   : > { %v4148_v27 = vsel %vm1541_vm0, %v15425_v48, %v4147_v16  ;;  %v4676_v51 = vrot.slane %v4529_v0, 6  ;;  %v12576_v5 = vadd.f32 %v15428_v2, %v2083_v17  ;;  %v3202_v42 = vadd.f32 %v15429_v31, %v2873_v29  ;;  %v15436_v48 = vld [vmem:[#allocation368_spill] sm:$0xff] }
 0x3ce   : > { %v2756_v60 = vsel %vm2334_vm1, %v2753_v14, %v15427_v4  ;;  %v4265_v8 = vadd.f32 %v4148_v27, %v12417_v3  ;;  %v15430_v44 = vrot.slane %v12465_v30, 7  ;;  %v15431_v45 = vrot.slane %v12316_v38, 6  ;;  %v15441_v4 = vld [vmem:[#allocation373_spill] sm:$0xff] }
 0x3cf   : > { %v2874_v6 = vadd.f32 %v2756_v60, %v2535_v59  ;;  %v15432_v26 = vrot.slane %v12474_v33, 6  ;;  %v5318_v3 = vrot.slane %v5171_v18, 7  ;;  %v1082_v23 = vadd.f32 %v1029_v58, %v15433_v10  ;;  %v15438_v58 = vld [vmem:[#allocation370_spill] sm:$0xff]  ;;  %v12623_v10 = vpop.permute.xlu0 %939 }
 0x3d0   : > { %v4150_v22 = vsel %vm1541_vm0, %v4147_v16, %v15430_v44  ;;  %v4677_v54 = vsel %vm2334_vm1, %v15431_v45, %v4676_v51  ;;  %v15434_v46 = vrot.slane %v12452_v49, 1  ;;  %v15435_v16 = vld [vmem:[#allocation339_spill] sm:$0xff]  ;;  %v4424_v38 = vmul.f32 %v11889_v37, %v12454_v9  ;;  %v15445_v45 = vld [vmem:[#allocation361_spill] sm:$0xff] }
 0x3d1   : > { %v4679_v14 = vsel %vm2334_vm1, %v4676_v51, %v15432_v26  ;;  %v4266_v12 = vadd.f32 %v4150_v22, %v3945_v1  ;;  %v4796_v17 = vadd.f32 %v4677_v54, %v12448_v62  ;;  %v4371_v0 = vadd.f32 %v15435_v16, %v4265_v8 }
 0x3d2   : > { %v3833_v59 = vsel %vm1203_vm2, %v3830_v61, %v15434_v46  ;;  %v4797_v29 = vadd.f32 %v4679_v14, %v4476_v7  ;;  %v12598_v50 = vmul.f32 %v11681_v47, %v12544_v63  ;;  %v12602_v18 = vmul.f32 %v11880_v21, %v12544_v63  ;;  %v15437_v61 = vld [vmem:[#allocation355_spill] sm:$0xff] }
 0x3d3   : > { %v3203_v27 = vadd.f32 %v15436_v48, %v2874_v6  ;;  %v5117_v1 = vadd.f32 %v15437_v61, %v4796_v17  ;;  %v15439_v7 = vld [vmem:[#allocation363_spill] sm:$0xff]  ;;  %v15442_v60 = vrot.slane %v15441_v4, 1  ;;  %v15443_v8 = vrot.slane %v12328_v20, 7 }
 0x3d4   : > { %v5118_v62 = vadd.f32 %v15438_v58, %v4797_v29  ;;  %v15440_v32 = vrot.slane %v15439_v7, 1  ;;  %v15444_v2 = vrot.slane %v12498_v56, 7  ;;  %v3262_v6 = vmul.f32 %v11696_v52, %v12544_v63  ;;  %v15448_v29 = vld [vmem:[#allocation376_spill] sm:$0xff] }
 0x3d5   : > { %v5319_v51 = vsel %vm1541_vm0, %v15443_v8, %v5318_v3  ;;  %v12620_v22 = vadd.f32 %v3833_v59, %v3629_v43  ;;  %v4372_v54 = vadd.f32 %v15445_v45, %v4266_v12  ;;  %v12625_v46 = vadd.f32 %v4424_v38, %v4371_v0  ;;  %v15446_v43 = vld [vmem:[#allocation372_spill] sm:$0xff]  ;;  %v15450_v38 = vld [vmem:[#allocation401_spill] sm:$0xff] }
 0x3d6   : > { %v1298_v9 = vsel %vm1203_vm2, %v15442_v60, %v15440_v32  ;;  %v5321_v31 = vsel %vm1541_vm0, %v5318_v3, %v15444_v2  ;;  %v5438_v26 = vadd.f32 %v5319_v51, %v5117_v1  ;;  %v1970_v20 = vrot.slane %v12598_v50, 7 }
 0x3d7   : > { %v1408_v44 = vadd.f32 %v1298_v9, %v1082_v23  ;;  %v5439_v14 = vadd.f32 %v5321_v31, %v5118_v62  ;;  %v2759_v17 = vrot.slane %v12602_v18, 6  ;;  %v12631_v3 = vmul.f32 %v11916_v19, %v12544_v63 }
 0x3d8   : > { %v5491_v23 = vmax.f32 %v3202_v42, %v5438_v26  ;;  %v15447_v59 = vrot.slane %v15446_v43, 1  ;;  %v15449_v12 = vrot.slane %v15448_v29, 1  ;;  %v12640_v0 = vmul.f32 %v11727_v15, %v12544_v63  ;;  %v12654_v42 = vld [vmem:[%s13634_s2 + $0x1] ss:$0 sm:$0xff] }
 0x3d9   : > { %v5492_v52 = vmax.f32 %v3203_v27, %v5439_v14  ;;  %v12643_v48 = vadd.f32 %v15450_v38, %v1408_v44  ;;  %v12649_v1 = vmul.f32 %v11889_v37, %v12544_v63  ;;  %v1028_v27 = vmul.f32 %v12654_v42, %v12623_v10 }
 0x3da   : > { %v3522_v16 = vsel %vm1203_vm2, %v15449_v12, %v15447_v59  ;;  %v12659_v58 = vadd.f32 %v12130_v36, %v5491_v23  ;;  %v1817_v32 = vmul.f32 %v11681_v47, %v12623_v10  ;;  %v2608_v60 = vmul.f32 %v11880_v21, %v12623_v10 }
 0x3db   : > { %v12645_v61 = vadd.f32 %v3522_v16, %v3262_v6  ;;  %v12662_v62 = vadd.f32 %v12130_v36, %v5492_v52  ;;  %v12671_v8 = vmul.f32 %v11827_v41, %v12544_v63  ;;  %v3684_v51 = vmul.f32 %v11916_v19, %v12623_v10  ;;  %v15453_v52 = vld [vmem:[#allocation367_spill] sm:$0xff] }
 0x3dc   : > { %v4000_v2 = vmul.f32 %v11727_v15, %v12623_v10  ;;  %v13999_v31 = vmax.f32 %v12659_v58, 0.0  ;;  %v1968_v6 = vrot.slane %v1817_v32, 7  ;;  %v12682_v45 = vmul.f32 %v11968_v11, %v12544_v63  ;;  %v15454_v15 = vld [vmem:[#allocation347_spill] sm:$0xff] }
 0x3dd   : > { %v13998_v44 = vmax.f32 %v12662_v62, 0.0  ;;  %v15451_v26 = vrot.slane %v15441_v4, 1  ;;  %v15452_v14 = vrot.slane %v15396_v28, 1  ;;  %v2536_v59 = vadd.f32 %v15453_v52, %v2196_v34  ;;  %v12704_v34 = vld [vmem:[%s13634_s2] ss:$0 sm:$0xff] }
 0x3de   : > { %v1081_v12 = vadd.f32 %v1028_v27, %v15454_v15  ;;  %v5745_v16 = vrot.slane %v13999_v31, 7  ;;  %v2757_v32 = vrot.slane %v2608_v60, 6  ;;  %v3834_v63 = vrot.slane %v3684_v51, 1 }
 0x3df   : > { %v1296_v23 = vsel %vm1203_vm2, %v15452_v14, %v15451_v26  ;;  %v12695_v38 = vrot.slane %v13998_v44, 7  ;;  %v15455_v4 = vrot.slane %v12430_v13, 7  ;;  %v3261_v27 = vmul.f32 %v12704_v34, %v12623_v10  ;;  %v15456_v13 = vld [vmem:[#allocation384_spill] sm:$0xff] }
 0x3e0   : > { %v4151_v26 = vrot.slane %v4000_v2, 7  ;;  %v5746_v60 = vsel %vm1541_vm0, %v12514_v25, %v5745_v16  ;;  %v2537_v14 = vadd.f32 %v15456_v13, %v12576_v5  ;;  %v1971_v52 = vsel %vm1541_vm0, %v1968_v6, %v1970_v20 }
 0x3e1   : > { %v1969_v28 = vsel %vm1541_vm0, %v15455_v4, %v1968_v6  ;;  %v5748_v51 = vsel %vm1541_vm0, %v5745_v16, %v12695_v38  ;;  %v15457_v15 = vmax.f32 %v12483_v35, 0.0  ;;  %v15458_v44 = vmax.f32 %v12486_v57, 0.0 }
 0x3e2   : > { %v14000_v2 = vrot.slane %v12682_v45, 7  ;;  %v15459_v25 = vrot.slane %v15448_v29, 1  ;;  %v15460_v47 = vrot.slane %v15405_v53, 1  ;;  %v1407_v9 = vadd.f32 %v1296_v23, %v1081_v12 }
 0x3e3   : > { %v5861_v4 = vmax.f32 %v15457_v15, %v5746_v60  ;;  %v5862_v31 = vmax.f32 %v15458_v44, %v5748_v51  ;;  %v2084_v5 = vadd.f32 %v1969_v28, %v12562_v39  ;;  %v15461_v13 = vrot.slane %v12434_v24, 6  ;;  %v12734_v44 = vpop.permute.xlu1 %954  ;;  %v15468_v15 = vld [vmem:[#allocation379_spill] sm:$0xff] }
 0x3e4   : > { %v3520_v16 = vsel %vm1203_vm2, %v15460_v47, %v15459_v25  ;;  %v15462_v35 = vrot.slane %v12452_v49, 1  ;;  %v2085_v53 = vadd.f32 %v1971_v52, %v12468_v40  ;;  %v15463_v39 = vrot.slane %v12465_v30, 7  ;;  %v15465_v40 = vld [vmem:[#allocation28_spill] sm:$0xff] }
 0x3e5   : > { %v2758_v6 = vsel %vm2334_vm1, %v15461_v13, %v2757_v32  ;;  %5913 = vst.msk [vmem:[%s9078_s8 + $0x128] sm:$0xff] %vm5875_vm3, %v5861_v4  ;;  %5914 = vst.msk [vmem:[%s9078_s8 + $0x130] sm:$0xff] %vm5875_vm3, %v5862_v31  ;;  %v3631_v47 = vadd.f32 %v3520_v16, %v3261_v27  ;;  %v4478_v23 = vadd.f32 %v12494_v55, %v4372_v54  ;;  %v15464_v12 = vrot.slane %v12631_v3, 1  ;;  %v15466_v54 = vld [vmem:[#allocation382_spill] sm:$0xff] }
 0x3e6   : > { %v3835_v57 = vsel %vm1203_vm2, %v15462_v35, %v3834_v63  ;;  %v2875_v29 = vadd.f32 %v2758_v6, %v2536_v59  ;;  %v4152_v24 = vsel %vm1541_vm0, %v15463_v39, %v4151_v26  ;;  %v2760_v49 = vsel %vm2334_vm1, %v2757_v32, %v2759_v17  ;;  %v15467_v32 = vld [vmem:[#allocation353_spill] sm:$0xff] }
 0x3e7   : > { %v3837_v28 = vsel %vm1203_vm2, %v3834_v63, %v15464_v12  ;;  %v4531_v31 = vmul.f32 %v11827_v41, %v12623_v10  ;;  %v3947_v59 = vadd.f32 %v3835_v57, %v15465_v40  ;;  %v4267_v27 = vadd.f32 %v4152_v24, %v12620_v22  ;;  %v15469_v41 = vld [vmem:[#allocation369_spill] sm:$0xff]  ;;  %v15475_v12 = vld [vmem:[#allocation386_spill] sm:$0xff] }
 0x3e8   : > { %v5173_v30 = vmul.f32 %v11968_v11, %v12623_v10  ;;  %v1031_v55 = vmul.f32 %v12654_v42, %v12734_v44  ;;  %v12760_v60 = vadd.f32 %v15466_v54, %v1407_v9  ;;  %v2198_v51 = vadd.f32 %v15467_v32, %v2084_v5  ;;  %v15473_v57 = vld [vmem:[#allocation397_spill] sm:$0xff] }
 0x3e9   : > { %v2876_v52 = vadd.f32 %v2760_v49, %v2537_v14  ;;  %v4680_v63 = vrot.slane %v4531_v31, 6  ;;  %v12764_v4 = vadd.f32 %v15468_v15, %v2085_v53  ;;  %v3204_v25 = vadd.f32 %v15469_v41, %v2875_v29  ;;  %v15474_v24 = vld [vmem:[#allocation357_spill] sm:$0xff] }
 0x3ea   : > { %v12767_v16 = vadd.f32 %v3837_v28, %v3631_v47  ;;  %v15470_v22 = vrot.slane %v12640_v0, 7  ;;  %v15471_v6 = vrot.slane %v12474_v33, 6  ;;  %v15472_v35 = vrot.slane %v12671_v8, 6 }
 0x3eb   : > { %v5322_v5 = vrot.slane %v5173_v30, 7  ;;  %v1084_v53 = vadd.f32 %v1031_v55, %v15473_v57  ;;  %v4373_v29 = vadd.f32 %v15474_v24, %v4267_v27  ;;  %v3205_v28 = vadd.f32 %v15475_v12, %v2876_v52  ;;  %v15478_v30 = vld [vmem:[#allocation377_spill] sm:$0xff]  ;;  %v12819_v24 = vpop.permute.xlu0 %949 }
 0x3ec   : > { %v4154_v13 = vsel %vm1541_vm0, %v4151_v26, %v15470_v22  ;;  %v4681_v9 = vsel %vm2334_vm1, %v15471_v6, %v4680_v63  ;;  %v4683_v14 = vsel %vm2334_vm1, %v4680_v63, %v15472_v35  ;;  %v4426_v33 = vmul.f32 %v11889_v37, %v12623_v10  ;;  %v12787_v26 = vld [vmem:[%s13634_s2 + $0x4] ss:$0 sm:$0xff]  ;;  %v15480_v10 = vld [vmem:[#allocation392_spill] sm:$0xff] }
 0x3ed   : > { %v4268_v39 = vadd.f32 %v4154_v13, %v3947_v59  ;;  %v4798_v47 = vadd.f32 %v4681_v9, %v12625_v46  ;;  %v4799_v49 = vadd.f32 %v4683_v14, %v4478_v23  ;;  %v12791_v31 = vmul.f32 %v12787_v26, %v12734_v44  ;;  %v15476_v46 = vld [vmem:[#allocation371_spill] sm:$0xff]  ;;  %v15477_v59 = vld [vmem:[#allocation390_spill] sm:$0xff]  ;;  %v15483_v6 = vld [vmem:[#allocation380_spill] sm:$0xff] }
 0x3ee   : > { %v12795_v40 = vmul.f32 %v11880_v21, %v12734_v44  ;;  %v15479_v55 = vrot.slane %v15478_v30, 1  ;;  %v15481_v54 = vrot.slane %v15480_v10, 1  ;;  %v3264_v52 = vmul.f32 %v12704_v34, %v12734_v44 }
 0x3ef   : > { %v5119_v23 = vadd.f32 %v15476_v46, %v4798_v47  ;;  %v5120_v27 = vadd.f32 %v15477_v59, %v4799_v49  ;;  %v15482_v63 = vrot.slane %v12498_v56, 7  ;;  %v5325_v41 = vsel %vm1541_vm0, %v5322_v5, %v14000_v2  ;;  %v15484_v49 = vld [vmem:[#allocation389_spill] sm:$0xff] }
 0x3f0   : > { %v1302_v32 = vsel %vm1203_vm2, %v15481_v54, %v15479_v55  ;;  %v12814_v13 = vmul.f32 %v11916_v19, %v12734_v44  ;;  %v4374_v9 = vadd.f32 %v15483_v6, %v4268_v39  ;;  %v12817_v35 = vadd.f32 %v4426_v33, %v4373_v29  ;;  %v12831_v39 = vld [vmem:[%s13634_s2 + $0x3] ss:$0 sm:$0xff]  ;;  %v15488_v54 = vld [vmem:[#allocation420_spill] sm:$0xff] }
 0x3f1   : > { %v5323_v15 = vsel %vm1541_vm0, %v15482_v63, %v5322_v5  ;;  %v1410_v22 = vadd.f32 %v1302_v32, %v1084_v53  ;;  %v5441_v57 = vadd.f32 %v5325_v41, %v5120_v27  ;;  %v14003_v56 = vrot.slane %v12791_v31, 7  ;;  %v15486_v5 = vld [vmem:[#allocation395_spill] sm:$0xff]  ;;  %v12842_v27 = vld [vmem:[%s13634_s2 + $0x6] ss:$0 sm:$0xff] }
 0x3f2   : > { %v5440_v14 = vadd.f32 %v5323_v15, %v5119_v23  ;;  %v2763_v47 = vrot.slane %v12795_v40, 6  ;;  %v15485_v12 = vrot.slane %v15484_v49, 1  ;;  %v15487_v53 = vrot.slane %v15486_v5, 1 }
 0x3f3   : > { %v12835_v29 = vmul.f32 %v12831_v39, %v12734_v44  ;;  %v5494_v23 = vmax.f32 %v3205_v28, %v5441_v57  ;;  %v12846_v55 = vmul.f32 %v12842_v27, %v12734_v44  ;;  %v12849_v32 = vadd.f32 %v15488_v54, %v1410_v22 }
 0x3f4   : > { %v3526_v46 = vsel %vm1203_vm2, %v15487_v53, %v15485_v12  ;;  %v5493_v33 = vmax.f32 %v3204_v25, %v5440_v14  ;;  %v3840_v63 = vrot.slane %v12814_v13, 1  ;;  %v1030_v25 = vmul.f32 %v12654_v42, %v12819_v24  ;;  %v15489_v14 = vld [vmem:[#allocation362_spill] sm:$0xff] }
 0x3f5   : > { %v12837_v59 = vadd.f32 %v3526_v46, %v3264_v52  ;;  %v1819_v28 = vmul.f32 %v12787_v26, %v12819_v24  ;;  %v12860_v15 = vadd.f32 %v12130_v36, %v5494_v23  ;;  %v12864_v41 = vmul.f32 %v11889_v37, %v12734_v44 }
 0x3f6   : > { %v12857_v52 = vadd.f32 %v12130_v36, %v5493_v33  ;;  %v3686_v22 = vmul.f32 %v11916_v19, %v12819_v24  ;;  %v1083_v57 = vadd.f32 %v1030_v25, %v15489_v14  ;;  %v2610_v53 = vmul.f32 %v11880_v21, %v12819_v24 }
 0x3f7   : > { %v1972_v12 = vrot.slane %v1819_v28, 7  ;;  %v14001_v33 = vmax.f32 %v12860_v15, 0.0  ;;  %v12877_v37 = vmul.f32 %v11968_v11, %v12734_v44  ;;  %v15490_v19 = vrot.slane %v15480_v10, 1  ;;  %v15492_v28 = vld [vmem:[#allocation385_spill] sm:$0xff] }
 0x3f8   : > { %v14002_v46 = vmax.f32 %v12857_v52, 0.0  ;;  %v15491_v54 = vrot.slane %v15439_v7, 1  ;;  %v2538_v14 = vadd.f32 %v15492_v28, %v2198_v51  ;;  %v3263_v21 = vmul.f32 %v12704_v34, %v12819_v24  ;;  %v15493_v51 = vld [vmem:[#allocation407_spill] sm:$0xff] }
 0x3f9   : > { %v3838_v2 = vrot.slane %v3686_v22, 1  ;;  %v12891_v23 = vrot.slane %v14001_v33, 7  ;;  %v1973_v44 = vsel %vm1541_vm0, %v1970_v20, %v1972_v12  ;;  %v4002_v7 = vmul.f32 %v12831_v39, %v12819_v24 }
 0x3fa   : > { %v1300_v25 = vsel %vm1203_vm2, %v15491_v54, %v15490_v19  ;;  %v5749_v6 = vrot.slane %v14002_v46, 7  ;;  %v2539_v10 = vadd.f32 %v15493_v51, %v12764_v4  ;;  %v1975_v22 = vsel %vm1541_vm0, %v1972_v12, %v14003_v56 }
 0x3fb   : > { %v1409_v19 = vadd.f32 %v1300_v25, %v1083_v57  ;;  %v2761_v54 = vrot.slane %v2610_v53, 6  ;;  %v15494_v33 = vrot.slane %v15486_v5, 1  ;;  %v15495_v4 = vrot.slane %v15446_v43, 1 }
 0x3fc   : > { %v5750_v28 = vsel %vm1541_vm0, %v12695_v38, %v5749_v6  ;;  %v5752_v50 = vsel %vm1541_vm0, %v5749_v6, %v12891_v23  ;;  %v15496_v25 = vmax.f32 %v12659_v58, 0.0  ;;  %v15497_v12 = vmax.f32 %v12662_v62, 0.0  ;;  %v15499_v58 = vld [vmem:[#allocation402_spill] sm:$0xff] }
 0x3fd   : > { %v3524_v57 = vsel %vm1203_vm2, %v15495_v4, %v15494_v33  ;;  %v2086_v46 = vadd.f32 %v1973_v44, %v12760_v60  ;;  %v15498_v38 = vrot.slane %v12631_v3, 1  ;;  %v4480_v56 = vadd.f32 %v12649_v1, %v4374_v9 }
 0x3fe   : > { %v5863_v51 = vmax.f32 %v15496_v25, %v5750_v28  ;;  %v5864_v53 = vmax.f32 %v15497_v12, %v5752_v50  ;;  %v2087_v5 = vadd.f32 %v1975_v22, %v12643_v48  ;;  %v3633_v20 = vadd.f32 %v3524_v57, %v3263_v21  ;;  %v965_v48 = vpop.permute.xlu1 %964  ;;  %v15502_v50 = vld [vmem:[#allocation399_spill] sm:$0xff] }
 0x3ff   : > { %v3839_v6 = vsel %vm1203_vm2, %v15498_v38, %v3838_v2  ;;  %v4155_v43 = vrot.slane %v4002_v7, 7  ;;  %v12928_v33 = vadd.f32 %v15499_v58, %v1409_v19  ;;  %v2762_v62 = vsel %vm2334_vm1, %v2759_v17, %v2761_v54  ;;  %v15501_v7 = vld [vmem:[#allocation374_spill] sm:$0xff] }
 0x400   : > { %5915 = vst.msk [vmem:[%s9078_s8 + $0x138] sm:$0xff] %vm5875_vm3, %v5863_v51  ;;  %5916 = vst.msk [vmem:[%s9078_s8 + $0x140] sm:$0xff] %vm5875_vm3, %v5864_v53  ;;  %v4533_v3 = vmul.f32 %v12842_v27, %v12819_v24  ;;  %v5175_v1 = vmul.f32 %v11968_v11, %v12819_v24  ;;  %v2764_v60 = vsel %vm2334_vm1, %v2761_v54, %v2763_v47  ;;  %v15500_v44 = vrot.slane %v12640_v0, 7  ;;  %v15506_v51 = vld [vmem:[#allocation387_spill] sm:$0xff]  ;;  %v12970_v58 = vld [vmem:[%s13634_s2 + $0x5] ss:$0 sm:$0xff] }
 0x401   : > { %v2877_v9 = vadd.f32 %v2762_v62, %v2538_v14  ;;  %v3949_v21 = vadd.f32 %v3839_v6, %v12645_v61  ;;  %v2200_v17 = vadd.f32 %v15501_v7, %v2086_v46  ;;  %v2878_v19 = vadd.f32 %v2764_v60, %v2539_v10  ;;  %v15507_v6 = vld [vmem:[#allocation410_spill] sm:$0xff] }
 0x402   : > { %v4156_v18 = vsel %vm1541_vm0, %v15500_v44, %v4155_v43  ;;  %v4684_v28 = vrot.slane %v4533_v3, 6  ;;  %v2201_v11 = vadd.f32 %v15502_v50, %v2087_v5  ;;  %v3841_v4 = vsel %vm1203_vm2, %v3838_v2, %v3840_v63  ;;  %v12977_v3 = vld [vmem:[%s13634_s2 + $0x7] ss:$0 sm:$0xff]  ;;  %v15511_v44 = vld [vmem:[#allocation416_spill] sm:$0xff]  ;;  %v960_v50 = vpop.permute.xlu0 %959 }
 0x403   : > { %v4269_v22 = vadd.f32 %v4156_v18, %v12767_v16  ;;  %v15503_v14 = vrot.slane %v12835_v29, 7  ;;  %v1033_v0 = vmul.f32 %v12654_v42, %v965_v48  ;;  %v15504_v54 = vrot.slane %v12671_v8, 6 }
 0x404   : > { %v15505_v10 = vrot.slane %v12846_v55, 6  ;;  %v5326_v57 = vrot.slane %v5175_v1, 7  ;;  %v12961_v25 = vmul.f32 %v12787_v26, %v965_v48  ;;  %v3206_v2 = vadd.f32 %v15506_v51, %v2877_v9  ;;  %v15509_v1 = vld [vmem:[#allocation394_spill] sm:$0xff]  ;;  %v15510_v9 = vld [vmem:[#allocation412_spill] sm:$0xff] }
 0x405   : > { %v4158_v61 = vsel %vm1541_vm0, %v4155_v43, %v15503_v14  ;;  %v4685_v46 = vsel %vm2334_vm1, %v15504_v54, %v4684_v28  ;;  %v3207_v5 = vadd.f32 %v15507_v6, %v2878_v19  ;;  %v15508_v43 = vld [vmem:[#allocation375_spill] sm:$0xff]  ;;  %v4428_v62 = vmul.f32 %v12970_v58, %v12819_v24 }
 0x406   : > { %v4687_v16 = vsel %vm2334_vm1, %v4684_v28, %v15505_v10  ;;  %v4270_v12 = vadd.f32 %v4158_v61, %v3949_v21  ;;  %v4800_v53 = vadd.f32 %v4685_v46, %v12817_v35  ;;  %v4375_v8 = vadd.f32 %v15508_v43, %v4269_v22  ;;  %v13025_v43 = vld [vmem:[%s13634_s2 + $0x8] ss:$0 sm:$0xff] }
 0x407   : > { %v4801_v38 = vadd.f32 %v4687_v16, %v4480_v56  ;;  %v12980_v35 = vmul.f32 %v12977_v3, %v965_v48  ;;  %v12982_v56 = vadd.f32 %v3841_v4, %v3633_v20  ;;  %v12987_v18 = vadd.f32 %v1033_v0, %v15511_v44  ;;  %v15514_v4 = vld [vmem:[#allocation400_spill] sm:$0xff] }
 0x408   : > { %v5121_v60 = vadd.f32 %v15509_v1, %v4800_v53  ;;  %v15512_v7 = vrot.slane %v12682_v45, 7  ;;  %v15513_v19 = vrot.slane %v12877_v37, 7  ;;  %v1978_v28 = vrot.slane %v12961_v25, 7  ;;  %v13003_v45 = vld [vmem:[%s13634_s2 + $0x2] ss:$0 sm:$0xff]  ;;  %v15515_v44 = vld [vmem:[#allocation408_spill] sm:$0xff] }
 0x409   : > { %v5122_v21 = vadd.f32 %v15510_v9, %v4801_v38  ;;  %v12997_v20 = vmul.f32 %v12704_v34, %v965_v48  ;;  %v4376_v14 = vadd.f32 %v15514_v4, %v4270_v12  ;;  %v13006_v0 = vmul.f32 %v13003_v45, %v965_v48 }
 0x40a   : > { %v5327_v24 = vsel %vm1541_vm0, %v15512_v7, %v5326_v57  ;;  %v5329_v22 = vsel %vm1541_vm0, %v5326_v57, %v15513_v19  ;;  %v13008_v46 = vadd.f32 %v4428_v62, %v4375_v8  ;;  %v2767_v10 = vrot.slane %v12980_v35, 6 }
 0x40b   : > { %v5442_v61 = vadd.f32 %v5327_v24, %v5121_v60  ;;  %v5443_v54 = vadd.f32 %v5329_v22, %v5122_v21  ;;  %v13012_v16 = vmul.f32 %v12831_v39, %v965_v48  ;;  %v13015_v57 = vmul.f32 %v12970_v58, %v965_v48 }
 0x40c   : > { %v1821_v53 = vmul.f32 %v12787_v26, %v960_v50  ;;  %v2612_v38 = vmul.f32 %v12977_v3, %v960_v50  ;;  %v13020_v6 = vmul.f32 %v12842_v27, %v965_v48  ;;  %v13028_v8 = vmul.f32 %v13025_v43, %v965_v48 }
 0x40d   : > { %v5495_v51 = vmax.f32 %v3206_v2, %v5442_v61  ;;  %v5496_v12 = vmax.f32 %v3207_v5, %v5443_v54  ;;  %v13031_v62 = vmul.f32 %v13003_v45, %v960_v50  ;;  %v4004_v2 = vmul.f32 %v12831_v39, %v960_v50 }
 0x40e   : > { %v1976_v9 = vrot.slane %v1821_v53, 7  ;;  %v2540_v7 = vadd.f32 %v15515_v44, %v2200_v17  ;;  %v1032_v48 = vmul.f32 %v12654_v42, %v960_v50  ;;  %v2765_v24 = vrot.slane %v2612_v38, 6 }
 0x40f   : > { %v13035_v5 = vadd.f32 %v12130_v36, %v5495_v51  ;;  %v13038_v1 = vadd.f32 %v12130_v36, %v5496_v12  ;;  %v15516_v4 = vrot.slane %v12791_v31, 7  ;;  %v4159_v36 = vrot.slane %v4004_v2, 7  ;;  %v15517_v12 = vld [vmem:[#allocation421_spill] sm:$0xff]  ;;  %v15518_v2 = vld [vmem:[#allocation415_spill] sm:$0xff] }
 0x410   : > { %v2541_v53 = vadd.f32 %v15517_v12, %v2201_v11  ;;  %v14012_v17 = vrot.slane %v13031_v62, 1  ;;  %v15519_v60 = vrot.slane %v15518_v2, 1  ;;  %v15520_v54 = vrot.slane %v15484_v49, 1  ;;  %v15521_v12 = vld [vmem:[#allocation383_spill] sm:$0xff] }
 0x411   : > { %v14005_v19 = vmax.f32 %v13035_v5, 0.0  ;;  %v14004_v22 = vmax.f32 %v13038_v1, 0.0  ;;  %v1977_v61 = vsel %vm1541_vm0, %v15516_v4, %v1976_v9  ;;  %v3265_v4 = vmul.f32 %v12704_v34, %v960_v50 }
 0x412   : > { %v2088_v31 = vadd.f32 %v1977_v61, %v12928_v33  ;;  %v3528_v51 = vsel %vm1203_vm2, %v15520_v54, %v15519_v60  ;;  %v4482_v11 = vadd.f32 %v12864_v41, %v4376_v14  ;;  %v13068_v21 = vadd.f32 %v1032_v48, %v15521_v12  ;;  %v13083_v60 = vpop.permute.xlu0 %969 }
 0x413   : > { %v5753_v38 = vrot.slane %v14005_v19, 7  ;;  %v13057_v44 = vrot.slane %v14004_v22, 7  ;;  %v1979_v22 = vsel %vm1541_vm0, %v1976_v9, %v1978_v28  ;;  %v2766_v49 = vsel %vm2334_vm1, %v2763_v47, %v2765_v24  ;;  %v15525_v47 = vld [vmem:[#allocation388_spill] sm:$0xff] }
 0x414   : > { %v15522_v41 = vrot.slane %v12835_v29, 7  ;;  %v15523_v48 = vmax.f32 %v12857_v52, 0.0  ;;  %v15524_v54 = vmax.f32 %v12860_v15, 0.0  ;;  %v3843_v40 = vsel %vm1203_vm2, %v3840_v63, %v14012_v17  ;;  %v13099_v52 = vpop.permute.xlu1 %974  ;;  %v15564_v17 = vld [vmem:[#allocation393_spill] sm:$0xff] }
 0x415   : > { %v5754_v33 = vsel %vm1541_vm0, %v12891_v23, %v5753_v38  ;;  %v5756_v61 = vsel %vm1541_vm0, %v5753_v38, %v13057_v44  ;;  %v2879_v23 = vadd.f32 %v2766_v49, %v2540_v7  ;;  %v2202_v38 = vadd.f32 %v15525_v47, %v2088_v31 }
 0x416   : > { %v4160_v14 = vsel %vm1541_vm0, %v15522_v41, %v4159_v36  ;;  %v5865_v9 = vmax.f32 %v15523_v48, %v5754_v33  ;;  %v5866_v12 = vmax.f32 %v15524_v54, %v5756_v61  ;;  %v13095_v29 = vadd.f32 %v3528_v51, %v3265_v4  ;;  %v15526_v61 = vld [vmem:[#allocation411_spill] sm:$0xff] }
 0x417   : > { %v4535_v41 = vmul.f32 %v12842_v27, %v960_v50  ;;  %v5177_v19 = vmul.f32 %v13025_v43, %v960_v50  ;;  %v2768_v13 = vsel %vm2334_vm1, %v2765_v24, %v2767_v10  ;;  %v4271_v63 = vadd.f32 %v4160_v14, %v12982_v56 }
 0x418   : > { %5917 = vst.msk [vmem:[%s9078_s8 + $0x148] sm:$0xff] %vm5875_vm3, %v5865_v9  ;;  %5918 = vst.msk [vmem:[%s9078_s8 + $0x150] sm:$0xff] %vm5875_vm3, %v5866_v12  ;;  %v4430_v15 = vmul.f32 %v12970_v58, %v960_v50  ;;  %v13112_v7 = vmul.f32 %v12977_v3, %v13083_v60  ;;  %v13115_v51 = vadd.f32 %v1979_v22, %v12849_v32  ;;  %v15527_v48 = vrot.slane %v13012_v16, 7  ;;  %v15530_v9 = vld [vmem:[#allocation422_spill] sm:$0xff]  ;;  %v15531_v12 = vld [vmem:[#allocation396_spill] sm:$0xff] }
 0x419   : > { %v2880_v31 = vadd.f32 %v2768_v13, %v2541_v53  ;;  %v3951_v4 = vadd.f32 %v3843_v40, %v12837_v59  ;;  %v4688_v33 = vrot.slane %v4535_v41, 6  ;;  %v3208_v49 = vadd.f32 %v15526_v61, %v2879_v23  ;;  %v15532_v41 = vld [vmem:[#allocation423_spill] sm:$0xff] }
 0x41a   : > { %v4162_v24 = vsel %vm1541_vm0, %v4159_v36, %v15527_v48  ;;  %v13124_v56 = vmul.f32 %v12787_v26, %v13099_v52  ;;  %v14006_v50 = vrot.slane %v13112_v7, 6  ;;  %v15528_v14 = vrot.slane %v12846_v55, 6 }
 0x41b   : > { %v15529_v22 = vrot.slane %v13020_v6, 6  ;;  %v5330_v53 = vrot.slane %v5177_v19, 7  ;;  %v2542_v54 = vadd.f32 %v15530_v9, %v2202_v38  ;;  %v4377_v23 = vadd.f32 %v15531_v12, %v4271_v63  ;;  %v15533_v38 = vld [vmem:[#allocation414_spill] sm:$0xff] }
 0x41c   : > { %v4689_v32 = vsel %vm2334_vm1, %v15528_v14, %v4688_v33  ;;  %v13138_v47 = vmul.f32 %v12842_v27, %v13083_v60  ;;  %v3209_v55 = vadd.f32 %v15532_v41, %v2880_v31  ;;  %v13141_v13 = vadd.f32 %v4162_v24, %v3951_v4  ;;  %v1425_v4 = vpop.permute.xlu1 %1424 }
 0x41d   : > { %v4691_v59 = vsel %vm2334_vm1, %v4688_v33, %v15529_v22  ;;  %v4802_v36 = vadd.f32 %v4689_v32, %v13008_v46  ;;  %v1823_v61 = vmul.f32 %v12787_v26, %v13083_v60  ;;  %v13147_v19 = vmul.f32 %v12831_v39, %v13083_v60  ;;  %v15534_v33 = vld [vmem:[#allocation7_spill] sm:$0xff] }
 0x41e   : > { %v4803_v40 = vadd.f32 %v4691_v59, %v4482_v11  ;;  %v2770_v11 = vsel %vm2334_vm1, %v2767_v10, %v14006_v50  ;;  %v13158_v31 = vmul.f32 %v13025_v43, %v13083_v60  ;;  %v15535_v48 = vrot.slane %v12877_v37, 7 }
 0x41f   : > { %v5123_v63 = vadd.f32 %v15533_v38, %v4802_v36  ;;  %v15536_v14 = vrot.slane %v13028_v8, 7  ;;  %v14010_v22 = vrot.slane %v13124_v56, 7  ;;  %v2881_v59 = vadd.f32 %v2770_v11, %v2542_v54  ;;  %v15542_v11 = vld [vmem:[#allocation398_spill] sm:$0xff] }
 0x420   : > { %v5124_v46 = vadd.f32 %v15534_v33, %v4803_v40  ;;  %v5331_v24 = vsel %vm1541_vm0, %v15535_v48, %v5330_v53  ;;  %v4483_v9 = vadd.f32 %v4430_v15, %v4377_v23  ;;  %v14007_v10 = vrot.slane %v13138_v47, 6  ;;  %v15537_v48 = vld [vmem:[#allocation413_spill] sm:$0xff] }
 0x421   : > { %v5333_v32 = vsel %vm1541_vm0, %v5330_v53, %v15536_v14  ;;  %v5444_v35 = vadd.f32 %v5331_v24, %v5123_v63  ;;  %v1980_v36 = vrot.slane %v1823_v61, 7  ;;  %v13170_v41 = vmul.f32 %v12831_v39, %v1425_v4  ;;  %v15540_v63 = vld [vmem:[#allocation424_spill] sm:$0xff] }
 0x422   : > { %v5445_v12 = vadd.f32 %v5333_v32, %v5124_v46  ;;  %v13173_v37 = vmul.f32 %v12842_v27, %v1425_v4  ;;  %v14011_v53 = vrot.slane %v13158_v31, 7  ;;  %v15538_v54 = vrot.slane %v15537_v48, 1 }
 0x423   : > { %v5497_v38 = vmax.f32 %v3208_v49, %v5444_v35  ;;  %v15539_v15 = vrot.slane %v15478_v30, 1  ;;  %v13182_v61 = vadd.f32 %v15540_v63, %v2881_v59  ;;  %v13185_v46 = vmul.f32 %v12970_v58, %v1425_v4  ;;  %v13196_v30 = vld [vmem:[%s13635_s3] ss:$0 sm:$0xff] }
 0x424   : > { %v5498_v33 = vmax.f32 %v3209_v55, %v5445_v12  ;;  %v15543_v24 = vrot.slane %v15542_v11, 1  ;;  %v15544_v14 = vmov %v15538_v54  ;;  %15545 = vst [vmem:[#allocation29_spill] sm:$0xff] %v13196_v30  ;;  %v15548_v35 = vrot.slane %v13020_v6, 6 }
 0x425   : > { %v1304_v23 = vsel %vm1203_vm2, %v15539_v15, %v15538_v54  ;;  %15541 = vst [vmem:[#allocation38_spill] sm:$0xff] %v13182_v61  ;;  %v13199_v32 = vadd.f32 %v13196_v30, %v5497_v38  ;;  %v15551_v38 = vld [vmem:[#allocation406_spill] sm:$0xff]  ;;  %v15553_v6 = vrot.slane %v13028_v8, 7  ;;  %v15558_v54 = vld [vmem:[#allocation425_spill] sm:$0xff]  ;;  %v13248_v25 = vmul.f32 %v12977_v3, %v1425_v4 }
 0x426   : > { %v1306_v49 = vsel %vm1203_vm2, %v15544_v14, %v15543_v24  ;;  %v1411_v55 = vadd.f32 %v1304_v23, %v13068_v21  ;;  %v13202_v59 = vadd.f32 %v13196_v30, %v5498_v33  ;;  %v4693_v12 = vsel %vm2334_vm1, %v15548_v35, %v14007_v10  ;;  %v15549_v23 = vld [vmem:[#allocation403_spill] sm:$0xff] }
 0x427   : > { %15546 = vst [vmem:[#allocation56_spill] sm:$0xff] %v13199_v32  ;;  %v1412_v48 = vadd.f32 %v1306_v49, %v12987_v18  ;;  %v4804_v21 = vadd.f32 %v4693_v12, %v4483_v9  ;;  %v15550_v63 = vrot.slane %v15549_v23, 7  ;;  %v15552_v24 = vrot.slane %v15551_v38, 7  ;;  %v15555_v35 = vld [vmem:[#allocation27_spill] sm:$0xff] }
 0x428   : > { %15547 = vst [vmem:[#allocation30_spill] sm:$0xff] %v13202_v59  ;;  %v14009_v14 = vmax.f32 %v13199_v32, 0.0  ;;  %v14008_v50 = vmax.f32 %v13202_v59, 0.0  ;;  %v5335_v18 = vsel %vm1541_vm0, %v15553_v6, %v14011_v53  ;;  %v13225_v49 = vmul.f32 %v13025_v43, %v1425_v4  ;;  %v15561_v6 = vld [vmem:[#allocation32_spill] sm:$0xff]  ;;  %v13275_v59 = vpop.permute.xlu1 %1764 }
 0x429   : > { %v1642_v33 = vsel %vm1541_vm0, %v15552_v24, %v15550_v63  ;;  %v15556_v12 = vrot.slane %v15555_v35, 7  ;;  %v15557_v38 = vmov %v15550_v63  ;;  %v1981_v24 = vsel %vm1541_vm0, %v1978_v28, %v1980_v36 }
 0x42a   : > { %v1751_v9 = vadd.f32 %v1642_v33, %v1411_v55  ;;  %15554 = vst [vmem:[#allocation43_spill] sm:$0xff] %v13225_v49  ;;  %v2275_v10 = vmul.f32 %v12842_v27, %v15558_v54  ;;  %v5757_v8 = vrot.slane %v14009_v14, 7  ;;  %v13241_v55 = vrot.slane %v14008_v50, 7  ;;  %v1420_v50 = vpop.permute.xlu0 %1419 }
 0x42b   : > { %v1644_v63 = vsel %vm1541_vm0, %v15557_v38, %v15556_v12  ;;  %v13244_v33 = vmul.f32 %v12787_v26, %v1425_v4  ;;  %v5125_v12 = vadd.f32 %v15561_v6, %v4804_v21  ;;  %v1983_v28 = vsel %vm1541_vm0, %v1980_v36, %v14010_v22 }
 0x42c   : > { %15559 = vst [vmem:[#allocation6_spill] sm:$0xff] %v13241_v55  ;;  %v1752_v23 = vadd.f32 %v1644_v63, %v1412_v48  ;;  %v2944_v38 = vmul.f32 %v13025_v43, %v15558_v54  ;;  %v5758_v14 = vsel %vm1541_vm0, %v13057_v44, %v5757_v8  ;;  %v5760_v48 = vsel %vm1541_vm0, %v5757_v8, %v13241_v55  ;;  %v15565_v8 = vld [vmem:[#allocation417_spill] sm:$0xff] }
 0x42d   : > { %15560 = vst [vmem:[#allocation13_spill] sm:$0xff] %v13244_v33  ;;  %v2090_v21 = vadd.f32 %v1981_v24, %v1751_v9  ;;  %v13261_v4 = vmul.f32 %v12977_v3, %v15558_v54  ;;  %v15562_v63 = vmax.f32 %v13035_v5, 0.0  ;;  %v15563_v6 = vmax.f32 %v13038_v1, 0.0 }
 0x42e   : > { %v2432_v15 = vrot.slane %v2275_v10, 6  ;;  %v2091_v40 = vadd.f32 %v1983_v28, %v1752_v23  ;;  %v2151_v44 = vmul.f32 %v12970_v58, %v15564_v17  ;;  %v2203_v9 = vadd.f32 %v15565_v8, %v13115_v51 }
 0x42f   : > { %v5867_v36 = vmax.f32 %v15562_v63, %v5758_v14  ;;  %v5868_v22 = vmax.f32 %v15563_v6, %v5760_v48  ;;  %v13273_v24 = vmul.f32 %v12831_v39, %v1420_v50  ;;  %v13281_v5 = vadd.f32 %v5335_v18, %v5125_v12  ;;  %v15567_v63 = vld [vmem:[#allocation404_spill] sm:$0xff] }
 0x430   : > { %v3100_v10 = vrot.slane %v2944_v38, 7  ;;  %v2276_v14 = vmul.f32 %v12842_v27, %v1420_v50  ;;  %v2152_v23 = vmul.f32 %v12970_v58, %v15558_v54  ;;  %v2204_v51 = vadd.f32 %v2151_v44, %v2090_v21 }
 0x431   : > { %5919 = vst.msk [vmem:[%s9078_s8 + $0x158] sm:$0xff] %vm5875_vm3, %v5867_v36  ;;  %5920 = vst.msk [vmem:[%s9078_s8 + $0x160] sm:$0xff] %vm5875_vm3, %v5868_v22  ;;  %v5015_v28 = vrot.slane %v13261_v4, 7  ;;  %v2945_v48 = vmul.f32 %v13025_v43, %v1420_v50  ;;  %v15568_v6 = vrot.slane %v15567_v63, 6  ;;  %v4860_v22 = vmul.f32 %v12977_v3, %v1420_v50 }
 0x432   : > { %15566 = vst [vmem:[#allocation41_spill] sm:$0xff] %v13281_v5  ;;  %v13295_v18 = vmul.f32 %v12787_v26, %v13275_v59  ;;  %v15569_v12 = vrot.slane %v13006_v0, 1  ;;  %v15570_v38 = vrot.slane %v13031_v62, 1  ;;  %v2205_v44 = vadd.f32 %v2152_v23, %v2091_v40 }
 0x433   : > { %v2433_v36 = vsel %vm2334_vm1, %v15568_v6, %v2432_v15  ;;  %v2615_v63 = vmul.f32 %v12977_v3, %v13099_v52  ;;  %v15571_v6 = vld [vmem:[#allocation405_spill] sm:$0xff]  ;;  %v13309_v32 = vmul.f32 %v12970_v58, %v1420_v50  ;;  %v2434_v55 = vrot.slane %v2276_v14, 6 }
 0x434   : > { %v3845_v21 = vsel %vm1203_vm2, %v15570_v38, %v15569_v12  ;;  %v2543_v4 = vadd.f32 %v2433_v36, %v2203_v9  ;;  %v15572_v1 = vrot.slane %v15571_v6, 7  ;;  %v13313_v62 = vmul.f32 %v12831_v39, %v13275_v59  ;;  %v15573_v12 = vld [vmem:[#allocation409_spill] sm:$0xff]  ;;  %v13322_v6 = vpop.permute.xlu0 %1759 }
 0x435   : > { %v15574_v40 = vrot.slane %v15573_v12, 7  ;;  %v3102_v23 = vrot.slane %v2945_v48, 7  ;;  %v13319_v36 = vmul.f32 %v12787_v26, %v1420_v50  ;;  %v3952_v38 = vadd.f32 %v3845_v21, %v13095_v29  ;;  %v15578_v12 = vld [vmem:[#allocation418_spill] sm:$0xff] }
 0x436   : > { %v3101_v53 = vsel %vm1541_vm0, %v15572_v1, %v3100_v10  ;;  %v5017_v1 = vrot.slane %v4860_v22, 7  ;;  %v15576_v14 = vrot.slane %v13147_v19, 7  ;;  %v15577_v33 = vrot.slane %v13012_v16, 7 }
 0x437   : > { %v5016_v9 = vsel %vm1541_vm0, %v15574_v40, %v5015_v28  ;;  %15575 = vst [vmem:[#allocation14_spill] sm:$0xff] %v13319_v36  ;;  %v4378_v40 = vadd.f32 %v15578_v12, %v13141_v13  ;;  %v2771_v48 = vrot.slane %v2615_v63, 6  ;;  %v4326_v50 = vmul.f32 %v12787_v26, %v15564_v17 }
 0x438   : > { %v4164_v30 = vsel %vm1541_vm0, %v15577_v33, %v15576_v14  ;;  %v4538_v29 = vmul.f32 %v12842_v27, %v13099_v52  ;;  %v2435_v22 = vsel %vm2334_vm1, %v2432_v15, %v2434_v55  ;;  %v13341_v16 = vmul.f32 %v12977_v3, %v13322_v6 }
 0x439   : > { %v4273_v61 = vadd.f32 %v4164_v30, %v3952_v38  ;;  %v4484_v8 = vadd.f32 %v13015_v57, %v4378_v40  ;;  %v15579_v13 = vrot.slane %v13173_v37, 6  ;;  %v5180_v38 = vmul.f32 %v13025_v43, %v13099_v52 }
 0x43a   : > { %v4694_v63 = vrot.slane %v4538_v29, 6  ;;  %v3103_v14 = vsel %vm1541_vm0, %v3100_v10, %v3102_v23  ;;  %v15580_v15 = vrot.slane %v13225_v49, 7  ;;  %v14020_v57 = vrot.slane %v13341_v16, 6 }
 0x43b   : > { %v2437_v30 = vsel %vm2334_vm1, %v2434_v55, %v15579_v13  ;;  %v4379_v33 = vadd.f32 %v4326_v50, %v4273_v61  ;;  %v13357_v40 = vmul.f32 %v12842_v27, %v13322_v6  ;;  %v15582_v55 = vrot.slane %v13112_v7, 6 }
 0x43c   : > { %v13352_v12 = vsel %vm1541_vm0, %v3102_v23, %v15580_v15  ;;  %v4432_v50 = vmul.f32 %v12970_v58, %v13083_v60  ;;  %v15583_v10 = vrot.slane %v13138_v47, 6  ;;  %v1825_v23 = vmul.f32 %v12787_v26, %v13322_v6  ;;  %v2218_v47 = vpop.permute.xlu1 %2217 }
 0x43d   : > { %15581 = vst [vmem:[#allocation42_spill] sm:$0xff] %v13352_v12  ;;  %v2772_v61 = vsel %vm2334_vm1, %v15582_v55, %v2771_v48  ;;  %v2774_v21 = vsel %vm2334_vm1, %v2771_v48, %v14020_v57  ;;  %v14019_v7 = vrot.slane %v13357_v40, 6  ;;  %v2544_v49 = vadd.f32 %v2435_v22, %v2204_v51 }
 0x43e   : > { %v4695_v29 = vsel %vm2334_vm1, %v15583_v10, %v4694_v63  ;;  %v2882_v13 = vadd.f32 %v2772_v61, %v2543_v4  ;;  %v4485_v55 = vadd.f32 %v4432_v50, %v4379_v33  ;;  %v5336_v36 = vrot.slane %v5180_v38, 7 }
 0x43f   : > { %v4805_v15 = vadd.f32 %v4695_v29, %v4484_v8  ;;  %v13375_v12 = vmul.f32 %v13025_v43, %v13322_v6  ;;  %v13377_v10 = vadd.f32 %v2437_v30, %v2205_v44  ;;  %v5018_v5 = vsel %vm1541_vm0, %v5015_v28, %v5017_v1 }
 0x440   : > { %v15584_v4 = vrot.slane %v13248_v25, 7  ;;  %v4697_v51 = vsel %vm2334_vm1, %v4694_v63, %v14019_v7  ;;  %v2883_v22 = vadd.f32 %v2774_v21, %v2544_v49  ;;  %v13390_v33 = vmul.f32 %v12831_v39, %v13322_v6 }
 0x441   : > { %v5126_v48 = vadd.f32 %v5016_v9, %v4805_v15  ;;  %v4806_v38 = vadd.f32 %v4697_v51, %v4485_v55  ;;  %v13392_v44 = vadd.f32 %v3101_v53, %v2882_v13  ;;  %v1984_v30 = vrot.slane %v1825_v23, 7  ;;  %v2213_v23 = vpop.permute.xlu0 %2212 }
 0x442   : > { %v13383_v8 = vsel %vm1541_vm0, %v5017_v1, %v15584_v4  ;;  %v5338_v28 = vrot.slane %v13375_v12, 7  ;;  %v2279_v61 = vmul.f32 %v12842_v27, %v2218_v47  ;;  %v15585_v1 = vrot.slane %v13158_v31, 7  ;;  %v2558_v4 = vpop.permute.xlu1 %2557  ;;  %v15611_v12 = vld [vmem:[#allocation30_spill] sm:$0xff] }
 0x443   : > { %v5127_v29 = vadd.f32 %v5018_v5, %v4806_v38  ;;  %v1034_v49 = vmul.f32 %v12654_v42, %v13083_v60  ;;  %v1035_v9 = vmul.f32 %v12654_v42, %v13099_v52  ;;  %v13404_v21 = vmul.f32 %v13025_v43, %v2218_v47 }
 0x444   : > { %v5337_v50 = vsel %vm1541_vm0, %v15585_v1, %v5336_v36  ;;  %v13407_v53 = vmul.f32 %v12977_v3, %v2218_v47  ;;  %v656_v63 = vmul.f32 %v12704_v34, %v15558_v54  ;;  %v1149_v31 = vmul.f32 %v13003_v45, %v15558_v54 }
 0x445   : > { %v13413_v5 = vadd.f32 %v5337_v50, %v5126_v48  ;;  %v13415_v13 = vadd.f32 %v3103_v14, %v2883_v22  ;;  %v655_v55 = vmul.f32 %v12704_v34, %v15564_v17  ;;  %v5339_v47 = vsel %vm1541_vm0, %v5336_v36, %v5338_v28 }
 0x446   : > { %v2440_v51 = vrot.slane %v2279_v61, 6  ;;  %v1088_v38 = vadd.f32 %v1035_v9, %v656_v63  ;;  %v1307_v1 = vrot.slane %v1149_v31, 1  ;;  %v13423_v7 = vadd.f32 %v5339_v47, %v5127_v29 }
 0x447   : > { %v1087_v57 = vadd.f32 %v1034_v49, %v655_v55  ;;  %v2278_v48 = vmul.f32 %v12842_v27, %v2213_v23  ;;  %v13427_v14 = vmul.f32 %v13025_v43, %v2213_v23  ;;  %v13432_v15 = vmul.f32 %v12977_v3, %v2213_v23 }
 0x448   : > { %v13435_v36 = vmul.f32 %v12977_v3, %v2558_v4  ;;  %v5500_v61 = vmax.f32 %v13392_v44, %v13413_v5  ;;  %v15586_v29 = vrot.slane %v13273_v24, 7  ;;  %v15587_v49 = vrot.slane %v15555_v35, 7 }
 0x449   : > { %v15588_v63 = vrot.slane %v13170_v41, 7  ;;  %v13450_v23 = vmul.f32 %v12842_v27, %v2558_v4  ;;  %v15590_v47 = vrot.slane %v15542_v11, 1  ;;  %v1414_v44 = vadd.f32 %v1307_v1, %v1088_v38 }
 0x44a   : > { %v1646_v9 = vsel %vm1541_vm0, %v15587_v49, %v15586_v29  ;;  %v15589_v31 = vmov %v15586_v29  ;;  %v15591_v5 = vrot.slane %v13124_v56, 7  ;;  %v15592_v29 = vrot.slane %v13295_v18, 7 }
 0x44b   : > { %v1648_v55 = vsel %vm1541_vm0, %v15589_v31, %v15588_v63  ;;  %v1308_v22 = vsel %vm1203_vm2, %v15590_v47, %v1307_v1  ;;  %v5501_v24 = vmax.f32 %v13415_v13, %v13423_v7  ;;  %v2438_v63 = vrot.slane %v2278_v48, 6 }
 0x44c   : > { %v1985_v35 = vsel %vm1541_vm0, %v15591_v5, %v1984_v30  ;;  %v1987_v41 = vsel %vm1541_vm0, %v1984_v30, %v15592_v29  ;;  %v1413_v49 = vadd.f32 %v1308_v22, %v1087_v57  ;;  %v3106_v31 = vrot.slane %v13427_v14, 7 }
 0x44d   : > { %v1754_v50 = vadd.f32 %v1648_v55, %v1414_v44  ;;  %v5021_v11 = vrot.slane %v13432_v15, 7  ;;  %v2779_v38 = vrot.slane %v13435_v36, 6  ;;  %v13468_v56 = vmul.f32 %v12977_v3, %v13275_v59 }
 0x44e   : > { %v1753_v1 = vadd.f32 %v1646_v9, %v1413_v49  ;;  %v4702_v18 = vrot.slane %v13450_v23, 6  ;;  %v3373_v30 = vmul.f32 %v12654_v42, %v15564_v17  ;;  %v3374_v57 = vmul.f32 %v12654_v42, %v15558_v54 }
 0x44f   : > { %v2093_v7 = vadd.f32 %v1987_v41, %v1754_v50  ;;  %v2775_v13 = vrot.slane %v13468_v56, 6  ;;  %v3268_v48 = vmul.f32 %v12704_v34, %v13099_v52  ;;  %v3690_v22 = vmul.f32 %v13003_v45, %v13083_v60 }
 0x450   : > { %v3267_v9 = vmul.f32 %v12704_v34, %v13083_v60  ;;  %v3529_v55 = vrot.slane %v3373_v30, 1  ;;  %v3531_v47 = vrot.slane %v3374_v57, 1  ;;  %v3691_v17 = vmul.f32 %v13003_v45, %v13099_v52 }
 0x451   : > { %v2092_v44 = vadd.f32 %v1985_v35, %v1753_v1  ;;  %v15593_v42 = vrot.slane %v13173_v37, 6  ;;  %v3846_v5 = vrot.slane %v3690_v22, 1  ;;  %v4007_v29 = vmul.f32 %v12831_v39, %v13099_v52 }
 0x452   : > { %v2441_v41 = vsel %vm2334_vm1, %v2438_v63, %v2440_v51  ;;  %v13493_v49 = vmul.f32 %v13025_v43, %v2558_v4  ;;  %v15594_v34 = vrot.slane %v13341_v16, 6  ;;  %v15595_v60 = vrot.slane %v15518_v2, 1 }
 0x453   : > { %v13487_v50 = vsel %vm2334_vm1, %v15593_v42, %v2438_v63  ;;  %v3532_v35 = vsel %vm1203_vm2, %v3529_v55, %v3531_v47  ;;  %v3638_v39 = vadd.f32 %v3531_v47, %v3268_v48  ;;  %v15596_v51 = vrot.slane %v13006_v0, 1 }
 0x454   : > { %v2776_v45 = vsel %vm2334_vm1, %v15594_v34, %v2775_v13  ;;  %v3530_v37 = vsel %vm1203_vm2, %v15595_v60, %v3529_v55  ;;  %v2207_v63 = vadd.f32 %v13185_v46, %v2093_v7  ;;  %v3637_v30 = vadd.f32 %v3532_v35, %v3267_v9 }
 0x455   : > { %v3636_v1 = vadd.f32 %v3530_v37, %v12997_v20  ;;  %v3847_v4 = vsel %vm1203_vm2, %v15596_v51, %v3846_v5  ;;  %v3848_v57 = vrot.slane %v3691_v17, 1  ;;  %v4165_v16 = vrot.slane %v4007_v29, 7  ;;  %v15602_v29 = vld [vmem:[#allocation38_spill] sm:$0xff] }
 0x456   : > { %v2206_v22 = vadd.f32 %v13309_v32, %v2092_v44  ;;  %v2884_v2 = vadd.f32 %v2776_v45, %v13377_v10  ;;  %v15597_v34 = vrot.slane %v13313_v62, 7  ;;  %v15598_v55 = vrot.slane %v13390_v33, 7 }
 0x457   : > { %v3953_v42 = vadd.f32 %v3847_v4, %v3636_v1  ;;  %v3849_v0 = vsel %vm1203_vm2, %v3846_v5, %v3848_v57  ;;  %v15599_v48 = vrot.slane %v13147_v19, 7  ;;  %v4327_v7 = vmul.f32 %v12787_v26, %v15558_v54  ;;  %v15601_v5 = vld [vmem:[#allocation41_spill] sm:$0xff] }
 0x458   : > { %v4170_v20 = vsel %vm1541_vm0, %v15598_v55, %v15597_v34  ;;  %v4433_v32 = vmul.f32 %v12970_v58, %v13099_v52  ;;  %v3955_v10 = vadd.f32 %v3848_v57, %v3638_v39  ;;  %v15600_v9 = vmov %v15598_v55  ;;  %v15603_v54 = vld [vmem:[#allocation29_spill] sm:$0xff]  ;;  %v15605_v34 = vld [vmem:[#allocation42_spill] sm:$0xff] }
 0x459   : > { %v4166_v46 = vsel %vm1541_vm0, %v15599_v48, %v4165_v16  ;;  %v4168_v62 = vsel %vm1541_vm0, %v4165_v16, %v15600_v9  ;;  %v4540_v17 = vmul.f32 %v12842_v27, %v13275_v59  ;;  %v3954_v44 = vadd.f32 %v3849_v0, %v3637_v30 }
 0x45a   : > { %v4274_v47 = vadd.f32 %v4166_v46, %v3953_v42  ;;  %v13531_v19 = vmul.f32 %v13025_v43, %v13275_v59  ;;  %v5499_v26 = vmax.f32 %v15602_v29, %v15601_v5  ;;  %v13536_v45 = vadd.f32 %v15603_v54, %v5500_v61  ;;  %v2553_v42 = vpop.permute.xlu0 %2552  ;;  %v15609_v5 = vld [vmem:[#allocation56_spill] sm:$0xff] }
 0x45b   : > { %v4276_v52 = vadd.f32 %v4170_v20, %v3955_v10  ;;  %v4698_v33 = vrot.slane %v4540_v17, 6  ;;  %v13539_v37 = vadd.f32 %v15603_v54, %v5501_v24  ;;  %v2547_v35 = vadd.f32 %v2441_v41, %v2207_v63  ;;  %v15606_v20 = vld [vmem:[#allocation13_spill] sm:$0xff] }
 0x45c   : > { %v4380_v60 = vadd.f32 %v4327_v7, %v4274_v47  ;;  %v4275_v1 = vadd.f32 %v4168_v62, %v3954_v44  ;;  %v5559_v39 = vadd.f32 %v15603_v54, %v5499_v26  ;;  %v5613_v51 = vmax.f32 %v13536_v45, 0.0  ;;  %v15607_v7 = vld [vmem:[#allocation14_spill] sm:$0xff] }
 0x45d   : > { %v15604_v30 = vrot.slane %v13357_v40, 6  ;;  %v5340_v61 = vrot.slane %v13531_v19, 7  ;;  %v5614_v16 = vmax.f32 %v13539_v37, 0.0  ;;  %v3213_v55 = vadd.f32 %v15605_v34, %v2884_v2  ;;  %v15608_v47 = vld [vmem:[#allocation6_spill] sm:$0xff] }
 0x45e   : > { %v4486_v4 = vadd.f32 %v4433_v32, %v4380_v60  ;;  %v4434_v24 = vmul.f32 %v12970_v58, %v13322_v6  ;;  %v5612_v41 = vmax.f32 %v5559_v39, 0.0  ;;  %v5763_v63 = vrot.slane %v5613_v51, 7 }
 0x45f   : > { %v4699_v57 = vsel %vm2334_vm1, %v15604_v30, %v4698_v33  ;;  %v4382_v0 = vadd.f32 %v15606_v20, %v4276_v52  ;;  %v4435_v40 = vmul.f32 %v12970_v58, %v13275_v59  ;;  %v5765_v46 = vrot.slane %v5614_v16, 7 }
 0x460   : > { %v4807_v48 = vadd.f32 %v4699_v57, %v4486_v4  ;;  %v4381_v32 = vadd.f32 %v15607_v7, %v4275_v1  ;;  %v5761_v10 = vrot.slane %v5612_v41, 7  ;;  %v2618_v2 = vmul.f32 %v12977_v3, %v2553_v42 }
 0x461   : > { %v4541_v6 = vmul.f32 %v12842_v27, %v2553_v42  ;;  %v5341_v62 = vsel %vm1541_vm0, %v5338_v28, %v5340_v61  ;;  %v5766_v58 = vsel %vm1541_vm0, %v5763_v63, %v5765_v46  ;;  %v5183_v59 = vmul.f32 %v13025_v43, %v2553_v42 }
 0x462   : > { %v5128_v9 = vadd.f32 %v13383_v8, %v4807_v48  ;;  %v5762_v17 = vsel %vm1541_vm0, %v15608_v47, %v5761_v10  ;;  %v5764_v3 = vsel %vm1541_vm0, %v5761_v10, %v5763_v63  ;;  %v5871_v44 = vmax.f32 %v5612_v41, %v5766_v58 }
 0x463   : > { %v2777_v19 = vrot.slane %v2618_v2, 6  ;;  %v15610_v8 = vmax.f32 %v15609_v5, 0.0  ;;  %v15612_v26 = vmax.f32 %v15611_v12, 0.0  ;;  %v4700_v52 = vrot.slane %v4541_v6, 6 }
 0x464   : > { %v5449_v27 = vadd.f32 %v5341_v62, %v5128_v9  ;;  %v2546_v60 = vadd.f32 %v13487_v50, %v2206_v22  ;;  %v4487_v43 = vadd.f32 %v4434_v24, %v4381_v32  ;;  %5923 = vst.msk [vmem:[%s9078_s8 + $0x178] sm:$0xff] %vm5875_vm3, %v5871_v44  ;;  %v4488_v4 = vadd.f32 %v4435_v40, %v4382_v0 }
 0x465   : > { %v5869_v29 = vmax.f32 %v15610_v8, %v5762_v17  ;;  %v5870_v28 = vmax.f32 %v15612_v26, %v5764_v3  ;;  %v2778_v1 = vsel %vm2334_vm1, %v2775_v13, %v2777_v19  ;;  %v2780_v39 = vsel %vm2334_vm1, %v2777_v19, %v2779_v38 }
 0x466   : > { %v5502_v30 = vmax.f32 %v3213_v55, %v5449_v27  ;;  %v4701_v57 = vsel %vm2334_vm1, %v4698_v33, %v4700_v52  ;;  %v5342_v50 = vrot.slane %v5183_v59, 7  ;;  %v5344_v22 = vrot.slane %v13493_v49, 7 }
 0x467   : > { %5921 = vst.msk [vmem:[%s9078_s8 + $0x168] sm:$0xff] %vm5875_vm3, %v5869_v29  ;;  %5922 = vst.msk [vmem:[%s9078_s8 + $0x170] sm:$0xff] %vm5875_vm3, %v5870_v28  ;;  %v2885_v42 = vadd.f32 %v2778_v1, %v2546_v60  ;;  %v4703_v56 = vsel %vm2334_vm1, %v4700_v52, %v4702_v18  ;;  %v4808_v13 = vadd.f32 %v4701_v57, %v4487_v43  ;;  %v15613_v36 = vrot.slane %v13248_v25, 7  ;;  %v15615_v18 = vld [vmem:[#allocation43_spill] sm:$0xff] }
 0x468   : > { %v5562_v34 = vadd.f32 %v15603_v54, %v5502_v30  ;;  %v2886_v55 = vadd.f32 %v2780_v39, %v2547_v35  ;;  %v4809_v24 = vadd.f32 %v4703_v56, %v4488_v4  ;;  %v15614_v33 = vrot.slane %v13407_v53, 7 }
 0x469   : > { %v5022_v38 = vsel %vm1541_vm0, %v15613_v36, %v5021_v11  ;;  %v15616_v41 = vrot.slane %v15615_v18, 7  ;;  %v5343_v0 = vsel %vm1541_vm0, %v5340_v61, %v5342_v50  ;;  %v15617_v35 = vrot.slane %v13404_v21, 7 }
 0x46a   : > { %v5024_v49 = vsel %vm1541_vm0, %v5021_v11, %v15614_v33  ;;  %v5129_v23 = vadd.f32 %v5022_v38, %v4808_v13  ;;  %v5615_v25 = vmax.f32 %v5562_v34, 0.0  ;;  %v5345_v11 = vsel %vm1541_vm0, %v5342_v50, %v5344_v22 }
 0x46b   : > { %v3107_v63 = vsel %vm1541_vm0, %v15616_v41, %v3106_v31  ;;  %v5130_v20 = vadd.f32 %v5024_v49, %v4809_v24  ;;  %v3109_v53 = vsel %vm1541_vm0, %v3106_v31, %v15617_v35 }
 0x46c   : > { %v3214_v15 = vadd.f32 %v3107_v63, %v2885_v42  ;;  %v5450_v40 = vadd.f32 %v5343_v0, %v5129_v23  ;;  %v5767_v48 = vrot.slane %v5615_v25, 7  ;;  %v3215_v7 = vadd.f32 %v3109_v53, %v2886_v55 }
 0x46d   : > { %v5451_v32 = vadd.f32 %v5345_v11, %v5130_v20 }
 0x46e   : > { %v5503_v10 = vmax.f32 %v3214_v15, %v5450_v40  ;;  %v5768_v2 = vsel %vm1541_vm0, %v5765_v46, %v5767_v48 }
 0x46f   : > { %v5504_v6 = vmax.f32 %v3215_v7, %v5451_v32  ;;  %v5872_v21 = vmax.f32 %v5613_v51, %v5768_v2 }
 0x470   : > { %v5563_v14 = vadd.f32 %v15603_v54, %v5503_v10 }
 0x471   : > { %v5564_v31 = vadd.f32 %v15603_v54, %v5504_v6  ;;  %5924 = vst.msk [vmem:[%s9078_s8 + $0x180] sm:$0xff] %vm5875_vm3, %v5872_v21 }
 0x472   : > { %v5616_v61 = vmax.f32 %v5563_v14, 0.0 }
 0x473   : > { %v5617_v9 = vmax.f32 %v5564_v31, 0.0 }
 0x474   : > { %v5769_v62 = vrot.slane %v5616_v61, 7 }
 0x475   : > { %v5771_v58 = vrot.slane %v5617_v9, 7 }
 0x476   : > { %v5770_v59 = vsel %vm1541_vm0, %v5767_v48, %v5769_v62 }
 0x477   : > { %v5772_v46 = vsel %vm1541_vm0, %v5769_v62, %v5771_v58  ;;  %v5873_v47 = vmax.f32 %v5614_v16, %v5770_v59 }
 0x478   : > { %v5874_v45 = vmax.f32 %v5615_v25, %v5772_v46 }
 0x479   : > { %5925 = vst.msk [vmem:[%s9078_s8 + $0x188] sm:$0xff] %vm5875_vm3, %v5873_v47 }
 0x47a   : > { %5927 = vst.msk [vmem:[%s9078_s8 + $0x190] sm:$0x1f] %vm5926_vm4, %v5874_v45 }
 0x47b PF: > { %s14_s15 = sadd.s32 1, %s6100_s15  }
 0x47c   : > { %p11_p4 = scmp.ge.s32.totalorder %s14_s15, 4  }
 0x47e   :  { %13 = sbr.rel (!%p11_p4) target bundleno = 1 (0x1), region = 77 }

</bundles_post_ra>
